<compile_context>
chip_gen: v6e
topology: v6e:2x2x1
jax: 0.10.0
libtpu: 0.0.40
codegen_flags: <defaults>
</compile_context>

<pallas_src>
import math

import jax
import jax.numpy as jnp
import numpy as np
from jax.experimental import pallas as pl
from jax.experimental.pallas import tpu as pltpu


# ----------------------------------------------------------------------------------
# helpers
# ----------------------------------------------------------------------------------
def _matT(a, b):
    """a @ b.T without an explicit transpose: a (m,k), b (n,k) -> (m,n) f32 accum."""
    return jax.lax.dot_general(
        a, b, (((1,), (1,)), ((), ())), preferred_element_type=jnp.float32
    )


def _tree_sum(xs):
    """Pairwise tree reduction (shorter critical add chain than a serial sum)."""
    xs = list(xs)
    while len(xs) > 1:
        nxt = [xs[i] + xs[i + 1] for i in range(0, len(xs) - 1, 2)]
        if len(xs) % 2:
            nxt.append(xs[-1])
        xs = nxt
    return xs[0]


# ----------------------------------------------------------------------------------
# fused Pallas kernel (all levels, grid over batch)
# ----------------------------------------------------------------------------------
def _make_kernel(L, p, dim, nh, ns, hd, level_meta):
    HS = nh * ns

    def kernel(*refs):
        x_ref, r_ref = refs[0], refs[1]
        f_refs = refs[2:2 + L]                            # pre-projected (hd, HW_l) bf16
        w_ref, b_ref, be_ref = refs[2 + L], refs[3 + L], refs[4 + L]
        o_ref = refs[5 + L]

        x2 = x_ref[0]                                     # (L*p, dim) f32
        r2 = r_ref[0]                                     # (L*p, 2)   f32

        # ---- one fused projection: attention logits + x/y sampling offsets -------
        proj = _matT(x2, w_ref[...]) + b_ref[...]         # (L*p, 3*HS) f32
        logits = proj[:, :HS]
        posx = jnp.tanh(proj[:, HS:2 * HS]) + r2[:, 0:1]  # (L*p, HS)
        posy = jnp.tanh(proj[:, 2 * HS:3 * HS]) + r2[:, 1:2]

        # ---- per-head softmax over the ns samples ---------------------------------
        aw_parts = []
        for h in range(nh):
            a_h = logits[:, h * ns:(h + 1) * ns]          # (L*p, ns)
            a_h = a_h - jnp.max(a_h, axis=-1, keepdims=True)
            e_h = jnp.exp(a_h)
            aw_parts.append(e_h / jnp.sum(e_h, axis=-1, keepdims=True))

        # ---- per level: one stacked sampling matrix + ONE matmul ------------------
        for l in range(L):
            H, W, HW = level_meta[l]
            lane = jax.lax.broadcasted_iota(jnp.int32, (p, HW), 1)
            rlo = l * p

            m_blocks = []
            for h in range(nh):
                clo = h * ns
                px = posx[rlo:rlo + p, clo:clo + ns]      # (p, ns)
                py = posy[rlo:rlo + p, clo:clo + ns]      # (p, ns)
                a_lh = aw_parts[h][rlo:rlo + p]           # (p, ns)

                # grid_sample pixel coords, align_corners=True
                ix = (px + 1.0) * (0.5 * (W - 1))
                iy = (py + 1.0) * (0.5 * (H - 1))
                x0f = jnp.floor(ix)
                y0f = jnp.floor(iy)
                fx = ix - x0f
                fy = iy - y0f
                x0 = x0f.astype(jnp.int32)
                y0 = y0f.astype(jnp.int32)

                # corner validity (zero-padding for OOB corners)
                vx0 = (x0 >= 0) & (x0 <= W - 1)
                vx1 = (x0 >= -1) & (x0 <= W - 2)
                vy0 = (y0 >= 0) & (y0 <= H - 1)
                vy1 = (y0 >= -1) & (y0 <= H - 2)

                # bilinear weights * softmax attention, masked on the weight
                w00 = jnp.where(vx0 & vy0, (1.0 - fx) * (1.0 - fy) * a_lh, 0.0)
                w10 = jnp.where(vx1 & vy0, fx * (1.0 - fy) * a_lh, 0.0)
                w01 = jnp.where(vx0 & vy1, (1.0 - fx) * fy * a_lh, 0.0)
                w11 = jnp.where(vx1 & vy1, fx * fy * a_lh, 0.0)
                i00 = y0 * W + x0                          # (p, ns) int32

                # accumulate ns*4 corner hits into a (p, HW) block for this head.
                # delta computed once per sample; constant compares; tree-reduced.
                parts = []
                for s in range(ns):
                    delta = lane - i00[:, s:s + 1]         # (p, HW) int32
                    parts.append(_tree_sum([
                        jnp.where(delta == 0, w00[:, s:s + 1], 0.0),
                        jnp.where(delta == 1, w10[:, s:s + 1], 0.0),
                        jnp.where(delta == W, w01[:, s:s + 1], 0.0),
                        jnp.where(delta == W + 1, w11[:, s:s + 1], 0.0),
                    ]))
                m_blocks.append(_tree_sum(parts))          # (p, HW) f32

            # stack ALL heads along rows -> one sampling matmul per level
            m = jnp.concatenate(m_blocks, axis=0)          # (nh*p, HW)
            s_all = _matT(m.astype(jnp.bfloat16), f_refs[l][0])   # (nh*p, hd) f32
            o_ref[0, l * nh * p:(l + 1) * nh * p, :] = (
                s_all + be_ref[l:l + 1, :]
            ).astype(o_ref.dtype)

    return kernel


def deformable_block_forward(x, ref, features_list, params, nh, ns):
    """x: (B, L, P, dim); ref: (B, L, P, 2); features_list[i]: (B, C_i, H_i, W_i)."""
    b, L, p, dim = x.shape
    assert len(features_list) == L
    hd = dim // nh
    HS = nh * ns

    x2 = x.reshape(b, L * p, dim)
    r2 = ref.reshape(b, L * p, 2)

    # --- fuse attention_weights + sampling_offsets into one projection ------------
    wa = params["wa"]                                              # (HS, dim)
    wo_perm = params["wo"].reshape(HS, 2, dim).transpose(1, 0, 2).reshape(2 * HS, dim)
    bo_perm = params["bo"].reshape(HS, 2).T.reshape(2 * HS)
    w_cat = jnp.concatenate([wa, wo_perm], axis=0)                 # (3*HS, dim)
    b_cat = jnp.concatenate([params["ba"], bo_perm]).reshape(1, 3 * HS)

    # --- fold embed_proj into the features: featP_l = we_l @ feat_l (bf16) --------
    level_meta = []
    featP_inputs = []
    for idx, feat in enumerate(features_list):
        _, C, H, W = feat.shape
        HW = H * W
        fp = jnp.einsum("dc,bcn->bdn", params["we"][idx], feat.reshape(b, C, HW))
        featP_inputs.append(fp.astype(jnp.bfloat16))               # (B, hd, HW)
        level_meta.append((H, W, HW))

    be_all = jnp.stack([params["be"][idx] for idx in range(L)], axis=0)  # (L, hd)

    kernel = _make_kernel(L, p, dim, nh, ns, hd, level_meta)

    in_specs = [
        pl.BlockSpec((1, L * p, dim), lambda i: (i, 0, 0)),
        pl.BlockSpec((1, L * p, 2), lambda i: (i, 0, 0)),
    ]
    for (H, W, HW) in level_meta:
        in_specs.append(pl.BlockSpec((1, hd, HW), lambda i: (i, 0, 0)))
    for arr in (w_cat, b_cat, be_all):
        in_specs.append(pl.BlockSpec(arr.shape, lambda i: (0, 0)))

    # advisory cost hint for XLA scheduling
    flops = 2 * (L * p) * dim * (3 * HS)                           # fused projection
    for (H, W, HW) in level_meta:
        flops += 2 * (nh * p) * HW * hd                            # sampling matmul
        flops += nh * p * HW * (ns * 8)                            # one-hot build (VPU)
    flops *= b
    transcendentals = b * (L * p) * 3 * HS
    bytes_accessed = (
        (x2.size + r2.size) * 4
        + sum(f.size * 2 for f in featP_inputs)
        + (w_cat.size + b_cat.size + be_all.size) * 4
        + b * L * p * dim * 4
    )

    out = pl.pallas_call(
        kernel,
        out_shape=jax.ShapeDtypeStruct((b, L * nh * p, hd), jnp.float32),
        grid=(b,),
        in_specs=in_specs,
        out_specs=pl.BlockSpec((1, L * nh * p, hd), lambda i: (i, 0, 0)),
        compiler_params=pltpu.CompilerParams(
            dimension_semantics=("parallel",),
            vmem_limit_bytes=32 * 1024 * 1024,   # above v5e's 16 MiB scoped default
        ),
        cost_estimate=pl.CostEstimate(
            flops=int(flops),
            transcendentals=int(transcendentals),
            bytes_accessed=int(bytes_accessed),
        ),
    )(x2, r2, *featP_inputs, w_cat, b_cat, be_all)

    # head-major (b, l, h, p, hd) -> (b, l, p, h*hd): tiny layout plumbing in XLA.
    return out.reshape(b, L, nh, p, hd).transpose(0, 1, 3, 2, 4).reshape(b, L, p, dim)


# ----------------------------------------------------------------------------------
# Pure-JAX reference (mirrors the PyTorch forward) for validation
# ----------------------------------------------------------------------------------
def _grid_sample_ref(feat, grid):
    """F.grid_sample(bilinear, zeros padding, align_corners=True).
    feat: (b, C, H, W), grid: (b, Ho, Wo, 2) -> (b, C, Ho, Wo)."""
    b, C, H, W = feat.shape
    gx, gy = grid[..., 0], grid[..., 1]
    ix = (gx + 1.0) * 0.5 * (W - 1)
    iy = (gy + 1.0) * 0.5 * (H - 1)
    x0 = jnp.floor(ix); x1 = x0 + 1.0
    y0 = jnp.floor(iy); y1 = y0 + 1.0
    flat = feat.reshape(b, C, H * W)

    def gather(cx, cy):
        valid = ((cx >= 0) & (cx <= W - 1) & (cy >= 0) & (cy <= H - 1))
        cxc = jnp.clip(cx, 0, W - 1).astype(jnp.int32)
        cyc = jnp.clip(cy, 0, H - 1).astype(jnp.int32)
        idx = (cyc * W + cxc).reshape(b, 1, -1)
        g = jnp.take_along_axis(flat, jnp.broadcast_to(idx, (b, C, idx.shape[-1])), axis=2)
        g = g.reshape(b, C, *cx.shape[1:])
        return g * valid[:, None].astype(feat.dtype)

    w00 = (x1 - ix) * (y1 - iy)
    w10 = (ix - x0) * (y1 - iy)
    w01 = (x1 - ix) * (iy - y0)
    w11 = (ix - x0) * (iy - y0)
    return (gather(x0, y0) * w00[:, None] + gather(x1, y0) * w10[:, None] +
            gather(x0, y1) * w01[:, None] + gather(x1, y1) * w11[:, None])


def reference_forward(x, ref, features_list, params, nh, ns):
    b, l, p, c = x.shape
    w = x @ params["wa"].T + params["ba"]                          # (b,l,p,nh*ns)
    w = jax.nn.softmax(w.reshape(b, l, p, nh, ns), axis=-1)[..., None]
    off = jnp.tanh(x @ params["wo"].T + params["bo"]).reshape(b, l, p, nh * ns, 2)
    pos = off + ref.reshape(b, l, p, 1, 2)
    sampled = []
    for idx, feat in enumerate(features_list):
        g = _grid_sample_ref(feat, pos[:, idx])                    # (b, C, p, nh*ns)
        g = jnp.transpose(g, (0, 2, 3, 1))                         # (b, p, nh*ns, C)
        sampled.append(g @ params["we"][idx].T + params["be"][idx])
    fs = jnp.stack(sampled, axis=1)                                # (b, l, p, nh*ns, hd)
    out = (w * fs.reshape(b, l, p, nh, ns, -1)).sum(axis=-2)
    return out.reshape(b, l, p, -1)


# ----------------------------------------------------------------------------------
# Deterministic parameter init (shapes from the module's __init__)
# ----------------------------------------------------------------------------------
def init_params(key, feature_dim_list, dim, nh, ns):
    hd = dim // nh
    ks = jax.random.split(key, 4 + 2 * len(feature_dim_list))
    # Small random weights (instead of the zero-init of _reset_parameters) so that
    # every compute path of the kernel is exercised; the sampling_offsets bias uses
    # the same directional grid init as the PyTorch module.
    wa = 0.1 * jax.random.normal(ks[0], (nh * ns, dim), jnp.float32)
    ba = 0.05 * jax.random.normal(ks[1], (nh * ns,), jnp.float32)
    wo = 0.1 * jax.random.normal(ks[2], (2 * nh * ns, dim), jnp.float32)
    thetas = jnp.arange(nh, dtype=jnp.float32) * (2.0 * math.pi / nh)
    grid_init = jnp.stack([jnp.cos(thetas), jnp.sin(thetas)], axis=-1)      # (nh, 2)
    grid_init = 0.01 * grid_init / jnp.max(jnp.abs(grid_init), axis=-1, keepdims=True)
    grid_init = jnp.tile(grid_init[:, None, :], (1, ns, 1))                 # (nh, ns, 2)
    grid_init = grid_init * (jnp.arange(ns, dtype=jnp.float32) + 1.0)[None, :, None]
    bo = grid_init.reshape(-1)                                              # (2*nh*ns,)
    we, be = [], []
    for i, c_in in enumerate(feature_dim_list):
        we.append(jax.random.normal(ks[4 + 2 * i], (hd, c_in), jnp.float32) / math.sqrt(c_in))
        be.append(0.05 * jax.random.normal(ks[5 + 2 * i], (hd,), jnp.float32))
    return {"wa": wa, "ba": ba, "wo": wo, "bo": bo, "we": we, "be": be}


# ----------------------------------------------------------------------------------
if __name__ == "__main__":
    B, P = 2, 16
    DIM, NH, NS = 32, 4, 4
    feature_dim_list = [6, 10]            # L = 2 levels
    spatial = [(8, 8), (12, 12)]
    L = len(feature_dim_list)

    keys = jax.random.split(jax.random.PRNGKey(0), 8)
    x = jax.random.normal(keys[0], (B, L, P, DIM), jnp.float32)
    ref = jax.random.uniform(keys[1], (B, L, P, 2), jnp.float32, minval=-1.0, maxval=1.0)
    features_list = [
        jax.random.normal(keys[2 + i], (B, c, h, w), jnp.float32)
        for i, (c, (h, w)) in enumerate(zip(feature_dim_list, spatial))
    ]
    params = init_params(keys[6], feature_dim_list, DIM, NH, NS)

    out = deformable_block_forward(x, ref, features_list, params, NH, NS)
    out = jax.block_until_ready(out)
    assert out.shape == (B, L, P, DIM), out.shape

    ref_out = jax.block_until_ready(reference_forward(x, ref, features_list, params, NH, NS))
    np.testing.assert_allclose(np.asarray(out), np.asarray(ref_out), atol=2e-2, rtol=2e-2)

    print("KERNEL_OK")
</pallas_src>

<mosaic_0001>
module attributes {stable_mosaic.version = 11 : i64} {
  func.func @kernel(%arg0: i32, %arg1: memref<1x32x32xf32, #tpu.memory_space<vmem>>, %arg2: memref<1x32x2xf32, #tpu.memory_space<vmem>>, %arg3: memref<1x8x64xbf16, #tpu.memory_space<vmem>>, %arg4: memref<1x8x144xbf16, #tpu.memory_space<vmem>>, %arg5: memref<48x32xf32, #tpu.memory_space<vmem>>, %arg6: memref<1x48xf32, #tpu.memory_space<vmem>>, %arg7: memref<2x8xf32, #tpu.memory_space<vmem>>, %arg8: memref<1x128x8xf32, #tpu.memory_space<vmem>>) attributes {dimension_semantics = [#tpu.dimension_semantics<parallel>], iteration_bounds = array<i64: 2>, scalar_prefetch = 0 : i64, scratch_operands = 0 : i64, tpu.core_type = #tpu.core_type<tc>, window_params = [{transform_indices = @transform_0, window_bounds = array<i64: 1, 32, 32>}, {transform_indices = @transform_1, window_bounds = array<i64: 1, 32, 2>}, {transform_indices = @transform_2, window_bounds = array<i64: 1, 8, 64>}, {transform_indices = @transform_3, window_bounds = array<i64: 1, 8, 144>}, {pipeline_mode = #tpu.pipeline_mode<synchronous>, transform_indices = @transform_4, window_bounds = array<i64: 48, 32>}, {pipeline_mode = #tpu.pipeline_mode<synchronous>, transform_indices = @transform_5, window_bounds = array<i64: 1, 48>}, {pipeline_mode = #tpu.pipeline_mode<synchronous>, transform_indices = @transform_6, window_bounds = array<i64: 2, 8>}, {transform_indices = @transform_7, window_bounds = array<i64: 1, 128, 8>}]} {
    %c0 = arith.constant 0 : index
    %c0_0 = arith.constant 0 : index
    %c0_1 = arith.constant 0 : index
    %0 = vector.load %arg1[%c0, %c0_0, %c0_1] : memref<1x32x32xf32, #tpu.memory_space<vmem>>, vector<1x32x32xf32>
    %1 = vector.shape_cast %0 : vector<1x32x32xf32> to vector<32x32xf32>
    %c0_2 = arith.constant 0 : index
    %c0_3 = arith.constant 0 : index
    %c0_4 = arith.constant 0 : index
    %2 = vector.load %arg2[%c0_2, %c0_3, %c0_4] : memref<1x32x2xf32, #tpu.memory_space<vmem>>, vector<1x32x2xf32>
    %3 = vector.shape_cast %2 : vector<1x32x2xf32> to vector<32x2xf32>
    %c0_5 = arith.constant 0 : index
    %c0_6 = arith.constant 0 : index
    %4 = vector.load %arg5[%c0_5, %c0_6] : memref<48x32xf32, #tpu.memory_space<vmem>>, vector<48x32xf32>
    %cst = arith.constant dense<0.000000e+00> : vector<32x48xf32>
    %5 = tpu.matmul %1, %4, %cst {dimension_numbers = #tpu.dot_dimension_numbers<[1], [1], [0], [0], [0, 0, 1, 0], [], []>} : vector<32x32xf32>, vector<48x32xf32>, vector<32x48xf32> -> vector<32x48xf32>
    %c0_7 = arith.constant 0 : index
    %c0_8 = arith.constant 0 : index
    %6 = vector.load %arg6[%c0_7, %c0_8] : memref<1x48xf32, #tpu.memory_space<vmem>>, vector<1x48xf32>
    %7 = vector.broadcast %6 : vector<1x48xf32> to vector<32x48xf32>
    %8 = arith.addf %5, %7 : vector<32x48xf32>
    %9 = vector.extract_strided_slice %8 {offsets = [0, 0], sizes = [32, 16], strides = [1, 1]} : vector<32x48xf32> to vector<32x16xf32>
    %10 = vector.extract_strided_slice %8 {offsets = [0, 16], sizes = [32, 16], strides = [1, 1]} : vector<32x48xf32> to vector<32x16xf32>
    %11 = math.tanh %10 : vector<32x16xf32>
    %12 = vector.extract_strided_slice %3 {offsets = [0, 0], sizes = [32, 1], strides = [1, 1]} : vector<32x2xf32> to vector<32x1xf32>
    %13 = vector.broadcast %12 : vector<32x1xf32> to vector<32x16xf32>
    %14 = arith.addf %11, %13 : vector<32x16xf32>
    %15 = vector.extract_strided_slice %8 {offsets = [0, 32], sizes = [32, 16], strides = [1, 1]} : vector<32x48xf32> to vector<32x16xf32>
    %16 = math.tanh %15 : vector<32x16xf32>
    %17 = vector.extract_strided_slice %3 {offsets = [0, 1], sizes = [32, 1], strides = [1, 1]} : vector<32x2xf32> to vector<32x1xf32>
    %18 = vector.broadcast %17 : vector<32x1xf32> to vector<32x16xf32>
    %19 = arith.addf %16, %18 : vector<32x16xf32>
    %20 = vector.extract_strided_slice %9 {offsets = [0, 0], sizes = [32, 4], strides = [1, 1]} : vector<32x16xf32> to vector<32x4xf32>
    %cst_9 = arith.constant dense<0xFF800000> : vector<32xf32>
    %21 = vector.multi_reduction <maximumf>, %20, %cst_9 [1] : vector<32x4xf32> to vector<32xf32>
    %22 = vector.shape_cast %21 : vector<32xf32> to vector<32x1xf32>
    %23 = vector.broadcast %22 : vector<32x1xf32> to vector<32x4xf32>
    %24 = arith.subf %20, %23 : vector<32x4xf32>
    %25 = math.exp %24 : vector<32x4xf32>
    %cst_10 = arith.constant dense<0.000000e+00> : vector<32xf32>
    %26 = vector.multi_reduction <add>, %25, %cst_10 [1] : vector<32x4xf32> to vector<32xf32>
    %27 = vector.shape_cast %26 : vector<32xf32> to vector<32x1xf32>
    %28 = vector.broadcast %27 : vector<32x1xf32> to vector<32x4xf32>
    %29 = arith.divf %25, %28 : vector<32x4xf32>
    %30 = vector.extract_strided_slice %9 {offsets = [0, 4], sizes = [32, 4], strides = [1, 1]} : vector<32x16xf32> to vector<32x4xf32>
    %cst_11 = arith.constant dense<0xFF800000> : vector<32xf32>
    %31 = vector.multi_reduction <maximumf>, %30, %cst_11 [1] : vector<32x4xf32> to vector<32xf32>
    %32 = vector.shape_cast %31 : vector<32xf32> to vector<32x1xf32>
    %33 = vector.broadcast %32 : vector<32x1xf32> to vector<32x4xf32>
    %34 = arith.subf %30, %33 : vector<32x4xf32>
    %35 = math.exp %34 : vector<32x4xf32>
    %cst_12 = arith.constant dense<0.000000e+00> : vector<32xf32>
    %36 = vector.multi_reduction <add>, %35, %cst_12 [1] : vector<32x4xf32> to vector<32xf32>
    %37 = vector.shape_cast %36 : vector<32xf32> to vector<32x1xf32>
    %38 = vector.broadcast %37 : vector<32x1xf32> to vector<32x4xf32>
    %39 = arith.divf %35, %38 : vector<32x4xf32>
    %40 = vector.extract_strided_slice %9 {offsets = [0, 8], sizes = [32, 4], strides = [1, 1]} : vector<32x16xf32> to vector<32x4xf32>
    %cst_13 = arith.constant dense<0xFF800000> : vector<32xf32>
    %41 = vector.multi_reduction <maximumf>, %40, %cst_13 [1] : vector<32x4xf32> to vector<32xf32>
    %42 = vector.shape_cast %41 : vector<32xf32> to vector<32x1xf32>
    %43 = vector.broadcast %42 : vector<32x1xf32> to vector<32x4xf32>
    %44 = arith.subf %40, %43 : vector<32x4xf32>
    %45 = math.exp %44 : vector<32x4xf32>
    %cst_14 = arith.constant dense<0.000000e+00> : vector<32xf32>
    %46 = vector.multi_reduction <add>, %45, %cst_14 [1] : vector<32x4xf32> to vector<32xf32>
    %47 = vector.shape_cast %46 : vector<32xf32> to vector<32x1xf32>
    %48 = vector.broadcast %47 : vector<32x1xf32> to vector<32x4xf32>
    %49 = arith.divf %45, %48 : vector<32x4xf32>
    %50 = vector.extract_strided_slice %9 {offsets = [0, 12], sizes = [32, 4], strides = [1, 1]} : vector<32x16xf32> to vector<32x4xf32>
    %cst_15 = arith.constant dense<0xFF800000> : vector<32xf32>
    %51 = vector.multi_reduction <maximumf>, %50, %cst_15 [1] : vector<32x4xf32> to vector<32xf32>
    %52 = vector.shape_cast %51 : vector<32xf32> to vector<32x1xf32>
    %53 = vector.broadcast %52 : vector<32x1xf32> to vector<32x4xf32>
    %54 = arith.subf %50, %53 : vector<32x4xf32>
    %55 = math.exp %54 : vector<32x4xf32>
    %cst_16 = arith.constant dense<0.000000e+00> : vector<32xf32>
    %56 = vector.multi_reduction <add>, %55, %cst_16 [1] : vector<32x4xf32> to vector<32xf32>
    %57 = vector.shape_cast %56 : vector<32xf32> to vector<32x1xf32>
    %58 = vector.broadcast %57 : vector<32x1xf32> to vector<32x4xf32>
    %59 = arith.divf %55, %58 : vector<32x4xf32>
    %60 = tpu.iota {dimensions = array<i32: 1>} : vector<16x64xi32>
    %61 = vector.extract_strided_slice %14 {offsets = [0, 0], sizes = [16, 4], strides = [1, 1]} : vector<32x16xf32> to vector<16x4xf32>
    %62 = vector.extract_strided_slice %19 {offsets = [0, 0], sizes = [16, 4], strides = [1, 1]} : vector<32x16xf32> to vector<16x4xf32>
    %63 = vector.extract_strided_slice %29 {offsets = [0, 0], sizes = [16, 4], strides = [1, 1]} : vector<32x4xf32> to vector<16x4xf32>
    %cst_17 = arith.constant 1.000000e+00 : f32
    %64 = vector.broadcast %cst_17 : f32 to vector<16x4xf32>
    %65 = arith.addf %61, %64 : vector<16x4xf32>
    %cst_18 = arith.constant 3.500000e+00 : f32
    %66 = vector.broadcast %cst_18 : f32 to vector<16x4xf32>
    %67 = arith.mulf %65, %66 : vector<16x4xf32>
    %cst_19 = arith.constant 1.000000e+00 : f32
    %68 = vector.broadcast %cst_19 : f32 to vector<16x4xf32>
    %69 = arith.addf %62, %68 : vector<16x4xf32>
    %cst_20 = arith.constant 3.500000e+00 : f32
    %70 = vector.broadcast %cst_20 : f32 to vector<16x4xf32>
    %71 = arith.mulf %69, %70 : vector<16x4xf32>
    %72 = math.floor %67 : vector<16x4xf32>
    %73 = math.floor %71 : vector<16x4xf32>
    %74 = arith.subf %67, %72 : vector<16x4xf32>
    %75 = arith.subf %71, %73 : vector<16x4xf32>
    %76 = arith.fptosi %72 : vector<16x4xf32> to vector<16x4xi32>
    %77 = arith.fptosi %73 : vector<16x4xf32> to vector<16x4xi32>
    %c0_i32 = arith.constant 0 : i32
    %78 = vector.broadcast %c0_i32 : i32 to vector<16x4xi32>
    %79 = arith.cmpi sge, %76, %78 : vector<16x4xi32>
    %c7_i32 = arith.constant 7 : i32
    %80 = vector.broadcast %c7_i32 : i32 to vector<16x4xi32>
    %81 = arith.cmpi sle, %76, %80 : vector<16x4xi32>
    %82 = arith.andi %79, %81 : vector<16x4xi1>
    %c-1_i32 = arith.constant -1 : i32
    %83 = vector.broadcast %c-1_i32 : i32 to vector<16x4xi32>
    %84 = arith.cmpi sge, %76, %83 : vector<16x4xi32>
    %c6_i32 = arith.constant 6 : i32
    %85 = vector.broadcast %c6_i32 : i32 to vector<16x4xi32>
    %86 = arith.cmpi sle, %76, %85 : vector<16x4xi32>
    %87 = arith.andi %84, %86 : vector<16x4xi1>
    %c0_i32_21 = arith.constant 0 : i32
    %88 = vector.broadcast %c0_i32_21 : i32 to vector<16x4xi32>
    %89 = arith.cmpi sge, %77, %88 : vector<16x4xi32>
    %c7_i32_22 = arith.constant 7 : i32
    %90 = vector.broadcast %c7_i32_22 : i32 to vector<16x4xi32>
    %91 = arith.cmpi sle, %77, %90 : vector<16x4xi32>
    %92 = arith.andi %89, %91 : vector<16x4xi1>
    %c-1_i32_23 = arith.constant -1 : i32
    %93 = vector.broadcast %c-1_i32_23 : i32 to vector<16x4xi32>
    %94 = arith.cmpi sge, %77, %93 : vector<16x4xi32>
    %c6_i32_24 = arith.constant 6 : i32
    %95 = vector.broadcast %c6_i32_24 : i32 to vector<16x4xi32>
    %96 = arith.cmpi sle, %77, %95 : vector<16x4xi32>
    %97 = arith.andi %94, %96 : vector<16x4xi1>
    %98 = arith.andi %82, %92 : vector<16x4xi1>
    %cst_25 = arith.constant 1.000000e+00 : f32
    %99 = vector.broadcast %cst_25 : f32 to vector<16x4xf32>
    %100 = arith.subf %99, %74 : vector<16x4xf32>
    %cst_26 = arith.constant 1.000000e+00 : f32
    %101 = vector.broadcast %cst_26 : f32 to vector<16x4xf32>
    %102 = arith.subf %101, %75 : vector<16x4xf32>
    %103 = arith.mulf %100, %102 : vector<16x4xf32>
    %104 = arith.mulf %103, %63 : vector<16x4xf32>
    %cst_27 = arith.constant 0.000000e+00 : f32
    %105 = vector.broadcast %cst_27 : f32 to vector<16x4xf32>
    %106 = arith.select %98, %104, %105 : vector<16x4xi1>, vector<16x4xf32>
    %107 = arith.andi %87, %92 : vector<16x4xi1>
    %cst_28 = arith.constant 1.000000e+00 : f32
    %108 = vector.broadcast %cst_28 : f32 to vector<16x4xf32>
    %109 = arith.subf %108, %75 : vector<16x4xf32>
    %110 = arith.mulf %74, %109 : vector<16x4xf32>
    %111 = arith.mulf %110, %63 : vector<16x4xf32>
    %cst_29 = arith.constant 0.000000e+00 : f32
    %112 = vector.broadcast %cst_29 : f32 to vector<16x4xf32>
    %113 = arith.select %107, %111, %112 : vector<16x4xi1>, vector<16x4xf32>
    %114 = arith.andi %82, %97 : vector<16x4xi1>
    %cst_30 = arith.constant 1.000000e+00 : f32
    %115 = vector.broadcast %cst_30 : f32 to vector<16x4xf32>
    %116 = arith.subf %115, %74 : vector<16x4xf32>
    %117 = arith.mulf %116, %75 : vector<16x4xf32>
    %118 = arith.mulf %117, %63 : vector<16x4xf32>
    %cst_31 = arith.constant 0.000000e+00 : f32
    %119 = vector.broadcast %cst_31 : f32 to vector<16x4xf32>
    %120 = arith.select %114, %118, %119 : vector<16x4xi1>, vector<16x4xf32>
    %121 = arith.andi %87, %97 : vector<16x4xi1>
    %122 = arith.mulf %74, %75 : vector<16x4xf32>
    %123 = arith.mulf %122, %63 : vector<16x4xf32>
    %cst_32 = arith.constant 0.000000e+00 : f32
    %124 = vector.broadcast %cst_32 : f32 to vector<16x4xf32>
    %125 = arith.select %121, %123, %124 : vector<16x4xi1>, vector<16x4xf32>
    %c8_i32 = arith.constant 8 : i32
    %126 = vector.broadcast %c8_i32 : i32 to vector<16x4xi32>
    %127 = arith.muli %77, %126 : vector<16x4xi32>
    %128 = arith.addi %127, %76 : vector<16x4xi32>
    %129 = vector.extract_strided_slice %128 {offsets = [0, 0], sizes = [16, 1], strides = [1, 1]} : vector<16x4xi32> to vector<16x1xi32>
    %130 = vector.broadcast %129 : vector<16x1xi32> to vector<16x64xi32>
    %131 = arith.subi %60, %130 : vector<16x64xi32>
    %c0_i32_33 = arith.constant 0 : i32
    %132 = vector.broadcast %c0_i32_33 : i32 to vector<16x64xi32>
    %133 = arith.cmpi eq, %131, %132 : vector<16x64xi32>
    %134 = vector.extract_strided_slice %106 {offsets = [0, 0], sizes = [16, 1], strides = [1, 1]} : vector<16x4xf32> to vector<16x1xf32>
    %cst_34 = arith.constant 0.000000e+00 : f32
    %135 = vector.shape_cast %134 : vector<16x1xf32> to vector<16x1xf32>
    %136 = vector.broadcast %135 : vector<16x1xf32> to vector<16x64xf32>
    %137 = vector.broadcast %cst_34 : f32 to vector<16x64xf32>
    %138 = arith.select %133, %136, %137 : vector<16x64xi1>, vector<16x64xf32>
    %c1_i32 = arith.constant 1 : i32
    %139 = vector.broadcast %c1_i32 : i32 to vector<16x64xi32>
    %140 = arith.cmpi eq, %131, %139 : vector<16x64xi32>
    %141 = vector.extract_strided_slice %113 {offsets = [0, 0], sizes = [16, 1], strides = [1, 1]} : vector<16x4xf32> to vector<16x1xf32>
    %cst_35 = arith.constant 0.000000e+00 : f32
    %142 = vector.shape_cast %141 : vector<16x1xf32> to vector<16x1xf32>
    %143 = vector.broadcast %142 : vector<16x1xf32> to vector<16x64xf32>
    %144 = vector.broadcast %cst_35 : f32 to vector<16x64xf32>
    %145 = arith.select %140, %143, %144 : vector<16x64xi1>, vector<16x64xf32>
    %c8_i32_36 = arith.constant 8 : i32
    %146 = vector.broadcast %c8_i32_36 : i32 to vector<16x64xi32>
    %147 = arith.cmpi eq, %131, %146 : vector<16x64xi32>
    %148 = vector.extract_strided_slice %120 {offsets = [0, 0], sizes = [16, 1], strides = [1, 1]} : vector<16x4xf32> to vector<16x1xf32>
    %cst_37 = arith.constant 0.000000e+00 : f32
    %149 = vector.shape_cast %148 : vector<16x1xf32> to vector<16x1xf32>
    %150 = vector.broadcast %149 : vector<16x1xf32> to vector<16x64xf32>
    %151 = vector.broadcast %cst_37 : f32 to vector<16x64xf32>
    %152 = arith.select %147, %150, %151 : vector<16x64xi1>, vector<16x64xf32>
    %c9_i32 = arith.constant 9 : i32
    %153 = vector.broadcast %c9_i32 : i32 to vector<16x64xi32>
    %154 = arith.cmpi eq, %131, %153 : vector<16x64xi32>
    %155 = vector.extract_strided_slice %125 {offsets = [0, 0], sizes = [16, 1], strides = [1, 1]} : vector<16x4xf32> to vector<16x1xf32>
    %cst_38 = arith.constant 0.000000e+00 : f32
    %156 = vector.shape_cast %155 : vector<16x1xf32> to vector<16x1xf32>
    %157 = vector.broadcast %156 : vector<16x1xf32> to vector<16x64xf32>
    %158 = vector.broadcast %cst_38 : f32 to vector<16x64xf32>
    %159 = arith.select %154, %157, %158 : vector<16x64xi1>, vector<16x64xf32>
    %160 = arith.addf %138, %145 : vector<16x64xf32>
    %161 = arith.addf %152, %159 : vector<16x64xf32>
    %162 = arith.addf %160, %161 : vector<16x64xf32>
    %163 = vector.extract_strided_slice %128 {offsets = [0, 1], sizes = [16, 1], strides = [1, 1]} : vector<16x4xi32> to vector<16x1xi32>
    %164 = vector.broadcast %163 : vector<16x1xi32> to vector<16x64xi32>
    %165 = arith.subi %60, %164 : vector<16x64xi32>
    %c0_i32_39 = arith.constant 0 : i32
    %166 = vector.broadcast %c0_i32_39 : i32 to vector<16x64xi32>
    %167 = arith.cmpi eq, %165, %166 : vector<16x64xi32>
    %168 = vector.extract_strided_slice %106 {offsets = [0, 1], sizes = [16, 1], strides = [1, 1]} : vector<16x4xf32> to vector<16x1xf32>
    %cst_40 = arith.constant 0.000000e+00 : f32
    %169 = vector.shape_cast %168 : vector<16x1xf32> to vector<16x1xf32>
    %170 = vector.broadcast %169 : vector<16x1xf32> to vector<16x64xf32>
    %171 = vector.broadcast %cst_40 : f32 to vector<16x64xf32>
    %172 = arith.select %167, %170, %171 : vector<16x64xi1>, vector<16x64xf32>
    %c1_i32_41 = arith.constant 1 : i32
    %173 = vector.broadcast %c1_i32_41 : i32 to vector<16x64xi32>
    %174 = arith.cmpi eq, %165, %173 : vector<16x64xi32>
    %175 = vector.extract_strided_slice %113 {offsets = [0, 1], sizes = [16, 1], strides = [1, 1]} : vector<16x4xf32> to vector<16x1xf32>
    %cst_42 = arith.constant 0.000000e+00 : f32
    %176 = vector.shape_cast %175 : vector<16x1xf32> to vector<16x1xf32>
    %177 = vector.broadcast %176 : vector<16x1xf32> to vector<16x64xf32>
    %178 = vector.broadcast %cst_42 : f32 to vector<16x64xf32>
    %179 = arith.select %174, %177, %178 : vector<16x64xi1>, vector<16x64xf32>
    %c8_i32_43 = arith.constant 8 : i32
    %180 = vector.broadcast %c8_i32_43 : i32 to vector<16x64xi32>
    %181 = arith.cmpi eq, %165, %180 : vector<16x64xi32>
    %182 = vector.extract_strided_slice %120 {offsets = [0, 1], sizes = [16, 1], strides = [1, 1]} : vector<16x4xf32> to vector<16x1xf32>
    %cst_44 = arith.constant 0.000000e+00 : f32
    %183 = vector.shape_cast %182 : vector<16x1xf32> to vector<16x1xf32>
    %184 = vector.broadcast %183 : vector<16x1xf32> to vector<16x64xf32>
    %185 = vector.broadcast %cst_44 : f32 to vector<16x64xf32>
    %186 = arith.select %181, %184, %185 : vector<16x64xi1>, vector<16x64xf32>
    %c9_i32_45 = arith.constant 9 : i32
    %187 = vector.broadcast %c9_i32_45 : i32 to vector<16x64xi32>
    %188 = arith.cmpi eq, %165, %187 : vector<16x64xi32>
    %189 = vector.extract_strided_slice %125 {offsets = [0, 1], sizes = [16, 1], strides = [1, 1]} : vector<16x4xf32> to vector<16x1xf32>
    %cst_46 = arith.constant 0.000000e+00 : f32
    %190 = vector.shape_cast %189 : vector<16x1xf32> to vector<16x1xf32>
    %191 = vector.broadcast %190 : vector<16x1xf32> to vector<16x64xf32>
    %192 = vector.broadcast %cst_46 : f32 to vector<16x64xf32>
    %193 = arith.select %188, %191, %192 : vector<16x64xi1>, vector<16x64xf32>
    %194 = arith.addf %172, %179 : vector<16x64xf32>
    %195 = arith.addf %186, %193 : vector<16x64xf32>
    %196 = arith.addf %194, %195 : vector<16x64xf32>
    %197 = vector.extract_strided_slice %128 {offsets = [0, 2], sizes = [16, 1], strides = [1, 1]} : vector<16x4xi32> to vector<16x1xi32>
    %198 = vector.broadcast %197 : vector<16x1xi32> to vector<16x64xi32>
    %199 = arith.subi %60, %198 : vector<16x64xi32>
    %c0_i32_47 = arith.constant 0 : i32
    %200 = vector.broadcast %c0_i32_47 : i32 to vector<16x64xi32>
    %201 = arith.cmpi eq, %199, %200 : vector<16x64xi32>
    %202 = vector.extract_strided_slice %106 {offsets = [0, 2], sizes = [16, 1], strides = [1, 1]} : vector<16x4xf32> to vector<16x1xf32>
    %cst_48 = arith.constant 0.000000e+00 : f32
    %203 = vector.shape_cast %202 : vector<16x1xf32> to vector<16x1xf32>
    %204 = vector.broadcast %203 : vector<16x1xf32> to vector<16x64xf32>
    %205 = vector.broadcast %cst_48 : f32 to vector<16x64xf32>
    %206 = arith.select %201, %204, %205 : vector<16x64xi1>, vector<16x64xf32>
    %c1_i32_49 = arith.constant 1 : i32
    %207 = vector.broadcast %c1_i32_49 : i32 to vector<16x64xi32>
    %208 = arith.cmpi eq, %199, %207 : vector<16x64xi32>
    %209 = vector.extract_strided_slice %113 {offsets = [0, 2], sizes = [16, 1], strides = [1, 1]} : vector<16x4xf32> to vector<16x1xf32>
    %cst_50 = arith.constant 0.000000e+00 : f32
    %210 = vector.shape_cast %209 : vector<16x1xf32> to vector<16x1xf32>
    %211 = vector.broadcast %210 : vector<16x1xf32> to vector<16x64xf32>
    %212 = vector.broadcast %cst_50 : f32 to vector<16x64xf32>
    %213 = arith.select %208, %211, %212 : vector<16x64xi1>, vector<16x64xf32>
    %c8_i32_51 = arith.constant 8 : i32
    %214 = vector.broadcast %c8_i32_51 : i32 to vector<16x64xi32>
    %215 = arith.cmpi eq, %199, %214 : vector<16x64xi32>
    %216 = vector.extract_strided_slice %120 {offsets = [0, 2], sizes = [16, 1], strides = [1, 1]} : vector<16x4xf32> to vector<16x1xf32>
    %cst_52 = arith.constant 0.000000e+00 : f32
    %217 = vector.shape_cast %216 : vector<16x1xf32> to vector<16x1xf32>
    %218 = vector.broadcast %217 : vector<16x1xf32> to vector<16x64xf32>
    %219 = vector.broadcast %cst_52 : f32 to vector<16x64xf32>
    %220 = arith.select %215, %218, %219 : vector<16x64xi1>, vector<16x64xf32>
    %c9_i32_53 = arith.constant 9 : i32
    %221 = vector.broadcast %c9_i32_53 : i32 to vector<16x64xi32>
    %222 = arith.cmpi eq, %199, %221 : vector<16x64xi32>
    %223 = vector.extract_strided_slice %125 {offsets = [0, 2], sizes = [16, 1], strides = [1, 1]} : vector<16x4xf32> to vector<16x1xf32>
    %cst_54 = arith.constant 0.000000e+00 : f32
    %224 = vector.shape_cast %223 : vector<16x1xf32> to vector<16x1xf32>
    %225 = vector.broadcast %224 : vector<16x1xf32> to vector<16x64xf32>
    %226 = vector.broadcast %cst_54 : f32 to vector<16x64xf32>
    %227 = arith.select %222, %225, %226 : vector<16x64xi1>, vector<16x64xf32>
    %228 = arith.addf %206, %213 : vector<16x64xf32>
    %229 = arith.addf %220, %227 : vector<16x64xf32>
    %230 = arith.addf %228, %229 : vector<16x64xf32>
    %231 = vector.extract_strided_slice %128 {offsets = [0, 3], sizes = [16, 1], strides = [1, 1]} : vector<16x4xi32> to vector<16x1xi32>
    %232 = vector.broadcast %231 : vector<16x1xi32> to vector<16x64xi32>
    %233 = arith.subi %60, %232 : vector<16x64xi32>
    %c0_i32_55 = arith.constant 0 : i32
    %234 = vector.broadcast %c0_i32_55 : i32 to vector<16x64xi32>
    %235 = arith.cmpi eq, %233, %234 : vector<16x64xi32>
    %236 = vector.extract_strided_slice %106 {offsets = [0, 3], sizes = [16, 1], strides = [1, 1]} : vector<16x4xf32> to vector<16x1xf32>
    %cst_56 = arith.constant 0.000000e+00 : f32
    %237 = vector.shape_cast %236 : vector<16x1xf32> to vector<16x1xf32>
    %238 = vector.broadcast %237 : vector<16x1xf32> to vector<16x64xf32>
    %239 = vector.broadcast %cst_56 : f32 to vector<16x64xf32>
    %240 = arith.select %235, %238, %239 : vector<16x64xi1>, vector<16x64xf32>
    %c1_i32_57 = arith.constant 1 : i32
    %241 = vector.broadcast %c1_i32_57 : i32 to vector<16x64xi32>
    %242 = arith.cmpi eq, %233, %241 : vector<16x64xi32>
    %243 = vector.extract_strided_slice %113 {offsets = [0, 3], sizes = [16, 1], strides = [1, 1]} : vector<16x4xf32> to vector<16x1xf32>
    %cst_58 = arith.constant 0.000000e+00 : f32
    %244 = vector.shape_cast %243 : vector<16x1xf32> to vector<16x1xf32>
    %245 = vector.broadcast %244 : vector<16x1xf32> to vector<16x64xf32>
    %246 = vector.broadcast %cst_58 : f32 to vector<16x64xf32>
    %247 = arith.select %242, %245, %246 : vector<16x64xi1>, vector<16x64xf32>
    %c8_i32_59 = arith.constant 8 : i32
    %248 = vector.broadcast %c8_i32_59 : i32 to vector<16x64xi32>
    %249 = arith.cmpi eq, %233, %248 : vector<16x64xi32>
    %250 = vector.extract_strided_slice %120 {offsets = [0, 3], sizes = [16, 1], strides = [1, 1]} : vector<16x4xf32> to vector<16x1xf32>
    %cst_60 = arith.constant 0.000000e+00 : f32
    %251 = vector.shape_cast %250 : vector<16x1xf32> to vector<16x1xf32>
    %252 = vector.broadcast %251 : vector<16x1xf32> to vector<16x64xf32>
    %253 = vector.broadcast %cst_60 : f32 to vector<16x64xf32>
    %254 = arith.select %249, %252, %253 : vector<16x64xi1>, vector<16x64xf32>
    %c9_i32_61 = arith.constant 9 : i32
    %255 = vector.broadcast %c9_i32_61 : i32 to vector<16x64xi32>
    %256 = arith.cmpi eq, %233, %255 : vector<16x64xi32>
    %257 = vector.extract_strided_slice %125 {offsets = [0, 3], sizes = [16, 1], strides = [1, 1]} : vector<16x4xf32> to vector<16x1xf32>
    %cst_62 = arith.constant 0.000000e+00 : f32
    %258 = vector.shape_cast %257 : vector<16x1xf32> to vector<16x1xf32>
    %259 = vector.broadcast %258 : vector<16x1xf32> to vector<16x64xf32>
    %260 = vector.broadcast %cst_62 : f32 to vector<16x64xf32>
    %261 = arith.select %256, %259, %260 : vector<16x64xi1>, vector<16x64xf32>
    %262 = arith.addf %240, %247 : vector<16x64xf32>
    %263 = arith.addf %254, %261 : vector<16x64xf32>
    %264 = arith.addf %262, %263 : vector<16x64xf32>
    %265 = arith.addf %162, %196 : vector<16x64xf32>
    %266 = arith.addf %230, %264 : vector<16x64xf32>
    %267 = arith.addf %265, %266 : vector<16x64xf32>
    %268 = vector.extract_strided_slice %14 {offsets = [0, 4], sizes = [16, 4], strides = [1, 1]} : vector<32x16xf32> to vector<16x4xf32>
    %269 = vector.extract_strided_slice %19 {offsets = [0, 4], sizes = [16, 4], strides = [1, 1]} : vector<32x16xf32> to vector<16x4xf32>
    %270 = vector.extract_strided_slice %39 {offsets = [0, 0], sizes = [16, 4], strides = [1, 1]} : vector<32x4xf32> to vector<16x4xf32>
    %cst_63 = arith.constant 1.000000e+00 : f32
    %271 = vector.broadcast %cst_63 : f32 to vector<16x4xf32>
    %272 = arith.addf %268, %271 : vector<16x4xf32>
    %cst_64 = arith.constant 3.500000e+00 : f32
    %273 = vector.broadcast %cst_64 : f32 to vector<16x4xf32>
    %274 = arith.mulf %272, %273 : vector<16x4xf32>
    %cst_65 = arith.constant 1.000000e+00 : f32
    %275 = vector.broadcast %cst_65 : f32 to vector<16x4xf32>
    %276 = arith.addf %269, %275 : vector<16x4xf32>
    %cst_66 = arith.constant 3.500000e+00 : f32
    %277 = vector.broadcast %cst_66 : f32 to vector<16x4xf32>
    %278 = arith.mulf %276, %277 : vector<16x4xf32>
    %279 = math.floor %274 : vector<16x4xf32>
    %280 = math.floor %278 : vector<16x4xf32>
    %281 = arith.subf %274, %279 : vector<16x4xf32>
    %282 = arith.subf %278, %280 : vector<16x4xf32>
    %283 = arith.fptosi %279 : vector<16x4xf32> to vector<16x4xi32>
    %284 = arith.fptosi %280 : vector<16x4xf32> to vector<16x4xi32>
    %c0_i32_67 = arith.constant 0 : i32
    %285 = vector.broadcast %c0_i32_67 : i32 to vector<16x4xi32>
    %286 = arith.cmpi sge, %283, %285 : vector<16x4xi32>
    %c7_i32_68 = arith.constant 7 : i32
    %287 = vector.broadcast %c7_i32_68 : i32 to vector<16x4xi32>
    %288 = arith.cmpi sle, %283, %287 : vector<16x4xi32>
    %289 = arith.andi %286, %288 : vector<16x4xi1>
    %c-1_i32_69 = arith.constant -1 : i32
    %290 = vector.broadcast %c-1_i32_69 : i32 to vector<16x4xi32>
    %291 = arith.cmpi sge, %283, %290 : vector<16x4xi32>
    %c6_i32_70 = arith.constant 6 : i32
    %292 = vector.broadcast %c6_i32_70 : i32 to vector<16x4xi32>
    %293 = arith.cmpi sle, %283, %292 : vector<16x4xi32>
    %294 = arith.andi %291, %293 : vector<16x4xi1>
    %c0_i32_71 = arith.constant 0 : i32
    %295 = vector.broadcast %c0_i32_71 : i32 to vector<16x4xi32>
    %296 = arith.cmpi sge, %284, %295 : vector<16x4xi32>
    %c7_i32_72 = arith.constant 7 : i32
    %297 = vector.broadcast %c7_i32_72 : i32 to vector<16x4xi32>
    %298 = arith.cmpi sle, %284, %297 : vector<16x4xi32>
    %299 = arith.andi %296, %298 : vector<16x4xi1>
    %c-1_i32_73 = arith.constant -1 : i32
    %300 = vector.broadcast %c-1_i32_73 : i32 to vector<16x4xi32>
    %301 = arith.cmpi sge, %284, %300 : vector<16x4xi32>
    %c6_i32_74 = arith.constant 6 : i32
    %302 = vector.broadcast %c6_i32_74 : i32 to vector<16x4xi32>
    %303 = arith.cmpi sle, %284, %302 : vector<16x4xi32>
    %304 = arith.andi %301, %303 : vector<16x4xi1>
    %305 = arith.andi %289, %299 : vector<16x4xi1>
    %cst_75 = arith.constant 1.000000e+00 : f32
    %306 = vector.broadcast %cst_75 : f32 to vector<16x4xf32>
    %307 = arith.subf %306, %281 : vector<16x4xf32>
    %cst_76 = arith.constant 1.000000e+00 : f32
    %308 = vector.broadcast %cst_76 : f32 to vector<16x4xf32>
    %309 = arith.subf %308, %282 : vector<16x4xf32>
    %310 = arith.mulf %307, %309 : vector<16x4xf32>
    %311 = arith.mulf %310, %270 : vector<16x4xf32>
    %cst_77 = arith.constant 0.000000e+00 : f32
    %312 = vector.broadcast %cst_77 : f32 to vector<16x4xf32>
    %313 = arith.select %305, %311, %312 : vector<16x4xi1>, vector<16x4xf32>
    %314 = arith.andi %294, %299 : vector<16x4xi1>
    %cst_78 = arith.constant 1.000000e+00 : f32
    %315 = vector.broadcast %cst_78 : f32 to vector<16x4xf32>
    %316 = arith.subf %315, %282 : vector<16x4xf32>
    %317 = arith.mulf %281, %316 : vector<16x4xf32>
    %318 = arith.mulf %317, %270 : vector<16x4xf32>
    %cst_79 = arith.constant 0.000000e+00 : f32
    %319 = vector.broadcast %cst_79 : f32 to vector<16x4xf32>
    %320 = arith.select %314, %318, %319 : vector<16x4xi1>, vector<16x4xf32>
    %321 = arith.andi %289, %304 : vector<16x4xi1>
    %cst_80 = arith.constant 1.000000e+00 : f32
    %322 = vector.broadcast %cst_80 : f32 to vector<16x4xf32>
    %323 = arith.subf %322, %281 : vector<16x4xf32>
    %324 = arith.mulf %323, %282 : vector<16x4xf32>
    %325 = arith.mulf %324, %270 : vector<16x4xf32>
    %cst_81 = arith.constant 0.000000e+00 : f32
    %326 = vector.broadcast %cst_81 : f32 to vector<16x4xf32>
    %327 = arith.select %321, %325, %326 : vector<16x4xi1>, vector<16x4xf32>
    %328 = arith.andi %294, %304 : vector<16x4xi1>
    %329 = arith.mulf %281, %282 : vector<16x4xf32>
    %330 = arith.mulf %329, %270 : vector<16x4xf32>
    %cst_82 = arith.constant 0.000000e+00 : f32
    %331 = vector.broadcast %cst_82 : f32 to vector<16x4xf32>
    %332 = arith.select %328, %330, %331 : vector<16x4xi1>, vector<16x4xf32>
    %c8_i32_83 = arith.constant 8 : i32
    %333 = vector.broadcast %c8_i32_83 : i32 to vector<16x4xi32>
    %334 = arith.muli %284, %333 : vector<16x4xi32>
    %335 = arith.addi %334, %283 : vector<16x4xi32>
    %336 = vector.extract_strided_slice %335 {offsets = [0, 0], sizes = [16, 1], strides = [1, 1]} : vector<16x4xi32> to vector<16x1xi32>
    %337 = vector.broadcast %336 : vector<16x1xi32> to vector<16x64xi32>
    %338 = arith.subi %60, %337 : vector<16x64xi32>
    %c0_i32_84 = arith.constant 0 : i32
    %339 = vector.broadcast %c0_i32_84 : i32 to vector<16x64xi32>
    %340 = arith.cmpi eq, %338, %339 : vector<16x64xi32>
    %341 = vector.extract_strided_slice %313 {offsets = [0, 0], sizes = [16, 1], strides = [1, 1]} : vector<16x4xf32> to vector<16x1xf32>
    %cst_85 = arith.constant 0.000000e+00 : f32
    %342 = vector.shape_cast %341 : vector<16x1xf32> to vector<16x1xf32>
    %343 = vector.broadcast %342 : vector<16x1xf32> to vector<16x64xf32>
    %344 = vector.broadcast %cst_85 : f32 to vector<16x64xf32>
    %345 = arith.select %340, %343, %344 : vector<16x64xi1>, vector<16x64xf32>
    %c1_i32_86 = arith.constant 1 : i32
    %346 = vector.broadcast %c1_i32_86 : i32 to vector<16x64xi32>
    %347 = arith.cmpi eq, %338, %346 : vector<16x64xi32>
    %348 = vector.extract_strided_slice %320 {offsets = [0, 0], sizes = [16, 1], strides = [1, 1]} : vector<16x4xf32> to vector<16x1xf32>
    %cst_87 = arith.constant 0.000000e+00 : f32
    %349 = vector.shape_cast %348 : vector<16x1xf32> to vector<16x1xf32>
    %350 = vector.broadcast %349 : vector<16x1xf32> to vector<16x64xf32>
    %351 = vector.broadcast %cst_87 : f32 to vector<16x64xf32>
    %352 = arith.select %347, %350, %351 : vector<16x64xi1>, vector<16x64xf32>
    %c8_i32_88 = arith.constant 8 : i32
    %353 = vector.broadcast %c8_i32_88 : i32 to vector<16x64xi32>
    %354 = arith.cmpi eq, %338, %353 : vector<16x64xi32>
    %355 = vector.extract_strided_slice %327 {offsets = [0, 0], sizes = [16, 1], strides = [1, 1]} : vector<16x4xf32> to vector<16x1xf32>
    %cst_89 = arith.constant 0.000000e+00 : f32
    %356 = vector.shape_cast %355 : vector<16x1xf32> to vector<16x1xf32>
    %357 = vector.broadcast %356 : vector<16x1xf32> to vector<16x64xf32>
    %358 = vector.broadcast %cst_89 : f32 to vector<16x64xf32>
    %359 = arith.select %354, %357, %358 : vector<16x64xi1>, vector<16x64xf32>
    %c9_i32_90 = arith.constant 9 : i32
    %360 = vector.broadcast %c9_i32_90 : i32 to vector<16x64xi32>
    %361 = arith.cmpi eq, %338, %360 : vector<16x64xi32>
    %362 = vector.extract_strided_slice %332 {offsets = [0, 0], sizes = [16, 1], strides = [1, 1]} : vector<16x4xf32> to vector<16x1xf32>
    %cst_91 = arith.constant 0.000000e+00 : f32
    %363 = vector.shape_cast %362 : vector<16x1xf32> to vector<16x1xf32>
    %364 = vector.broadcast %363 : vector<16x1xf32> to vector<16x64xf32>
    %365 = vector.broadcast %cst_91 : f32 to vector<16x64xf32>
    %366 = arith.select %361, %364, %365 : vector<16x64xi1>, vector<16x64xf32>
    %367 = arith.addf %345, %352 : vector<16x64xf32>
    %368 = arith.addf %359, %366 : vector<16x64xf32>
    %369 = arith.addf %367, %368 : vector<16x64xf32>
    %370 = vector.extract_strided_slice %335 {offsets = [0, 1], sizes = [16, 1], strides = [1, 1]} : vector<16x4xi32> to vector<16x1xi32>
    %371 = vector.broadcast %370 : vector<16x1xi32> to vector<16x64xi32>
    %372 = arith.subi %60, %371 : vector<16x64xi32>
    %c0_i32_92 = arith.constant 0 : i32
    %373 = vector.broadcast %c0_i32_92 : i32 to vector<16x64xi32>
    %374 = arith.cmpi eq, %372, %373 : vector<16x64xi32>
    %375 = vector.extract_strided_slice %313 {offsets = [0, 1], sizes = [16, 1], strides = [1, 1]} : vector<16x4xf32> to vector<16x1xf32>
    %cst_93 = arith.constant 0.000000e+00 : f32
    %376 = vector.shape_cast %375 : vector<16x1xf32> to vector<16x1xf32>
    %377 = vector.broadcast %376 : vector<16x1xf32> to vector<16x64xf32>
    %378 = vector.broadcast %cst_93 : f32 to vector<16x64xf32>
    %379 = arith.select %374, %377, %378 : vector<16x64xi1>, vector<16x64xf32>
    %c1_i32_94 = arith.constant 1 : i32
    %380 = vector.broadcast %c1_i32_94 : i32 to vector<16x64xi32>
    %381 = arith.cmpi eq, %372, %380 : vector<16x64xi32>
    %382 = vector.extract_strided_slice %320 {offsets = [0, 1], sizes = [16, 1], strides = [1, 1]} : vector<16x4xf32> to vector<16x1xf32>
    %cst_95 = arith.constant 0.000000e+00 : f32
    %383 = vector.shape_cast %382 : vector<16x1xf32> to vector<16x1xf32>
    %384 = vector.broadcast %383 : vector<16x1xf32> to vector<16x64xf32>
    %385 = vector.broadcast %cst_95 : f32 to vector<16x64xf32>
    %386 = arith.select %381, %384, %385 : vector<16x64xi1>, vector<16x64xf32>
    %c8_i32_96 = arith.constant 8 : i32
    %387 = vector.broadcast %c8_i32_96 : i32 to vector<16x64xi32>
    %388 = arith.cmpi eq, %372, %387 : vector<16x64xi32>
    %389 = vector.extract_strided_slice %327 {offsets = [0, 1], sizes = [16, 1], strides = [1, 1]} : vector<16x4xf32> to vector<16x1xf32>
    %cst_97 = arith.constant 0.000000e+00 : f32
    %390 = vector.shape_cast %389 : vector<16x1xf32> to vector<16x1xf32>
    %391 = vector.broadcast %390 : vector<16x1xf32> to vector<16x64xf32>
    %392 = vector.broadcast %cst_97 : f32 to vector<16x64xf32>
    %393 = arith.select %388, %391, %392 : vector<16x64xi1>, vector<16x64xf32>
    %c9_i32_98 = arith.constant 9 : i32
    %394 = vector.broadcast %c9_i32_98 : i32 to vector<16x64xi32>
    %395 = arith.cmpi eq, %372, %394 : vector<16x64xi32>
    %396 = vector.extract_strided_slice %332 {offsets = [0, 1], sizes = [16, 1], strides = [1, 1]} : vector<16x4xf32> to vector<16x1xf32>
    %cst_99 = arith.constant 0.000000e+00 : f32
    %397 = vector.shape_cast %396 : vector<16x1xf32> to vector<16x1xf32>
    %398 = vector.broadcast %397 : vector<16x1xf32> to vector<16x64xf32>
    %399 = vector.broadcast %cst_99 : f32 to vector<16x64xf32>
    %400 = arith.select %395, %398, %399 : vector<16x64xi1>, vector<16x64xf32>
    %401 = arith.addf %379, %386 : vector<16x64xf32>
    %402 = arith.addf %393, %400 : vector<16x64xf32>
    %403 = arith.addf %401, %402 : vector<16x64xf32>
    %404 = vector.extract_strided_slice %335 {offsets = [0, 2], sizes = [16, 1], strides = [1, 1]} : vector<16x4xi32> to vector<16x1xi32>
    %405 = vector.broadcast %404 : vector<16x1xi32> to vector<16x64xi32>
    %406 = arith.subi %60, %405 : vector<16x64xi32>
    %c0_i32_100 = arith.constant 0 : i32
    %407 = vector.broadcast %c0_i32_100 : i32 to vector<16x64xi32>
    %408 = arith.cmpi eq, %406, %407 : vector<16x64xi32>
    %409 = vector.extract_strided_slice %313 {offsets = [0, 2], sizes = [16, 1], strides = [1, 1]} : vector<16x4xf32> to vector<16x1xf32>
    %cst_101 = arith.constant 0.000000e+00 : f32
    %410 = vector.shape_cast %409 : vector<16x1xf32> to vector<16x1xf32>
    %411 = vector.broadcast %410 : vector<16x1xf32> to vector<16x64xf32>
    %412 = vector.broadcast %cst_101 : f32 to vector<16x64xf32>
    %413 = arith.select %408, %411, %412 : vector<16x64xi1>, vector<16x64xf32>
    %c1_i32_102 = arith.constant 1 : i32
    %414 = vector.broadcast %c1_i32_102 : i32 to vector<16x64xi32>
    %415 = arith.cmpi eq, %406, %414 : vector<16x64xi32>
    %416 = vector.extract_strided_slice %320 {offsets = [0, 2], sizes = [16, 1], strides = [1, 1]} : vector<16x4xf32> to vector<16x1xf32>
    %cst_103 = arith.constant 0.000000e+00 : f32
    %417 = vector.shape_cast %416 : vector<16x1xf32> to vector<16x1xf32>
    %418 = vector.broadcast %417 : vector<16x1xf32> to vector<16x64xf32>
    %419 = vector.broadcast %cst_103 : f32 to vector<16x64xf32>
    %420 = arith.select %415, %418, %419 : vector<16x64xi1>, vector<16x64xf32>
    %c8_i32_104 = arith.constant 8 : i32
    %421 = vector.broadcast %c8_i32_104 : i32 to vector<16x64xi32>
    %422 = arith.cmpi eq, %406, %421 : vector<16x64xi32>
    %423 = vector.extract_strided_slice %327 {offsets = [0, 2], sizes = [16, 1], strides = [1, 1]} : vector<16x4xf32> to vector<16x1xf32>
    %cst_105 = arith.constant 0.000000e+00 : f32
    %424 = vector.shape_cast %423 : vector<16x1xf32> to vector<16x1xf32>
    %425 = vector.broadcast %424 : vector<16x1xf32> to vector<16x64xf32>
    %426 = vector.broadcast %cst_105 : f32 to vector<16x64xf32>
    %427 = arith.select %422, %425, %426 : vector<16x64xi1>, vector<16x64xf32>
    %c9_i32_106 = arith.constant 9 : i32
    %428 = vector.broadcast %c9_i32_106 : i32 to vector<16x64xi32>
    %429 = arith.cmpi eq, %406, %428 : vector<16x64xi32>
    %430 = vector.extract_strided_slice %332 {offsets = [0, 2], sizes = [16, 1], strides = [1, 1]} : vector<16x4xf32> to vector<16x1xf32>
    %cst_107 = arith.constant 0.000000e+00 : f32
    %431 = vector.shape_cast %430 : vector<16x1xf32> to vector<16x1xf32>
    %432 = vector.broadcast %431 : vector<16x1xf32> to vector<16x64xf32>
    %433 = vector.broadcast %cst_107 : f32 to vector<16x64xf32>
    %434 = arith.select %429, %432, %433 : vector<16x64xi1>, vector<16x64xf32>
    %435 = arith.addf %413, %420 : vector<16x64xf32>
    %436 = arith.addf %427, %434 : vector<16x64xf32>
    %437 = arith.addf %435, %436 : vector<16x64xf32>
    %438 = vector.extract_strided_slice %335 {offsets = [0, 3], sizes = [16, 1], strides = [1, 1]} : vector<16x4xi32> to vector<16x1xi32>
    %439 = vector.broadcast %438 : vector<16x1xi32> to vector<16x64xi32>
    %440 = arith.subi %60, %439 : vector<16x64xi32>
    %c0_i32_108 = arith.constant 0 : i32
    %441 = vector.broadcast %c0_i32_108 : i32 to vector<16x64xi32>
    %442 = arith.cmpi eq, %440, %441 : vector<16x64xi32>
    %443 = vector.extract_strided_slice %313 {offsets = [0, 3], sizes = [16, 1], strides = [1, 1]} : vector<16x4xf32> to vector<16x1xf32>
    %cst_109 = arith.constant 0.000000e+00 : f32
    %444 = vector.shape_cast %443 : vector<16x1xf32> to vector<16x1xf32>
    %445 = vector.broadcast %444 : vector<16x1xf32> to vector<16x64xf32>
    %446 = vector.broadcast %cst_109 : f32 to vector<16x64xf32>
    %447 = arith.select %442, %445, %446 : vector<16x64xi1>, vector<16x64xf32>
    %c1_i32_110 = arith.constant 1 : i32
    %448 = vector.broadcast %c1_i32_110 : i32 to vector<16x64xi32>
    %449 = arith.cmpi eq, %440, %448 : vector<16x64xi32>
    %450 = vector.extract_strided_slice %320 {offsets = [0, 3], sizes = [16, 1], strides = [1, 1]} : vector<16x4xf32> to vector<16x1xf32>
    %cst_111 = arith.constant 0.000000e+00 : f32
    %451 = vector.shape_cast %450 : vector<16x1xf32> to vector<16x1xf32>
    %452 = vector.broadcast %451 : vector<16x1xf32> to vector<16x64xf32>
    %453 = vector.broadcast %cst_111 : f32 to vector<16x64xf32>
    %454 = arith.select %449, %452, %453 : vector<16x64xi1>, vector<16x64xf32>
    %c8_i32_112 = arith.constant 8 : i32
    %455 = vector.broadcast %c8_i32_112 : i32 to vector<16x64xi32>
    %456 = arith.cmpi eq, %440, %455 : vector<16x64xi32>
    %457 = vector.extract_strided_slice %327 {offsets = [0, 3], sizes = [16, 1], strides = [1, 1]} : vector<16x4xf32> to vector<16x1xf32>
    %cst_113 = arith.constant 0.000000e+00 : f32
    %458 = vector.shape_cast %457 : vector<16x1xf32> to vector<16x1xf32>
    %459 = vector.broadcast %458 : vector<16x1xf32> to vector<16x64xf32>
    %460 = vector.broadcast %cst_113 : f32 to vector<16x64xf32>
    %461 = arith.select %456, %459, %460 : vector<16x64xi1>, vector<16x64xf32>
    %c9_i32_114 = arith.constant 9 : i32
    %462 = vector.broadcast %c9_i32_114 : i32 to vector<16x64xi32>
    %463 = arith.cmpi eq, %440, %462 : vector<16x64xi32>
    %464 = vector.extract_strided_slice %332 {offsets = [0, 3], sizes = [16, 1], strides = [1, 1]} : vector<16x4xf32> to vector<16x1xf32>
    %cst_115 = arith.constant 0.000000e+00 : f32
    %465 = vector.shape_cast %464 : vector<16x1xf32> to vector<16x1xf32>
    %466 = vector.broadcast %465 : vector<16x1xf32> to vector<16x64xf32>
    %467 = vector.broadcast %cst_115 : f32 to vector<16x64xf32>
    %468 = arith.select %463, %466, %467 : vector<16x64xi1>, vector<16x64xf32>
    %469 = arith.addf %447, %454 : vector<16x64xf32>
    %470 = arith.addf %461, %468 : vector<16x64xf32>
    %471 = arith.addf %469, %470 : vector<16x64xf32>
    %472 = arith.addf %369, %403 : vector<16x64xf32>
    %473 = arith.addf %437, %471 : vector<16x64xf32>
    %474 = arith.addf %472, %473 : vector<16x64xf32>
    %475 = vector.extract_strided_slice %14 {offsets = [0, 8], sizes = [16, 4], strides = [1, 1]} : vector<32x16xf32> to vector<16x4xf32>
    %476 = vector.extract_strided_slice %19 {offsets = [0, 8], sizes = [16, 4], strides = [1, 1]} : vector<32x16xf32> to vector<16x4xf32>
    %477 = vector.extract_strided_slice %49 {offsets = [0, 0], sizes = [16, 4], strides = [1, 1]} : vector<32x4xf32> to vector<16x4xf32>
    %cst_116 = arith.constant 1.000000e+00 : f32
    %478 = vector.broadcast %cst_116 : f32 to vector<16x4xf32>
    %479 = arith.addf %475, %478 : vector<16x4xf32>
    %cst_117 = arith.constant 3.500000e+00 : f32
    %480 = vector.broadcast %cst_117 : f32 to vector<16x4xf32>
    %481 = arith.mulf %479, %480 : vector<16x4xf32>
    %cst_118 = arith.constant 1.000000e+00 : f32
    %482 = vector.broadcast %cst_118 : f32 to vector<16x4xf32>
    %483 = arith.addf %476, %482 : vector<16x4xf32>
    %cst_119 = arith.constant 3.500000e+00 : f32
    %484 = vector.broadcast %cst_119 : f32 to vector<16x4xf32>
    %485 = arith.mulf %483, %484 : vector<16x4xf32>
    %486 = math.floor %481 : vector<16x4xf32>
    %487 = math.floor %485 : vector<16x4xf32>
    %488 = arith.subf %481, %486 : vector<16x4xf32>
    %489 = arith.subf %485, %487 : vector<16x4xf32>
    %490 = arith.fptosi %486 : vector<16x4xf32> to vector<16x4xi32>
    %491 = arith.fptosi %487 : vector<16x4xf32> to vector<16x4xi32>
    %c0_i32_120 = arith.constant 0 : i32
    %492 = vector.broadcast %c0_i32_120 : i32 to vector<16x4xi32>
    %493 = arith.cmpi sge, %490, %492 : vector<16x4xi32>
    %c7_i32_121 = arith.constant 7 : i32
    %494 = vector.broadcast %c7_i32_121 : i32 to vector<16x4xi32>
    %495 = arith.cmpi sle, %490, %494 : vector<16x4xi32>
    %496 = arith.andi %493, %495 : vector<16x4xi1>
    %c-1_i32_122 = arith.constant -1 : i32
    %497 = vector.broadcast %c-1_i32_122 : i32 to vector<16x4xi32>
    %498 = arith.cmpi sge, %490, %497 : vector<16x4xi32>
    %c6_i32_123 = arith.constant 6 : i32
    %499 = vector.broadcast %c6_i32_123 : i32 to vector<16x4xi32>
    %500 = arith.cmpi sle, %490, %499 : vector<16x4xi32>
    %501 = arith.andi %498, %500 : vector<16x4xi1>
    %c0_i32_124 = arith.constant 0 : i32
    %502 = vector.broadcast %c0_i32_124 : i32 to vector<16x4xi32>
    %503 = arith.cmpi sge, %491, %502 : vector<16x4xi32>
    %c7_i32_125 = arith.constant 7 : i32
    %504 = vector.broadcast %c7_i32_125 : i32 to vector<16x4xi32>
    %505 = arith.cmpi sle, %491, %504 : vector<16x4xi32>
    %506 = arith.andi %503, %505 : vector<16x4xi1>
    %c-1_i32_126 = arith.constant -1 : i32
    %507 = vector.broadcast %c-1_i32_126 : i32 to vector<16x4xi32>
    %508 = arith.cmpi sge, %491, %507 : vector<16x4xi32>
    %c6_i32_127 = arith.constant 6 : i32
    %509 = vector.broadcast %c6_i32_127 : i32 to vector<16x4xi32>
    %510 = arith.cmpi sle, %491, %509 : vector<16x4xi32>
    %511 = arith.andi %508, %510 : vector<16x4xi1>
    %512 = arith.andi %496, %506 : vector<16x4xi1>
    %cst_128 = arith.constant 1.000000e+00 : f32
    %513 = vector.broadcast %cst_128 : f32 to vector<16x4xf32>
    %514 = arith.subf %513, %488 : vector<16x4xf32>
    %cst_129 = arith.constant 1.000000e+00 : f32
    %515 = vector.broadcast %cst_129 : f32 to vector<16x4xf32>
    %516 = arith.subf %515, %489 : vector<16x4xf32>
    %517 = arith.mulf %514, %516 : vector<16x4xf32>
    %518 = arith.mulf %517, %477 : vector<16x4xf32>
    %cst_130 = arith.constant 0.000000e+00 : f32
    %519 = vector.broadcast %cst_130 : f32 to vector<16x4xf32>
    %520 = arith.select %512, %518, %519 : vector<16x4xi1>, vector<16x4xf32>
    %521 = arith.andi %501, %506 : vector<16x4xi1>
    %cst_131 = arith.constant 1.000000e+00 : f32
    %522 = vector.broadcast %cst_131 : f32 to vector<16x4xf32>
    %523 = arith.subf %522, %489 : vector<16x4xf32>
    %524 = arith.mulf %488, %523 : vector<16x4xf32>
    %525 = arith.mulf %524, %477 : vector<16x4xf32>
    %cst_132 = arith.constant 0.000000e+00 : f32
    %526 = vector.broadcast %cst_132 : f32 to vector<16x4xf32>
    %527 = arith.select %521, %525, %526 : vector<16x4xi1>, vector<16x4xf32>
    %528 = arith.andi %496, %511 : vector<16x4xi1>
    %cst_133 = arith.constant 1.000000e+00 : f32
    %529 = vector.broadcast %cst_133 : f32 to vector<16x4xf32>
    %530 = arith.subf %529, %488 : vector<16x4xf32>
    %531 = arith.mulf %530, %489 : vector<16x4xf32>
    %532 = arith.mulf %531, %477 : vector<16x4xf32>
    %cst_134 = arith.constant 0.000000e+00 : f32
    %533 = vector.broadcast %cst_134 : f32 to vector<16x4xf32>
    %534 = arith.select %528, %532, %533 : vector<16x4xi1>, vector<16x4xf32>
    %535 = arith.andi %501, %511 : vector<16x4xi1>
    %536 = arith.mulf %488, %489 : vector<16x4xf32>
    %537 = arith.mulf %536, %477 : vector<16x4xf32>
    %cst_135 = arith.constant 0.000000e+00 : f32
    %538 = vector.broadcast %cst_135 : f32 to vector<16x4xf32>
    %539 = arith.select %535, %537, %538 : vector<16x4xi1>, vector<16x4xf32>
    %c8_i32_136 = arith.constant 8 : i32
    %540 = vector.broadcast %c8_i32_136 : i32 to vector<16x4xi32>
    %541 = arith.muli %491, %540 : vector<16x4xi32>
    %542 = arith.addi %541, %490 : vector<16x4xi32>
    %543 = vector.extract_strided_slice %542 {offsets = [0, 0], sizes = [16, 1], strides = [1, 1]} : vector<16x4xi32> to vector<16x1xi32>
    %544 = vector.broadcast %543 : vector<16x1xi32> to vector<16x64xi32>
    %545 = arith.subi %60, %544 : vector<16x64xi32>
    %c0_i32_137 = arith.constant 0 : i32
    %546 = vector.broadcast %c0_i32_137 : i32 to vector<16x64xi32>
    %547 = arith.cmpi eq, %545, %546 : vector<16x64xi32>
    %548 = vector.extract_strided_slice %520 {offsets = [0, 0], sizes = [16, 1], strides = [1, 1]} : vector<16x4xf32> to vector<16x1xf32>
    %cst_138 = arith.constant 0.000000e+00 : f32
    %549 = vector.shape_cast %548 : vector<16x1xf32> to vector<16x1xf32>
    %550 = vector.broadcast %549 : vector<16x1xf32> to vector<16x64xf32>
    %551 = vector.broadcast %cst_138 : f32 to vector<16x64xf32>
    %552 = arith.select %547, %550, %551 : vector<16x64xi1>, vector<16x64xf32>
    %c1_i32_139 = arith.constant 1 : i32
    %553 = vector.broadcast %c1_i32_139 : i32 to vector<16x64xi32>
    %554 = arith.cmpi eq, %545, %553 : vector<16x64xi32>
    %555 = vector.extract_strided_slice %527 {offsets = [0, 0], sizes = [16, 1], strides = [1, 1]} : vector<16x4xf32> to vector<16x1xf32>
    %cst_140 = arith.constant 0.000000e+00 : f32
    %556 = vector.shape_cast %555 : vector<16x1xf32> to vector<16x1xf32>
    %557 = vector.broadcast %556 : vector<16x1xf32> to vector<16x64xf32>
    %558 = vector.broadcast %cst_140 : f32 to vector<16x64xf32>
    %559 = arith.select %554, %557, %558 : vector<16x64xi1>, vector<16x64xf32>
    %c8_i32_141 = arith.constant 8 : i32
    %560 = vector.broadcast %c8_i32_141 : i32 to vector<16x64xi32>
    %561 = arith.cmpi eq, %545, %560 : vector<16x64xi32>
    %562 = vector.extract_strided_slice %534 {offsets = [0, 0], sizes = [16, 1], strides = [1, 1]} : vector<16x4xf32> to vector<16x1xf32>
    %cst_142 = arith.constant 0.000000e+00 : f32
    %563 = vector.shape_cast %562 : vector<16x1xf32> to vector<16x1xf32>
    %564 = vector.broadcast %563 : vector<16x1xf32> to vector<16x64xf32>
    %565 = vector.broadcast %cst_142 : f32 to vector<16x64xf32>
    %566 = arith.select %561, %564, %565 : vector<16x64xi1>, vector<16x64xf32>
    %c9_i32_143 = arith.constant 9 : i32
    %567 = vector.broadcast %c9_i32_143 : i32 to vector<16x64xi32>
    %568 = arith.cmpi eq, %545, %567 : vector<16x64xi32>
    %569 = vector.extract_strided_slice %539 {offsets = [0, 0], sizes = [16, 1], strides = [1, 1]} : vector<16x4xf32> to vector<16x1xf32>
    %cst_144 = arith.constant 0.000000e+00 : f32
    %570 = vector.shape_cast %569 : vector<16x1xf32> to vector<16x1xf32>
    %571 = vector.broadcast %570 : vector<16x1xf32> to vector<16x64xf32>
    %572 = vector.broadcast %cst_144 : f32 to vector<16x64xf32>
    %573 = arith.select %568, %571, %572 : vector<16x64xi1>, vector<16x64xf32>
    %574 = arith.addf %552, %559 : vector<16x64xf32>
    %575 = arith.addf %566, %573 : vector<16x64xf32>
    %576 = arith.addf %574, %575 : vector<16x64xf32>
    %577 = vector.extract_strided_slice %542 {offsets = [0, 1], sizes = [16, 1], strides = [1, 1]} : vector<16x4xi32> to vector<16x1xi32>
    %578 = vector.broadcast %577 : vector<16x1xi32> to vector<16x64xi32>
    %579 = arith.subi %60, %578 : vector<16x64xi32>
    %c0_i32_145 = arith.constant 0 : i32
    %580 = vector.broadcast %c0_i32_145 : i32 to vector<16x64xi32>
    %581 = arith.cmpi eq, %579, %580 : vector<16x64xi32>
    %582 = vector.extract_strided_slice %520 {offsets = [0, 1], sizes = [16, 1], strides = [1, 1]} : vector<16x4xf32> to vector<16x1xf32>
    %cst_146 = arith.constant 0.000000e+00 : f32
    %583 = vector.shape_cast %582 : vector<16x1xf32> to vector<16x1xf32>
    %584 = vector.broadcast %583 : vector<16x1xf32> to vector<16x64xf32>
    %585 = vector.broadcast %cst_146 : f32 to vector<16x64xf32>
    %586 = arith.select %581, %584, %585 : vector<16x64xi1>, vector<16x64xf32>
    %c1_i32_147 = arith.constant 1 : i32
    %587 = vector.broadcast %c1_i32_147 : i32 to vector<16x64xi32>
    %588 = arith.cmpi eq, %579, %587 : vector<16x64xi32>
    %589 = vector.extract_strided_slice %527 {offsets = [0, 1], sizes = [16, 1], strides = [1, 1]} : vector<16x4xf32> to vector<16x1xf32>
    %cst_148 = arith.constant 0.000000e+00 : f32
    %590 = vector.shape_cast %589 : vector<16x1xf32> to vector<16x1xf32>
    %591 = vector.broadcast %590 : vector<16x1xf32> to vector<16x64xf32>
    %592 = vector.broadcast %cst_148 : f32 to vector<16x64xf32>
    %593 = arith.select %588, %591, %592 : vector<16x64xi1>, vector<16x64xf32>
    %c8_i32_149 = arith.constant 8 : i32
    %594 = vector.broadcast %c8_i32_149 : i32 to vector<16x64xi32>
    %595 = arith.cmpi eq, %579, %594 : vector<16x64xi32>
    %596 = vector.extract_strided_slice %534 {offsets = [0, 1], sizes = [16, 1], strides = [1, 1]} : vector<16x4xf32> to vector<16x1xf32>
    %cst_150 = arith.constant 0.000000e+00 : f32
    %597 = vector.shape_cast %596 : vector<16x1xf32> to vector<16x1xf32>
    %598 = vector.broadcast %597 : vector<16x1xf32> to vector<16x64xf32>
    %599 = vector.broadcast %cst_150 : f32 to vector<16x64xf32>
    %600 = arith.select %595, %598, %599 : vector<16x64xi1>, vector<16x64xf32>
    %c9_i32_151 = arith.constant 9 : i32
    %601 = vector.broadcast %c9_i32_151 : i32 to vector<16x64xi32>
    %602 = arith.cmpi eq, %579, %601 : vector<16x64xi32>
    %603 = vector.extract_strided_slice %539 {offsets = [0, 1], sizes = [16, 1], strides = [1, 1]} : vector<16x4xf32> to vector<16x1xf32>
    %cst_152 = arith.constant 0.000000e+00 : f32
    %604 = vector.shape_cast %603 : vector<16x1xf32> to vector<16x1xf32>
    %605 = vector.broadcast %604 : vector<16x1xf32> to vector<16x64xf32>
    %606 = vector.broadcast %cst_152 : f32 to vector<16x64xf32>
    %607 = arith.select %602, %605, %606 : vector<16x64xi1>, vector<16x64xf32>
    %608 = arith.addf %586, %593 : vector<16x64xf32>
    %609 = arith.addf %600, %607 : vector<16x64xf32>
    %610 = arith.addf %608, %609 : vector<16x64xf32>
    %611 = vector.extract_strided_slice %542 {offsets = [0, 2], sizes = [16, 1], strides = [1, 1]} : vector<16x4xi32> to vector<16x1xi32>
    %612 = vector.broadcast %611 : vector<16x1xi32> to vector<16x64xi32>
    %613 = arith.subi %60, %612 : vector<16x64xi32>
    %c0_i32_153 = arith.constant 0 : i32
    %614 = vector.broadcast %c0_i32_153 : i32 to vector<16x64xi32>
    %615 = arith.cmpi eq, %613, %614 : vector<16x64xi32>
    %616 = vector.extract_strided_slice %520 {offsets = [0, 2], sizes = [16, 1], strides = [1, 1]} : vector<16x4xf32> to vector<16x1xf32>
    %cst_154 = arith.constant 0.000000e+00 : f32
    %617 = vector.shape_cast %616 : vector<16x1xf32> to vector<16x1xf32>
    %618 = vector.broadcast %617 : vector<16x1xf32> to vector<16x64xf32>
    %619 = vector.broadcast %cst_154 : f32 to vector<16x64xf32>
    %620 = arith.select %615, %618, %619 : vector<16x64xi1>, vector<16x64xf32>
    %c1_i32_155 = arith.constant 1 : i32
    %621 = vector.broadcast %c1_i32_155 : i32 to vector<16x64xi32>
    %622 = arith.cmpi eq, %613, %621 : vector<16x64xi32>
    %623 = vector.extract_strided_slice %527 {offsets = [0, 2], sizes = [16, 1], strides = [1, 1]} : vector<16x4xf32> to vector<16x1xf32>
    %cst_156 = arith.constant 0.000000e+00 : f32
    %624 = vector.shape_cast %623 : vector<16x1xf32> to vector<16x1xf32>
    %625 = vector.broadcast %624 : vector<16x1xf32> to vector<16x64xf32>
    %626 = vector.broadcast %cst_156 : f32 to vector<16x64xf32>
    %627 = arith.select %622, %625, %626 : vector<16x64xi1>, vector<16x64xf32>
    %c8_i32_157 = arith.constant 8 : i32
    %628 = vector.broadcast %c8_i32_157 : i32 to vector<16x64xi32>
    %629 = arith.cmpi eq, %613, %628 : vector<16x64xi32>
    %630 = vector.extract_strided_slice %534 {offsets = [0, 2], sizes = [16, 1], strides = [1, 1]} : vector<16x4xf32> to vector<16x1xf32>
    %cst_158 = arith.constant 0.000000e+00 : f32
    %631 = vector.shape_cast %630 : vector<16x1xf32> to vector<16x1xf32>
    %632 = vector.broadcast %631 : vector<16x1xf32> to vector<16x64xf32>
    %633 = vector.broadcast %cst_158 : f32 to vector<16x64xf32>
    %634 = arith.select %629, %632, %633 : vector<16x64xi1>, vector<16x64xf32>
    %c9_i32_159 = arith.constant 9 : i32
    %635 = vector.broadcast %c9_i32_159 : i32 to vector<16x64xi32>
    %636 = arith.cmpi eq, %613, %635 : vector<16x64xi32>
    %637 = vector.extract_strided_slice %539 {offsets = [0, 2], sizes = [16, 1], strides = [1, 1]} : vector<16x4xf32> to vector<16x1xf32>
    %cst_160 = arith.constant 0.000000e+00 : f32
    %638 = vector.shape_cast %637 : vector<16x1xf32> to vector<16x1xf32>
    %639 = vector.broadcast %638 : vector<16x1xf32> to vector<16x64xf32>
    %640 = vector.broadcast %cst_160 : f32 to vector<16x64xf32>
    %641 = arith.select %636, %639, %640 : vector<16x64xi1>, vector<16x64xf32>
    %642 = arith.addf %620, %627 : vector<16x64xf32>
    %643 = arith.addf %634, %641 : vector<16x64xf32>
    %644 = arith.addf %642, %643 : vector<16x64xf32>
    %645 = vector.extract_strided_slice %542 {offsets = [0, 3], sizes = [16, 1], strides = [1, 1]} : vector<16x4xi32> to vector<16x1xi32>
    %646 = vector.broadcast %645 : vector<16x1xi32> to vector<16x64xi32>
    %647 = arith.subi %60, %646 : vector<16x64xi32>
    %c0_i32_161 = arith.constant 0 : i32
    %648 = vector.broadcast %c0_i32_161 : i32 to vector<16x64xi32>
    %649 = arith.cmpi eq, %647, %648 : vector<16x64xi32>
    %650 = vector.extract_strided_slice %520 {offsets = [0, 3], sizes = [16, 1], strides = [1, 1]} : vector<16x4xf32> to vector<16x1xf32>
    %cst_162 = arith.constant 0.000000e+00 : f32
    %651 = vector.shape_cast %650 : vector<16x1xf32> to vector<16x1xf32>
    %652 = vector.broadcast %651 : vector<16x1xf32> to vector<16x64xf32>
    %653 = vector.broadcast %cst_162 : f32 to vector<16x64xf32>
    %654 = arith.select %649, %652, %653 : vector<16x64xi1>, vector<16x64xf32>
    %c1_i32_163 = arith.constant 1 : i32
    %655 = vector.broadcast %c1_i32_163 : i32 to vector<16x64xi32>
    %656 = arith.cmpi eq, %647, %655 : vector<16x64xi32>
    %657 = vector.extract_strided_slice %527 {offsets = [0, 3], sizes = [16, 1], strides = [1, 1]} : vector<16x4xf32> to vector<16x1xf32>
    %cst_164 = arith.constant 0.000000e+00 : f32
    %658 = vector.shape_cast %657 : vector<16x1xf32> to vector<16x1xf32>
    %659 = vector.broadcast %658 : vector<16x1xf32> to vector<16x64xf32>
    %660 = vector.broadcast %cst_164 : f32 to vector<16x64xf32>
    %661 = arith.select %656, %659, %660 : vector<16x64xi1>, vector<16x64xf32>
    %c8_i32_165 = arith.constant 8 : i32
    %662 = vector.broadcast %c8_i32_165 : i32 to vector<16x64xi32>
    %663 = arith.cmpi eq, %647, %662 : vector<16x64xi32>
    %664 = vector.extract_strided_slice %534 {offsets = [0, 3], sizes = [16, 1], strides = [1, 1]} : vector<16x4xf32> to vector<16x1xf32>
    %cst_166 = arith.constant 0.000000e+00 : f32
    %665 = vector.shape_cast %664 : vector<16x1xf32> to vector<16x1xf32>
    %666 = vector.broadcast %665 : vector<16x1xf32> to vector<16x64xf32>
    %667 = vector.broadcast %cst_166 : f32 to vector<16x64xf32>
    %668 = arith.select %663, %666, %667 : vector<16x64xi1>, vector<16x64xf32>
    %c9_i32_167 = arith.constant 9 : i32
    %669 = vector.broadcast %c9_i32_167 : i32 to vector<16x64xi32>
    %670 = arith.cmpi eq, %647, %669 : vector<16x64xi32>
    %671 = vector.extract_strided_slice %539 {offsets = [0, 3], sizes = [16, 1], strides = [1, 1]} : vector<16x4xf32> to vector<16x1xf32>
    %cst_168 = arith.constant 0.000000e+00 : f32
    %672 = vector.shape_cast %671 : vector<16x1xf32> to vector<16x1xf32>
    %673 = vector.broadcast %672 : vector<16x1xf32> to vector<16x64xf32>
    %674 = vector.broadcast %cst_168 : f32 to vector<16x64xf32>
    %675 = arith.select %670, %673, %674 : vector<16x64xi1>, vector<16x64xf32>
    %676 = arith.addf %654, %661 : vector<16x64xf32>
    %677 = arith.addf %668, %675 : vector<16x64xf32>
    %678 = arith.addf %676, %677 : vector<16x64xf32>
    %679 = arith.addf %576, %610 : vector<16x64xf32>
    %680 = arith.addf %644, %678 : vector<16x64xf32>
    %681 = arith.addf %679, %680 : vector<16x64xf32>
    %682 = vector.extract_strided_slice %14 {offsets = [0, 12], sizes = [16, 4], strides = [1, 1]} : vector<32x16xf32> to vector<16x4xf32>
    %683 = vector.extract_strided_slice %19 {offsets = [0, 12], sizes = [16, 4], strides = [1, 1]} : vector<32x16xf32> to vector<16x4xf32>
    %684 = vector.extract_strided_slice %59 {offsets = [0, 0], sizes = [16, 4], strides = [1, 1]} : vector<32x4xf32> to vector<16x4xf32>
    %cst_169 = arith.constant 1.000000e+00 : f32
    %685 = vector.broadcast %cst_169 : f32 to vector<16x4xf32>
    %686 = arith.addf %682, %685 : vector<16x4xf32>
    %cst_170 = arith.constant 3.500000e+00 : f32
    %687 = vector.broadcast %cst_170 : f32 to vector<16x4xf32>
    %688 = arith.mulf %686, %687 : vector<16x4xf32>
    %cst_171 = arith.constant 1.000000e+00 : f32
    %689 = vector.broadcast %cst_171 : f32 to vector<16x4xf32>
    %690 = arith.addf %683, %689 : vector<16x4xf32>
    %cst_172 = arith.constant 3.500000e+00 : f32
    %691 = vector.broadcast %cst_172 : f32 to vector<16x4xf32>
    %692 = arith.mulf %690, %691 : vector<16x4xf32>
    %693 = math.floor %688 : vector<16x4xf32>
    %694 = math.floor %692 : vector<16x4xf32>
    %695 = arith.subf %688, %693 : vector<16x4xf32>
    %696 = arith.subf %692, %694 : vector<16x4xf32>
    %697 = arith.fptosi %693 : vector<16x4xf32> to vector<16x4xi32>
    %698 = arith.fptosi %694 : vector<16x4xf32> to vector<16x4xi32>
    %c0_i32_173 = arith.constant 0 : i32
    %699 = vector.broadcast %c0_i32_173 : i32 to vector<16x4xi32>
    %700 = arith.cmpi sge, %697, %699 : vector<16x4xi32>
    %c7_i32_174 = arith.constant 7 : i32
    %701 = vector.broadcast %c7_i32_174 : i32 to vector<16x4xi32>
    %702 = arith.cmpi sle, %697, %701 : vector<16x4xi32>
    %703 = arith.andi %700, %702 : vector<16x4xi1>
    %c-1_i32_175 = arith.constant -1 : i32
    %704 = vector.broadcast %c-1_i32_175 : i32 to vector<16x4xi32>
    %705 = arith.cmpi sge, %697, %704 : vector<16x4xi32>
    %c6_i32_176 = arith.constant 6 : i32
    %706 = vector.broadcast %c6_i32_176 : i32 to vector<16x4xi32>
    %707 = arith.cmpi sle, %697, %706 : vector<16x4xi32>
    %708 = arith.andi %705, %707 : vector<16x4xi1>
    %c0_i32_177 = arith.constant 0 : i32
    %709 = vector.broadcast %c0_i32_177 : i32 to vector<16x4xi32>
    %710 = arith.cmpi sge, %698, %709 : vector<16x4xi32>
    %c7_i32_178 = arith.constant 7 : i32
    %711 = vector.broadcast %c7_i32_178 : i32 to vector<16x4xi32>
    %712 = arith.cmpi sle, %698, %711 : vector<16x4xi32>
    %713 = arith.andi %710, %712 : vector<16x4xi1>
    %c-1_i32_179 = arith.constant -1 : i32
    %714 = vector.broadcast %c-1_i32_179 : i32 to vector<16x4xi32>
    %715 = arith.cmpi sge, %698, %714 : vector<16x4xi32>
    %c6_i32_180 = arith.constant 6 : i32
    %716 = vector.broadcast %c6_i32_180 : i32 to vector<16x4xi32>
    %717 = arith.cmpi sle, %698, %716 : vector<16x4xi32>
    %718 = arith.andi %715, %717 : vector<16x4xi1>
    %719 = arith.andi %703, %713 : vector<16x4xi1>
    %cst_181 = arith.constant 1.000000e+00 : f32
    %720 = vector.broadcast %cst_181 : f32 to vector<16x4xf32>
    %721 = arith.subf %720, %695 : vector<16x4xf32>
    %cst_182 = arith.constant 1.000000e+00 : f32
    %722 = vector.broadcast %cst_182 : f32 to vector<16x4xf32>
    %723 = arith.subf %722, %696 : vector<16x4xf32>
    %724 = arith.mulf %721, %723 : vector<16x4xf32>
    %725 = arith.mulf %724, %684 : vector<16x4xf32>
    %cst_183 = arith.constant 0.000000e+00 : f32
    %726 = vector.broadcast %cst_183 : f32 to vector<16x4xf32>
    %727 = arith.select %719, %725, %726 : vector<16x4xi1>, vector<16x4xf32>
    %728 = arith.andi %708, %713 : vector<16x4xi1>
    %cst_184 = arith.constant 1.000000e+00 : f32
    %729 = vector.broadcast %cst_184 : f32 to vector<16x4xf32>
    %730 = arith.subf %729, %696 : vector<16x4xf32>
    %731 = arith.mulf %695, %730 : vector<16x4xf32>
    %732 = arith.mulf %731, %684 : vector<16x4xf32>
    %cst_185 = arith.constant 0.000000e+00 : f32
    %733 = vector.broadcast %cst_185 : f32 to vector<16x4xf32>
    %734 = arith.select %728, %732, %733 : vector<16x4xi1>, vector<16x4xf32>
    %735 = arith.andi %703, %718 : vector<16x4xi1>
    %cst_186 = arith.constant 1.000000e+00 : f32
    %736 = vector.broadcast %cst_186 : f32 to vector<16x4xf32>
    %737 = arith.subf %736, %695 : vector<16x4xf32>
    %738 = arith.mulf %737, %696 : vector<16x4xf32>
    %739 = arith.mulf %738, %684 : vector<16x4xf32>
    %cst_187 = arith.constant 0.000000e+00 : f32
    %740 = vector.broadcast %cst_187 : f32 to vector<16x4xf32>
    %741 = arith.select %735, %739, %740 : vector<16x4xi1>, vector<16x4xf32>
    %742 = arith.andi %708, %718 : vector<16x4xi1>
    %743 = arith.mulf %695, %696 : vector<16x4xf32>
    %744 = arith.mulf %743, %684 : vector<16x4xf32>
    %cst_188 = arith.constant 0.000000e+00 : f32
    %745 = vector.broadcast %cst_188 : f32 to vector<16x4xf32>
    %746 = arith.select %742, %744, %745 : vector<16x4xi1>, vector<16x4xf32>
    %c8_i32_189 = arith.constant 8 : i32
    %747 = vector.broadcast %c8_i32_189 : i32 to vector<16x4xi32>
    %748 = arith.muli %698, %747 : vector<16x4xi32>
    %749 = arith.addi %748, %697 : vector<16x4xi32>
    %750 = vector.extract_strided_slice %749 {offsets = [0, 0], sizes = [16, 1], strides = [1, 1]} : vector<16x4xi32> to vector<16x1xi32>
    %751 = vector.broadcast %750 : vector<16x1xi32> to vector<16x64xi32>
    %752 = arith.subi %60, %751 : vector<16x64xi32>
    %c0_i32_190 = arith.constant 0 : i32
    %753 = vector.broadcast %c0_i32_190 : i32 to vector<16x64xi32>
    %754 = arith.cmpi eq, %752, %753 : vector<16x64xi32>
    %755 = vector.extract_strided_slice %727 {offsets = [0, 0], sizes = [16, 1], strides = [1, 1]} : vector<16x4xf32> to vector<16x1xf32>
    %cst_191 = arith.constant 0.000000e+00 : f32
    %756 = vector.shape_cast %755 : vector<16x1xf32> to vector<16x1xf32>
    %757 = vector.broadcast %756 : vector<16x1xf32> to vector<16x64xf32>
    %758 = vector.broadcast %cst_191 : f32 to vector<16x64xf32>
    %759 = arith.select %754, %757, %758 : vector<16x64xi1>, vector<16x64xf32>
    %c1_i32_192 = arith.constant 1 : i32
    %760 = vector.broadcast %c1_i32_192 : i32 to vector<16x64xi32>
    %761 = arith.cmpi eq, %752, %760 : vector<16x64xi32>
    %762 = vector.extract_strided_slice %734 {offsets = [0, 0], sizes = [16, 1], strides = [1, 1]} : vector<16x4xf32> to vector<16x1xf32>
    %cst_193 = arith.constant 0.000000e+00 : f32
    %763 = vector.shape_cast %762 : vector<16x1xf32> to vector<16x1xf32>
    %764 = vector.broadcast %763 : vector<16x1xf32> to vector<16x64xf32>
    %765 = vector.broadcast %cst_193 : f32 to vector<16x64xf32>
    %766 = arith.select %761, %764, %765 : vector<16x64xi1>, vector<16x64xf32>
    %c8_i32_194 = arith.constant 8 : i32
    %767 = vector.broadcast %c8_i32_194 : i32 to vector<16x64xi32>
    %768 = arith.cmpi eq, %752, %767 : vector<16x64xi32>
    %769 = vector.extract_strided_slice %741 {offsets = [0, 0], sizes = [16, 1], strides = [1, 1]} : vector<16x4xf32> to vector<16x1xf32>
    %cst_195 = arith.constant 0.000000e+00 : f32
    %770 = vector.shape_cast %769 : vector<16x1xf32> to vector<16x1xf32>
    %771 = vector.broadcast %770 : vector<16x1xf32> to vector<16x64xf32>
    %772 = vector.broadcast %cst_195 : f32 to vector<16x64xf32>
    %773 = arith.select %768, %771, %772 : vector<16x64xi1>, vector<16x64xf32>
    %c9_i32_196 = arith.constant 9 : i32
    %774 = vector.broadcast %c9_i32_196 : i32 to vector<16x64xi32>
    %775 = arith.cmpi eq, %752, %774 : vector<16x64xi32>
    %776 = vector.extract_strided_slice %746 {offsets = [0, 0], sizes = [16, 1], strides = [1, 1]} : vector<16x4xf32> to vector<16x1xf32>
    %cst_197 = arith.constant 0.000000e+00 : f32
    %777 = vector.shape_cast %776 : vector<16x1xf32> to vector<16x1xf32>
    %778 = vector.broadcast %777 : vector<16x1xf32> to vector<16x64xf32>
    %779 = vector.broadcast %cst_197 : f32 to vector<16x64xf32>
    %780 = arith.select %775, %778, %779 : vector<16x64xi1>, vector<16x64xf32>
    %781 = arith.addf %759, %766 : vector<16x64xf32>
    %782 = arith.addf %773, %780 : vector<16x64xf32>
    %783 = arith.addf %781, %782 : vector<16x64xf32>
    %784 = vector.extract_strided_slice %749 {offsets = [0, 1], sizes = [16, 1], strides = [1, 1]} : vector<16x4xi32> to vector<16x1xi32>
    %785 = vector.broadcast %784 : vector<16x1xi32> to vector<16x64xi32>
    %786 = arith.subi %60, %785 : vector<16x64xi32>
    %c0_i32_198 = arith.constant 0 : i32
    %787 = vector.broadcast %c0_i32_198 : i32 to vector<16x64xi32>
    %788 = arith.cmpi eq, %786, %787 : vector<16x64xi32>
    %789 = vector.extract_strided_slice %727 {offsets = [0, 1], sizes = [16, 1], strides = [1, 1]} : vector<16x4xf32> to vector<16x1xf32>
    %cst_199 = arith.constant 0.000000e+00 : f32
    %790 = vector.shape_cast %789 : vector<16x1xf32> to vector<16x1xf32>
    %791 = vector.broadcast %790 : vector<16x1xf32> to vector<16x64xf32>
    %792 = vector.broadcast %cst_199 : f32 to vector<16x64xf32>
    %793 = arith.select %788, %791, %792 : vector<16x64xi1>, vector<16x64xf32>
    %c1_i32_200 = arith.constant 1 : i32
    %794 = vector.broadcast %c1_i32_200 : i32 to vector<16x64xi32>
    %795 = arith.cmpi eq, %786, %794 : vector<16x64xi32>
    %796 = vector.extract_strided_slice %734 {offsets = [0, 1], sizes = [16, 1], strides = [1, 1]} : vector<16x4xf32> to vector<16x1xf32>
    %cst_201 = arith.constant 0.000000e+00 : f32
    %797 = vector.shape_cast %796 : vector<16x1xf32> to vector<16x1xf32>
    %798 = vector.broadcast %797 : vector<16x1xf32> to vector<16x64xf32>
    %799 = vector.broadcast %cst_201 : f32 to vector<16x64xf32>
    %800 = arith.select %795, %798, %799 : vector<16x64xi1>, vector<16x64xf32>
    %c8_i32_202 = arith.constant 8 : i32
    %801 = vector.broadcast %c8_i32_202 : i32 to vector<16x64xi32>
    %802 = arith.cmpi eq, %786, %801 : vector<16x64xi32>
    %803 = vector.extract_strided_slice %741 {offsets = [0, 1], sizes = [16, 1], strides = [1, 1]} : vector<16x4xf32> to vector<16x1xf32>
    %cst_203 = arith.constant 0.000000e+00 : f32
    %804 = vector.shape_cast %803 : vector<16x1xf32> to vector<16x1xf32>
    %805 = vector.broadcast %804 : vector<16x1xf32> to vector<16x64xf32>
    %806 = vector.broadcast %cst_203 : f32 to vector<16x64xf32>
    %807 = arith.select %802, %805, %806 : vector<16x64xi1>, vector<16x64xf32>
    %c9_i32_204 = arith.constant 9 : i32
    %808 = vector.broadcast %c9_i32_204 : i32 to vector<16x64xi32>
    %809 = arith.cmpi eq, %786, %808 : vector<16x64xi32>
    %810 = vector.extract_strided_slice %746 {offsets = [0, 1], sizes = [16, 1], strides = [1, 1]} : vector<16x4xf32> to vector<16x1xf32>
    %cst_205 = arith.constant 0.000000e+00 : f32
    %811 = vector.shape_cast %810 : vector<16x1xf32> to vector<16x1xf32>
    %812 = vector.broadcast %811 : vector<16x1xf32> to vector<16x64xf32>
    %813 = vector.broadcast %cst_205 : f32 to vector<16x64xf32>
    %814 = arith.select %809, %812, %813 : vector<16x64xi1>, vector<16x64xf32>
    %815 = arith.addf %793, %800 : vector<16x64xf32>
    %816 = arith.addf %807, %814 : vector<16x64xf32>
    %817 = arith.addf %815, %816 : vector<16x64xf32>
    %818 = vector.extract_strided_slice %749 {offsets = [0, 2], sizes = [16, 1], strides = [1, 1]} : vector<16x4xi32> to vector<16x1xi32>
    %819 = vector.broadcast %818 : vector<16x1xi32> to vector<16x64xi32>
    %820 = arith.subi %60, %819 : vector<16x64xi32>
    %c0_i32_206 = arith.constant 0 : i32
    %821 = vector.broadcast %c0_i32_206 : i32 to vector<16x64xi32>
    %822 = arith.cmpi eq, %820, %821 : vector<16x64xi32>
    %823 = vector.extract_strided_slice %727 {offsets = [0, 2], sizes = [16, 1], strides = [1, 1]} : vector<16x4xf32> to vector<16x1xf32>
    %cst_207 = arith.constant 0.000000e+00 : f32
    %824 = vector.shape_cast %823 : vector<16x1xf32> to vector<16x1xf32>
    %825 = vector.broadcast %824 : vector<16x1xf32> to vector<16x64xf32>
    %826 = vector.broadcast %cst_207 : f32 to vector<16x64xf32>
    %827 = arith.select %822, %825, %826 : vector<16x64xi1>, vector<16x64xf32>
    %c1_i32_208 = arith.constant 1 : i32
    %828 = vector.broadcast %c1_i32_208 : i32 to vector<16x64xi32>
    %829 = arith.cmpi eq, %820, %828 : vector<16x64xi32>
    %830 = vector.extract_strided_slice %734 {offsets = [0, 2], sizes = [16, 1], strides = [1, 1]} : vector<16x4xf32> to vector<16x1xf32>
    %cst_209 = arith.constant 0.000000e+00 : f32
    %831 = vector.shape_cast %830 : vector<16x1xf32> to vector<16x1xf32>
    %832 = vector.broadcast %831 : vector<16x1xf32> to vector<16x64xf32>
    %833 = vector.broadcast %cst_209 : f32 to vector<16x64xf32>
    %834 = arith.select %829, %832, %833 : vector<16x64xi1>, vector<16x64xf32>
    %c8_i32_210 = arith.constant 8 : i32
    %835 = vector.broadcast %c8_i32_210 : i32 to vector<16x64xi32>
    %836 = arith.cmpi eq, %820, %835 : vector<16x64xi32>
    %837 = vector.extract_strided_slice %741 {offsets = [0, 2], sizes = [16, 1], strides = [1, 1]} : vector<16x4xf32> to vector<16x1xf32>
    %cst_211 = arith.constant 0.000000e+00 : f32
    %838 = vector.shape_cast %837 : vector<16x1xf32> to vector<16x1xf32>
    %839 = vector.broadcast %838 : vector<16x1xf32> to vector<16x64xf32>
    %840 = vector.broadcast %cst_211 : f32 to vector<16x64xf32>
    %841 = arith.select %836, %839, %840 : vector<16x64xi1>, vector<16x64xf32>
    %c9_i32_212 = arith.constant 9 : i32
    %842 = vector.broadcast %c9_i32_212 : i32 to vector<16x64xi32>
    %843 = arith.cmpi eq, %820, %842 : vector<16x64xi32>
    %844 = vector.extract_strided_slice %746 {offsets = [0, 2], sizes = [16, 1], strides = [1, 1]} : vector<16x4xf32> to vector<16x1xf32>
    %cst_213 = arith.constant 0.000000e+00 : f32
    %845 = vector.shape_cast %844 : vector<16x1xf32> to vector<16x1xf32>
    %846 = vector.broadcast %845 : vector<16x1xf32> to vector<16x64xf32>
    %847 = vector.broadcast %cst_213 : f32 to vector<16x64xf32>
    %848 = arith.select %843, %846, %847 : vector<16x64xi1>, vector<16x64xf32>
    %849 = arith.addf %827, %834 : vector<16x64xf32>
    %850 = arith.addf %841, %848 : vector<16x64xf32>
    %851 = arith.addf %849, %850 : vector<16x64xf32>
    %852 = vector.extract_strided_slice %749 {offsets = [0, 3], sizes = [16, 1], strides = [1, 1]} : vector<16x4xi32> to vector<16x1xi32>
    %853 = vector.broadcast %852 : vector<16x1xi32> to vector<16x64xi32>
    %854 = arith.subi %60, %853 : vector<16x64xi32>
    %c0_i32_214 = arith.constant 0 : i32
    %855 = vector.broadcast %c0_i32_214 : i32 to vector<16x64xi32>
    %856 = arith.cmpi eq, %854, %855 : vector<16x64xi32>
    %857 = vector.extract_strided_slice %727 {offsets = [0, 3], sizes = [16, 1], strides = [1, 1]} : vector<16x4xf32> to vector<16x1xf32>
    %cst_215 = arith.constant 0.000000e+00 : f32
    %858 = vector.shape_cast %857 : vector<16x1xf32> to vector<16x1xf32>
    %859 = vector.broadcast %858 : vector<16x1xf32> to vector<16x64xf32>
    %860 = vector.broadcast %cst_215 : f32 to vector<16x64xf32>
    %861 = arith.select %856, %859, %860 : vector<16x64xi1>, vector<16x64xf32>
    %c1_i32_216 = arith.constant 1 : i32
    %862 = vector.broadcast %c1_i32_216 : i32 to vector<16x64xi32>
    %863 = arith.cmpi eq, %854, %862 : vector<16x64xi32>
    %864 = vector.extract_strided_slice %734 {offsets = [0, 3], sizes = [16, 1], strides = [1, 1]} : vector<16x4xf32> to vector<16x1xf32>
    %cst_217 = arith.constant 0.000000e+00 : f32
    %865 = vector.shape_cast %864 : vector<16x1xf32> to vector<16x1xf32>
    %866 = vector.broadcast %865 : vector<16x1xf32> to vector<16x64xf32>
    %867 = vector.broadcast %cst_217 : f32 to vector<16x64xf32>
    %868 = arith.select %863, %866, %867 : vector<16x64xi1>, vector<16x64xf32>
    %c8_i32_218 = arith.constant 8 : i32
    %869 = vector.broadcast %c8_i32_218 : i32 to vector<16x64xi32>
    %870 = arith.cmpi eq, %854, %869 : vector<16x64xi32>
    %871 = vector.extract_strided_slice %741 {offsets = [0, 3], sizes = [16, 1], strides = [1, 1]} : vector<16x4xf32> to vector<16x1xf32>
    %cst_219 = arith.constant 0.000000e+00 : f32
    %872 = vector.shape_cast %871 : vector<16x1xf32> to vector<16x1xf32>
    %873 = vector.broadcast %872 : vector<16x1xf32> to vector<16x64xf32>
    %874 = vector.broadcast %cst_219 : f32 to vector<16x64xf32>
    %875 = arith.select %870, %873, %874 : vector<16x64xi1>, vector<16x64xf32>
    %c9_i32_220 = arith.constant 9 : i32
    %876 = vector.broadcast %c9_i32_220 : i32 to vector<16x64xi32>
    %877 = arith.cmpi eq, %854, %876 : vector<16x64xi32>
    %878 = vector.extract_strided_slice %746 {offsets = [0, 3], sizes = [16, 1], strides = [1, 1]} : vector<16x4xf32> to vector<16x1xf32>
    %cst_221 = arith.constant 0.000000e+00 : f32
    %879 = vector.shape_cast %878 : vector<16x1xf32> to vector<16x1xf32>
    %880 = vector.broadcast %879 : vector<16x1xf32> to vector<16x64xf32>
    %881 = vector.broadcast %cst_221 : f32 to vector<16x64xf32>
    %882 = arith.select %877, %880, %881 : vector<16x64xi1>, vector<16x64xf32>
    %883 = arith.addf %861, %868 : vector<16x64xf32>
    %884 = arith.addf %875, %882 : vector<16x64xf32>
    %885 = arith.addf %883, %884 : vector<16x64xf32>
    %886 = arith.addf %783, %817 : vector<16x64xf32>
    %887 = arith.addf %851, %885 : vector<16x64xf32>
    %888 = arith.addf %886, %887 : vector<16x64xf32>
    %889 = tpu.concatenate %267, %474, %681, %888 in 0 : vector<16x64xf32>, vector<16x64xf32>, vector<16x64xf32>, vector<16x64xf32> -> vector<64x64xf32>
    %890 = arith.truncf %889 : vector<64x64xf32> to vector<64x64xbf16>
    %c0_222 = arith.constant 0 : index
    %c0_223 = arith.constant 0 : index
    %c0_224 = arith.constant 0 : index
    %891 = vector.load %arg3[%c0_222, %c0_223, %c0_224] : memref<1x8x64xbf16, #tpu.memory_space<vmem>>, vector<1x8x64xbf16>
    %892 = vector.shape_cast %891 : vector<1x8x64xbf16> to vector<8x64xbf16>
    %cst_225 = arith.constant dense<0.000000e+00> : vector<64x8xf32>
    %893 = tpu.matmul %890, %892, %cst_225 {dimension_numbers = #tpu.dot_dimension_numbers<[1], [1], [0], [0], [0, 0, 1, 0], [], []>} : vector<64x64xbf16>, vector<8x64xbf16>, vector<64x8xf32> -> vector<64x8xf32>
    %c0_226 = arith.constant 0 : index
    %c0_227 = arith.constant 0 : index
    %894 = vector.load %arg7[%c0_226, %c0_227] : memref<2x8xf32, #tpu.memory_space<vmem>>, vector<1x8xf32>
    %895 = vector.broadcast %894 : vector<1x8xf32> to vector<64x8xf32>
    %896 = arith.addf %893, %895 : vector<64x8xf32>
    %c0_228 = arith.constant 0 : index
    %c0_229 = arith.constant 0 : index
    %c0_230 = arith.constant 0 : index
    %897 = vector.load %arg8[%c0_228, %c0_229, %c0_230] : memref<1x128x8xf32, #tpu.memory_space<vmem>>, vector<1x64x8xf32>
    %898 = vector.shape_cast %897 : vector<1x64x8xf32> to vector<64x8xf32>
    %899 = vector.shape_cast %896 : vector<64x8xf32> to vector<1x64x8xf32>
    tpu.vector_store %arg8[%c0_228, %c0_229, %c0_230], %899 {strides = array<i32>} : memref<1x128x8xf32, #tpu.memory_space<vmem>>, vector<1x64x8xf32>,
    %900 = tpu.iota {dimensions = array<i32: 1>} : vector<16x144xi32>
    %901 = vector.extract_strided_slice %14 {offsets = [16, 0], sizes = [16, 4], strides = [1, 1]} : vector<32x16xf32> to vector<16x4xf32>
    %902 = vector.extract_strided_slice %19 {offsets = [16, 0], sizes = [16, 4], strides = [1, 1]} : vector<32x16xf32> to vector<16x4xf32>
    %903 = vector.extract_strided_slice %29 {offsets = [16, 0], sizes = [16, 4], strides = [1, 1]} : vector<32x4xf32> to vector<16x4xf32>
    %cst_231 = arith.constant 1.000000e+00 : f32
    %904 = vector.broadcast %cst_231 : f32 to vector<16x4xf32>
    %905 = arith.addf %901, %904 : vector<16x4xf32>
    %cst_232 = arith.constant 5.500000e+00 : f32
    %906 = vector.broadcast %cst_232 : f32 to vector<16x4xf32>
    %907 = arith.mulf %905, %906 : vector<16x4xf32>
    %cst_233 = arith.constant 1.000000e+00 : f32
    %908 = vector.broadcast %cst_233 : f32 to vector<16x4xf32>
    %909 = arith.addf %902, %908 : vector<16x4xf32>
    %cst_234 = arith.constant 5.500000e+00 : f32
    %910 = vector.broadcast %cst_234 : f32 to vector<16x4xf32>
    %911 = arith.mulf %909, %910 : vector<16x4xf32>
    %912 = math.floor %907 : vector<16x4xf32>
    %913 = math.floor %911 : vector<16x4xf32>
    %914 = arith.subf %907, %912 : vector<16x4xf32>
    %915 = arith.subf %911, %913 : vector<16x4xf32>
    %916 = arith.fptosi %912 : vector<16x4xf32> to vector<16x4xi32>
    %917 = arith.fptosi %913 : vector<16x4xf32> to vector<16x4xi32>
    %c0_i32_235 = arith.constant 0 : i32
    %918 = vector.broadcast %c0_i32_235 : i32 to vector<16x4xi32>
    %919 = arith.cmpi sge, %916, %918 : vector<16x4xi32>
    %c11_i32 = arith.constant 11 : i32
    %920 = vector.broadcast %c11_i32 : i32 to vector<16x4xi32>
    %921 = arith.cmpi sle, %916, %920 : vector<16x4xi32>
    %922 = arith.andi %919, %921 : vector<16x4xi1>
    %c-1_i32_236 = arith.constant -1 : i32
    %923 = vector.broadcast %c-1_i32_236 : i32 to vector<16x4xi32>
    %924 = arith.cmpi sge, %916, %923 : vector<16x4xi32>
    %c10_i32 = arith.constant 10 : i32
    %925 = vector.broadcast %c10_i32 : i32 to vector<16x4xi32>
    %926 = arith.cmpi sle, %916, %925 : vector<16x4xi32>
    %927 = arith.andi %924, %926 : vector<16x4xi1>
    %c0_i32_237 = arith.constant 0 : i32
    %928 = vector.broadcast %c0_i32_237 : i32 to vector<16x4xi32>
    %929 = arith.cmpi sge, %917, %928 : vector<16x4xi32>
    %c11_i32_238 = arith.constant 11 : i32
    %930 = vector.broadcast %c11_i32_238 : i32 to vector<16x4xi32>
    %931 = arith.cmpi sle, %917, %930 : vector<16x4xi32>
    %932 = arith.andi %929, %931 : vector<16x4xi1>
    %c-1_i32_239 = arith.constant -1 : i32
    %933 = vector.broadcast %c-1_i32_239 : i32 to vector<16x4xi32>
    %934 = arith.cmpi sge, %917, %933 : vector<16x4xi32>
    %c10_i32_240 = arith.constant 10 : i32
    %935 = vector.broadcast %c10_i32_240 : i32 to vector<16x4xi32>
    %936 = arith.cmpi sle, %917, %935 : vector<16x4xi32>
    %937 = arith.andi %934, %936 : vector<16x4xi1>
    %938 = arith.andi %922, %932 : vector<16x4xi1>
    %cst_241 = arith.constant 1.000000e+00 : f32
    %939 = vector.broadcast %cst_241 : f32 to vector<16x4xf32>
    %940 = arith.subf %939, %914 : vector<16x4xf32>
    %cst_242 = arith.constant 1.000000e+00 : f32
    %941 = vector.broadcast %cst_242 : f32 to vector<16x4xf32>
    %942 = arith.subf %941, %915 : vector<16x4xf32>
    %943 = arith.mulf %940, %942 : vector<16x4xf32>
    %944 = arith.mulf %943, %903 : vector<16x4xf32>
    %cst_243 = arith.constant 0.000000e+00 : f32
    %945 = vector.broadcast %cst_243 : f32 to vector<16x4xf32>
    %946 = arith.select %938, %944, %945 : vector<16x4xi1>, vector<16x4xf32>
    %947 = arith.andi %927, %932 : vector<16x4xi1>
    %cst_244 = arith.constant 1.000000e+00 : f32
    %948 = vector.broadcast %cst_244 : f32 to vector<16x4xf32>
    %949 = arith.subf %948, %915 : vector<16x4xf32>
    %950 = arith.mulf %914, %949 : vector<16x4xf32>
    %951 = arith.mulf %950, %903 : vector<16x4xf32>
    %cst_245 = arith.constant 0.000000e+00 : f32
    %952 = vector.broadcast %cst_245 : f32 to vector<16x4xf32>
    %953 = arith.select %947, %951, %952 : vector<16x4xi1>, vector<16x4xf32>
    %954 = arith.andi %922, %937 : vector<16x4xi1>
    %cst_246 = arith.constant 1.000000e+00 : f32
    %955 = vector.broadcast %cst_246 : f32 to vector<16x4xf32>
    %956 = arith.subf %955, %914 : vector<16x4xf32>
    %957 = arith.mulf %956, %915 : vector<16x4xf32>
    %958 = arith.mulf %957, %903 : vector<16x4xf32>
    %cst_247 = arith.constant 0.000000e+00 : f32
    %959 = vector.broadcast %cst_247 : f32 to vector<16x4xf32>
    %960 = arith.select %954, %958, %959 : vector<16x4xi1>, vector<16x4xf32>
    %961 = arith.andi %927, %937 : vector<16x4xi1>
    %962 = arith.mulf %914, %915 : vector<16x4xf32>
    %963 = arith.mulf %962, %903 : vector<16x4xf32>
    %cst_248 = arith.constant 0.000000e+00 : f32
    %964 = vector.broadcast %cst_248 : f32 to vector<16x4xf32>
    %965 = arith.select %961, %963, %964 : vector<16x4xi1>, vector<16x4xf32>
    %c12_i32 = arith.constant 12 : i32
    %966 = vector.broadcast %c12_i32 : i32 to vector<16x4xi32>
    %967 = arith.muli %917, %966 : vector<16x4xi32>
    %968 = arith.addi %967, %916 : vector<16x4xi32>
    %969 = vector.extract_strided_slice %968 {offsets = [0, 0], sizes = [16, 1], strides = [1, 1]} : vector<16x4xi32> to vector<16x1xi32>
    %970 = vector.broadcast %969 : vector<16x1xi32> to vector<16x144xi32>
    %971 = arith.subi %900, %970 : vector<16x144xi32>
    %c0_i32_249 = arith.constant 0 : i32
    %972 = vector.broadcast %c0_i32_249 : i32 to vector<16x144xi32>
    %973 = arith.cmpi eq, %971, %972 : vector<16x144xi32>
    %974 = vector.extract_strided_slice %946 {offsets = [0, 0], sizes = [16, 1], strides = [1, 1]} : vector<16x4xf32> to vector<16x1xf32>
    %cst_250 = arith.constant 0.000000e+00 : f32
    %975 = vector.shape_cast %974 : vector<16x1xf32> to vector<16x1xf32>
    %976 = vector.broadcast %975 : vector<16x1xf32> to vector<16x144xf32>
    %977 = vector.broadcast %cst_250 : f32 to vector<16x144xf32>
    %978 = arith.select %973, %976, %977 : vector<16x144xi1>, vector<16x144xf32>
    %c1_i32_251 = arith.constant 1 : i32
    %979 = vector.broadcast %c1_i32_251 : i32 to vector<16x144xi32>
    %980 = arith.cmpi eq, %971, %979 : vector<16x144xi32>
    %981 = vector.extract_strided_slice %953 {offsets = [0, 0], sizes = [16, 1], strides = [1, 1]} : vector<16x4xf32> to vector<16x1xf32>
    %cst_252 = arith.constant 0.000000e+00 : f32
    %982 = vector.shape_cast %981 : vector<16x1xf32> to vector<16x1xf32>
    %983 = vector.broadcast %982 : vector<16x1xf32> to vector<16x144xf32>
    %984 = vector.broadcast %cst_252 : f32 to vector<16x144xf32>
    %985 = arith.select %980, %983, %984 : vector<16x144xi1>, vector<16x144xf32>
    %c12_i32_253 = arith.constant 12 : i32
    %986 = vector.broadcast %c12_i32_253 : i32 to vector<16x144xi32>
    %987 = arith.cmpi eq, %971, %986 : vector<16x144xi32>
    %988 = vector.extract_strided_slice %960 {offsets = [0, 0], sizes = [16, 1], strides = [1, 1]} : vector<16x4xf32> to vector<16x1xf32>
    %cst_254 = arith.constant 0.000000e+00 : f32
    %989 = vector.shape_cast %988 : vector<16x1xf32> to vector<16x1xf32>
    %990 = vector.broadcast %989 : vector<16x1xf32> to vector<16x144xf32>
    %991 = vector.broadcast %cst_254 : f32 to vector<16x144xf32>
    %992 = arith.select %987, %990, %991 : vector<16x144xi1>, vector<16x144xf32>
    %c13_i32 = arith.constant 13 : i32
    %993 = vector.broadcast %c13_i32 : i32 to vector<16x144xi32>
    %994 = arith.cmpi eq, %971, %993 : vector<16x144xi32>
    %995 = vector.extract_strided_slice %965 {offsets = [0, 0], sizes = [16, 1], strides = [1, 1]} : vector<16x4xf32> to vector<16x1xf32>
    %cst_255 = arith.constant 0.000000e+00 : f32
    %996 = vector.shape_cast %995 : vector<16x1xf32> to vector<16x1xf32>
    %997 = vector.broadcast %996 : vector<16x1xf32> to vector<16x144xf32>
    %998 = vector.broadcast %cst_255 : f32 to vector<16x144xf32>
    %999 = arith.select %994, %997, %998 : vector<16x144xi1>, vector<16x144xf32>
    %1000 = arith.addf %978, %985 : vector<16x144xf32>
    %1001 = arith.addf %992, %999 : vector<16x144xf32>
    %1002 = arith.addf %1000, %1001 : vector<16x144xf32>
    %1003 = vector.extract_strided_slice %968 {offsets = [0, 1], sizes = [16, 1], strides = [1, 1]} : vector<16x4xi32> to vector<16x1xi32>
    %1004 = vector.broadcast %1003 : vector<16x1xi32> to vector<16x144xi32>
    %1005 = arith.subi %900, %1004 : vector<16x144xi32>
    %c0_i32_256 = arith.constant 0 : i32
    %1006 = vector.broadcast %c0_i32_256 : i32 to vector<16x144xi32>
    %1007 = arith.cmpi eq, %1005, %1006 : vector<16x144xi32>
    %1008 = vector.extract_strided_slice %946 {offsets = [0, 1], sizes = [16, 1], strides = [1, 1]} : vector<16x4xf32> to vector<16x1xf32>
    %cst_257 = arith.constant 0.000000e+00 : f32
    %1009 = vector.shape_cast %1008 : vector<16x1xf32> to vector<16x1xf32>
    %1010 = vector.broadcast %1009 : vector<16x1xf32> to vector<16x144xf32>
    %1011 = vector.broadcast %cst_257 : f32 to vector<16x144xf32>
    %1012 = arith.select %1007, %1010, %1011 : vector<16x144xi1>, vector<16x144xf32>
    %c1_i32_258 = arith.constant 1 : i32
    %1013 = vector.broadcast %c1_i32_258 : i32 to vector<16x144xi32>
    %1014 = arith.cmpi eq, %1005, %1013 : vector<16x144xi32>
    %1015 = vector.extract_strided_slice %953 {offsets = [0, 1], sizes = [16, 1], strides = [1, 1]} : vector<16x4xf32> to vector<16x1xf32>
    %cst_259 = arith.constant 0.000000e+00 : f32
    %1016 = vector.shape_cast %1015 : vector<16x1xf32> to vector<16x1xf32>
    %1017 = vector.broadcast %1016 : vector<16x1xf32> to vector<16x144xf32>
    %1018 = vector.broadcast %cst_259 : f32 to vector<16x144xf32>
    %1019 = arith.select %1014, %1017, %1018 : vector<16x144xi1>, vector<16x144xf32>
    %c12_i32_260 = arith.constant 12 : i32
    %1020 = vector.broadcast %c12_i32_260 : i32 to vector<16x144xi32>
    %1021 = arith.cmpi eq, %1005, %1020 : vector<16x144xi32>
    %1022 = vector.extract_strided_slice %960 {offsets = [0, 1], sizes = [16, 1], strides = [1, 1]} : vector<16x4xf32> to vector<16x1xf32>
    %cst_261 = arith.constant 0.000000e+00 : f32
    %1023 = vector.shape_cast %1022 : vector<16x1xf32> to vector<16x1xf32>
    %1024 = vector.broadcast %1023 : vector<16x1xf32> to vector<16x144xf32>
    %1025 = vector.broadcast %cst_261 : f32 to vector<16x144xf32>
    %1026 = arith.select %1021, %1024, %1025 : vector<16x144xi1>, vector<16x144xf32>
    %c13_i32_262 = arith.constant 13 : i32
    %1027 = vector.broadcast %c13_i32_262 : i32 to vector<16x144xi32>
    %1028 = arith.cmpi eq, %1005, %1027 : vector<16x144xi32>
    %1029 = vector.extract_strided_slice %965 {offsets = [0, 1], sizes = [16, 1], strides = [1, 1]} : vector<16x4xf32> to vector<16x1xf32>
    %cst_263 = arith.constant 0.000000e+00 : f32
    %1030 = vector.shape_cast %1029 : vector<16x1xf32> to vector<16x1xf32>
    %1031 = vector.broadcast %1030 : vector<16x1xf32> to vector<16x144xf32>
    %1032 = vector.broadcast %cst_263 : f32 to vector<16x144xf32>
    %1033 = arith.select %1028, %1031, %1032 : vector<16x144xi1>, vector<16x144xf32>
    %1034 = arith.addf %1012, %1019 : vector<16x144xf32>
    %1035 = arith.addf %1026, %1033 : vector<16x144xf32>
    %1036 = arith.addf %1034, %1035 : vector<16x144xf32>
    %1037 = vector.extract_strided_slice %968 {offsets = [0, 2], sizes = [16, 1], strides = [1, 1]} : vector<16x4xi32> to vector<16x1xi32>
    %1038 = vector.broadcast %1037 : vector<16x1xi32> to vector<16x144xi32>
    %1039 = arith.subi %900, %1038 : vector<16x144xi32>
    %c0_i32_264 = arith.constant 0 : i32
    %1040 = vector.broadcast %c0_i32_264 : i32 to vector<16x144xi32>
    %1041 = arith.cmpi eq, %1039, %1040 : vector<16x144xi32>
    %1042 = vector.extract_strided_slice %946 {offsets = [0, 2], sizes = [16, 1], strides = [1, 1]} : vector<16x4xf32> to vector<16x1xf32>
    %cst_265 = arith.constant 0.000000e+00 : f32
    %1043 = vector.shape_cast %1042 : vector<16x1xf32> to vector<16x1xf32>
    %1044 = vector.broadcast %1043 : vector<16x1xf32> to vector<16x144xf32>
    %1045 = vector.broadcast %cst_265 : f32 to vector<16x144xf32>
    %1046 = arith.select %1041, %1044, %1045 : vector<16x144xi1>, vector<16x144xf32>
    %c1_i32_266 = arith.constant 1 : i32
    %1047 = vector.broadcast %c1_i32_266 : i32 to vector<16x144xi32>
    %1048 = arith.cmpi eq, %1039, %1047 : vector<16x144xi32>
    %1049 = vector.extract_strided_slice %953 {offsets = [0, 2], sizes = [16, 1], strides = [1, 1]} : vector<16x4xf32> to vector<16x1xf32>
    %cst_267 = arith.constant 0.000000e+00 : f32
    %1050 = vector.shape_cast %1049 : vector<16x1xf32> to vector<16x1xf32>
    %1051 = vector.broadcast %1050 : vector<16x1xf32> to vector<16x144xf32>
    %1052 = vector.broadcast %cst_267 : f32 to vector<16x144xf32>
    %1053 = arith.select %1048, %1051, %1052 : vector<16x144xi1>, vector<16x144xf32>
    %c12_i32_268 = arith.constant 12 : i32
    %1054 = vector.broadcast %c12_i32_268 : i32 to vector<16x144xi32>
    %1055 = arith.cmpi eq, %1039, %1054 : vector<16x144xi32>
    %1056 = vector.extract_strided_slice %960 {offsets = [0, 2], sizes = [16, 1], strides = [1, 1]} : vector<16x4xf32> to vector<16x1xf32>
    %cst_269 = arith.constant 0.000000e+00 : f32
    %1057 = vector.shape_cast %1056 : vector<16x1xf32> to vector<16x1xf32>
    %1058 = vector.broadcast %1057 : vector<16x1xf32> to vector<16x144xf32>
    %1059 = vector.broadcast %cst_269 : f32 to vector<16x144xf32>
    %1060 = arith.select %1055, %1058, %1059 : vector<16x144xi1>, vector<16x144xf32>
    %c13_i32_270 = arith.constant 13 : i32
    %1061 = vector.broadcast %c13_i32_270 : i32 to vector<16x144xi32>
    %1062 = arith.cmpi eq, %1039, %1061 : vector<16x144xi32>
    %1063 = vector.extract_strided_slice %965 {offsets = [0, 2], sizes = [16, 1], strides = [1, 1]} : vector<16x4xf32> to vector<16x1xf32>
    %cst_271 = arith.constant 0.000000e+00 : f32
    %1064 = vector.shape_cast %1063 : vector<16x1xf32> to vector<16x1xf32>
    %1065 = vector.broadcast %1064 : vector<16x1xf32> to vector<16x144xf32>
    %1066 = vector.broadcast %cst_271 : f32 to vector<16x144xf32>
    %1067 = arith.select %1062, %1065, %1066 : vector<16x144xi1>, vector<16x144xf32>
    %1068 = arith.addf %1046, %1053 : vector<16x144xf32>
    %1069 = arith.addf %1060, %1067 : vector<16x144xf32>
    %1070 = arith.addf %1068, %1069 : vector<16x144xf32>
    %1071 = vector.extract_strided_slice %968 {offsets = [0, 3], sizes = [16, 1], strides = [1, 1]} : vector<16x4xi32> to vector<16x1xi32>
    %1072 = vector.broadcast %1071 : vector<16x1xi32> to vector<16x144xi32>
    %1073 = arith.subi %900, %1072 : vector<16x144xi32>
    %c0_i32_272 = arith.constant 0 : i32
    %1074 = vector.broadcast %c0_i32_272 : i32 to vector<16x144xi32>
    %1075 = arith.cmpi eq, %1073, %1074 : vector<16x144xi32>
    %1076 = vector.extract_strided_slice %946 {offsets = [0, 3], sizes = [16, 1], strides = [1, 1]} : vector<16x4xf32> to vector<16x1xf32>
    %cst_273 = arith.constant 0.000000e+00 : f32
    %1077 = vector.shape_cast %1076 : vector<16x1xf32> to vector<16x1xf32>
    %1078 = vector.broadcast %1077 : vector<16x1xf32> to vector<16x144xf32>
    %1079 = vector.broadcast %cst_273 : f32 to vector<16x144xf32>
    %1080 = arith.select %1075, %1078, %1079 : vector<16x144xi1>, vector<16x144xf32>
    %c1_i32_274 = arith.constant 1 : i32
    %1081 = vector.broadcast %c1_i32_274 : i32 to vector<16x144xi32>
    %1082 = arith.cmpi eq, %1073, %1081 : vector<16x144xi32>
    %1083 = vector.extract_strided_slice %953 {offsets = [0, 3], sizes = [16, 1], strides = [1, 1]} : vector<16x4xf32> to vector<16x1xf32>
    %cst_275 = arith.constant 0.000000e+00 : f32
    %1084 = vector.shape_cast %1083 : vector<16x1xf32> to vector<16x1xf32>
    %1085 = vector.broadcast %1084 : vector<16x1xf32> to vector<16x144xf32>
    %1086 = vector.broadcast %cst_275 : f32 to vector<16x144xf32>
    %1087 = arith.select %1082, %1085, %1086 : vector<16x144xi1>, vector<16x144xf32>
    %c12_i32_276 = arith.constant 12 : i32
    %1088 = vector.broadcast %c12_i32_276 : i32 to vector<16x144xi32>
    %1089 = arith.cmpi eq, %1073, %1088 : vector<16x144xi32>
    %1090 = vector.extract_strided_slice %960 {offsets = [0, 3], sizes = [16, 1], strides = [1, 1]} : vector<16x4xf32> to vector<16x1xf32>
    %cst_277 = arith.constant 0.000000e+00 : f32
    %1091 = vector.shape_cast %1090 : vector<16x1xf32> to vector<16x1xf32>
    %1092 = vector.broadcast %1091 : vector<16x1xf32> to vector<16x144xf32>
    %1093 = vector.broadcast %cst_277 : f32 to vector<16x144xf32>
    %1094 = arith.select %1089, %1092, %1093 : vector<16x144xi1>, vector<16x144xf32>
    %c13_i32_278 = arith.constant 13 : i32
    %1095 = vector.broadcast %c13_i32_278 : i32 to vector<16x144xi32>
    %1096 = arith.cmpi eq, %1073, %1095 : vector<16x144xi32>
    %1097 = vector.extract_strided_slice %965 {offsets = [0, 3], sizes = [16, 1], strides = [1, 1]} : vector<16x4xf32> to vector<16x1xf32>
    %cst_279 = arith.constant 0.000000e+00 : f32
    %1098 = vector.shape_cast %1097 : vector<16x1xf32> to vector<16x1xf32>
    %1099 = vector.broadcast %1098 : vector<16x1xf32> to vector<16x144xf32>
    %1100 = vector.broadcast %cst_279 : f32 to vector<16x144xf32>
    %1101 = arith.select %1096, %1099, %1100 : vector<16x144xi1>, vector<16x144xf32>
    %1102 = arith.addf %1080, %1087 : vector<16x144xf32>
    %1103 = arith.addf %1094, %1101 : vector<16x144xf32>
    %1104 = arith.addf %1102, %1103 : vector<16x144xf32>
    %1105 = arith.addf %1002, %1036 : vector<16x144xf32>
    %1106 = arith.addf %1070, %1104 : vector<16x144xf32>
    %1107 = arith.addf %1105, %1106 : vector<16x144xf32>
    %1108 = vector.extract_strided_slice %14 {offsets = [16, 4], sizes = [16, 4], strides = [1, 1]} : vector<32x16xf32> to vector<16x4xf32>
    %1109 = vector.extract_strided_slice %19 {offsets = [16, 4], sizes = [16, 4], strides = [1, 1]} : vector<32x16xf32> to vector<16x4xf32>
    %1110 = vector.extract_strided_slice %39 {offsets = [16, 0], sizes = [16, 4], strides = [1, 1]} : vector<32x4xf32> to vector<16x4xf32>
    %cst_280 = arith.constant 1.000000e+00 : f32
    %1111 = vector.broadcast %cst_280 : f32 to vector<16x4xf32>
    %1112 = arith.addf %1108, %1111 : vector<16x4xf32>
    %cst_281 = arith.constant 5.500000e+00 : f32
    %1113 = vector.broadcast %cst_281 : f32 to vector<16x4xf32>
    %1114 = arith.mulf %1112, %1113 : vector<16x4xf32>
    %cst_282 = arith.constant 1.000000e+00 : f32
    %1115 = vector.broadcast %cst_282 : f32 to vector<16x4xf32>
    %1116 = arith.addf %1109, %1115 : vector<16x4xf32>
    %cst_283 = arith.constant 5.500000e+00 : f32
    %1117 = vector.broadcast %cst_283 : f32 to vector<16x4xf32>
    %1118 = arith.mulf %1116, %1117 : vector<16x4xf32>
    %1119 = math.floor %1114 : vector<16x4xf32>
    %1120 = math.floor %1118 : vector<16x4xf32>
    %1121 = arith.subf %1114, %1119 : vector<16x4xf32>
    %1122 = arith.subf %1118, %1120 : vector<16x4xf32>
    %1123 = arith.fptosi %1119 : vector<16x4xf32> to vector<16x4xi32>
    %1124 = arith.fptosi %1120 : vector<16x4xf32> to vector<16x4xi32>
    %c0_i32_284 = arith.constant 0 : i32
    %1125 = vector.broadcast %c0_i32_284 : i32 to vector<16x4xi32>
    %1126 = arith.cmpi sge, %1123, %1125 : vector<16x4xi32>
    %c11_i32_285 = arith.constant 11 : i32
    %1127 = vector.broadcast %c11_i32_285 : i32 to vector<16x4xi32>
    %1128 = arith.cmpi sle, %1123, %1127 : vector<16x4xi32>
    %1129 = arith.andi %1126, %1128 : vector<16x4xi1>
    %c-1_i32_286 = arith.constant -1 : i32
    %1130 = vector.broadcast %c-1_i32_286 : i32 to vector<16x4xi32>
    %1131 = arith.cmpi sge, %1123, %1130 : vector<16x4xi32>
    %c10_i32_287 = arith.constant 10 : i32
    %1132 = vector.broadcast %c10_i32_287 : i32 to vector<16x4xi32>
    %1133 = arith.cmpi sle, %1123, %1132 : vector<16x4xi32>
    %1134 = arith.andi %1131, %1133 : vector<16x4xi1>
    %c0_i32_288 = arith.constant 0 : i32
    %1135 = vector.broadcast %c0_i32_288 : i32 to vector<16x4xi32>
    %1136 = arith.cmpi sge, %1124, %1135 : vector<16x4xi32>
    %c11_i32_289 = arith.constant 11 : i32
    %1137 = vector.broadcast %c11_i32_289 : i32 to vector<16x4xi32>
    %1138 = arith.cmpi sle, %1124, %1137 : vector<16x4xi32>
    %1139 = arith.andi %1136, %1138 : vector<16x4xi1>
    %c-1_i32_290 = arith.constant -1 : i32
    %1140 = vector.broadcast %c-1_i32_290 : i32 to vector<16x4xi32>
    %1141 = arith.cmpi sge, %1124, %1140 : vector<16x4xi32>
    %c10_i32_291 = arith.constant 10 : i32
    %1142 = vector.broadcast %c10_i32_291 : i32 to vector<16x4xi32>
    %1143 = arith.cmpi sle, %1124, %1142 : vector<16x4xi32>
    %1144 = arith.andi %1141, %1143 : vector<16x4xi1>
    %1145 = arith.andi %1129, %1139 : vector<16x4xi1>
    %cst_292 = arith.constant 1.000000e+00 : f32
    %1146 = vector.broadcast %cst_292 : f32 to vector<16x4xf32>
    %1147 = arith.subf %1146, %1121 : vector<16x4xf32>
    %cst_293 = arith.constant 1.000000e+00 : f32
    %1148 = vector.broadcast %cst_293 : f32 to vector<16x4xf32>
    %1149 = arith.subf %1148, %1122 : vector<16x4xf32>
    %1150 = arith.mulf %1147, %1149 : vector<16x4xf32>
    %1151 = arith.mulf %1150, %1110 : vector<16x4xf32>
    %cst_294 = arith.constant 0.000000e+00 : f32
    %1152 = vector.broadcast %cst_294 : f32 to vector<16x4xf32>
    %1153 = arith.select %1145, %1151, %1152 : vector<16x4xi1>, vector<16x4xf32>
    %1154 = arith.andi %1134, %1139 : vector<16x4xi1>
    %cst_295 = arith.constant 1.000000e+00 : f32
    %1155 = vector.broadcast %cst_295 : f32 to vector<16x4xf32>
    %1156 = arith.subf %1155, %1122 : vector<16x4xf32>
    %1157 = arith.mulf %1121, %1156 : vector<16x4xf32>
    %1158 = arith.mulf %1157, %1110 : vector<16x4xf32>
    %cst_296 = arith.constant 0.000000e+00 : f32
    %1159 = vector.broadcast %cst_296 : f32 to vector<16x4xf32>
    %1160 = arith.select %1154, %1158, %1159 : vector<16x4xi1>, vector<16x4xf32>
    %1161 = arith.andi %1129, %1144 : vector<16x4xi1>
    %cst_297 = arith.constant 1.000000e+00 : f32
    %1162 = vector.broadcast %cst_297 : f32 to vector<16x4xf32>
    %1163 = arith.subf %1162, %1121 : vector<16x4xf32>
    %1164 = arith.mulf %1163, %1122 : vector<16x4xf32>
    %1165 = arith.mulf %1164, %1110 : vector<16x4xf32>
    %cst_298 = arith.constant 0.000000e+00 : f32
    %1166 = vector.broadcast %cst_298 : f32 to vector<16x4xf32>
    %1167 = arith.select %1161, %1165, %1166 : vector<16x4xi1>, vector<16x4xf32>
    %1168 = arith.andi %1134, %1144 : vector<16x4xi1>
    %1169 = arith.mulf %1121, %1122 : vector<16x4xf32>
    %1170 = arith.mulf %1169, %1110 : vector<16x4xf32>
    %cst_299 = arith.constant 0.000000e+00 : f32
    %1171 = vector.broadcast %cst_299 : f32 to vector<16x4xf32>
    %1172 = arith.select %1168, %1170, %1171 : vector<16x4xi1>, vector<16x4xf32>
    %c12_i32_300 = arith.constant 12 : i32
    %1173 = vector.broadcast %c12_i32_300 : i32 to vector<16x4xi32>
    %1174 = arith.muli %1124, %1173 : vector<16x4xi32>
    %1175 = arith.addi %1174, %1123 : vector<16x4xi32>
    %1176 = vector.extract_strided_slice %1175 {offsets = [0, 0], sizes = [16, 1], strides = [1, 1]} : vector<16x4xi32> to vector<16x1xi32>
    %1177 = vector.broadcast %1176 : vector<16x1xi32> to vector<16x144xi32>
    %1178 = arith.subi %900, %1177 : vector<16x144xi32>
    %c0_i32_301 = arith.constant 0 : i32
    %1179 = vector.broadcast %c0_i32_301 : i32 to vector<16x144xi32>
    %1180 = arith.cmpi eq, %1178, %1179 : vector<16x144xi32>
    %1181 = vector.extract_strided_slice %1153 {offsets = [0, 0], sizes = [16, 1], strides = [1, 1]} : vector<16x4xf32> to vector<16x1xf32>
    %cst_302 = arith.constant 0.000000e+00 : f32
    %1182 = vector.shape_cast %1181 : vector<16x1xf32> to vector<16x1xf32>
    %1183 = vector.broadcast %1182 : vector<16x1xf32> to vector<16x144xf32>
    %1184 = vector.broadcast %cst_302 : f32 to vector<16x144xf32>
    %1185 = arith.select %1180, %1183, %1184 : vector<16x144xi1>, vector<16x144xf32>
    %c1_i32_303 = arith.constant 1 : i32
    %1186 = vector.broadcast %c1_i32_303 : i32 to vector<16x144xi32>
    %1187 = arith.cmpi eq, %1178, %1186 : vector<16x144xi32>
    %1188 = vector.extract_strided_slice %1160 {offsets = [0, 0], sizes = [16, 1], strides = [1, 1]} : vector<16x4xf32> to vector<16x1xf32>
    %cst_304 = arith.constant 0.000000e+00 : f32
    %1189 = vector.shape_cast %1188 : vector<16x1xf32> to vector<16x1xf32>
    %1190 = vector.broadcast %1189 : vector<16x1xf32> to vector<16x144xf32>
    %1191 = vector.broadcast %cst_304 : f32 to vector<16x144xf32>
    %1192 = arith.select %1187, %1190, %1191 : vector<16x144xi1>, vector<16x144xf32>
    %c12_i32_305 = arith.constant 12 : i32
    %1193 = vector.broadcast %c12_i32_305 : i32 to vector<16x144xi32>
    %1194 = arith.cmpi eq, %1178, %1193 : vector<16x144xi32>
    %1195 = vector.extract_strided_slice %1167 {offsets = [0, 0], sizes = [16, 1], strides = [1, 1]} : vector<16x4xf32> to vector<16x1xf32>
    %cst_306 = arith.constant 0.000000e+00 : f32
    %1196 = vector.shape_cast %1195 : vector<16x1xf32> to vector<16x1xf32>
    %1197 = vector.broadcast %1196 : vector<16x1xf32> to vector<16x144xf32>
    %1198 = vector.broadcast %cst_306 : f32 to vector<16x144xf32>
    %1199 = arith.select %1194, %1197, %1198 : vector<16x144xi1>, vector<16x144xf32>
    %c13_i32_307 = arith.constant 13 : i32
    %1200 = vector.broadcast %c13_i32_307 : i32 to vector<16x144xi32>
    %1201 = arith.cmpi eq, %1178, %1200 : vector<16x144xi32>
    %1202 = vector.extract_strided_slice %1172 {offsets = [0, 0], sizes = [16, 1], strides = [1, 1]} : vector<16x4xf32> to vector<16x1xf32>
    %cst_308 = arith.constant 0.000000e+00 : f32
    %1203 = vector.shape_cast %1202 : vector<16x1xf32> to vector<16x1xf32>
    %1204 = vector.broadcast %1203 : vector<16x1xf32> to vector<16x144xf32>
    %1205 = vector.broadcast %cst_308 : f32 to vector<16x144xf32>
    %1206 = arith.select %1201, %1204, %1205 : vector<16x144xi1>, vector<16x144xf32>
    %1207 = arith.addf %1185, %1192 : vector<16x144xf32>
    %1208 = arith.addf %1199, %1206 : vector<16x144xf32>
    %1209 = arith.addf %1207, %1208 : vector<16x144xf32>
    %1210 = vector.extract_strided_slice %1175 {offsets = [0, 1], sizes = [16, 1], strides = [1, 1]} : vector<16x4xi32> to vector<16x1xi32>
    %1211 = vector.broadcast %1210 : vector<16x1xi32> to vector<16x144xi32>
    %1212 = arith.subi %900, %1211 : vector<16x144xi32>
    %c0_i32_309 = arith.constant 0 : i32
    %1213 = vector.broadcast %c0_i32_309 : i32 to vector<16x144xi32>
    %1214 = arith.cmpi eq, %1212, %1213 : vector<16x144xi32>
    %1215 = vector.extract_strided_slice %1153 {offsets = [0, 1], sizes = [16, 1], strides = [1, 1]} : vector<16x4xf32> to vector<16x1xf32>
    %cst_310 = arith.constant 0.000000e+00 : f32
    %1216 = vector.shape_cast %1215 : vector<16x1xf32> to vector<16x1xf32>
    %1217 = vector.broadcast %1216 : vector<16x1xf32> to vector<16x144xf32>
    %1218 = vector.broadcast %cst_310 : f32 to vector<16x144xf32>
    %1219 = arith.select %1214, %1217, %1218 : vector<16x144xi1>, vector<16x144xf32>
    %c1_i32_311 = arith.constant 1 : i32
    %1220 = vector.broadcast %c1_i32_311 : i32 to vector<16x144xi32>
    %1221 = arith.cmpi eq, %1212, %1220 : vector<16x144xi32>
    %1222 = vector.extract_strided_slice %1160 {offsets = [0, 1], sizes = [16, 1], strides = [1, 1]} : vector<16x4xf32> to vector<16x1xf32>
    %cst_312 = arith.constant 0.000000e+00 : f32
    %1223 = vector.shape_cast %1222 : vector<16x1xf32> to vector<16x1xf32>
    %1224 = vector.broadcast %1223 : vector<16x1xf32> to vector<16x144xf32>
    %1225 = vector.broadcast %cst_312 : f32 to vector<16x144xf32>
    %1226 = arith.select %1221, %1224, %1225 : vector<16x144xi1>, vector<16x144xf32>
    %c12_i32_313 = arith.constant 12 : i32
    %1227 = vector.broadcast %c12_i32_313 : i32 to vector<16x144xi32>
    %1228 = arith.cmpi eq, %1212, %1227 : vector<16x144xi32>
    %1229 = vector.extract_strided_slice %1167 {offsets = [0, 1], sizes = [16, 1], strides = [1, 1]} : vector<16x4xf32> to vector<16x1xf32>
    %cst_314 = arith.constant 0.000000e+00 : f32
    %1230 = vector.shape_cast %1229 : vector<16x1xf32> to vector<16x1xf32>
    %1231 = vector.broadcast %1230 : vector<16x1xf32> to vector<16x144xf32>
    %1232 = vector.broadcast %cst_314 : f32 to vector<16x144xf32>
    %1233 = arith.select %1228, %1231, %1232 : vector<16x144xi1>, vector<16x144xf32>
    %c13_i32_315 = arith.constant 13 : i32
    %1234 = vector.broadcast %c13_i32_315 : i32 to vector<16x144xi32>
    %1235 = arith.cmpi eq, %1212, %1234 : vector<16x144xi32>
    %1236 = vector.extract_strided_slice %1172 {offsets = [0, 1], sizes = [16, 1], strides = [1, 1]} : vector<16x4xf32> to vector<16x1xf32>
    %cst_316 = arith.constant 0.000000e+00 : f32
    %1237 = vector.shape_cast %1236 : vector<16x1xf32> to vector<16x1xf32>
    %1238 = vector.broadcast %1237 : vector<16x1xf32> to vector<16x144xf32>
    %1239 = vector.broadcast %cst_316 : f32 to vector<16x144xf32>
    %1240 = arith.select %1235, %1238, %1239 : vector<16x144xi1>, vector<16x144xf32>
    %1241 = arith.addf %1219, %1226 : vector<16x144xf32>
    %1242 = arith.addf %1233, %1240 : vector<16x144xf32>
    %1243 = arith.addf %1241, %1242 : vector<16x144xf32>
    %1244 = vector.extract_strided_slice %1175 {offsets = [0, 2], sizes = [16, 1], strides = [1, 1]} : vector<16x4xi32> to vector<16x1xi32>
    %1245 = vector.broadcast %1244 : vector<16x1xi32> to vector<16x144xi32>
    %1246 = arith.subi %900, %1245 : vector<16x144xi32>
    %c0_i32_317 = arith.constant 0 : i32
    %1247 = vector.broadcast %c0_i32_317 : i32 to vector<16x144xi32>
    %1248 = arith.cmpi eq, %1246, %1247 : vector<16x144xi32>
    %1249 = vector.extract_strided_slice %1153 {offsets = [0, 2], sizes = [16, 1], strides = [1, 1]} : vector<16x4xf32> to vector<16x1xf32>
    %cst_318 = arith.constant 0.000000e+00 : f32
    %1250 = vector.shape_cast %1249 : vector<16x1xf32> to vector<16x1xf32>
    %1251 = vector.broadcast %1250 : vector<16x1xf32> to vector<16x144xf32>
    %1252 = vector.broadcast %cst_318 : f32 to vector<16x144xf32>
    %1253 = arith.select %1248, %1251, %1252 : vector<16x144xi1>, vector<16x144xf32>
    %c1_i32_319 = arith.constant 1 : i32
    %1254 = vector.broadcast %c1_i32_319 : i32 to vector<16x144xi32>
    %1255 = arith.cmpi eq, %1246, %1254 : vector<16x144xi32>
    %1256 = vector.extract_strided_slice %1160 {offsets = [0, 2], sizes = [16, 1], strides = [1, 1]} : vector<16x4xf32> to vector<16x1xf32>
    %cst_320 = arith.constant 0.000000e+00 : f32
    %1257 = vector.shape_cast %1256 : vector<16x1xf32> to vector<16x1xf32>
    %1258 = vector.broadcast %1257 : vector<16x1xf32> to vector<16x144xf32>
    %1259 = vector.broadcast %cst_320 : f32 to vector<16x144xf32>
    %1260 = arith.select %1255, %1258, %1259 : vector<16x144xi1>, vector<16x144xf32>
    %c12_i32_321 = arith.constant 12 : i32
    %1261 = vector.broadcast %c12_i32_321 : i32 to vector<16x144xi32>
    %1262 = arith.cmpi eq, %1246, %1261 : vector<16x144xi32>
    %1263 = vector.extract_strided_slice %1167 {offsets = [0, 2], sizes = [16, 1], strides = [1, 1]} : vector<16x4xf32> to vector<16x1xf32>
    %cst_322 = arith.constant 0.000000e+00 : f32
    %1264 = vector.shape_cast %1263 : vector<16x1xf32> to vector<16x1xf32>
    %1265 = vector.broadcast %1264 : vector<16x1xf32> to vector<16x144xf32>
    %1266 = vector.broadcast %cst_322 : f32 to vector<16x144xf32>
    %1267 = arith.select %1262, %1265, %1266 : vector<16x144xi1>, vector<16x144xf32>
    %c13_i32_323 = arith.constant 13 : i32
    %1268 = vector.broadcast %c13_i32_323 : i32 to vector<16x144xi32>
    %1269 = arith.cmpi eq, %1246, %1268 : vector<16x144xi32>
    %1270 = vector.extract_strided_slice %1172 {offsets = [0, 2], sizes = [16, 1], strides = [1, 1]} : vector<16x4xf32> to vector<16x1xf32>
    %cst_324 = arith.constant 0.000000e+00 : f32
    %1271 = vector.shape_cast %1270 : vector<16x1xf32> to vector<16x1xf32>
    %1272 = vector.broadcast %1271 : vector<16x1xf32> to vector<16x144xf32>
    %1273 = vector.broadcast %cst_324 : f32 to vector<16x144xf32>
    %1274 = arith.select %1269, %1272, %1273 : vector<16x144xi1>, vector<16x144xf32>
    %1275 = arith.addf %1253, %1260 : vector<16x144xf32>
    %1276 = arith.addf %1267, %1274 : vector<16x144xf32>
    %1277 = arith.addf %1275, %1276 : vector<16x144xf32>
    %1278 = vector.extract_strided_slice %1175 {offsets = [0, 3], sizes = [16, 1], strides = [1, 1]} : vector<16x4xi32> to vector<16x1xi32>
    %1279 = vector.broadcast %1278 : vector<16x1xi32> to vector<16x144xi32>
    %1280 = arith.subi %900, %1279 : vector<16x144xi32>
    %c0_i32_325 = arith.constant 0 : i32
    %1281 = vector.broadcast %c0_i32_325 : i32 to vector<16x144xi32>
    %1282 = arith.cmpi eq, %1280, %1281 : vector<16x144xi32>
    %1283 = vector.extract_strided_slice %1153 {offsets = [0, 3], sizes = [16, 1], strides = [1, 1]} : vector<16x4xf32> to vector<16x1xf32>
    %cst_326 = arith.constant 0.000000e+00 : f32
    %1284 = vector.shape_cast %1283 : vector<16x1xf32> to vector<16x1xf32>
    %1285 = vector.broadcast %1284 : vector<16x1xf32> to vector<16x144xf32>
    %1286 = vector.broadcast %cst_326 : f32 to vector<16x144xf32>
    %1287 = arith.select %1282, %1285, %1286 : vector<16x144xi1>, vector<16x144xf32>
    %c1_i32_327 = arith.constant 1 : i32
    %1288 = vector.broadcast %c1_i32_327 : i32 to vector<16x144xi32>
    %1289 = arith.cmpi eq, %1280, %1288 : vector<16x144xi32>
    %1290 = vector.extract_strided_slice %1160 {offsets = [0, 3], sizes = [16, 1], strides = [1, 1]} : vector<16x4xf32> to vector<16x1xf32>
    %cst_328 = arith.constant 0.000000e+00 : f32
    %1291 = vector.shape_cast %1290 : vector<16x1xf32> to vector<16x1xf32>
    %1292 = vector.broadcast %1291 : vector<16x1xf32> to vector<16x144xf32>
    %1293 = vector.broadcast %cst_328 : f32 to vector<16x144xf32>
    %1294 = arith.select %1289, %1292, %1293 : vector<16x144xi1>, vector<16x144xf32>
    %c12_i32_329 = arith.constant 12 : i32
    %1295 = vector.broadcast %c12_i32_329 : i32 to vector<16x144xi32>
    %1296 = arith.cmpi eq, %1280, %1295 : vector<16x144xi32>
    %1297 = vector.extract_strided_slice %1167 {offsets = [0, 3], sizes = [16, 1], strides = [1, 1]} : vector<16x4xf32> to vector<16x1xf32>
    %cst_330 = arith.constant 0.000000e+00 : f32
    %1298 = vector.shape_cast %1297 : vector<16x1xf32> to vector<16x1xf32>
    %1299 = vector.broadcast %1298 : vector<16x1xf32> to vector<16x144xf32>
    %1300 = vector.broadcast %cst_330 : f32 to vector<16x144xf32>
    %1301 = arith.select %1296, %1299, %1300 : vector<16x144xi1>, vector<16x144xf32>
    %c13_i32_331 = arith.constant 13 : i32
    %1302 = vector.broadcast %c13_i32_331 : i32 to vector<16x144xi32>
    %1303 = arith.cmpi eq, %1280, %1302 : vector<16x144xi32>
    %1304 = vector.extract_strided_slice %1172 {offsets = [0, 3], sizes = [16, 1], strides = [1, 1]} : vector<16x4xf32> to vector<16x1xf32>
    %cst_332 = arith.constant 0.000000e+00 : f32
    %1305 = vector.shape_cast %1304 : vector<16x1xf32> to vector<16x1xf32>
    %1306 = vector.broadcast %1305 : vector<16x1xf32> to vector<16x144xf32>
    %1307 = vector.broadcast %cst_332 : f32 to vector<16x144xf32>
    %1308 = arith.select %1303, %1306, %1307 : vector<16x144xi1>, vector<16x144xf32>
    %1309 = arith.addf %1287, %1294 : vector<16x144xf32>
    %1310 = arith.addf %1301, %1308 : vector<16x144xf32>
    %1311 = arith.addf %1309, %1310 : vector<16x144xf32>
    %1312 = arith.addf %1209, %1243 : vector<16x144xf32>
    %1313 = arith.addf %1277, %1311 : vector<16x144xf32>
    %1314 = arith.addf %1312, %1313 : vector<16x144xf32>
    %1315 = vector.extract_strided_slice %14 {offsets = [16, 8], sizes = [16, 4], strides = [1, 1]} : vector<32x16xf32> to vector<16x4xf32>
    %1316 = vector.extract_strided_slice %19 {offsets = [16, 8], sizes = [16, 4], strides = [1, 1]} : vector<32x16xf32> to vector<16x4xf32>
    %1317 = vector.extract_strided_slice %49 {offsets = [16, 0], sizes = [16, 4], strides = [1, 1]} : vector<32x4xf32> to vector<16x4xf32>
    %cst_333 = arith.constant 1.000000e+00 : f32
    %1318 = vector.broadcast %cst_333 : f32 to vector<16x4xf32>
    %1319 = arith.addf %1315, %1318 : vector<16x4xf32>
    %cst_334 = arith.constant 5.500000e+00 : f32
    %1320 = vector.broadcast %cst_334 : f32 to vector<16x4xf32>
    %1321 = arith.mulf %1319, %1320 : vector<16x4xf32>
    %cst_335 = arith.constant 1.000000e+00 : f32
    %1322 = vector.broadcast %cst_335 : f32 to vector<16x4xf32>
    %1323 = arith.addf %1316, %1322 : vector<16x4xf32>
    %cst_336 = arith.constant 5.500000e+00 : f32
    %1324 = vector.broadcast %cst_336 : f32 to vector<16x4xf32>
    %1325 = arith.mulf %1323, %1324 : vector<16x4xf32>
    %1326 = math.floor %1321 : vector<16x4xf32>
    %1327 = math.floor %1325 : vector<16x4xf32>
    %1328 = arith.subf %1321, %1326 : vector<16x4xf32>
    %1329 = arith.subf %1325, %1327 : vector<16x4xf32>
    %1330 = arith.fptosi %1326 : vector<16x4xf32> to vector<16x4xi32>
    %1331 = arith.fptosi %1327 : vector<16x4xf32> to vector<16x4xi32>
    %c0_i32_337 = arith.constant 0 : i32
    %1332 = vector.broadcast %c0_i32_337 : i32 to vector<16x4xi32>
    %1333 = arith.cmpi sge, %1330, %1332 : vector<16x4xi32>
    %c11_i32_338 = arith.constant 11 : i32
    %1334 = vector.broadcast %c11_i32_338 : i32 to vector<16x4xi32>
    %1335 = arith.cmpi sle, %1330, %1334 : vector<16x4xi32>
    %1336 = arith.andi %1333, %1335 : vector<16x4xi1>
    %c-1_i32_339 = arith.constant -1 : i32
    %1337 = vector.broadcast %c-1_i32_339 : i32 to vector<16x4xi32>
    %1338 = arith.cmpi sge, %1330, %1337 : vector<16x4xi32>
    %c10_i32_340 = arith.constant 10 : i32
    %1339 = vector.broadcast %c10_i32_340 : i32 to vector<16x4xi32>
    %1340 = arith.cmpi sle, %1330, %1339 : vector<16x4xi32>
    %1341 = arith.andi %1338, %1340 : vector<16x4xi1>
    %c0_i32_341 = arith.constant 0 : i32
    %1342 = vector.broadcast %c0_i32_341 : i32 to vector<16x4xi32>
    %1343 = arith.cmpi sge, %1331, %1342 : vector<16x4xi32>
    %c11_i32_342 = arith.constant 11 : i32
    %1344 = vector.broadcast %c11_i32_342 : i32 to vector<16x4xi32>
    %1345 = arith.cmpi sle, %1331, %1344 : vector<16x4xi32>
    %1346 = arith.andi %1343, %1345 : vector<16x4xi1>
    %c-1_i32_343 = arith.constant -1 : i32
    %1347 = vector.broadcast %c-1_i32_343 : i32 to vector<16x4xi32>
    %1348 = arith.cmpi sge, %1331, %1347 : vector<16x4xi32>
    %c10_i32_344 = arith.constant 10 : i32
    %1349 = vector.broadcast %c10_i32_344 : i32 to vector<16x4xi32>
    %1350 = arith.cmpi sle, %1331, %1349 : vector<16x4xi32>
    %1351 = arith.andi %1348, %1350 : vector<16x4xi1>
    %1352 = arith.andi %1336, %1346 : vector<16x4xi1>
    %cst_345 = arith.constant 1.000000e+00 : f32
    %1353 = vector.broadcast %cst_345 : f32 to vector<16x4xf32>
    %1354 = arith.subf %1353, %1328 : vector<16x4xf32>
    %cst_346 = arith.constant 1.000000e+00 : f32
    %1355 = vector.broadcast %cst_346 : f32 to vector<16x4xf32>
    %1356 = arith.subf %1355, %1329 : vector<16x4xf32>
    %1357 = arith.mulf %1354, %1356 : vector<16x4xf32>
    %1358 = arith.mulf %1357, %1317 : vector<16x4xf32>
    %cst_347 = arith.constant 0.000000e+00 : f32
    %1359 = vector.broadcast %cst_347 : f32 to vector<16x4xf32>
    %1360 = arith.select %1352, %1358, %1359 : vector<16x4xi1>, vector<16x4xf32>
    %1361 = arith.andi %1341, %1346 : vector<16x4xi1>
    %cst_348 = arith.constant 1.000000e+00 : f32
    %1362 = vector.broadcast %cst_348 : f32 to vector<16x4xf32>
    %1363 = arith.subf %1362, %1329 : vector<16x4xf32>
    %1364 = arith.mulf %1328, %1363 : vector<16x4xf32>
    %1365 = arith.mulf %1364, %1317 : vector<16x4xf32>
    %cst_349 = arith.constant 0.000000e+00 : f32
    %1366 = vector.broadcast %cst_349 : f32 to vector<16x4xf32>
    %1367 = arith.select %1361, %1365, %1366 : vector<16x4xi1>, vector<16x4xf32>
    %1368 = arith.andi %1336, %1351 : vector<16x4xi1>
    %cst_350 = arith.constant 1.000000e+00 : f32
    %1369 = vector.broadcast %cst_350 : f32 to vector<16x4xf32>
    %1370 = arith.subf %1369, %1328 : vector<16x4xf32>
    %1371 = arith.mulf %1370, %1329 : vector<16x4xf32>
    %1372 = arith.mulf %1371, %1317 : vector<16x4xf32>
    %cst_351 = arith.constant 0.000000e+00 : f32
    %1373 = vector.broadcast %cst_351 : f32 to vector<16x4xf32>
    %1374 = arith.select %1368, %1372, %1373 : vector<16x4xi1>, vector<16x4xf32>
    %1375 = arith.andi %1341, %1351 : vector<16x4xi1>
    %1376 = arith.mulf %1328, %1329 : vector<16x4xf32>
    %1377 = arith.mulf %1376, %1317 : vector<16x4xf32>
    %cst_352 = arith.constant 0.000000e+00 : f32
    %1378 = vector.broadcast %cst_352 : f32 to vector<16x4xf32>
    %1379 = arith.select %1375, %1377, %1378 : vector<16x4xi1>, vector<16x4xf32>
    %c12_i32_353 = arith.constant 12 : i32
    %1380 = vector.broadcast %c12_i32_353 : i32 to vector<16x4xi32>
    %1381 = arith.muli %1331, %1380 : vector<16x4xi32>
    %1382 = arith.addi %1381, %1330 : vector<16x4xi32>
    %1383 = vector.extract_strided_slice %1382 {offsets = [0, 0], sizes = [16, 1], strides = [1, 1]} : vector<16x4xi32> to vector<16x1xi32>
    %1384 = vector.broadcast %1383 : vector<16x1xi32> to vector<16x144xi32>
    %1385 = arith.subi %900, %1384 : vector<16x144xi32>
    %c0_i32_354 = arith.constant 0 : i32
    %1386 = vector.broadcast %c0_i32_354 : i32 to vector<16x144xi32>
    %1387 = arith.cmpi eq, %1385, %1386 : vector<16x144xi32>
    %1388 = vector.extract_strided_slice %1360 {offsets = [0, 0], sizes = [16, 1], strides = [1, 1]} : vector<16x4xf32> to vector<16x1xf32>
    %cst_355 = arith.constant 0.000000e+00 : f32
    %1389 = vector.shape_cast %1388 : vector<16x1xf32> to vector<16x1xf32>
    %1390 = vector.broadcast %1389 : vector<16x1xf32> to vector<16x144xf32>
    %1391 = vector.broadcast %cst_355 : f32 to vector<16x144xf32>
    %1392 = arith.select %1387, %1390, %1391 : vector<16x144xi1>, vector<16x144xf32>
    %c1_i32_356 = arith.constant 1 : i32
    %1393 = vector.broadcast %c1_i32_356 : i32 to vector<16x144xi32>
    %1394 = arith.cmpi eq, %1385, %1393 : vector<16x144xi32>
    %1395 = vector.extract_strided_slice %1367 {offsets = [0, 0], sizes = [16, 1], strides = [1, 1]} : vector<16x4xf32> to vector<16x1xf32>
    %cst_357 = arith.constant 0.000000e+00 : f32
    %1396 = vector.shape_cast %1395 : vector<16x1xf32> to vector<16x1xf32>
    %1397 = vector.broadcast %1396 : vector<16x1xf32> to vector<16x144xf32>
    %1398 = vector.broadcast %cst_357 : f32 to vector<16x144xf32>
    %1399 = arith.select %1394, %1397, %1398 : vector<16x144xi1>, vector<16x144xf32>
    %c12_i32_358 = arith.constant 12 : i32
    %1400 = vector.broadcast %c12_i32_358 : i32 to vector<16x144xi32>
    %1401 = arith.cmpi eq, %1385, %1400 : vector<16x144xi32>
    %1402 = vector.extract_strided_slice %1374 {offsets = [0, 0], sizes = [16, 1], strides = [1, 1]} : vector<16x4xf32> to vector<16x1xf32>
    %cst_359 = arith.constant 0.000000e+00 : f32
    %1403 = vector.shape_cast %1402 : vector<16x1xf32> to vector<16x1xf32>
    %1404 = vector.broadcast %1403 : vector<16x1xf32> to vector<16x144xf32>
    %1405 = vector.broadcast %cst_359 : f32 to vector<16x144xf32>
    %1406 = arith.select %1401, %1404, %1405 : vector<16x144xi1>, vector<16x144xf32>
    %c13_i32_360 = arith.constant 13 : i32
    %1407 = vector.broadcast %c13_i32_360 : i32 to vector<16x144xi32>
    %1408 = arith.cmpi eq, %1385, %1407 : vector<16x144xi32>
    %1409 = vector.extract_strided_slice %1379 {offsets = [0, 0], sizes = [16, 1], strides = [1, 1]} : vector<16x4xf32> to vector<16x1xf32>
    %cst_361 = arith.constant 0.000000e+00 : f32
    %1410 = vector.shape_cast %1409 : vector<16x1xf32> to vector<16x1xf32>
    %1411 = vector.broadcast %1410 : vector<16x1xf32> to vector<16x144xf32>
    %1412 = vector.broadcast %cst_361 : f32 to vector<16x144xf32>
    %1413 = arith.select %1408, %1411, %1412 : vector<16x144xi1>, vector<16x144xf32>
    %1414 = arith.addf %1392, %1399 : vector<16x144xf32>
    %1415 = arith.addf %1406, %1413 : vector<16x144xf32>
    %1416 = arith.addf %1414, %1415 : vector<16x144xf32>
    %1417 = vector.extract_strided_slice %1382 {offsets = [0, 1], sizes = [16, 1], strides = [1, 1]} : vector<16x4xi32> to vector<16x1xi32>
    %1418 = vector.broadcast %1417 : vector<16x1xi32> to vector<16x144xi32>
    %1419 = arith.subi %900, %1418 : vector<16x144xi32>
    %c0_i32_362 = arith.constant 0 : i32
    %1420 = vector.broadcast %c0_i32_362 : i32 to vector<16x144xi32>
    %1421 = arith.cmpi eq, %1419, %1420 : vector<16x144xi32>
    %1422 = vector.extract_strided_slice %1360 {offsets = [0, 1], sizes = [16, 1], strides = [1, 1]} : vector<16x4xf32> to vector<16x1xf32>
    %cst_363 = arith.constant 0.000000e+00 : f32
    %1423 = vector.shape_cast %1422 : vector<16x1xf32> to vector<16x1xf32>
    %1424 = vector.broadcast %1423 : vector<16x1xf32> to vector<16x144xf32>
    %1425 = vector.broadcast %cst_363 : f32 to vector<16x144xf32>
    %1426 = arith.select %1421, %1424, %1425 : vector<16x144xi1>, vector<16x144xf32>
    %c1_i32_364 = arith.constant 1 : i32
    %1427 = vector.broadcast %c1_i32_364 : i32 to vector<16x144xi32>
    %1428 = arith.cmpi eq, %1419, %1427 : vector<16x144xi32>
    %1429 = vector.extract_strided_slice %1367 {offsets = [0, 1], sizes = [16, 1], strides = [1, 1]} : vector<16x4xf32> to vector<16x1xf32>
    %cst_365 = arith.constant 0.000000e+00 : f32
    %1430 = vector.shape_cast %1429 : vector<16x1xf32> to vector<16x1xf32>
    %1431 = vector.broadcast %1430 : vector<16x1xf32> to vector<16x144xf32>
    %1432 = vector.broadcast %cst_365 : f32 to vector<16x144xf32>
    %1433 = arith.select %1428, %1431, %1432 : vector<16x144xi1>, vector<16x144xf32>
    %c12_i32_366 = arith.constant 12 : i32
    %1434 = vector.broadcast %c12_i32_366 : i32 to vector<16x144xi32>
    %1435 = arith.cmpi eq, %1419, %1434 : vector<16x144xi32>
    %1436 = vector.extract_strided_slice %1374 {offsets = [0, 1], sizes = [16, 1], strides = [1, 1]} : vector<16x4xf32> to vector<16x1xf32>
    %cst_367 = arith.constant 0.000000e+00 : f32
    %1437 = vector.shape_cast %1436 : vector<16x1xf32> to vector<16x1xf32>
    %1438 = vector.broadcast %1437 : vector<16x1xf32> to vector<16x144xf32>
    %1439 = vector.broadcast %cst_367 : f32 to vector<16x144xf32>
    %1440 = arith.select %1435, %1438, %1439 : vector<16x144xi1>, vector<16x144xf32>
    %c13_i32_368 = arith.constant 13 : i32
    %1441 = vector.broadcast %c13_i32_368 : i32 to vector<16x144xi32>
    %1442 = arith.cmpi eq, %1419, %1441 : vector<16x144xi32>
    %1443 = vector.extract_strided_slice %1379 {offsets = [0, 1], sizes = [16, 1], strides = [1, 1]} : vector<16x4xf32> to vector<16x1xf32>
    %cst_369 = arith.constant 0.000000e+00 : f32
    %1444 = vector.shape_cast %1443 : vector<16x1xf32> to vector<16x1xf32>
    %1445 = vector.broadcast %1444 : vector<16x1xf32> to vector<16x144xf32>
    %1446 = vector.broadcast %cst_369 : f32 to vector<16x144xf32>
    %1447 = arith.select %1442, %1445, %1446 : vector<16x144xi1>, vector<16x144xf32>
    %1448 = arith.addf %1426, %1433 : vector<16x144xf32>
    %1449 = arith.addf %1440, %1447 : vector<16x144xf32>
    %1450 = arith.addf %1448, %1449 : vector<16x144xf32>
    %1451 = vector.extract_strided_slice %1382 {offsets = [0, 2], sizes = [16, 1], strides = [1, 1]} : vector<16x4xi32> to vector<16x1xi32>
    %1452 = vector.broadcast %1451 : vector<16x1xi32> to vector<16x144xi32>
    %1453 = arith.subi %900, %1452 : vector<16x144xi32>
    %c0_i32_370 = arith.constant 0 : i32
    %1454 = vector.broadcast %c0_i32_370 : i32 to vector<16x144xi32>
    %1455 = arith.cmpi eq, %1453, %1454 : vector<16x144xi32>
    %1456 = vector.extract_strided_slice %1360 {offsets = [0, 2], sizes = [16, 1], strides = [1, 1]} : vector<16x4xf32> to vector<16x1xf32>
    %cst_371 = arith.constant 0.000000e+00 : f32
    %1457 = vector.shape_cast %1456 : vector<16x1xf32> to vector<16x1xf32>
    %1458 = vector.broadcast %1457 : vector<16x1xf32> to vector<16x144xf32>
    %1459 = vector.broadcast %cst_371 : f32 to vector<16x144xf32>
    %1460 = arith.select %1455, %1458, %1459 : vector<16x144xi1>, vector<16x144xf32>
    %c1_i32_372 = arith.constant 1 : i32
    %1461 = vector.broadcast %c1_i32_372 : i32 to vector<16x144xi32>
    %1462 = arith.cmpi eq, %1453, %1461 : vector<16x144xi32>
    %1463 = vector.extract_strided_slice %1367 {offsets = [0, 2], sizes = [16, 1], strides = [1, 1]} : vector<16x4xf32> to vector<16x1xf32>
    %cst_373 = arith.constant 0.000000e+00 : f32
    %1464 = vector.shape_cast %1463 : vector<16x1xf32> to vector<16x1xf32>
    %1465 = vector.broadcast %1464 : vector<16x1xf32> to vector<16x144xf32>
    %1466 = vector.broadcast %cst_373 : f32 to vector<16x144xf32>
    %1467 = arith.select %1462, %1465, %1466 : vector<16x144xi1>, vector<16x144xf32>
    %c12_i32_374 = arith.constant 12 : i32
    %1468 = vector.broadcast %c12_i32_374 : i32 to vector<16x144xi32>
    %1469 = arith.cmpi eq, %1453, %1468 : vector<16x144xi32>
    %1470 = vector.extract_strided_slice %1374 {offsets = [0, 2], sizes = [16, 1], strides = [1, 1]} : vector<16x4xf32> to vector<16x1xf32>
    %cst_375 = arith.constant 0.000000e+00 : f32
    %1471 = vector.shape_cast %1470 : vector<16x1xf32> to vector<16x1xf32>
    %1472 = vector.broadcast %1471 : vector<16x1xf32> to vector<16x144xf32>
    %1473 = vector.broadcast %cst_375 : f32 to vector<16x144xf32>
    %1474 = arith.select %1469, %1472, %1473 : vector<16x144xi1>, vector<16x144xf32>
    %c13_i32_376 = arith.constant 13 : i32
    %1475 = vector.broadcast %c13_i32_376 : i32 to vector<16x144xi32>
    %1476 = arith.cmpi eq, %1453, %1475 : vector<16x144xi32>
    %1477 = vector.extract_strided_slice %1379 {offsets = [0, 2], sizes = [16, 1], strides = [1, 1]} : vector<16x4xf32> to vector<16x1xf32>
    %cst_377 = arith.constant 0.000000e+00 : f32
    %1478 = vector.shape_cast %1477 : vector<16x1xf32> to vector<16x1xf32>
    %1479 = vector.broadcast %1478 : vector<16x1xf32> to vector<16x144xf32>
    %1480 = vector.broadcast %cst_377 : f32 to vector<16x144xf32>
    %1481 = arith.select %1476, %1479, %1480 : vector<16x144xi1>, vector<16x144xf32>
    %1482 = arith.addf %1460, %1467 : vector<16x144xf32>
    %1483 = arith.addf %1474, %1481 : vector<16x144xf32>
    %1484 = arith.addf %1482, %1483 : vector<16x144xf32>
    %1485 = vector.extract_strided_slice %1382 {offsets = [0, 3], sizes = [16, 1], strides = [1, 1]} : vector<16x4xi32> to vector<16x1xi32>
    %1486 = vector.broadcast %1485 : vector<16x1xi32> to vector<16x144xi32>
    %1487 = arith.subi %900, %1486 : vector<16x144xi32>
    %c0_i32_378 = arith.constant 0 : i32
    %1488 = vector.broadcast %c0_i32_378 : i32 to vector<16x144xi32>
    %1489 = arith.cmpi eq, %1487, %1488 : vector<16x144xi32>
    %1490 = vector.extract_strided_slice %1360 {offsets = [0, 3], sizes = [16, 1], strides = [1, 1]} : vector<16x4xf32> to vector<16x1xf32>
    %cst_379 = arith.constant 0.000000e+00 : f32
    %1491 = vector.shape_cast %1490 : vector<16x1xf32> to vector<16x1xf32>
    %1492 = vector.broadcast %1491 : vector<16x1xf32> to vector<16x144xf32>
    %1493 = vector.broadcast %cst_379 : f32 to vector<16x144xf32>
    %1494 = arith.select %1489, %1492, %1493 : vector<16x144xi1>, vector<16x144xf32>
    %c1_i32_380 = arith.constant 1 : i32
    %1495 = vector.broadcast %c1_i32_380 : i32 to vector<16x144xi32>
    %1496 = arith.cmpi eq, %1487, %1495 : vector<16x144xi32>
    %1497 = vector.extract_strided_slice %1367 {offsets = [0, 3], sizes = [16, 1], strides = [1, 1]} : vector<16x4xf32> to vector<16x1xf32>
    %cst_381 = arith.constant 0.000000e+00 : f32
    %1498 = vector.shape_cast %1497 : vector<16x1xf32> to vector<16x1xf32>
    %1499 = vector.broadcast %1498 : vector<16x1xf32> to vector<16x144xf32>
    %1500 = vector.broadcast %cst_381 : f32 to vector<16x144xf32>
    %1501 = arith.select %1496, %1499, %1500 : vector<16x144xi1>, vector<16x144xf32>
    %c12_i32_382 = arith.constant 12 : i32
    %1502 = vector.broadcast %c12_i32_382 : i32 to vector<16x144xi32>
    %1503 = arith.cmpi eq, %1487, %1502 : vector<16x144xi32>
    %1504 = vector.extract_strided_slice %1374 {offsets = [0, 3], sizes = [16, 1], strides = [1, 1]} : vector<16x4xf32> to vector<16x1xf32>
    %cst_383 = arith.constant 0.000000e+00 : f32
    %1505 = vector.shape_cast %1504 : vector<16x1xf32> to vector<16x1xf32>
    %1506 = vector.broadcast %1505 : vector<16x1xf32> to vector<16x144xf32>
    %1507 = vector.broadcast %cst_383 : f32 to vector<16x144xf32>
    %1508 = arith.select %1503, %1506, %1507 : vector<16x144xi1>, vector<16x144xf32>
    %c13_i32_384 = arith.constant 13 : i32
    %1509 = vector.broadcast %c13_i32_384 : i32 to vector<16x144xi32>
    %1510 = arith.cmpi eq, %1487, %1509 : vector<16x144xi32>
    %1511 = vector.extract_strided_slice %1379 {offsets = [0, 3], sizes = [16, 1], strides = [1, 1]} : vector<16x4xf32> to vector<16x1xf32>
    %cst_385 = arith.constant 0.000000e+00 : f32
    %1512 = vector.shape_cast %1511 : vector<16x1xf32> to vector<16x1xf32>
    %1513 = vector.broadcast %1512 : vector<16x1xf32> to vector<16x144xf32>
    %1514 = vector.broadcast %cst_385 : f32 to vector<16x144xf32>
    %1515 = arith.select %1510, %1513, %1514 : vector<16x144xi1>, vector<16x144xf32>
    %1516 = arith.addf %1494, %1501 : vector<16x144xf32>
    %1517 = arith.addf %1508, %1515 : vector<16x144xf32>
    %1518 = arith.addf %1516, %1517 : vector<16x144xf32>
    %1519 = arith.addf %1416, %1450 : vector<16x144xf32>
    %1520 = arith.addf %1484, %1518 : vector<16x144xf32>
    %1521 = arith.addf %1519, %1520 : vector<16x144xf32>
    %1522 = vector.extract_strided_slice %14 {offsets = [16, 12], sizes = [16, 4], strides = [1, 1]} : vector<32x16xf32> to vector<16x4xf32>
    %1523 = vector.extract_strided_slice %19 {offsets = [16, 12], sizes = [16, 4], strides = [1, 1]} : vector<32x16xf32> to vector<16x4xf32>
    %1524 = vector.extract_strided_slice %59 {offsets = [16, 0], sizes = [16, 4], strides = [1, 1]} : vector<32x4xf32> to vector<16x4xf32>
    %cst_386 = arith.constant 1.000000e+00 : f32
    %1525 = vector.broadcast %cst_386 : f32 to vector<16x4xf32>
    %1526 = arith.addf %1522, %1525 : vector<16x4xf32>
    %cst_387 = arith.constant 5.500000e+00 : f32
    %1527 = vector.broadcast %cst_387 : f32 to vector<16x4xf32>
    %1528 = arith.mulf %1526, %1527 : vector<16x4xf32>
    %cst_388 = arith.constant 1.000000e+00 : f32
    %1529 = vector.broadcast %cst_388 : f32 to vector<16x4xf32>
    %1530 = arith.addf %1523, %1529 : vector<16x4xf32>
    %cst_389 = arith.constant 5.500000e+00 : f32
    %1531 = vector.broadcast %cst_389 : f32 to vector<16x4xf32>
    %1532 = arith.mulf %1530, %1531 : vector<16x4xf32>
    %1533 = math.floor %1528 : vector<16x4xf32>
    %1534 = math.floor %1532 : vector<16x4xf32>
    %1535 = arith.subf %1528, %1533 : vector<16x4xf32>
    %1536 = arith.subf %1532, %1534 : vector<16x4xf32>
    %1537 = arith.fptosi %1533 : vector<16x4xf32> to vector<16x4xi32>
    %1538 = arith.fptosi %1534 : vector<16x4xf32> to vector<16x4xi32>
    %c0_i32_390 = arith.constant 0 : i32
    %1539 = vector.broadcast %c0_i32_390 : i32 to vector<16x4xi32>
    %1540 = arith.cmpi sge, %1537, %1539 : vector<16x4xi32>
    %c11_i32_391 = arith.constant 11 : i32
    %1541 = vector.broadcast %c11_i32_391 : i32 to vector<16x4xi32>
    %1542 = arith.cmpi sle, %1537, %1541 : vector<16x4xi32>
    %1543 = arith.andi %1540, %1542 : vector<16x4xi1>
    %c-1_i32_392 = arith.constant -1 : i32
    %1544 = vector.broadcast %c-1_i32_392 : i32 to vector<16x4xi32>
    %1545 = arith.cmpi sge, %1537, %1544 : vector<16x4xi32>
    %c10_i32_393 = arith.constant 10 : i32
    %1546 = vector.broadcast %c10_i32_393 : i32 to vector<16x4xi32>
    %1547 = arith.cmpi sle, %1537, %1546 : vector<16x4xi32>
    %1548 = arith.andi %1545, %1547 : vector<16x4xi1>
    %c0_i32_394 = arith.constant 0 : i32
    %1549 = vector.broadcast %c0_i32_394 : i32 to vector<16x4xi32>
    %1550 = arith.cmpi sge, %1538, %1549 : vector<16x4xi32>
    %c11_i32_395 = arith.constant 11 : i32
    %1551 = vector.broadcast %c11_i32_395 : i32 to vector<16x4xi32>
    %1552 = arith.cmpi sle, %1538, %1551 : vector<16x4xi32>
    %1553 = arith.andi %1550, %1552 : vector<16x4xi1>
    %c-1_i32_396 = arith.constant -1 : i32
    %1554 = vector.broadcast %c-1_i32_396 : i32 to vector<16x4xi32>
    %1555 = arith.cmpi sge, %1538, %1554 : vector<16x4xi32>
    %c10_i32_397 = arith.constant 10 : i32
    %1556 = vector.broadcast %c10_i32_397 : i32 to vector<16x4xi32>
    %1557 = arith.cmpi sle, %1538, %1556 : vector<16x4xi32>
    %1558 = arith.andi %1555, %1557 : vector<16x4xi1>
    %1559 = arith.andi %1543, %1553 : vector<16x4xi1>
    %cst_398 = arith.constant 1.000000e+00 : f32
    %1560 = vector.broadcast %cst_398 : f32 to vector<16x4xf32>
    %1561 = arith.subf %1560, %1535 : vector<16x4xf32>
    %cst_399 = arith.constant 1.000000e+00 : f32
    %1562 = vector.broadcast %cst_399 : f32 to vector<16x4xf32>
    %1563 = arith.subf %1562, %1536 : vector<16x4xf32>
    %1564 = arith.mulf %1561, %1563 : vector<16x4xf32>
    %1565 = arith.mulf %1564, %1524 : vector<16x4xf32>
    %cst_400 = arith.constant 0.000000e+00 : f32
    %1566 = vector.broadcast %cst_400 : f32 to vector<16x4xf32>
    %1567 = arith.select %1559, %1565, %1566 : vector<16x4xi1>, vector<16x4xf32>
    %1568 = arith.andi %1548, %1553 : vector<16x4xi1>
    %cst_401 = arith.constant 1.000000e+00 : f32
    %1569 = vector.broadcast %cst_401 : f32 to vector<16x4xf32>
    %1570 = arith.subf %1569, %1536 : vector<16x4xf32>
    %1571 = arith.mulf %1535, %1570 : vector<16x4xf32>
    %1572 = arith.mulf %1571, %1524 : vector<16x4xf32>
    %cst_402 = arith.constant 0.000000e+00 : f32
    %1573 = vector.broadcast %cst_402 : f32 to vector<16x4xf32>
    %1574 = arith.select %1568, %1572, %1573 : vector<16x4xi1>, vector<16x4xf32>
    %1575 = arith.andi %1543, %1558 : vector<16x4xi1>
    %cst_403 = arith.constant 1.000000e+00 : f32
    %1576 = vector.broadcast %cst_403 : f32 to vector<16x4xf32>
    %1577 = arith.subf %1576, %1535 : vector<16x4xf32>
    %1578 = arith.mulf %1577, %1536 : vector<16x4xf32>
    %1579 = arith.mulf %1578, %1524 : vector<16x4xf32>
    %cst_404 = arith.constant 0.000000e+00 : f32
    %1580 = vector.broadcast %cst_404 : f32 to vector<16x4xf32>
    %1581 = arith.select %1575, %1579, %1580 : vector<16x4xi1>, vector<16x4xf32>
    %1582 = arith.andi %1548, %1558 : vector<16x4xi1>
    %1583 = arith.mulf %1535, %1536 : vector<16x4xf32>
    %1584 = arith.mulf %1583, %1524 : vector<16x4xf32>
    %cst_405 = arith.constant 0.000000e+00 : f32
    %1585 = vector.broadcast %cst_405 : f32 to vector<16x4xf32>
    %1586 = arith.select %1582, %1584, %1585 : vector<16x4xi1>, vector<16x4xf32>
    %c12_i32_406 = arith.constant 12 : i32
    %1587 = vector.broadcast %c12_i32_406 : i32 to vector<16x4xi32>
    %1588 = arith.muli %1538, %1587 : vector<16x4xi32>
    %1589 = arith.addi %1588, %1537 : vector<16x4xi32>
    %1590 = vector.extract_strided_slice %1589 {offsets = [0, 0], sizes = [16, 1], strides = [1, 1]} : vector<16x4xi32> to vector<16x1xi32>
    %1591 = vector.broadcast %1590 : vector<16x1xi32> to vector<16x144xi32>
    %1592 = arith.subi %900, %1591 : vector<16x144xi32>
    %c0_i32_407 = arith.constant 0 : i32
    %1593 = vector.broadcast %c0_i32_407 : i32 to vector<16x144xi32>
    %1594 = arith.cmpi eq, %1592, %1593 : vector<16x144xi32>
    %1595 = vector.extract_strided_slice %1567 {offsets = [0, 0], sizes = [16, 1], strides = [1, 1]} : vector<16x4xf32> to vector<16x1xf32>
    %cst_408 = arith.constant 0.000000e+00 : f32
    %1596 = vector.shape_cast %1595 : vector<16x1xf32> to vector<16x1xf32>
    %1597 = vector.broadcast %1596 : vector<16x1xf32> to vector<16x144xf32>
    %1598 = vector.broadcast %cst_408 : f32 to vector<16x144xf32>
    %1599 = arith.select %1594, %1597, %1598 : vector<16x144xi1>, vector<16x144xf32>
    %c1_i32_409 = arith.constant 1 : i32
    %1600 = vector.broadcast %c1_i32_409 : i32 to vector<16x144xi32>
    %1601 = arith.cmpi eq, %1592, %1600 : vector<16x144xi32>
    %1602 = vector.extract_strided_slice %1574 {offsets = [0, 0], sizes = [16, 1], strides = [1, 1]} : vector<16x4xf32> to vector<16x1xf32>
    %cst_410 = arith.constant 0.000000e+00 : f32
    %1603 = vector.shape_cast %1602 : vector<16x1xf32> to vector<16x1xf32>
    %1604 = vector.broadcast %1603 : vector<16x1xf32> to vector<16x144xf32>
    %1605 = vector.broadcast %cst_410 : f32 to vector<16x144xf32>
    %1606 = arith.select %1601, %1604, %1605 : vector<16x144xi1>, vector<16x144xf32>
    %c12_i32_411 = arith.constant 12 : i32
    %1607 = vector.broadcast %c12_i32_411 : i32 to vector<16x144xi32>
    %1608 = arith.cmpi eq, %1592, %1607 : vector<16x144xi32>
    %1609 = vector.extract_strided_slice %1581 {offsets = [0, 0], sizes = [16, 1], strides = [1, 1]} : vector<16x4xf32> to vector<16x1xf32>
    %cst_412 = arith.constant 0.000000e+00 : f32
    %1610 = vector.shape_cast %1609 : vector<16x1xf32> to vector<16x1xf32>
    %1611 = vector.broadcast %1610 : vector<16x1xf32> to vector<16x144xf32>
    %1612 = vector.broadcast %cst_412 : f32 to vector<16x144xf32>
    %1613 = arith.select %1608, %1611, %1612 : vector<16x144xi1>, vector<16x144xf32>
    %c13_i32_413 = arith.constant 13 : i32
    %1614 = vector.broadcast %c13_i32_413 : i32 to vector<16x144xi32>
    %1615 = arith.cmpi eq, %1592, %1614 : vector<16x144xi32>
    %1616 = vector.extract_strided_slice %1586 {offsets = [0, 0], sizes = [16, 1], strides = [1, 1]} : vector<16x4xf32> to vector<16x1xf32>
    %cst_414 = arith.constant 0.000000e+00 : f32
    %1617 = vector.shape_cast %1616 : vector<16x1xf32> to vector<16x1xf32>
    %1618 = vector.broadcast %1617 : vector<16x1xf32> to vector<16x144xf32>
    %1619 = vector.broadcast %cst_414 : f32 to vector<16x144xf32>
    %1620 = arith.select %1615, %1618, %1619 : vector<16x144xi1>, vector<16x144xf32>
    %1621 = arith.addf %1599, %1606 : vector<16x144xf32>
    %1622 = arith.addf %1613, %1620 : vector<16x144xf32>
    %1623 = arith.addf %1621, %1622 : vector<16x144xf32>
    %1624 = vector.extract_strided_slice %1589 {offsets = [0, 1], sizes = [16, 1], strides = [1, 1]} : vector<16x4xi32> to vector<16x1xi32>
    %1625 = vector.broadcast %1624 : vector<16x1xi32> to vector<16x144xi32>
    %1626 = arith.subi %900, %1625 : vector<16x144xi32>
    %c0_i32_415 = arith.constant 0 : i32
    %1627 = vector.broadcast %c0_i32_415 : i32 to vector<16x144xi32>
    %1628 = arith.cmpi eq, %1626, %1627 : vector<16x144xi32>
    %1629 = vector.extract_strided_slice %1567 {offsets = [0, 1], sizes = [16, 1], strides = [1, 1]} : vector<16x4xf32> to vector<16x1xf32>
    %cst_416 = arith.constant 0.000000e+00 : f32
    %1630 = vector.shape_cast %1629 : vector<16x1xf32> to vector<16x1xf32>
    %1631 = vector.broadcast %1630 : vector<16x1xf32> to vector<16x144xf32>
    %1632 = vector.broadcast %cst_416 : f32 to vector<16x144xf32>
    %1633 = arith.select %1628, %1631, %1632 : vector<16x144xi1>, vector<16x144xf32>
    %c1_i32_417 = arith.constant 1 : i32
    %1634 = vector.broadcast %c1_i32_417 : i32 to vector<16x144xi32>
    %1635 = arith.cmpi eq, %1626, %1634 : vector<16x144xi32>
    %1636 = vector.extract_strided_slice %1574 {offsets = [0, 1], sizes = [16, 1], strides = [1, 1]} : vector<16x4xf32> to vector<16x1xf32>
    %cst_418 = arith.constant 0.000000e+00 : f32
    %1637 = vector.shape_cast %1636 : vector<16x1xf32> to vector<16x1xf32>
    %1638 = vector.broadcast %1637 : vector<16x1xf32> to vector<16x144xf32>
    %1639 = vector.broadcast %cst_418 : f32 to vector<16x144xf32>
    %1640 = arith.select %1635, %1638, %1639 : vector<16x144xi1>, vector<16x144xf32>
    %c12_i32_419 = arith.constant 12 : i32
    %1641 = vector.broadcast %c12_i32_419 : i32 to vector<16x144xi32>
    %1642 = arith.cmpi eq, %1626, %1641 : vector<16x144xi32>
    %1643 = vector.extract_strided_slice %1581 {offsets = [0, 1], sizes = [16, 1], strides = [1, 1]} : vector<16x4xf32> to vector<16x1xf32>
    %cst_420 = arith.constant 0.000000e+00 : f32
    %1644 = vector.shape_cast %1643 : vector<16x1xf32> to vector<16x1xf32>
    %1645 = vector.broadcast %1644 : vector<16x1xf32> to vector<16x144xf32>
    %1646 = vector.broadcast %cst_420 : f32 to vector<16x144xf32>
    %1647 = arith.select %1642, %1645, %1646 : vector<16x144xi1>, vector<16x144xf32>
    %c13_i32_421 = arith.constant 13 : i32
    %1648 = vector.broadcast %c13_i32_421 : i32 to vector<16x144xi32>
    %1649 = arith.cmpi eq, %1626, %1648 : vector<16x144xi32>
    %1650 = vector.extract_strided_slice %1586 {offsets = [0, 1], sizes = [16, 1], strides = [1, 1]} : vector<16x4xf32> to vector<16x1xf32>
    %cst_422 = arith.constant 0.000000e+00 : f32
    %1651 = vector.shape_cast %1650 : vector<16x1xf32> to vector<16x1xf32>
    %1652 = vector.broadcast %1651 : vector<16x1xf32> to vector<16x144xf32>
    %1653 = vector.broadcast %cst_422 : f32 to vector<16x144xf32>
    %1654 = arith.select %1649, %1652, %1653 : vector<16x144xi1>, vector<16x144xf32>
    %1655 = arith.addf %1633, %1640 : vector<16x144xf32>
    %1656 = arith.addf %1647, %1654 : vector<16x144xf32>
    %1657 = arith.addf %1655, %1656 : vector<16x144xf32>
    %1658 = vector.extract_strided_slice %1589 {offsets = [0, 2], sizes = [16, 1], strides = [1, 1]} : vector<16x4xi32> to vector<16x1xi32>
    %1659 = vector.broadcast %1658 : vector<16x1xi32> to vector<16x144xi32>
    %1660 = arith.subi %900, %1659 : vector<16x144xi32>
    %c0_i32_423 = arith.constant 0 : i32
    %1661 = vector.broadcast %c0_i32_423 : i32 to vector<16x144xi32>
    %1662 = arith.cmpi eq, %1660, %1661 : vector<16x144xi32>
    %1663 = vector.extract_strided_slice %1567 {offsets = [0, 2], sizes = [16, 1], strides = [1, 1]} : vector<16x4xf32> to vector<16x1xf32>
    %cst_424 = arith.constant 0.000000e+00 : f32
    %1664 = vector.shape_cast %1663 : vector<16x1xf32> to vector<16x1xf32>
    %1665 = vector.broadcast %1664 : vector<16x1xf32> to vector<16x144xf32>
    %1666 = vector.broadcast %cst_424 : f32 to vector<16x144xf32>
    %1667 = arith.select %1662, %1665, %1666 : vector<16x144xi1>, vector<16x144xf32>
    %c1_i32_425 = arith.constant 1 : i32
    %1668 = vector.broadcast %c1_i32_425 : i32 to vector<16x144xi32>
    %1669 = arith.cmpi eq, %1660, %1668 : vector<16x144xi32>
    %1670 = vector.extract_strided_slice %1574 {offsets = [0, 2], sizes = [16, 1], strides = [1, 1]} : vector<16x4xf32> to vector<16x1xf32>
    %cst_426 = arith.constant 0.000000e+00 : f32
    %1671 = vector.shape_cast %1670 : vector<16x1xf32> to vector<16x1xf32>
    %1672 = vector.broadcast %1671 : vector<16x1xf32> to vector<16x144xf32>
    %1673 = vector.broadcast %cst_426 : f32 to vector<16x144xf32>
    %1674 = arith.select %1669, %1672, %1673 : vector<16x144xi1>, vector<16x144xf32>
    %c12_i32_427 = arith.constant 12 : i32
    %1675 = vector.broadcast %c12_i32_427 : i32 to vector<16x144xi32>
    %1676 = arith.cmpi eq, %1660, %1675 : vector<16x144xi32>
    %1677 = vector.extract_strided_slice %1581 {offsets = [0, 2], sizes = [16, 1], strides = [1, 1]} : vector<16x4xf32> to vector<16x1xf32>
    %cst_428 = arith.constant 0.000000e+00 : f32
    %1678 = vector.shape_cast %1677 : vector<16x1xf32> to vector<16x1xf32>
    %1679 = vector.broadcast %1678 : vector<16x1xf32> to vector<16x144xf32>
    %1680 = vector.broadcast %cst_428 : f32 to vector<16x144xf32>
    %1681 = arith.select %1676, %1679, %1680 : vector<16x144xi1>, vector<16x144xf32>
    %c13_i32_429 = arith.constant 13 : i32
    %1682 = vector.broadcast %c13_i32_429 : i32 to vector<16x144xi32>
    %1683 = arith.cmpi eq, %1660, %1682 : vector<16x144xi32>
    %1684 = vector.extract_strided_slice %1586 {offsets = [0, 2], sizes = [16, 1], strides = [1, 1]} : vector<16x4xf32> to vector<16x1xf32>
    %cst_430 = arith.constant 0.000000e+00 : f32
    %1685 = vector.shape_cast %1684 : vector<16x1xf32> to vector<16x1xf32>
    %1686 = vector.broadcast %1685 : vector<16x1xf32> to vector<16x144xf32>
    %1687 = vector.broadcast %cst_430 : f32 to vector<16x144xf32>
    %1688 = arith.select %1683, %1686, %1687 : vector<16x144xi1>, vector<16x144xf32>
    %1689 = arith.addf %1667, %1674 : vector<16x144xf32>
    %1690 = arith.addf %1681, %1688 : vector<16x144xf32>
    %1691 = arith.addf %1689, %1690 : vector<16x144xf32>
    %1692 = vector.extract_strided_slice %1589 {offsets = [0, 3], sizes = [16, 1], strides = [1, 1]} : vector<16x4xi32> to vector<16x1xi32>
    %1693 = vector.broadcast %1692 : vector<16x1xi32> to vector<16x144xi32>
    %1694 = arith.subi %900, %1693 : vector<16x144xi32>
    %c0_i32_431 = arith.constant 0 : i32
    %1695 = vector.broadcast %c0_i32_431 : i32 to vector<16x144xi32>
    %1696 = arith.cmpi eq, %1694, %1695 : vector<16x144xi32>
    %1697 = vector.extract_strided_slice %1567 {offsets = [0, 3], sizes = [16, 1], strides = [1, 1]} : vector<16x4xf32> to vector<16x1xf32>
    %cst_432 = arith.constant 0.000000e+00 : f32
    %1698 = vector.shape_cast %1697 : vector<16x1xf32> to vector<16x1xf32>
    %1699 = vector.broadcast %1698 : vector<16x1xf32> to vector<16x144xf32>
    %1700 = vector.broadcast %cst_432 : f32 to vector<16x144xf32>
    %1701 = arith.select %1696, %1699, %1700 : vector<16x144xi1>, vector<16x144xf32>
    %c1_i32_433 = arith.constant 1 : i32
    %1702 = vector.broadcast %c1_i32_433 : i32 to vector<16x144xi32>
    %1703 = arith.cmpi eq, %1694, %1702 : vector<16x144xi32>
    %1704 = vector.extract_strided_slice %1574 {offsets = [0, 3], sizes = [16, 1], strides = [1, 1]} : vector<16x4xf32> to vector<16x1xf32>
    %cst_434 = arith.constant 0.000000e+00 : f32
    %1705 = vector.shape_cast %1704 : vector<16x1xf32> to vector<16x1xf32>
    %1706 = vector.broadcast %1705 : vector<16x1xf32> to vector<16x144xf32>
    %1707 = vector.broadcast %cst_434 : f32 to vector<16x144xf32>
    %1708 = arith.select %1703, %1706, %1707 : vector<16x144xi1>, vector<16x144xf32>
    %c12_i32_435 = arith.constant 12 : i32
    %1709 = vector.broadcast %c12_i32_435 : i32 to vector<16x144xi32>
    %1710 = arith.cmpi eq, %1694, %1709 : vector<16x144xi32>
    %1711 = vector.extract_strided_slice %1581 {offsets = [0, 3], sizes = [16, 1], strides = [1, 1]} : vector<16x4xf32> to vector<16x1xf32>
    %cst_436 = arith.constant 0.000000e+00 : f32
    %1712 = vector.shape_cast %1711 : vector<16x1xf32> to vector<16x1xf32>
    %1713 = vector.broadcast %1712 : vector<16x1xf32> to vector<16x144xf32>
    %1714 = vector.broadcast %cst_436 : f32 to vector<16x144xf32>
    %1715 = arith.select %1710, %1713, %1714 : vector<16x144xi1>, vector<16x144xf32>
    %c13_i32_437 = arith.constant 13 : i32
    %1716 = vector.broadcast %c13_i32_437 : i32 to vector<16x144xi32>
    %1717 = arith.cmpi eq, %1694, %1716 : vector<16x144xi32>
    %1718 = vector.extract_strided_slice %1586 {offsets = [0, 3], sizes = [16, 1], strides = [1, 1]} : vector<16x4xf32> to vector<16x1xf32>
    %cst_438 = arith.constant 0.000000e+00 : f32
    %1719 = vector.shape_cast %1718 : vector<16x1xf32> to vector<16x1xf32>
    %1720 = vector.broadcast %1719 : vector<16x1xf32> to vector<16x144xf32>
    %1721 = vector.broadcast %cst_438 : f32 to vector<16x144xf32>
    %1722 = arith.select %1717, %1720, %1721 : vector<16x144xi1>, vector<16x144xf32>
    %1723 = arith.addf %1701, %1708 : vector<16x144xf32>
    %1724 = arith.addf %1715, %1722 : vector<16x144xf32>
    %1725 = arith.addf %1723, %1724 : vector<16x144xf32>
    %1726 = arith.addf %1623, %1657 : vector<16x144xf32>
    %1727 = arith.addf %1691, %1725 : vector<16x144xf32>
    %1728 = arith.addf %1726, %1727 : vector<16x144xf32>
    %1729 = tpu.concatenate %1107, %1314, %1521, %1728 in 0 : vector<16x144xf32>, vector<16x144xf32>, vector<16x144xf32>, vector<16x144xf32> -> vector<64x144xf32>
    %1730 = arith.truncf %1729 : vector<64x144xf32> to vector<64x144xbf16>
    %c0_439 = arith.constant 0 : index
    %c0_440 = arith.constant 0 : index
    %c0_441 = arith.constant 0 : index
    %1731 = vector.load %arg4[%c0_439, %c0_440, %c0_441] : memref<1x8x144xbf16, #tpu.memory_space<vmem>>, vector<1x8x144xbf16>
    %1732 = vector.shape_cast %1731 : vector<1x8x144xbf16> to vector<8x144xbf16>
    %cst_442 = arith.constant dense<0.000000e+00> : vector<64x8xf32>
    %1733 = tpu.matmul %1730, %1732, %cst_442 {dimension_numbers = #tpu.dot_dimension_numbers<[1], [1], [0], [0], [0, 0, 1, 0], [], []>} : vector<64x144xbf16>, vector<8x144xbf16>, vector<64x8xf32> -> vector<64x8xf32>
    %c1 = arith.constant 1 : index
    %c0_443 = arith.constant 0 : index
    %1734 = vector.load %arg7[%c1, %c0_443] : memref<2x8xf32, #tpu.memory_space<vmem>>, vector<1x8xf32>
    %1735 = vector.broadcast %1734 : vector<1x8xf32> to vector<64x8xf32>
    %1736 = arith.addf %1733, %1735 : vector<64x8xf32>
    %c0_444 = arith.constant 0 : index
    %c64 = arith.constant 64 : index
    %c0_445 = arith.constant 0 : index
    %1737 = vector.load %arg8[%c0_444, %c64, %c0_445] : memref<1x128x8xf32, #tpu.memory_space<vmem>>, vector<1x64x8xf32>
    %1738 = vector.shape_cast %1737 : vector<1x64x8xf32> to vector<64x8xf32>
    %1739 = vector.shape_cast %1736 : vector<64x8xf32> to vector<1x64x8xf32>
    tpu.vector_store %arg8[%c0_444, %c64, %c0_445], %1739 {strides = array<i32>} : memref<1x128x8xf32, #tpu.memory_space<vmem>>, vector<1x64x8xf32>,
    return
  }
  func.func @transform_0(%arg0: i32) -> (i32, i32, i32) {
    %c0_i32 = arith.constant 0 : i32
    %c0_i32_0 = arith.constant 0 : i32
    %c0_i32_1 = arith.constant 0 : i32
    return %arg0, %c0_i32, %c0_i32_0 : i32, i32, i32
  }
  func.func @transform_1(%arg0: i32) -> (i32, i32, i32) {
    %c0_i32 = arith.constant 0 : i32
    %c0_i32_0 = arith.constant 0 : i32
    %c0_i32_1 = arith.constant 0 : i32
    return %arg0, %c0_i32, %c0_i32_0 : i32, i32, i32
  }
  func.func @transform_2(%arg0: i32) -> (i32, i32, i32) {
    %c0_i32 = arith.constant 0 : i32
    %c0_i32_0 = arith.constant 0 : i32
    %c0_i32_1 = arith.constant 0 : i32
    return %arg0, %c0_i32, %c0_i32_0 : i32, i32, i32
  }
  func.func @transform_3(%arg0: i32) -> (i32, i32, i32) {
    %c0_i32 = arith.constant 0 : i32
    %c0_i32_0 = arith.constant 0 : i32
    %c0_i32_1 = arith.constant 0 : i32
    return %arg0, %c0_i32, %c0_i32_0 : i32, i32, i32
  }
  func.func @transform_4(%arg0: i32) -> (i32, i32) {
    %c0_i32 = arith.constant 0 : i32
    %c0_i32_0 = arith.constant 0 : i32
    %c0_i32_1 = arith.constant 0 : i32
    return %c0_i32, %c0_i32_0 : i32, i32
  }
  func.func @transform_5(%arg0: i32) -> (i32, i32) {
    %c0_i32 = arith.constant 0 : i32
    %c0_i32_0 = arith.constant 0 : i32
    %c0_i32_1 = arith.constant 0 : i32
    return %c0_i32, %c0_i32_0 : i32, i32
  }
  func.func @transform_6(%arg0: i32) -> (i32, i32) {
    %c0_i32 = arith.constant 0 : i32
    %c0_i32_0 = arith.constant 0 : i32
    %c0_i32_1 = arith.constant 0 : i32
    return %c0_i32, %c0_i32_0 : i32, i32
  }
  func.func @transform_7(%arg0: i32) -> (i32, i32, i32) {
    %c0_i32 = arith.constant 0 : i32
    %c0_i32_0 = arith.constant 0 : i32
    %c0_i32_1 = arith.constant 0 : i32
    return %arg0, %c0_i32, %c0_i32_0 : i32, i32, i32
  }
}

</mosaic_0001>

<bundles_post_ra>
// kernel: tpu_custom_call.1
= control target key start
LH: loop header
LB: loop body
LE: loop exit
PB: predicated region body
PF: predicated region fallthrough
CT: control target
= control target key end

     0   :  { %s4396_s24 = smov 0   ;;  %s7756_s0 = inlined_call_operand.vmem [shape: f32[2,32,32], index: 0, kind: input, shape index: {}]   ;;  %s7757_s1 = inlined_call_operand.vmem [shape: f32[2,32,2], index: 1, kind: input, shape index: {}]   ;;  %s7758_s2 = inlined_call_operand.vmem [shape: bf16[2,8,64], index: 2, kind: input, shape index: {}]   ;;  %s7759_s3 = inlined_call_operand.vmem [shape: bf16[2,8,144], index: 3, kind: input, shape index: {}]   ;;  %s7760_s4 = inlined_call_operand.vmem [shape: f32[48,32], index: 4, kind: input, shape index: {}]   ;;  %s7761_s5 = inlined_call_operand.vmem [shape: f32[1,48], index: 5, kind: input, shape index: {}]   ;;  %s7762_s6 = inlined_call_operand.vmem [shape: f32[2,8], index: 6, kind: input, shape index: {}]   ;;  %s7763_s7 = inlined_call_operand.vmem [shape: f32[2,128,8], index: 7, kind: output, shape index: {}]  }
   0x1 LB: > { %s3957_s25 = sadd.s32 4294967295, %s4315_s24   ;;  %p3961_p0 = scmp.ge.s32.totalorder %s4315_s24, 1  ;;  %s4315_s24 = sphi %s4396_s24, %s17_s24  }
   0x2   : > { %p266_p1 = scmp.lt.s32.totalorder %s4315_s24, 3 }
   0x4   : > { %p267_p2 = pnand %p3961_p0, %p266_p1 }
   0x6   : > { %270 = sbr.rel (%p267_p2) target bundleno = 2207 (0x89f), region = 48 }
   0xb   : > { %v350_v0 = vld [vmem:[%s7760_s4 + $0x28] sm:$0xff]  ;;  %vm358_vm0 = vcmask 261120   ;;  %v349_v1 = vld [vmem:[%s7760_s4 + $0x20] sm:$0xff]  ;;  %p312_p3 = scmp.lt.s32.totalorder %s3957_s25, 1  ;;  %v4317_v2 = vmov 0   ;;  %v348_v3 = vld [vmem:[%s7760_s4 + $0x18] sm:$0xff] }
   0xc   : > { %4016 = vmatprep.subr.msk.mxu0 %vm358_vm0, %v350_v0  ;;  %4109 = vset.pattern.permute.xlu1 %v4317_v2  ;;  %v347_v7 = vld [vmem:[%s7760_s4 + $0x10] sm:$0xff]  ;;  %v346_v10 = vld [vmem:[%s7760_s4 + $0x8] sm:$0xff]  ;;  %v345_v11 = vld [vmem:[%s7760_s4] sm:$0xff]  ;;  %v4318_v12 = vmov 1   ;;  %vm567_vm1 = vcmask 64544   ;;  %vm522_vm2 = vcmask 31744  }
   0xd   : > { %4017 = vmatpush3.xpose.msk.msra.mxu0 %vm358_vm0, %v350_v0  ;;  %s8405_s25 = smov (!%p312_p3, %s3957_s25), 1  ;;  %4108 = vset.pattern.permute.xlu0 %v4317_v2  ;;  %v3971_v16 = vld [vmem:[%s7761_s5] ss:$0 sm:$0xff]  ;;  %vm628_vm3 = vcmask 97344   ;;  %vm689_vm4 = vcmask 130144   ;;  %s4319_s26 = smov 112  }
   0xe   : > { %4018 = vmatprep.subr.msk.mxu0 %vm358_vm0, %v349_v1  ;;  %s3997_s9 = sshll.u32 %s8405_s25, 5  ;;  %s4321_s27 = smov 16  }
   0xf   : > { %s4424_s12 = scalar_lea.vmem %s7756_s0, %s3997_s9  ;;  %s321_s15 = scalar_lea.vmem %s7757_s1, %s3997_s9 }
  0x10   : > { %v337_v4 = vld [vmem:[%s4424_s12] sm:$0xff]  ;;  %v343_v5 = vld [vmem:[%s321_s15 + $0x10] sm:$0xff]  ;;  %v344_v8 = vld [vmem:[%s321_s15 + $0x18] sm:$0xff]  ;;  %s4329_s28 = smov 124   ;;  %s4331_s29 = smov 120  }
  0x11   : > { %4019 = vmatpush3.xpose.msk.msra.mxu0 %vm358_vm0, %v349_v1  ;;  %4028 = vmatprep.mubr.msk.f32.mxu0 %vm358_vm0, %v337_v4  ;;  %v341_v6 = vld [vmem:[%s321_s15] sm:$0xff]  ;;  %v342_v9 = vld [vmem:[%s321_s15 + $0x8] sm:$0xff]  ;;  %v339_v14 = vld [vmem:[%s4424_s12 + $0x10] sm:$0xff]  ;;  %s4333_s30 = smov 116   ;;  %s3999_s8 = sshll.u32 %s8405_s25, 3 }
  0x12   : > { %4020 = vmatprep.subr.msk.mxu0 %vm358_vm0, %v348_v3  ;;  %490 = vperm.xlu1 %4109, %v343_v5   ;;  %v338_v13 = vld [vmem:[%s4424_s12 + $0x8] sm:$0xff]  ;;  %v340_v15 = vld [vmem:[%s4424_s12 + $0x18] sm:$0xff]  ;;  %s330_s11 = scalar_lea.vmem %s7759_s3, %s3999_s8  ;;  %s3966_s12 = sshll.u32 %s8405_s25, 2 }
  0x13   : > { %480 = vperm.xlu0 %4108, %v341_v6   ;;  %s325_s15 = scalar_lea.vmem %s7758_s2, %s3966_s12  ;;  %s4000_s16 = sshll.u32 %s8405_s25, 7 }
  0x14   : > { %s6441_s20 = scalar_lea.vmem %s7763_s7, %s4000_s16 }
  0x15   : > { %4021 = vmatpush3.xpose.msk.msra.mxu0 %vm358_vm0, %v348_v3 }
  0x16   : > { %4022 = vmatprep.subr.msk.mxu0 %vm358_vm0, %v347_v7  ;;  %495 = vperm.xlu1 %4109, %v344_v8  }
  0x17   : > { %485 = vperm.xlu0 %4108, %v342_v9  }
  0x19   : > { %4023 = vmatpush3.xpose.msk.msra.mxu0 %vm358_vm0, %v347_v7 }
  0x1a   : > { %4024 = vmatprep.subr.msk.mxu0 %vm358_vm0, %v346_v10  ;;  %4111 = vset.pattern.permute.xlu1 %v4318_v12 }
  0x1b   : > { %4110 = vset.pattern.permute.xlu0 %v4318_v12  ;;  %507 = vperm.xlu1 %4111, %v342_v9  }
  0x1c   : > { %503 = vperm.xlu0 %4110, %v341_v6  }
  0x1d   : > { %4025 = vmatpush3.xpose.msk.msra.mxu0 %vm358_vm0, %v346_v10 }
  0x1e   : > { %4026 = vmatprep.subr.msk.mxu0 %vm358_vm0, %v345_v11 }
  0x1f   : > { %511 = vperm.xlu1 %4111, %v343_v5  }
  0x20   : > { %515 = vperm.xlu0 %4110, %v344_v8  }
  0x21   : > { %4027 = vmatpush3.xpose.msk.msra.mxu0 %vm358_vm0, %v345_v11 }
  0x24   : > { %4029 = vmatmul.mubr.msk.f32.vlgmr.msra.gmra.mxu0 %vm358_vm0, %v338_v13 }
  0x25   : > { %4031 = vmatprep.mubr.msk.f32.mxu0 %vm358_vm0, %v339_v14 }
  0x28   : > { %4032 = vmatmul.mubr.msk.f32.gmra.mxu0 %vm358_vm0, %v340_v15 }
  0x8d   : > { %v491_v32 = vpop.permute.xlu1 %490 }
  0x8e   : > { %v481_v29 = vpop.permute.xlu0 %480 }
  0x91   : > { %v496_v44 = vpop.permute.xlu1 %495 }
  0x92   : > { %v486_v36 = vpop.permute.xlu0 %485 }
  0x96   : > { %v508_v57 = vpop.permute.xlu1 %507 }
  0x97   : > { %v504_v60 = vpop.permute.xlu0 %503 }
  0xe4   : > { %v4030_v17 = vpop.f32.mrf.mxu0 }
  0xe5   : > { %v4458_v18 = vadd.f32 %v4030_v17, %v3971_v16  ;;  %v516_v17 = vpop.permute.xlu0 %515 }
  0xe6   : > { %v455_v19 = vpop.f32.mrf.mxu0 }
  0xe7   : > { %v4460_v20 = vadd.f32 %v3971_v16, %v455_v19  ;;  %v571_v21 = vsel %vm567_vm1, %v4458_v18, -inf  ;;  %v526_v22 = vsel %vm522_vm2, %v4458_v18, -inf  ;;  %4235 = vtanh.f32 %v4458_v18 }
  0xe8   : > { %572 = vmax.xlane.f32.xlu1 %v571_v21  ;;  %527 = vmax.xlane.f32.xlu0 %v526_v22  ;;  %v4033_v23 = vpop.f32.mrf.mxu0  ;;  %v632_v26 = vsel %vm628_vm3, %v4458_v18, -inf  ;;  %v693_v30 = vsel %vm689_vm4, %v4458_v18, -inf }
  0xe9   : > { %4237 = vtanh.f32 %v4460_v20  ;;  %v4468_v24 = vadd.f32 %v4033_v23, %v3971_v16  ;;  %v568_v27 = vsel %vm567_vm1, %v4460_v20, -inf  ;;  %v629_v31 = vsel %vm628_vm3, %v4460_v20, -inf }
  0xea   : > { %v465_v25 = vpop.f32.mrf.mxu0  ;;  %v690_v33 = vsel %vm689_vm4, %v4460_v20, -inf  ;;  %v523_v34 = vsel %vm522_vm2, %v4460_v20, -inf }
  0xeb   : > { %v4474_v28 = vadd.f32 %v3971_v16, %v465_v25  ;;  %4239 = vtanh.f32 %v4468_v24  ;;  %v532_v38 = vsel %vm522_vm2, %v4468_v24, -inf  ;;  %v577_v50 = vsel %vm567_vm1, %v4468_v24, -inf  ;;  %v512_v16 = vpop.permute.xlu1 %511 }
  0xec   : > { %633 = vmax.xlane.f32.xlu1 %v632_v26  ;;  %569 = vmax.xlane.f32.xlu0 %v568_v27  ;;  %v638_v59 = vsel %vm628_vm3, %v4468_v24, -inf  ;;  %v699_v3 = vsel %vm689_vm4, %v4468_v24, -inf }
  0xed   : > { %4241 = vtanh.f32 %v4474_v28  ;;  %v529_v37 = vsel %vm522_vm2, %v4474_v28, -inf  ;;  %v574_v49 = vsel %vm567_vm1, %v4474_v28, -inf  ;;  %v635_v58 = vsel %vm628_vm3, %v4474_v28, -inf }
  0xee   : > { %v696_v1 = vsel %vm689_vm4, %v4474_v28, -inf }
  0xf0   : > { %694 = vmax.xlane.f32.xlu1 %v693_v30  ;;  %630 = vmax.xlane.f32.xlu0 %v629_v31 }
  0xf4   : > { %691 = vmax.xlane.f32.xlu0 %v690_v33  ;;  %524 = vmax.xlane.f32.xlu1 %v523_v34  ;;  %v4236_v35 = vpop.eup %4235 }
  0xf5   : > { %v499_v40 = vadd.f32 %v4236_v35, %v486_v36  ;;  %v519_v61 = vadd.f32 %v4236_v35, %v508_v57  ;;  %v4320_v35 = vmov 32  }
  0xf6   : > { %v4238_v39 = vpop.eup %4237  ;;  %4116 = vset.pattern.permute.xlu1 %v4320_v35  ;;  %4112 = vset.pattern.permute.xlu0 %v4320_v35 }
  0xf7   : > { %v498_v41 = vadd.f32 %v4238_v39, %v481_v29  ;;  %v753_v42 = vadd.f32 1.0, %v499_v40  ;;  %v518_v0 = vadd.f32 %v4238_v39, %v504_v60  ;;  %v757_v4 = vadd.f32 1.0, %v519_v61 }
  0xf8   : > { %530 = vmax.xlane.f32.xlu0 %v529_v37  ;;  %533 = vmax.xlane.f32.xlu1 %v532_v38  ;;  %v4240_v45 = vpop.eup %4239 }
  0xf9   : > { %v752_v43 = vadd.f32 1.0, %v498_v41  ;;  %v4490_v46 = vmul.f32 3.5, %v753_v42  ;;  %v501_v55 = vadd.f32 %v4240_v45, %v496_v44  ;;  %v756_v7 = vadd.f32 1.0, %v518_v0 }
  0xfa   : > { %v4242_v47 = vpop.eup %4241  ;;  %v759_v9 = vmul.f32 3.5, %v757_v4  ;;  %v521_v23 = vadd.f32 %v4240_v45, %v516_v17 }
  0xfb   : > { %v754_v48 = vmul.f32 3.5, %v752_v43  ;;  %v761_v51 = vfloor.f32 %v4490_v46  ;;  %v500_v54 = vadd.f32 %v4242_v47, %v491_v32  ;;  %v2102_v63 = vadd.f32 1.0, %v501_v55 }
  0xfc   : > { %575 = vmax.xlane.f32.xlu0 %v574_v49  ;;  %578 = vmax.xlane.f32.xlu1 %v577_v50  ;;  %v758_v11 = vmul.f32 3.5, %v756_v7  ;;  %v763_v13 = vfloor.f32 %v759_v9  ;;  %v520_v21 = vadd.f32 %v4242_v47, %v512_v16  ;;  %v2106_v30 = vadd.f32 1.0, %v521_v23 }
  0xfd   : > { %v760_v52 = vfloor.f32 %v754_v48  ;;  %v4498_v53 = vsub.f32 %v4490_v46, %v761_v51  ;;  %v2101_v62 = vadd.f32 1.0, %v500_v54  ;;  %v4512_v6 = vmul.f32 5.5, %v2102_v63 }
  0xfe   : > { %v762_v15 = vfloor.f32 %v758_v11  ;;  %v4051_v19 = vtrunc.f32 %v763_v13  ;;  %v2105_v27 = vadd.f32 1.0, %v520_v21  ;;  %v767_v31 = vsub.f32 %v759_v9, %v763_v13 }
  0xff   : > { %v4500_v56 = vsub.f32 %v754_v48, %v760_v52  ;;  %v4510_v5 = vmul.f32 5.5, %v2101_v62  ;;  %v2110_v8 = vfloor.f32 %v4512_v6  ;;  %v4045_v26 = vtrunc.f32 %v760_v52 }
 0x100   : > { %636 = vmax.xlane.f32.xlu0 %v635_v58  ;;  %639 = vmax.xlane.f32.xlu1 %v638_v59  ;;  %v766_v22 = vsub.f32 %v758_v11, %v762_v15  ;;  %v4525_v25 = vcvt.f32.s32 %v4051_v19  ;;  %v4049_v32 = vtrunc.f32 %v762_v15  ;;  %v2107_v34 = vmul.f32 5.5, %v2105_v27 }
 0x101   : > { %v2109_v10 = vfloor.f32 %v4510_v5  ;;  %v4519_v12 = vsub.f32 %v4512_v6, %v2110_v8  ;;  %v4531_v33 = vcvt.f32.s32 %v4045_v26  ;;  %v4047_v36 = vtrunc.f32 %v761_v51 }
 0x102   : > { %v808_v29 = vsub.f32 1.0, %v766_v22  ;;  %vm785_vm5 = vcmp.ge.s32.totalorder %v4525_v25, 0  ;;  %vm787_vm6 = vcmp.le.s32.totalorder %v4525_v25, 7  ;;  %v2108_v37 = vmul.f32 5.5, %v2106_v30 }
 0x103   : > { %v4522_v14 = vsub.f32 %v4510_v5, %v2109_v10  ;;  %v809_v38 = vsub.f32 1.0, %v767_v31  ;;  %vm789_vm7 = vmand %vm785_vm5, %vm787_vm6  ;;  %v4537_v39 = vcvt.f32.s32 %v4049_v32  ;;  %v2111_v40 = vfloor.f32 %v2107_v34 }
 0x104   : > { %697 = vmax.xlane.f32.xlu0 %v696_v1  ;;  %700 = vmax.xlane.f32.xlu1 %v699_v3  ;;  %v4540_v41 = vcvt.f32.s32 %v4047_v36  ;;  %v2112_v42 = vfloor.f32 %v2108_v37  ;;  %v797_v43 = vsel %vm789_vm7, 1, %v4317_v2  ;;  %vm791_vm10 = vcmp.ge.s32.totalorder %v4525_v25, 4294967295 }
 0x105   : > { %vm790_vm8 = vcmp.ge.s32.totalorder %v4537_v39, 4294967295  ;;  %vm792_vm9 = vcmp.le.s32.totalorder %v4537_v39, 6  ;;  %v2115_v44 = vsub.f32 %v2107_v34, %v2111_v40  ;;  %vm793_vm11 = vcmp.le.s32.totalorder %v4525_v25, 6 }
 0x106   : > { %v2116_v45 = vsub.f32 %v2108_v37, %v2112_v42  ;;  %vm794_vm12 = vmand %vm790_vm8, %vm792_vm9  ;;  %v4057_v46 = vtrunc.f32 %v2111_v40  ;;  %v4059_v50 = vtrunc.f32 %v2112_v42  ;;  %v4053_v52 = vtrunc.f32 %v2109_v10 }
 0x107   : > { %vm795_vm13 = vmand %vm791_vm10, %vm793_vm11  ;;  %v840_v47 = vsel %vm794_vm12, 1, %v4317_v2  ;;  %v2157_v51 = vsub.f32 1.0, %v2115_v44  ;;  %v4055_v55 = vtrunc.f32 %v2110_v8  ;;  %vm784_vm0 = vcmp.ge.s32.totalorder %v4537_v39, 0 }
 0x108   : > { %v841_v48 = vsel %vm795_vm13, 1, %v4317_v2  ;;  %v4555_v49 = vcvt.f32.s32 %v4057_v46  ;;  %v2158_v54 = vsub.f32 1.0, %v2116_v45  ;;  %v4564_v57 = vcvt.f32.s32 %v4059_v50 }
 0x109   : > { %v4566_v58 = vcvt.f32.s32 %v4053_v52  ;;  %vm786_vm1 = vcmp.le.s32.totalorder %v4537_v39, 7  ;;  %v4570_v59 = vcvt.f32.s32 %v4055_v55  ;;  %v873_v27 = vmul.u32 8, %v4525_v25 }
 0x10a   : > { %vm2133_vm14 = vcmp.ge.s32.totalorder %v4555_v49, 0  ;;  %vm2135_vm15 = vcmp.le.s32.totalorder %v4555_v49, 11  ;;  %vm788_vm4 = vmand %vm784_vm0, %vm786_vm1  ;;  %vm2139_vm5 = vcmp.ge.s32.totalorder %v4555_v49, 4294967295  ;;  %vm2141_vm6 = vcmp.le.s32.totalorder %v4555_v49, 10 }
 0x10b   : > { %vm2137_vm3 = vmand %vm2133_vm14, %vm2135_vm15  ;;  %vm2134_vm7 = vcmp.ge.s32.totalorder %v4564_v57, 0  ;;  %vm2136_vm8 = vcmp.le.s32.totalorder %v4564_v57, 11  ;;  %v796_v61 = vsel %vm788_vm4, 1, %v4317_v2  ;;  %vm2140_vm11 = vcmp.ge.s32.totalorder %v4564_v57, 4294967295 }
 0x10c   : > { %v2145_v60 = vsel %vm2137_vm3, 1, %v4317_v2  ;;  %vm2143_vm9 = vmand %vm2139_vm5, %vm2141_vm6  ;;  %vm2142_vm12 = vcmp.le.s32.totalorder %v4564_v57, 10  ;;  %v7766_v50 = vmov 45   ;;  %vm2121_vm14 = vcmp.ge.s32.totalorder %v4566_v58, 0 }
 0x10d   : > { %vm2138_vm10 = vmand %vm2134_vm7, %vm2136_vm8  ;;  %v2189_v62 = vsel %vm2143_vm9, 1, %v4317_v2  ;;  %vm2123_vm15 = vcmp.le.s32.totalorder %v4566_v58, 11  ;;  %vm775_vm4 = vcmp.le.s32.totalorder %v4540_v41, 7  ;;  %vm779_vm5 = vcmp.ge.s32.totalorder %v4540_v41, 4294967295 }
 0x10e   : > { %v2146_v63 = vsel %vm2138_vm10, 1, %v4317_v2  ;;  %vm2144_vm13 = vmand %vm2140_vm11, %vm2142_vm12  ;;  %vm781_vm6 = vcmp.le.s32.totalorder %v4540_v41, 6 }
 0x10f   : > { %v2190_v0 = vsel %vm2144_vm13, 1, %v4317_v2  ;;  %vm4677_vm1 = vmand %vm2121_vm14, %vm2123_vm15  ;;  %vm778_vm15 = vcmp.ge.s32.totalorder %v4531_v33, 4294967295 }
 0x110   : > { %vm783_vm9 = vmand %vm779_vm5, %vm781_vm6 }
 0x115   : > { %852 = vrot.lane.b32.xlu1 %v766_v22, %s4319_s26 }
 0x119   : > { %812 = vrot.lane.b32.xlu1 %v808_v29, %s4319_s26  ;;  %v872_v29 = vmul.u32 8, %v4537_v39 }
 0x11a   : > { %854 = vrot.lane.b32.xlu0 %v767_v31, %s4319_s26 }
 0x11d   : > { %874 = vrot.lane.b32.xlu1 %v4531_v33, %s4321_s27 }
 0x11e   : > { %814 = vrot.lane.b32.xlu0 %v809_v38, %s4319_s26  ;;  %v4322_v38 = vmov 33  }
 0x121   : > { %800 = vrot.lane.b32.xlu1 %v797_v43, %s4319_s26  ;;  %v7767_v43 = vmov 43  }
 0x122   : > { %876 = vrot.lane.b32.xlu0 %v4540_v41, %s4321_s27 }
 0x125   : > { %2201 = vrot.lane.b32.xlu1 %v2115_v44, %s4319_s26  ;;  %v7788_v44 = vmov 34  }
 0x126   : > { %2203 = vrot.lane.b32.xlu0 %v2116_v45, %s4319_s26 }
 0x129   : > { %842 = vrot.lane.b32.xlu1 %v840_v47, %s4319_s26 }
 0x12a   : > { %844 = vrot.lane.b32.xlu0 %v841_v48, %s4319_s26 }
 0x12d   : > { %2161 = vrot.lane.b32.xlu1 %v2157_v51, %s4319_s26  ;;  %v7786_v51 = vmov 35  }
 0x12e   : > { %2163 = vrot.lane.b32.xlu0 %v2158_v54, %s4319_s26 }
 0x131   : > { %2223 = vrot.lane.b32.xlu1 %v4566_v58, %s4321_s27 }
 0x132   : > { %2225 = vrot.lane.b32.xlu0 %v4570_v59, %s4321_s27 }
 0x135   : > { %2147 = vrot.lane.b32.xlu1 %v2145_v60, %s4319_s26  ;;  %v2222_v60 = vmul.u32 12, %v4564_v57 }
 0x136   : > { %798 = vrot.lane.b32.xlu0 %v796_v61, %s4319_s26 }
 0x139   : > { %2191 = vrot.lane.b32.xlu1 %v2189_v62, %s4319_s26 }
 0x13a   : > { %2149 = vrot.lane.b32.xlu0 %v2146_v63, %s4319_s26 }
 0x13e   : > { %2193 = vrot.lane.b32.xlu0 %v2190_v0, %s4319_s26  ;;  %v7784_v0 = vmov 36  }
 0x171   : > { %v4592_v1 = vpop.xlane.xlu1 %572  ;;  %v4594_v3 = vpop.xlane.xlu0 %527 }
 0x175   : > { %v4596_v4 = vpop.xlane.xlu1 %633  ;;  %v570_v5 = vpop.xlane.xlu0 %569 }
 0x176   : > { %v580_v40 = vsub.f32 %v4460_v20, %v570_v5  ;;  %v7929_v5 = vmov 0 }
 0x177   : > { %v7930_v5 = vsel %vm4677_vm1, 4294967295, %v7929_v5 }
 0x178   : > { %v584_v46 = vmul.f32 1.442695, %v580_v40 }
 0x179   : > { %v4598_v6 = vpop.xlane.xlu1 %694  ;;  %v631_v7 = vpop.xlane.xlu0 %630 }
 0x17a   : > { %v641_v47 = vsub.f32 %v4460_v20, %v631_v7  ;;  %4243 = vpow2.f32 %v584_v46  ;;  %v7782_v7 = vmov 37   ;;  %v7776_v46 = vmov 40  }
 0x17c   : > { %v645_v52 = vmul.f32 1.442695, %v641_v47 }
 0x17d   : > { %v692_v8 = vpop.xlane.xlu0 %691  ;;  %v4600_v9 = vpop.xlane.xlu1 %524 }
 0x17e   : > { %v702_v54 = vsub.f32 %v4460_v20, %v692_v8  ;;  %4245 = vpow2.f32 %v645_v52  ;;  %v7931_v8 = vmov 0  ;;  %v535_v47 = vsub.f32 %v4460_v20, %v4600_v9 }
 0x17f   : > { %v7770_v52 = vmov 41   ;;  %v581_v9 = vsub.f32 %v4458_v18, %v4592_v1 }
 0x180   : > { %v706_v63 = vmul.f32 1.442695, %v702_v54  ;;  %v539_v54 = vmul.f32 1.442695, %v535_v47 }
 0x181   : > { %v4602_v10 = vpop.xlane.xlu0 %530  ;;  %v4604_v11 = vpop.xlane.xlu1 %533 }
 0x182   : > { %4247 = vpow2.f32 %v706_v63 }
 0x183   : > { %4249 = vpow2.f32 %v539_v54  ;;  %v7774_v54 = vmov 46  }
 0x185   : > { %v4606_v2 = vpop.xlane.xlu0 %575  ;;  %v4608_v13 = vpop.xlane.xlu1 %578 }
 0x186   : > { %v583_v47 = vsub.f32 %v4468_v24, %v4608_v13  ;;  %v703_v13 = vsub.f32 %v4458_v18, %v4598_v6 }
 0x189   : > { %v4610_v15 = vpop.xlane.xlu0 %636  ;;  %v4612_v16 = vpop.xlane.xlu1 %639 }
 0x18a   : > { %v644_v1 = vsub.f32 %v4468_v24, %v4612_v16  ;;  %v708_v16 = vmul.f32 1.442695, %v703_v13 }
 0x18d   : > { %v4614_v17 = vpop.xlane.xlu0 %697  ;;  %v4616_v19 = vpop.xlane.xlu1 %700 }
 0x191   : > { %v4618_v21 = vpop.permute.xlu0 %854  ;;  %v4620_v22 = vpop.permute.xlu1 %852 }
 0x195   : > { %v4622_v23 = vpop.permute.xlu0 %814  ;;  %v4624_v26 = vpop.permute.xlu1 %812 }
 0x199   : > { %v877_v30 = vpop.permute.xlu0 %876  ;;  %v875_v31 = vpop.permute.xlu1 %874 }
 0x19a   : > { %v4628_v32 = vadd.s32 %v877_v30, %v873_v27  ;;  %v4630_v34 = vadd.s32 %v875_v31, %v872_v29  ;;  %v4693_v27 = vpop.eup %4243  ;;  %v7780_v29 = vmov 38   ;;  %v7778_v31 = vmov 39  }
 0x19b   : > { %v4699_v30 = vpop.eup %4245 }
 0x19c   : > { %7927 = vst [vmem:[#allocation2_spill] sm:$0xff] %v4628_v32  ;;  %884 = vperm.xlu0 %4112, %v4628_v32   ;;  %881 = vperm.xlu1 %4116, %v4630_v34   ;;  %v4705_v40 = vpop.eup %4247 }
 0x19d   : > { %v4634_v36 = vpop.permute.xlu0 %2203  ;;  %v4636_v37 = vpop.permute.xlu1 %800 }
 0x19e   : > { %v4721_v20 = vpop.eup %4249  ;;  %vm803_vm7 = vcmp.ne.s32.totalorder %v4636_v37, 0  ;;  %v4928_v37 = vmul.f32 %v4622_v23, %v4498_v53 }
 0x19f   : > { %v547_v63 = vsel %vm522_vm2, %v4721_v20, 0.0  ;;  %vm4934_vm12 = vmand %vm783_vm9, %vm803_vm7 }
 0x1a0   : > { %4113 = vset.pattern.permute.xlu0 %v4322_v38  ;;  %4117 = vset.pattern.permute.xlu1 %v4322_v38 }
 0x1a1   : > { %v4640_v25 = vpop.permute.xlu0 %844  ;;  %954 = vperm.xlu0 %4113, %v4628_v32   ;;  %951 = vperm.xlu1 %4117, %v4630_v34   ;;  %v4644_v39 = vpop.permute.xlu1 %2201 }
 0x1a2   : > { %vm847_vm10 = vcmp.ne.s32.totalorder %v4640_v25, 0 }
 0x1a3   : > { %vm4946_vm14 = vmand %vm783_vm9, %vm847_vm10 }
 0x1a5   : > { %v4647_v42 = vpop.permute.xlu0 %2163  ;;  %4114 = vset.pattern.permute.xlu0 %v7767_v43  ;;  %4118 = vset.pattern.permute.xlu1 %v7788_v44  ;;  %v4651_v45 = vpop.permute.xlu1 %842 }
 0x1a6   : > { %1650 = vperm.xlu0 %4114, %v4628_v32   ;;  %1013 = vperm.xlu1 %4118, %v4630_v34   ;;  %v5230_v25 = vmul.f32 %v4647_v42, %v4519_v12 }
 0x1a8   : > { %8021 = vst [vmem:[#allocation51_spill] sm:$0xff] %v5230_v25 }
 0x1a9   : > { %v4656_v48 = vpop.permute.xlu1 %2161  ;;  %v2226_v55 = vpop.permute.xlu0 %2225 }
 0x1aa   : > { %4115 = vset.pattern.permute.xlu0 %v7766_v50  ;;  %4119 = vset.pattern.permute.xlu1 %v7786_v51  ;;  %v4666_v62 = vadd.s32 %v2226_v55, %v2222_v60  ;;  %v7768_v55 = vmov 42   ;;  %v7764_v60 = vmov 44  }
 0x1ab   : > { %1812 = vperm.xlu0 %4115, %v4628_v32   ;;  %1075 = vperm.xlu1 %4119, %v4630_v34  }
 0x1ac   : > { %7928 = vst [vmem:[#allocation3_spill] sm:$0xff] %v4666_v62 }
 0x1ad   : > { %v4664_v61 = vpop.permute.xlu1 %2223 }
 0x1af   : > { %4132 = vset.pattern.permute.xlu0 %v4320_v35  ;;  %4120 = vset.pattern.permute.xlu1 %v7784_v0 }
 0x1b0   : > { %2233 = vperm.xlu0 %4132, %v4666_v62   ;;  %1167 = vperm.xlu1 %4120, %v4630_v34  }
 0x1b1   : > { %v4674_v57 = vpop.permute.xlu1 %2147 }
 0x1b2   : > { %vm7801_vm0 = vcmp.ne.s32.totalorder %v4674_v57, 0 }
 0x1b3   : > { %vm4687_vm3 = vmand %vm4677_vm1, %vm7801_vm0 }
 0x1b4   : > { %4133 = vset.pattern.permute.xlu0 %v4322_v38  ;;  %4121 = vset.pattern.permute.xlu1 %v7782_v7  ;;  %v7932_v8 = vsel %vm4687_vm3, 4294967295, %v7931_v8 }
 0x1b5   : > { %7933 = vst [vmem:[#allocation4_spill] sm:$0xff] %v7932_v8  ;;  %2327 = vperm.xlu0 %4133, %v4666_v62   ;;  %1237 = vperm.xlu1 %4121, %v4630_v34  }
 0x1b9   : > { %596 = vrot.lane.b32.xlu0 %v4693_v27, %s4329_s28  ;;  %4122 = vset.pattern.permute.xlu1 %v7780_v29 }
 0x1ba   : > { %1299 = vperm.xlu1 %4122, %v4630_v34  }
 0x1bd   : > { %657 = vrot.lane.b32.xlu0 %v4699_v30, %s4331_s29 }
 0x1be   : > { %4123 = vset.pattern.permute.xlu1 %v7778_v31 }
 0x1bf   : > { %1361 = vperm.xlu1 %4123, %v4630_v34  }
 0x1c1   : > { %718 = vrot.lane.b32.xlu0 %v4705_v40, %s4333_s30 }
 0x1c3   : > { %4124 = vset.pattern.permute.xlu1 %v7776_v46 }
 0x1c4   : > { %1453 = vperm.xlu1 %4124, %v4630_v34  }
 0x1c8   : > { %4125 = vset.pattern.permute.xlu1 %v7770_v52 }
 0x1c9   : > { %1523 = vperm.xlu1 %4125, %v4630_v34  }
 0x1cd   : > { %4126 = vset.pattern.permute.xlu1 %v7768_v55  ;;  %v7772_v55 = vmov 47  }
 0x1ce   : > { %1585 = vperm.xlu1 %4126, %v4630_v34  }
 0x1d2   : > { %4127 = vset.pattern.permute.xlu1 %v7767_v43  ;;  %v590_v43 = vmul.f32 1.442695, %v583_v47 }
 0x1d3   : > { %1647 = vperm.xlu1 %4127, %v4630_v34  }
 0x1d7   : > { %4128 = vset.pattern.permute.xlu1 %v7764_v60  ;;  %v586_v60 = vmul.f32 1.442695, %v581_v9  ;;  %v705_v9 = vsub.f32 %v4468_v24, %v4616_v19 }
 0x1d8   : > { %1739 = vperm.xlu1 %4128, %v4630_v34  }
 0x1d9   : > { %4251 = vpow2.f32 %v586_v60 }
 0x1da   : > { %4253 = vpow2.f32 %v590_v43  ;;  %v537_v43 = vsub.f32 %v4474_v28, %v4602_v10 }
 0x1dc   : > { %4129 = vset.pattern.permute.xlu1 %v7766_v50  ;;  %v642_v50 = vsub.f32 %v4458_v18, %v4596_v4  ;;  %v2221_v4 = vmul.u32 12, %v4555_v49 }
 0x1dd   : > { %1809 = vperm.xlu1 %4129, %v4630_v34  }
 0x1de   : > { %v647_v52 = vmul.f32 1.442695, %v642_v50  ;;  %v4745_v47 = vadd.s32 %v4664_v61, %v2221_v4  ;;  %v712_v50 = vmul.f32 1.442695, %v705_v9  ;;  %v536_v61 = vsub.f32 %v4458_v18, %v4594_v3 }
 0x1e0   : > { %548 = vadd.xlane.f32.xlu0 %v547_v63  ;;  %v651_v63 = vmul.f32 1.442695, %v644_v1  ;;  %7934 = vst [vmem:[#allocation5_spill] sm:$0xff] %v4745_v47  ;;  %4255 = vpow2.f32 %v647_v52  ;;  %v543_v52 = vmul.f32 1.442695, %v537_v43  ;;  %v538_v1 = vsub.f32 %v4468_v24, %v4604_v11 }
 0x1e1   : > { %4130 = vset.pattern.permute.xlu1 %v7774_v54  ;;  %v541_v60 = vmul.f32 1.442695, %v536_v61  ;;  %v582_v24 = vsub.f32 %v4474_v28, %v4606_v2  ;;  %v643_v61 = vsub.f32 %v4474_v28, %v4610_v15 }
 0x1e2   : > { %1871 = vperm.xlu1 %4130, %v4630_v34   ;;  %4257 = vpow2.f32 %v651_v63  ;;  %v545_v13 = vmul.f32 1.442695, %v538_v1  ;;  %v4781_v63 = vpop.permute.xlu1 %2191 }
 0x1e3   : > { %4259 = vpow2.f32 %v708_v16  ;;  %v588_v43 = vmul.f32 1.442695, %v582_v24  ;;  %v649_v2 = vmul.f32 1.442695, %v643_v61 }
 0x1e4   : > { %4261 = vpow2.f32 %v712_v50 }
 0x1e5   : > { %4263 = vpow2.f32 %v543_v52 }
 0x1e6   : > { %4131 = vset.pattern.permute.xlu1 %v7772_v55  ;;  %v4751_v6 = vpop.eup %4251  ;;  %4265 = vpow2.f32 %v541_v60  ;;  %v4805_v60 = vpop.permute.xlu0 %798 }
 0x1e7   : > { %1933 = vperm.xlu1 %4131, %v4630_v34   ;;  %v4753_v49 = vpop.eup %4253  ;;  %4267 = vpow2.f32 %v545_v13  ;;  %v704_v13 = vsub.f32 %v4474_v28, %v4614_v17 }
 0x1e8   : > { %4269 = vpow2.f32 %v588_v43 }
 0x1e9   : > { %4271 = vpow2.f32 %v649_v2  ;;  %v710_v24 = vmul.f32 1.442695, %v704_v13 }
 0x1eb   : > { %4134 = vset.pattern.permute.xlu1 %v4320_v35  ;;  %4273 = vpow2.f32 %v710_v24 }
 0x1ec   : > { %2230 = vperm.xlu1 %4134, %v4745_v47  }
 0x1ed   : > { %v4759_v35 = vpop.eup %4255 }
 0x1ef   : > { %v4761_v19 = vpop.eup %4257 }
 0x1f0   : > { %4135 = vset.pattern.permute.xlu1 %v4322_v38  ;;  %7935 = vst [vmem:[#allocation6_spill] sm:$0xff] %v4761_v19  ;;  %v4767_v34 = vpop.eup %4259 }
 0x1f1   : > { %2324 = vperm.xlu1 %4135, %v4745_v47   ;;  %v4769_v38 = vpop.eup %4261 }
 0x1f2   : > { %7936 = vst [vmem:[#allocation7_spill] sm:$0xff] %v4769_v38  ;;  %v4785_v4 = vpop.eup %4263 }
 0x1f3   : > { %v553_v18 = vsel %vm522_vm2, %v4785_v4, 0.0  ;;  %v4791_v3 = vpop.eup %4265 }
 0x1f4   : > { %v550_v10 = vsel %vm522_vm2, %v4791_v3, 0.0  ;;  %v4797_v11 = vpop.eup %4267 }
 0x1f5   : > { %598 = vrot.lane.b32.xlu1 %v4751_v6, %s4329_s28  ;;  %v556_v52 = vsel %vm522_vm2, %v4797_v11, 0.0  ;;  %v4819_v54 = vpop.eup %4269 }
 0x1f6   : > { %602 = vrot.lane.b32.xlu0 %v4753_v49, %s4329_s28  ;;  %7939 = vst [vmem:[#allocation10_spill] sm:$0xff] %v4819_v54  ;;  %v4827_v28 = vpop.eup %4271 }
 0x1f7   : > { %7941 = vst [vmem:[#allocation12_spill] sm:$0xff] %v4827_v28 }
 0x1f8   : > { %v4835_v2 = vpop.eup %4273 }
 0x1f9   : > { %659 = vrot.lane.b32.xlu1 %v4759_v35, %s4331_s29  ;;  %7943 = vst [vmem:[#allocation14_spill] sm:$0xff] %v4835_v2 }
 0x1fa   : > { %663 = vrot.lane.b32.xlu0 %v4761_v19, %s4331_s29 }
 0x1fd   : > { %720 = vrot.lane.b32.xlu1 %v4767_v34, %s4333_s30 }
 0x1fe   : > { %724 = vrot.lane.b32.xlu0 %v4769_v38, %s4333_s30 }
 0x217   : > { %v4783_v9 = vpop.permute.xlu1 %881 }
 0x21c   : > { %v4787_v16 = vpop.permute.xlu1 %951 }
 0x21d   : > { %554 = vadd.xlane.f32.xlu0 %v553_v18  ;;  %v4811_v18 = vpop.permute.xlu0 %2149 }
 0x221   : > { %551 = vadd.xlane.f32.xlu1 %v550_v10  ;;  %v4799_v50 = vpop.permute.xlu1 %1013  ;;  %v4817_v55 = vpop.permute.xlu0 %2193 }
 0x222   : > { %vm7808_vm9 = vcmp.ne.s32.totalorder %v4817_v55, 0 }
 0x225   : > { %557 = vadd.xlane.f32.xlu1 %v556_v52  ;;  %v4821_v52 = vpop.permute.xlu0 %884 }
 0x226   : > { %v4807_v1 = vpop.permute.xlu1 %1075 }
 0x229   : > { %v4833_v61 = vpop.permute.xlu0 %954 }
 0x22b   : > { %v4813_v10 = vpop.permute.xlu1 %1167 }
 0x22c   : > { %7937 = vst [vmem:[#allocation8_spill] sm:$0xff] %v4813_v10 }
 0x22d   : > { %v4841_v24 = vpop.permute.xlu0 %1650 }
 0x22e   : > { %7945 = vst [vmem:[#allocation16_spill] sm:$0xff] %v4841_v24 }
 0x230   : > { %v4815_v15 = vpop.permute.xlu1 %1237 }
 0x231   : > { %7938 = vst [vmem:[#allocation9_spill] sm:$0xff] %v4815_v15  ;;  %v4845_v31 = vpop.permute.xlu0 %1812 }
 0x232   : > { %7947 = vst [vmem:[#allocation18_spill] sm:$0xff] %v4845_v31 }
 0x235   : > { %v4823_v43 = vpop.permute.xlu1 %1299  ;;  %v4849_v7 = vpop.permute.xlu0 %2233 }
 0x236   : > { %7940 = vst [vmem:[#allocation11_spill] sm:$0xff] %v4823_v43  ;;  %600 = vrot.lane.b32.xlu1 %v4819_v54, %s4329_s28  ;;  %7949 = vst [vmem:[#allocation20_spill] sm:$0xff] %v4849_v7  ;;  %v8012_v54 = vmov 34  }
 0x239   : > { %v4853_v51 = vpop.permute.xlu0 %2327 }
 0x23a   : > { %661 = vrot.lane.b32.xlu1 %v4827_v28, %s4331_s29  ;;  %v4831_v17 = vpop.permute.xlu1 %1361  ;;  %7951 = vst [vmem:[#allocation22_spill] sm:$0xff] %v4853_v51 }
 0x23b   : > { %7942 = vst [vmem:[#allocation13_spill] sm:$0xff] %v4831_v17 }
 0x23d   : > { %v597_v43 = vpop.permute.xlu0 %596 }
 0x23e   : > { %722 = vrot.lane.b32.xlu1 %v4835_v2, %s4333_s30 }
 0x23f   : > { %v4839_v13 = vpop.permute.xlu1 %1453 }
 0x240   : > { %7944 = vst [vmem:[#allocation15_spill] sm:$0xff] %v4839_v13 }
 0x241   : > { %v658_v24 = vpop.permute.xlu0 %657 }
 0x242   : > { %v669_v15 = vsel %vm522_vm2, %v658_v24, 0.0 }
 0x244   : > { %v4843_v46 = vpop.permute.xlu1 %1523 }
 0x245   : > { %7946 = vst [vmem:[#allocation17_spill] sm:$0xff] %v4843_v46  ;;  %v608_v46 = vsel %vm522_vm2, %v597_v43, 0.0 }
 0x249   : > { %v4847_v29 = vpop.permute.xlu1 %1585 }
 0x24a   : > { %7948 = vst [vmem:[#allocation19_spill] sm:$0xff] %v4847_v29  ;;  %v719_v29 = vpop.permute.xlu0 %718 }
 0x24e   : > { %v4851_v0 = vpop.permute.xlu1 %1647 }
 0x24f   : > { %7950 = vst [vmem:[#allocation21_spill] sm:$0xff] %v4851_v0 }
 0x253   : > { %v4855_v44 = vpop.permute.xlu1 %1739 }
 0x254   : > { %7952 = vst [vmem:[#allocation23_spill] sm:$0xff] %v4855_v44  ;;  %v730_v44 = vsel %vm522_vm2, %v719_v29, 0.0 }
 0x258   : > { %v4857_v17 = vpop.permute.xlu1 %1809 }
 0x259   : > { %7953 = vst [vmem:[#allocation24_spill] sm:$0xff] %v4857_v17 }
 0x25d   : > { %v4859_v13 = vpop.permute.xlu1 %1871 }
 0x25e   : > { %7954 = vst [vmem:[#allocation25_spill] sm:$0xff] %v4859_v13 }
 0x262   : > { %609 = vadd.xlane.f32.xlu1 %v608_v46  ;;  %v4862_v31 = vpop.permute.xlu1 %1933 }
 0x263   : > { %7955 = vst [vmem:[#allocation26_spill] sm:$0xff] %v4862_v31 }
 0x266   : > { %670 = vadd.xlane.f32.xlu1 %v669_v15 }
 0x267   : > { %v4865_v0 = vpop.permute.xlu1 %2230 }
 0x268   : > { %7956 = vst [vmem:[#allocation27_spill] sm:$0xff] %v4865_v0 }
 0x269   : > { %v549_v10 = vpop.xlane.xlu0 %548 }
 0x26a   : > { %731 = vadd.xlane.f32.xlu1 %v730_v44  ;;  %4275 = vrcp.f32 %v549_v10 }
 0x26c   : > { %v4868_v17 = vpop.permute.xlu1 %2324 }
 0x26d   : > { %7957 = vst [vmem:[#allocation28_spill] sm:$0xff] %v4868_v17  ;;  %v603_v38 = vpop.permute.xlu0 %602 }
 0x26e   : > { %v617_v13 = vsel %vm522_vm2, %v603_v38, 0.0 }
 0x26f   : > { %618 = vadd.xlane.f32.xlu1 %v617_v13 }
 0x270   : > { %v599_v43 = vpop.permute.xlu1 %598 }
 0x271   : > { %v664_v46 = vpop.permute.xlu0 %663  ;;  %v611_v31 = vsel %vm522_vm2, %v599_v43, 0.0 }
 0x272   : > { %612 = vadd.xlane.f32.xlu0 %v611_v31  ;;  %v678_v24 = vsel %vm522_vm2, %v664_v46, 0.0 }
 0x273   : > { %679 = vadd.xlane.f32.xlu1 %v678_v24 }
 0x274   : > { %v660_v15 = vpop.permute.xlu1 %659 }
 0x275   : > { %v725_v28 = vpop.permute.xlu0 %724  ;;  %v672_v2 = vsel %vm522_vm2, %v660_v15, 0.0 }
 0x276   : > { %673 = vadd.xlane.f32.xlu0 %v672_v2  ;;  %v739_v44 = vsel %vm522_vm2, %v725_v28, 0.0 }
 0x277   : > { %740 = vadd.xlane.f32.xlu1 %v739_v44  ;;  %v4276_v13 = vpop.eup %4275 }
 0x278   : > { %v721_v29 = vpop.permute.xlu1 %720  ;;  %v560_v43 = vmul.f32 %v4276_v13, %v4721_v20 }
 0x279   : > { %v733_v38 = vsel %vm522_vm2, %v721_v29, 0.0 }
 0x27a   : > { %734 = vadd.xlane.f32.xlu0 %v733_v38  ;;  %v7798_v38 = vmov 16  }
 0x27b   : > { %4137 = vset.pattern.permute.xlu0 %v7798_v38  ;;  %4136 = vset.pattern.permute.xlu1 %v7798_v38 }
 0x288   : > { %822 = vrot.lane.b32.xlu1 %v560_v43, %s4321_s27 }
 0x2a6   : > { %v555_v31 = vpop.xlane.xlu0 %554 }
 0x2a7   : > { %4277 = vrcp.f32 %v555_v31 }
 0x2aa   : > { %v552_v46 = vpop.xlane.xlu1 %551 }
 0x2ab   : > { %4279 = vrcp.f32 %v552_v46 }
 0x2ae   : > { %v558_v24 = vpop.xlane.xlu1 %557 }
 0x2af   : > { %4281 = vrcp.f32 %v558_v24 }
 0x2b2   : > { %v601_v19 = vpop.permute.xlu1 %600 }
 0x2b3   : > { %v614_v10 = vsel %vm522_vm2, %v601_v19, 0.0 }
 0x2b4   : > { %v4278_v2 = vpop.eup %4277  ;;  %615 = vadd.xlane.f32.xlu0 %v614_v10 }
 0x2b5   : > { %v564_v28 = vmul.f32 %v4278_v2, %v4785_v4 }
 0x2b6   : > { %v662_v15 = vpop.permute.xlu1 %661 }
 0x2b7   : > { %2171 = vrot.lane.b32.xlu1 %v564_v28, %s4321_s27  ;;  %v675_v44 = vsel %vm522_vm2, %v662_v15, 0.0 }
 0x2b8   : > { %676 = vadd.xlane.f32.xlu0 %v675_v44  ;;  %v4280_v19 = vpop.eup %4279 }
 0x2b9   : > { %v562_v4 = vmul.f32 %v4280_v19, %v4791_v3 }
 0x2ba   : > { %v723_v20 = vpop.permute.xlu1 %722 }
 0x2bb   : > { %v736_v29 = vsel %vm522_vm2, %v723_v20, 0.0  ;;  %vm773_vm2 = vcmp.ge.s32.totalorder %v4540_v41, 0 }
 0x2bc   : > { %737 = vadd.xlane.f32.xlu0 %v736_v29  ;;  %v4282_v13 = vpop.eup %4281  ;;  %vm777_vm8 = vmand %vm773_vm2, %vm775_vm4  ;;  %vm780_vm2 = vcmp.le.s32.totalorder %v4531_v33, 6  ;;  %vm7807_vm4 = vcmp.ne.s32.totalorder %v4805_v60, 0 }
 0x2bd   : > { %v566_v43 = vmul.f32 %v4282_v13, %v4797_v11  ;;  %vm4930_vm11 = vmand %vm777_vm8, %vm803_vm7  ;;  %vm2122_vm7 = vcmp.ge.s32.totalorder %v4570_v59, 0 }
 0x2be   : > { %vm4938_vm13 = vmand %vm777_vm8, %vm847_vm10  ;;  %vm2124_vm8 = vcmp.le.s32.totalorder %v4570_v59, 11 }
 0x2bf   : > { %vm4983_vm5 = vmand %vm778_vm15, %vm780_vm2  ;;  %vm2128_vm15 = vcmp.ge.s32.totalorder %v4570_v59, 4294967295  ;;  %vm2130_vm2 = vcmp.le.s32.totalorder %v4570_v59, 10 }
 0x2c0   : > { %vm4991_vm6 = vmand %vm4983_vm5, %vm7807_vm4 }
 0x2c1   : > { %vm5021_vm10 = vmand %vm2122_vm7, %vm2124_vm8  ;;  %vm772_vm7 = vcmp.ge.s32.totalorder %v4531_v33, 0  ;;  %vm774_vm8 = vcmp.le.s32.totalorder %v4531_v33, 7  ;;  %v7990_v33 = vmov 0 }
 0x2c2   : > { %vm5031_vm0 = vmand %vm5021_vm10, %vm7808_vm9  ;;  %vm2127_vm9 = vcmp.ge.s32.totalorder %v4566_v58, 4294967295 }
 0x2c3   : > { %vm5060_vm4 = vmand %vm2128_vm15, %vm2130_vm2 }
 0x2c4   : > { %vm5074_vm3 = vmand %vm772_vm7, %vm774_vm8  ;;  %vm8000_vm7 = vcmp.ne.s32.totalorder %v4674_v57, 0 }
 0x2d2   : > { %824 = vrot.lane.b32.xlu0 %v562_v4, %s4321_s27 }
 0x2d6   : > { %2173 = vrot.lane.b32.xlu0 %v566_v43, %s4321_s27 }
 0x2eb   : > { %v610_v31 = vpop.xlane.xlu1 %609 }
 0x2ec   : > { %4283 = vrcp.f32 %v610_v31 }
 0x2ef   : > { %v671_v10 = vpop.xlane.xlu1 %670 }
 0x2f0   : > { %4285 = vrcp.f32 %v671_v10 }
 0x2f3   : > { %v732_v46 = vpop.xlane.xlu1 %731 }
 0x2f4   : > { %4287 = vrcp.f32 %v732_v46  ;;  %v4921_v46 = vmul.f32 %v4618_v21, %v4498_v53 }
 0x2f9   : > { %v4284_v24 = vpop.eup %4283 }
 0x2fa   : > { %v621_v2 = vmul.f32 %v4284_v24, %v4693_v27 }
 0x2fb   : > { %v613_v28 = vpop.xlane.xlu0 %612 }
 0x2fc   : > { %4289 = vrcp.f32 %v613_v28  ;;  %1144 = vrot.lane.b32.xlu1 %v621_v2, %s4321_s27  ;;  %v8022_v28 = vmov 0 }
 0x2fd   : > { %v4286_v3 = vpop.eup %4285 }
 0x2fe   : > { %v682_v15 = vmul.f32 %v4286_v3, %v4699_v30 }
 0x2ff   : > { %v674_v44 = vpop.xlane.xlu0 %673 }
 0x300   : > { %4291 = vrcp.f32 %v674_v44  ;;  %1430 = vrot.lane.b32.xlu1 %v682_v15, %s4321_s27  ;;  %v8025_v15 = vmov 35  }
 0x301   : > { %v4288_v11 = vpop.eup %4287 }
 0x302   : > { %v743_v20 = vmul.f32 %v4288_v11, %v4705_v40 }
 0x303   : > { %v735_v29 = vpop.xlane.xlu0 %734 }
 0x304   : > { %4293 = vrcp.f32 %v735_v29  ;;  %1716 = vrot.lane.b32.xlu1 %v743_v20, %s4321_s27 }
 0x309   : > { %v4290_v19 = vpop.eup %4289 }
 0x30a   : > { %v623_v27 = vmul.f32 %v4290_v19, %v4751_v6  ;;  %v4910_v6 = vpop.xlane.xlu1 %618 }
 0x30b   : > { %4295 = vrcp.f32 %v4910_v6 }
 0x30c   : > { %1146 = vrot.lane.b32.xlu0 %v623_v27, %s4321_s27 }
 0x30d   : > { %v4292_v4 = vpop.eup %4291 }
 0x30e   : > { %v684_v13 = vmul.f32 %v4292_v4, %v4759_v35  ;;  %v4950_v44 = vpop.xlane.xlu1 %679  ;;  %v7794_v4 = vmov 17  }
 0x30f   : > { %7969 = vst [vmem:[#allocation32_spill] sm:$0xff] %v4950_v44 }
 0x310   : > { %1432 = vrot.lane.b32.xlu0 %v684_v13, %s4321_s27 }
 0x311   : > { %v4294_v30 = vpop.eup %4293 }
 0x312   : > { %v745_v43 = vmul.f32 %v4294_v30, %v4767_v34  ;;  %v807_v34 = vsub.f32 1.0, %v4498_v53  ;;  %v4965_v27 = vpop.xlane.xlu1 %740  ;;  %v4975_v30 = vmul.f32 %v4624_v26, %v4500_v56 }
 0x313   : > { %7970 = vst [vmem:[#allocation33_spill] sm:$0xff] %v4965_v27  ;;  %v7982_v27 = vmov 0 }
 0x314   : > { %1718 = vrot.lane.b32.xlu0 %v745_v43, %s4321_s27  ;;  %v4917_v10 = vmul.f32 %v4618_v21, %v807_v34  ;;  %v4924_v41 = vmul.f32 %v4622_v23, %v807_v34  ;;  %7971 = vst [vmem:[#allocation34_spill] sm:$0xff] %v4975_v30  ;;  %v7983_v27 = vsel %vm5031_vm0, 4294967295, %v7982_v27 }
 0x315   : > { %7984 = vst [vmem:[#allocation38_spill] sm:$0xff] %v7983_v27 }
 0x316   : > { %v4971_v13 = vpop.permute.xlu1 %822 }
 0x317   : > { %v836_v43 = vmul.f32 %v4975_v30, %v4971_v13 }
 0x329   : > { %v5046_v17 = vpop.permute.xlu1 %2171 }
 0x33d   : > { %v4901_v40 = vpop.xlane.xlu0 %615 }
 0x33e   : > { %7958 = vst [vmem:[#allocation29_spill] sm:$0xff] %v4901_v40 }
 0x341   : > { %v4903_v31 = vpop.xlane.xlu0 %676 }
 0x342   : > { %7959 = vst [vmem:[#allocation30_spill] sm:$0xff] %v4903_v31  ;;  %v7805_v31 = vmov 19  }
 0x345   : > { %v4912_v35 = vpop.xlane.xlu0 %737 }
 0x346   : > { %7960 = vst [vmem:[#allocation31_spill] sm:$0xff] %v4912_v35  ;;  %v7985_v35 = vmov 16  }
 0x349   : > { %v825_v2 = vpop.permute.xlu0 %824 }
 0x34a   : > { %v861_v21 = vmul.f32 %v4917_v10, %v825_v2  ;;  %v829_v3 = vmul.f32 %v825_v2, %v4924_v41  ;;  %v869_v53 = vmul.f32 %v4921_v46, %v825_v2  ;;  %v837_v23 = vmul.f32 %v4928_v37, %v825_v2 }
 0x34b   : > { %v7974_v2 = vmov 0 }
 0x34c   : > { %v4954_v11 = vsel %vm4938_vm13, %v861_v21, 0.0  ;;  %v831_v20 = vsel %vm4930_vm11, %v829_v3, 0.0  ;;  %v4960_v29 = vsel %vm4946_vm14, %v869_v53, 0.0  ;;  %v839_v19 = vsel %vm4934_vm12, %v837_v23, 0.0 }
 0x34d   : > { %925 = vperm.xlu0 %4137, %v4954_v11   ;;  %897 = vperm.xlu1 %4136, %v831_v20   ;;  %v7975_v2 = vsel %vm4991_vm6, 4294967295, %v7974_v2  ;;  %v7796_v21 = vmov 18   ;;  %v4999_v3 = vsel %vm4991_vm6, %v836_v43, 0.0  ;;  %v7800_v53 = vsub.f32 1.0, %v4519_v12  ;;  %v5003_v23 = vpop.permute.xlu0 %2173 }
 0x34e   : > { %7976 = vst [vmem:[#allocation35_spill] sm:$0xff] %v7975_v2  ;;  %vm7989_vm6 = vcmp.ne.s32.totalorder %v4817_v55, 0 }
 0x34f   : > { %vm5070_vm1 = vmand %vm5060_vm4, %vm7989_vm6  ;;  %vm7997_vm6 = vcmp.ne.s32.totalorder %v4805_v60, 0 }
 0x350   : > { %v7991_v33 = vsel %vm5070_vm1, 4294967295, %v7990_v33  ;;  %vm5098_vm2 = vmand %vm5074_vm3, %vm7997_vm6 }
 0x351   : > { %939 = vperm.xlu0 %4137, %v4960_v29   ;;  %911 = vperm.xlu1 %4136, %v839_v19   ;;  %7992 = vst [vmem:[#allocation40_spill] sm:$0xff] %v7991_v33  ;;  %v5123_v33 = vmul.f32 %v4620_v22, %v4500_v56 }
 0x353   : > { %8004 = vst [vmem:[#allocation42_spill] sm:$0xff] %v5123_v33 }
 0x355   : > { %4139 = vset.pattern.permute.xlu0 %v7794_v4  ;;  %4138 = vset.pattern.permute.xlu1 %v7794_v4  ;;  %v5008_v4 = vmul.f32 %v4634_v36, %v7800_v53  ;;  %v2155_v53 = vsub.f32 1.0, %v4522_v14 }
 0x356   : > { %989 = vperm.xlu0 %4139, %v4954_v11   ;;  %965 = vperm.xlu1 %4138, %v831_v20  }
 0x357   : > { %7977 = vst [vmem:[#allocation36_spill] sm:$0xff] %v5008_v4  ;;  %v2210_v43 = vmul.f32 %v5008_v4, %v5003_v23 }
 0x359   : > { %v5040_v44 = vsel %vm5031_vm0, %v2210_v43, 0.0  ;;  %vm2129_vm0 = vcmp.le.s32.totalorder %v4566_v58, 10 }
 0x35a   : > { %1001 = vperm.xlu0 %4139, %v4960_v29   ;;  %977 = vperm.xlu1 %4138, %v839_v19   ;;  %vm5086_vm15 = vmand %vm2127_vm9, %vm2129_vm0  ;;  %vm846_vm9 = vcmp.ne.s32.totalorder %v4651_v45, 0 }
 0x35b   : > { %vm5106_vm0 = vmand %vm5086_vm15, %vm8000_vm7 }
 0x35c   : > { %vm5127_vm8 = vmand %vm5074_vm3, %vm846_vm9  ;;  %vm2152_vm3 = vcmp.ne.s32.totalorder %v4811_v18, 0 }
 0x35d   : > { %vm5139_vm6 = vmand %vm4983_vm5, %vm846_vm9 }
 0x35e   : > { %4143 = vset.pattern.permute.xlu0 %v7798_v38  ;;  %4140 = vset.pattern.permute.xlu1 %v7796_v21  ;;  %v7978_v21 = vmov 17   ;;  %v5019_v38 = vmul.f32 %v4634_v36, %v4519_v12  ;;  %v806_v36 = vsub.f32 1.0, %v4500_v56  ;;  %v8007_v56 = vmov 0 }
 0x35f   : > { %1027 = vperm.xlu1 %4140, %v831_v20   ;;  %906 = vperm.xlu0 %4143, %v4999_v3   ;;  %v8008_v56 = vsel %vm5139_vm6, 4294967295, %v8007_v56 }
 0x360   : > { %7979 = vst [vmem:[#allocation37_spill] sm:$0xff] %v5019_v38  ;;  %v2218_v4 = vmul.f32 %v5019_v38, %v5003_v23  ;;  %v5092_v27 = vmul.f32 %v4620_v22, %v806_v36  ;;  %8009 = vst [vmem:[#allocation43_spill] sm:$0xff] %v8008_v56  ;;  %v4296_v38 = vpop.eup %4295 }
 0x362   : > { %v5080_v59 = vsel %vm5070_vm1, %v2218_v4, 0.0  ;;  %v8001_v4 = vmov 0  ;;  %v860_v57 = vmul.f32 %v5092_v27, %v4971_v13 }
 0x363   : > { %1039 = vperm.xlu1 %4140, %v839_v19   ;;  %4145 = vset.pattern.permute.xlu0 %v7978_v21  ;;  %v8002_v4 = vsel %vm5106_vm0, 4294967295, %v8001_v4 }
 0x364   : > { %973 = vperm.xlu0 %4145, %v4999_v3   ;;  %8003 = vst [vmem:[#allocation41_spill] sm:$0xff] %v8002_v4 }
 0x367   : > { %4141 = vset.pattern.permute.xlu1 %v7805_v31  ;;  %v5050_v31 = vmul.f32 %v4624_v26, %v806_v36 }
 0x368   : > { %1089 = vperm.xlu1 %4141, %v831_v20   ;;  %4149 = vset.pattern.permute.xlu0 %v7985_v35  ;;  %v5054_v20 = vmul.f32 %v4656_v48, %v4522_v14 }
 0x369   : > { %2286 = vperm.xlu0 %4149, %v5040_v44   ;;  %v828_v55 = vmul.f32 %v4971_v13, %v5050_v31 }
 0x36a   : > { %7986 = vst [vmem:[#allocation39_spill] sm:$0xff] %v5054_v20  ;;  %v2185_v58 = vmul.f32 %v5054_v20, %v5046_v17 }
 0x36b   : > { %v830_v36 = vsel %vm5098_vm2, %v828_v55, 0.0  ;;  %v868_v55 = vmul.f32 %v5123_v33, %v4971_v13 }
 0x36c   : > { %1101 = vperm.xlu1 %4141, %v839_v19   ;;  %v5114_v60 = vsel %vm5106_vm0, %v2185_v58, 0.0  ;;  %v862_v58 = vsel %vm5127_vm8, %v860_v57, 0.0 }
 0x36d   : > { %2304 = vperm.xlu0 %4149, %v5080_v59   ;;  %v870_v22 = vsel %vm5139_vm6, %v868_v55, 0.0 }
 0x370   : > { %4142 = vset.pattern.permute.xlu1 %v7985_v35 }
 0x371   : > { %2263 = vperm.xlu0 %4149, %v5114_v60   ;;  %892 = vperm.xlu1 %4142, %v830_v36  }
 0x375   : > { %4153 = vset.pattern.permute.xlu0 %v7978_v21  ;;  %920 = vperm.xlu1 %4142, %v862_v58  }
 0x376   : > { %2354 = vperm.xlu0 %4153, %v5114_v60  }
 0x379   : > { %934 = vperm.xlu1 %4142, %v870_v22  }
 0x37a   : > { %2374 = vperm.xlu0 %4153, %v5040_v44  }
 0x37d   : > { %4144 = vset.pattern.permute.xlu1 %v7978_v21 }
 0x37e   : > { %v1147_v13 = vpop.permute.xlu0 %1146  ;;  %2390 = vperm.xlu0 %4153, %v5080_v59   ;;  %961 = vperm.xlu1 %4144, %v830_v36  }
 0x37f   : > { %v1151_v26 = vmul.f32 %v1147_v13, %v4924_v41  ;;  %v1155_v34 = vmul.f32 %v1147_v13, %v4928_v37  ;;  %v1159_v57 = vmul.f32 %v1147_v13, %v4917_v10  ;;  %v1163_v4 = vmul.f32 %v1147_v13, %v4921_v46 }
 0x381   : > { %v5154_v55 = vsel %vm4930_vm11, %v1151_v26, 0.0  ;;  %v5158_v20 = vsel %vm4934_vm12, %v1155_v34, 0.0  ;;  %v5162_v0 = vsel %vm4938_vm13, %v1159_v57, 0.0  ;;  %v5166_v51 = vsel %vm4946_vm14, %v1163_v4, 0.0 }
 0x382   : > { %8010 = vst [vmem:[#allocation44_spill] sm:$0xff] %v5162_v0  ;;  %8011 = vst [vmem:[#allocation45_spill] sm:$0xff] %v5166_v51  ;;  %v1433_v7 = vpop.permute.xlu0 %1432  ;;  %4179 = vset.pattern.permute.xlu0 %v8012_v54  ;;  %985 = vperm.xlu1 %4144, %v862_v58  }
 0x383   : > { %1016 = vperm.xlu0 %4179, %v4628_v32   ;;  %v1437_v13 = vmul.f32 %v1433_v7, %v4924_v41  ;;  %v1441_v26 = vmul.f32 %v1433_v7, %v4928_v37  ;;  %v1445_v34 = vmul.f32 %v1433_v7, %v4917_v10  ;;  %v1449_v40 = vmul.f32 %v1433_v7, %v4921_v46 }
 0x385   : > { %v5176_v57 = vsel %vm4930_vm11, %v1437_v13, 0.0  ;;  %v5180_v4 = vsel %vm4934_vm12, %v1441_v26, 0.0  ;;  %v5184_v47 = vsel %vm4938_vm13, %v1445_v34, 0.0  ;;  %v5188_v54 = vsel %vm4946_vm14, %v1449_v40, 0.0 }
 0x386   : > { %8013 = vst [vmem:[#allocation46_spill] sm:$0xff] %v5184_v47  ;;  %8014 = vst [vmem:[#allocation47_spill] sm:$0xff] %v5188_v54  ;;  %v1719_v56 = vpop.permute.xlu0 %1718  ;;  %997 = vperm.xlu1 %4144, %v870_v22   ;;  %v8016_v47 = vmov 18  }
 0x387   : > { %2413 = vperm.xlu0 %4179, %v4666_v62   ;;  %v1723_v7 = vmul.f32 %v1719_v56, %v4924_v41  ;;  %v1727_v13 = vmul.f32 %v1719_v56, %v4928_v37  ;;  %v1731_v33 = vmul.f32 %v1719_v56, %v4917_v10  ;;  %v1735_v26 = vmul.f32 %v1719_v56, %v4921_v46 }
 0x388   : > { %v8018_v10 = vmov 19   ;;  %v8019_v46 = vsub.f32 1.0, %v4519_v12  ;;  %v8026_v12 = vmov 0  ;;  %v7839_v56 = vmov 20  }
 0x389   : > { %v5197_v34 = vsel %vm4930_vm11, %v1723_v7, 0.0  ;;  %v5201_v40 = vsel %vm4934_vm12, %v1727_v13, 0.0  ;;  %v5205_v54 = vsel %vm4938_vm13, %v1731_v33, 0.0  ;;  %v5210_v41 = vsel %vm4946_vm14, %v1735_v26, 0.0  ;;  %vm5234_vm11 = vmand %vm5021_vm10, %vm2152_vm3 }
 0x38a   : > { %8015 = vst [vmem:[#allocation48_spill] sm:$0xff] %v5205_v54  ;;  %4146 = vset.pattern.permute.xlu1 %v8016_v47  ;;  %8017 = vst [vmem:[#allocation49_spill] sm:$0xff] %v5210_v41  ;;  %v5222_v37 = vmul.f32 %v4647_v42, %v8019_v46  ;;  %v8023_v28 = vsel %vm5234_vm11, 4294967295, %v8022_v28  ;;  %v2186_v33 = vmul.f32 %v5230_v25, %v5003_v23  ;;  %vm2195_vm13 = vcmp.ne.s32.totalorder %v4781_v63, 0 }
 0x38b   : > { %4181 = vset.pattern.permute.xlu0 %v8016_v47  ;;  %1023 = vperm.xlu1 %4146, %v830_v36   ;;  %8024 = vst [vmem:[#allocation52_spill] sm:$0xff] %v8023_v28  ;;  %vm5250_vm12 = vmand %vm5060_vm4, %vm2152_vm3  ;;  %vm8031_vm14 = vnez %v7932_v8  ;;  %vm8033_vm4 = vnez %v7930_v5  ;;  %v8034_v63 = vmov 0  ;;  %v7893_v8 = vmov 28  }
 0x38c   : > { %1035 = vperm.xlu0 %4181, %v4999_v3   ;;  %8020 = vst [vmem:[#allocation50_spill] sm:$0xff] %v5222_v37  ;;  %v2178_v24 = vmul.f32 %v5003_v23, %v5222_v37  ;;  %v8027_v12 = vsel %vm5250_vm12, 4294967295, %v8026_v12  ;;  %v5256_v42 = vsel %vm5250_vm12, %v2186_v33, 0.0  ;;  %v5266_v23 = vmul.f32 %v4656_v48, %v2155_v53  ;;  %vm5293_vm5 = vmand %vm8033_vm4, %vm2195_vm13 }
 0x38d   : > { %8028 = vst [vmem:[#allocation53_spill] sm:$0xff] %v8027_v12  ;;  %v8035_v63 = vsel %vm5293_vm5, 4294967295, %v8034_v63  ;;  %vm5308_vm10 = vmand %vm5086_vm15, %vm2195_vm13  ;;  %vm8042_vm15 = vnez %v7975_v2  ;;  %v7855_v2 = vmov 24   ;;  %v7888_v12 = vmov 27  }
 0x38e   : > { %v5242_v18 = vsel %vm5234_vm11, %v2178_v24, 0.0  ;;  %8029 = vst [vmem:[#allocation54_spill] sm:$0xff] %v5266_v23  ;;  %v2177_v43 = vmul.f32 %v5046_v17, %v5266_v23  ;;  %8036 = vst [vmem:[#allocation57_spill] sm:$0xff] %v8035_v63  ;;  %v7837_v24 = vmov 21   ;;  %v750_v23 = vlaneseq }
 0x38f   : > { %1047 = vperm.xlu1 %4146, %v862_v58  }
 0x390   : > { %1051 = vperm.xlu0 %4181, %v4954_v11   ;;  %v5280_v48 = vsel %vm8031_vm14, %v2177_v43, 0.0 }
 0x393   : > { %1059 = vperm.xlu1 %4146, %v870_v22  }
 0x394   : > { %1063 = vperm.xlu0 %4181, %v4960_v29  }
 0x397   : > { %4147 = vset.pattern.permute.xlu1 %v8018_v10 }
 0x398   : > { %2440 = vperm.xlu0 %4181, %v5114_v60   ;;  %1085 = vperm.xlu1 %4147, %v830_v36   ;;  %v5273_v36 = vmul.f32 %v4644_v39, %v2155_v53 }
 0x39a   : > { %8030 = vst [vmem:[#allocation55_spill] sm:$0xff] %v5273_v36 }
 0x39c   : > { %2460 = vperm.xlu0 %4181, %v5040_v44   ;;  %1109 = vperm.xlu1 %4147, %v862_v58   ;;  %v5289_v58 = vpop.permute.xlu1 %1144 }
 0x39d   : > { %v1154_v13 = vmul.f32 %v5289_v58, %v4975_v30 }
 0x3a0   : > { %2476 = vperm.xlu0 %4181, %v5080_v59   ;;  %1121 = vperm.xlu1 %4147, %v870_v22   ;;  %v5312_v5 = vpop.permute.xlu1 %1430 }
 0x3a4   : > { %4183 = vset.pattern.permute.xlu0 %v8025_v15  ;;  %4148 = vset.pattern.permute.xlu1 %v7985_v35 }
 0x3a5   : > { %1078 = vperm.xlu0 %4183, %v4628_v32   ;;  %2250 = vperm.xlu1 %4148, %v5242_v18  }
 0x3a9   : > { %2499 = vperm.xlu0 %4183, %v4666_v62   ;;  %2268 = vperm.xlu1 %4148, %v5256_v42  }
 0x3ad   : > { %4185 = vset.pattern.permute.xlu0 %v8018_v10  ;;  %4150 = vset.pattern.permute.xlu1 %v7978_v21 }
 0x3ae   : > { %1097 = vperm.xlu0 %4185, %v4999_v3   ;;  %2342 = vperm.xlu1 %4150, %v5242_v18   ;;  %v5287_v3 = vmul.f32 %v4644_v39, %v4522_v14  ;;  %v8037_v39 = vmov 0 }
 0x3af   : > { %v8038_v39 = vsel %vm5308_vm10, 4294967295, %v8037_v39 }
 0x3b0   : > { %8032 = vst [vmem:[#allocation56_spill] sm:$0xff] %v5287_v3  ;;  %v2217_v14 = vmul.f32 %v5287_v3, %v5046_v17  ;;  %8039 = vst [vmem:[#allocation58_spill] sm:$0xff] %v8038_v39 }
 0x3b2   : > { %1113 = vperm.xlu0 %4185, %v4954_v11   ;;  %2358 = vperm.xlu1 %4150, %v5256_v42   ;;  %v2209_v11 = vmul.f32 %v5273_v36, %v5046_v17  ;;  %v5317_v6 = vsel %vm5308_vm10, %v2217_v14, 0.0  ;;  %v5322_v17 = vpop.permute.xlu1 %1716  ;;  %v7841_v14 = vmov 22  }
 0x3b3   : > { %8040 = vst [vmem:[#allocation59_spill] sm:$0xff] %v5322_v17 }
 0x3b6   : > { %1125 = vperm.xlu0 %4185, %v4960_v29   ;;  %4151 = vset.pattern.permute.xlu1 %v7985_v35  ;;  %v5301_v35 = vsel %vm5293_vm5, %v2209_v11, 0.0  ;;  %v8041_v29 = vmov 36  }
 0x3b7   : > { %2245 = vperm.xlu1 %4151, %v5280_v48  }
 0x3ba   : > { %2526 = vperm.xlu0 %4185, %v5114_v60  }
 0x3bb   : > { %2281 = vperm.xlu1 %4151, %v5301_v35  }
 0x3be   : > { %2546 = vperm.xlu0 %4185, %v5040_v44  }
 0x3bf   : > { %2299 = vperm.xlu1 %4151, %v5317_v6  }
 0x3c2   : > { %2562 = vperm.xlu0 %4185, %v5080_v59   ;;  %v627_v59 = vmul.f32 %v4296_v38, %v4753_v49  ;;  %v5352_v49 = vsel %vm8042_vm15, %v1154_v13, 0.0 }
 0x3c3   : > { %4152 = vset.pattern.permute.xlu1 %v7978_v21  ;;  %8043 = vst [vmem:[#allocation60_spill] sm:$0xff] %v5352_v49 }
 0x3c4   : > { %2338 = vperm.xlu1 %4152, %v5280_v48  }
 0x3c6   : > { %4187 = vset.pattern.permute.xlu0 %v8041_v29 }
 0x3c7   : > { %1170 = vperm.xlu0 %4187, %v4628_v32   ;;  %v7877_v32 = vmov 26  }
 0x3c8   : > { %v5327_v44 = vpop.permute.xlu0 %925  ;;  %v5329_v60 = vpop.permute.xlu1 %897  ;;  %4154 = vset.pattern.permute.xlu1 %v7839_v56 }
 0x3c9   : > { %1183 = vperm.xlu1 %4154, %v5154_v55  }
 0x3cb   : > { %2597 = vrot.lane.b32.xlu0 %v627_v59, %s4321_s27 }
 0x3cc   : > { %v5335_v22 = vpop.permute.xlu0 %939  ;;  %v5337_v7 = vpop.permute.xlu1 %911 }
 0x3cd   : > { %1197 = vperm.xlu1 %4154, %v5158_v20  }
 0x3cf   : > { %2621 = vperm.xlu0 %4187, %v4666_v62  }
 0x3d1   : > { %v5343_v26 = vpop.permute.xlu0 %989  ;;  %v5345_v46 = vpop.permute.xlu1 %965  ;;  %4155 = vset.pattern.permute.xlu1 %v7837_v24  ;;  %v7849_v24 = vmov 23  }
 0x3d2   : > { %1251 = vperm.xlu1 %4155, %v5154_v55  }
 0x3d3   : > { %4189 = vset.pattern.permute.xlu0 %v7839_v56 }
 0x3d4   : > { %1192 = vperm.xlu0 %4189, %v5352_v49  }
 0x3d5   : > { %v5355_v33 = vpop.permute.xlu0 %1001  ;;  %v5357_v53 = vpop.permute.xlu1 %977 }
 0x3d6   : > { %1263 = vperm.xlu1 %4155, %v5158_v20  }
 0x3d8   : > { %1211 = vperm.xlu0 %4189, %v5162_v0  }
 0x3da   : > { %v5361_v43 = vpop.permute.xlu1 %1027  ;;  %v5363_v11 = vpop.permute.xlu0 %906  ;;  %4156 = vset.pattern.permute.xlu1 %v7841_v14 }
 0x3db   : > { %1313 = vperm.xlu1 %4156, %v5154_v55  }
 0x3dc   : > { %1225 = vperm.xlu0 %4189, %v5166_v51  }
 0x3de   : > { %v5368_v38 = vpop.permute.xlu1 %1039 }
 0x3df   : > { %v5370_v59 = vpop.permute.xlu0 %973  ;;  %1325 = vperm.xlu1 %4156, %v5158_v20  }
 0x3e3   : > { %v5373_v13 = vpop.permute.xlu1 %1089  ;;  %4157 = vset.pattern.permute.xlu1 %v7849_v24 }
 0x3e4   : > { %v5376_v56 = vpop.permute.xlu0 %2286  ;;  %1375 = vperm.xlu1 %4157, %v5154_v55  }
 0x3e7   : > { %v5379_v14 = vpop.permute.xlu1 %1101 }
 0x3e8   : > { %v5381_v41 = vpop.permute.xlu0 %2304  ;;  %1387 = vperm.xlu1 %4157, %v5158_v20   ;;  %v7867_v20 = vmov 25  }
 0x3ec   : > { %v5384_v54 = vpop.permute.xlu0 %2263  ;;  %4158 = vset.pattern.permute.xlu1 %v7855_v2  ;;  %v5387_v30 = vpop.permute.xlu1 %892 }
 0x3ed   : > { %8044 = vst [vmem:[#allocation61_spill] sm:$0xff] %v5384_v54  ;;  %1469 = vperm.xlu1 %4158, %v5176_v57  }
 0x3f0   : > { %v5390_v24 = vpop.permute.xlu1 %920 }
 0x3f1   : > { %v5392_v51 = vpop.permute.xlu0 %2354  ;;  %1483 = vperm.xlu1 %4158, %v5180_v4  }
 0x3f2   : > { %8045 = vst [vmem:[#allocation62_spill] sm:$0xff] %v5392_v51 }
 0x3f4   : > { %v5395_v55 = vpop.permute.xlu1 %934 }
 0x3f5   : > { %v5397_v0 = vpop.permute.xlu0 %2374  ;;  %4159 = vset.pattern.permute.xlu1 %v7867_v20 }
 0x3f6   : > { %8046 = vst [vmem:[#allocation63_spill] sm:$0xff] %v5397_v0  ;;  %1537 = vperm.xlu1 %4159, %v5176_v57  }
 0x3f9   : > { %v5401_v2 = vpop.permute.xlu0 %2390  ;;  %v5403_v49 = vpop.permute.xlu1 %961 }
 0x3fa   : > { %8047 = vst [vmem:[#allocation64_spill] sm:$0xff] %v5401_v2  ;;  %1549 = vperm.xlu1 %4159, %v5180_v4  }
 0x3fd   : > { %v5406_v62 = vpop.permute.xlu1 %985 }
 0x3fe   : > { %v5408_v39 = vpop.permute.xlu0 %1016  ;;  %4160 = vset.pattern.permute.xlu1 %v7877_v32 }
 0x3ff   : > { %1599 = vperm.xlu1 %4160, %v5176_v57  }
 0x401   : > { %v5412_v3 = vpop.permute.xlu1 %997 }
 0x402   : > { %v5414_v20 = vpop.permute.xlu0 %2413 }
 0x403   : > { %8048 = vst [vmem:[#allocation65_spill] sm:$0xff] %v5414_v20  ;;  %1611 = vperm.xlu1 %4160, %v5180_v4   ;;  %v7904_v20 = vmov 29  }
 0x406   : > { %v5417_v63 = vpop.permute.xlu1 %1023 }
 0x407   : > { %v5419_v36 = vpop.permute.xlu0 %1035  ;;  %4161 = vset.pattern.permute.xlu1 %v7888_v12 }
 0x408   : > { %1661 = vperm.xlu1 %4161, %v5176_v57   ;;  %v5438_v57 = vand.u32 127, %v750_v23 }
 0x40a   : > { %v5423_v25 = vpop.permute.xlu1 %1047  ;;  %v887_v54 = vsub.s32 %v5438_v57, %v4821_v52  ;;  %v5459_v2 = vsub.s32 %v5438_v57, %v4787_v16  ;;  %v5468_v52 = vsub.s32 %v5438_v57, %v4807_v1  ;;  %v7910_v1 = vmov 30  }
 0x40b   : > { %v5425_v32 = vpop.permute.xlu0 %1051 }
 0x40c   : > { %1673 = vperm.xlu1 %4161, %v5180_v4   ;;  %vm958_vm15 = vcmp.eq.s32.totalorder %v5459_v2, 0  ;;  %vm1082_vm3 = vcmp.eq.s32.totalorder %v5468_v52, 0  ;;  %vm1118_vm5 = vcmp.eq.s32.totalorder %v5468_v52, 9  ;;  %vm8057_vm4 = vcmp.eq.s32.totalorder %v887_v54, 8 }
 0x40e   : > { %v5428_v28 = vpop.permute.xlu1 %1059 }
 0x40f   : > { %v5430_v37 = vpop.permute.xlu0 %1063 }
 0x410   : > { %4162 = vset.pattern.permute.xlu1 %v7893_v8  ;;  %v886_v8 = vsub.s32 %v5438_v57, %v4783_v9  ;;  %v5464_v9 = vsub.s32 %v5438_v57, %v4799_v50 }
 0x411   : > { %1755 = vperm.xlu1 %4162, %v5197_v34  }
 0x412   : > { %vm930_vm12 = vcmp.eq.s32.totalorder %v886_v8, 9  ;;  %vm8065_vm1 = vcmp.eq.s32.totalorder %v5464_v9, 0 }
 0x413   : > { %v5434_v0 = vpop.permute.xlu0 %2440  ;;  %v5436_v12 = vpop.permute.xlu1 %1085 }
 0x414   : > { %8049 = vst [vmem:[#allocation66_spill] sm:$0xff] %v5434_v0 }
 0x415   : > { %1769 = vperm.xlu1 %4162, %v5201_v40  }
 0x417   : > { %v5441_v51 = vpop.permute.xlu0 %2460  ;;  %v5443_v4 = vpop.permute.xlu1 %1109 }
 0x418   : > { %8050 = vst [vmem:[#allocation67_spill] sm:$0xff] %v5441_v51  ;;  %v957_v51 = vsub.s32 %v5438_v57, %v4833_v61 }
 0x419   : > { %4163 = vset.pattern.permute.xlu1 %v7904_v20 }
 0x41a   : > { %1823 = vperm.xlu1 %4163, %v5197_v34   ;;  %vm995_vm7 = vcmp.eq.s32.totalorder %v957_v51, 9  ;;  %vm971_vm10 = vcmp.eq.s32.totalorder %v957_v51, 1  ;;  %vm983_vm9 = vcmp.eq.s32.totalorder %v957_v51, 8  ;;  %vm959_vm13 = vcmp.eq.s32.totalorder %v957_v51, 0 }
 0x41b   : > { %v5451_v0 = vpop.permute.xlu0 %2476  ;;  %v5453_v23 = vpop.permute.xlu1 %1121  ;;  %v1005_v20 = vsel %vm995_vm7, %v5355_v33, 0.0  ;;  %v981_v50 = vsel %vm971_vm10, %v5357_v53, 0.0  ;;  %vm8053_vm10 = vcmp.eq.s32.totalorder %v887_v54, 9  ;;  %vm8061_vm7 = vcmp.eq.s32.totalorder %v5459_v2, 1 }
 0x41c   : > { %8051 = vst [vmem:[#allocation68_spill] sm:$0xff] %v5451_v0  ;;  %v993_v0 = vsel %vm983_vm9, %v5343_v26, 0.0  ;;  %v943_v51 = vsel %vm8053_vm10, %v5335_v22, 0.0  ;;  %vm8056_vm9 = vcmp.eq.s32.totalorder %v887_v54, 1  ;;  %vm1094_vm10 = vcmp.eq.s32.totalorder %v5468_v52, 1 }
 0x41d   : > { %v1009_v33 = vadd.f32 %v1005_v20, %v993_v0  ;;  %v929_v0 = vsel %vm8057_vm4, %v5327_v44, 0.0  ;;  %v942_v22 = vsel %vm930_vm12, %v5395_v55, 0.0  ;;  %v1019_v20 = vsub.s32 %v5438_v57, %v5408_v39 }
 0x41e   : > { %1835 = vperm.xlu1 %4163, %v5201_v40   ;;  %vm8059_vm12 = vcmp.eq.s32.totalorder %v886_v8, 1  ;;  %vm8060_vm4 = vcmp.eq.s32.totalorder %v886_v8, 8 }
 0x41f   : > { %v914_v39 = vsel %vm8059_vm12, %v5363_v11, 0.0  ;;  %v928_v55 = vsel %vm8060_vm4, %v5390_v24, 0.0  ;;  %vm1045_vm12 = vcmp.eq.s32.totalorder %v1019_v20, 8  ;;  %vm1021_vm4 = vcmp.eq.s32.totalorder %v1019_v20, 0 }
 0x420   : > { %v1079_v16 = vpop.permute.xlu0 %1078  ;;  %v5470_v61 = vpop.permute.xlu1 %2250 }
 0x421   : > { %8052 = vst [vmem:[#allocation69_spill] sm:$0xff] %v5470_v61  ;;  %v969_v61 = vsel %vm959_vm13, %v5345_v46, 0.0  ;;  %v915_v46 = vsel %vm8056_vm9, %v5337_v7, 0.0  ;;  %v5506_v7 = vmul.f32 %v5289_v58, %v5050_v31  ;;  %vm8058_vm9 = vcmp.eq.s32.totalorder %v887_v54, 0 }
 0x422   : > { %4164 = vset.pattern.permute.xlu1 %v7910_v1  ;;  %v1007_v53 = vadd.f32 %v981_v50, %v969_v61  ;;  %v901_v61 = vsel %vm8058_vm9, %v5329_v60, 0.0  ;;  %v947_v50 = vadd.f32 %v943_v51, %v929_v0  ;;  %v980_v54 = vsel %vm8061_vm7, %v5370_v59, 0.0 }
 0x423   : > { %1885 = vperm.xlu1 %4164, %v5197_v34   ;;  %v945_v44 = vadd.f32 %v915_v46, %v901_v61  ;;  %vm8062_vm9 = vcmp.eq.s32.totalorder %v886_v8, 0  ;;  %v946_v51 = vadd.f32 %v942_v22, %v928_v55  ;;  %vm8064_vm7 = vcmp.eq.s32.totalorder %v5459_v2, 9 }
 0x424   : > { %v5488_v1 = vpop.permute.xlu0 %2499  ;;  %v5490_v26 = vpop.permute.xlu1 %2268  ;;  %v900_v60 = vsel %vm8062_vm9, %v5387_v30, 0.0  ;;  %v1004_v8 = vsel %vm8064_vm7, %v5412_v3, 0.0  ;;  %vm1033_vm9 = vcmp.eq.s32.totalorder %v1019_v20, 1  ;;  %vm1057_vm13 = vcmp.eq.s32.totalorder %v1019_v20, 9 }
 0x425   : > { %8054 = vst [vmem:[#allocation70_spill] sm:$0xff] %v5488_v1  ;;  %8055 = vst [vmem:[#allocation71_spill] sm:$0xff] %v5490_v26  ;;  %v968_v1 = vsel %vm958_vm15, %v5403_v49, 0.0  ;;  %v5514_v26 = vadd.f32 %v1009_v33, %v1007_v53  ;;  %v1081_v49 = vsub.s32 %v5438_v57, %v1079_v16  ;;  %vm8063_vm15 = vcmp.eq.s32.totalorder %v5459_v2, 8 }
 0x426   : > { %v1006_v33 = vadd.f32 %v980_v54, %v968_v1  ;;  %v992_v11 = vsel %vm8063_vm15, %v5406_v62, 0.0  ;;  %v7914_v30 = vmov 31   ;;  %v1030_v59 = vsel %vm8065_vm1, %v5417_v63, 0.0 }
 0x427   : > { %1897 = vperm.xlu1 %4164, %v5201_v40   ;;  %vm8066_vm15 = vcmp.eq.s32.totalorder %v5464_v9, 9  ;;  %v1092_v16 = vsel %vm1082_vm3, %v5436_v12, 0.0  ;;  %v1128_v2 = vsel %vm1118_vm5, %v5453_v23, 0.0  ;;  %vm1083_vm1 = vcmp.eq.s32.totalorder %v1081_v49, 0 }
 0x428   : > { %v1066_v62 = vsel %vm8066_vm15, %v5428_v28, 0.0  ;;  %vm1095_vm7 = vcmp.eq.s32.totalorder %v1081_v49, 1  ;;  %vm8068_vm15 = vcmp.eq.s32.totalorder %v5464_v9, 8  ;;  %v1031_v12 = vsel %vm1021_vm4, %v5361_v43, 0.0 }
 0x429   : > { %v1098_v0 = vpop.permute.xlu0 %1097  ;;  %v5526_v46 = vpop.permute.xlu1 %2342  ;;  %v1054_v28 = vsel %vm8068_vm15, %v5423_v25, 0.0  ;;  %vm8069_vm5 = vcmp.eq.s32.totalorder %v5468_v52, 8  ;;  %v1008_v23 = vadd.f32 %v1004_v8, %v992_v11  ;;  %v1043_v61 = vsel %vm1033_vm9, %v5368_v38, 0.0 }
 0x42a   : > { %v1104_v24 = vsel %vm1094_vm10, %v1098_v0, 0.0  ;;  %vm8067_vm10 = vcmp.eq.s32.totalorder %v5464_v9, 1  ;;  %v1070_v22 = vadd.f32 %v1066_v62, %v1054_v28  ;;  %v1055_v25 = vsel %vm1045_vm12, %v5425_v32, 0.0 }
 0x42b   : > { %4165 = vset.pattern.permute.xlu1 %v7914_v30  ;;  %v1042_v3 = vsel %vm8067_vm10, %v5419_v36, 0.0  ;;  %v1130_v1 = vadd.f32 %v1104_v24, %v1092_v16  ;;  %v1116_v36 = vsel %vm8069_vm5, %v5443_v4, 0.0  ;;  %v1093_v43 = vsel %vm1083_vm1, %v5373_v13, 0.0 }
 0x42c   : > { %1947 = vperm.xlu1 %4165, %v5197_v34   ;;  %v1067_v34 = vsel %vm1057_vm13, %v5430_v37, 0.0  ;;  %v1132_v55 = vadd.f32 %v1128_v2, %v1116_v36  ;;  %v1068_v54 = vadd.f32 %v1042_v3, %v1030_v59  ;;  %v1105_v37 = vsel %vm1095_vm7, %v5379_v14, 0.0 }
 0x42d   : > { %v1114_v63 = vpop.permute.xlu0 %1113  ;;  %v5553_v53 = vpop.permute.xlu1 %2358  ;;  %v1071_v9 = vadd.f32 %v1067_v34, %v1055_v25  ;;  %vm1107_vm3 = vcmp.eq.s32.totalorder %v1081_v49, 8  ;;  %vm1119_vm13 = vcmp.eq.s32.totalorder %v1081_v49, 9  ;;  %v944_v52 = vadd.f32 %v914_v39, %v900_v60 }
 0x42e   : > { %v1134_v0 = vadd.f32 %v1132_v55, %v1130_v1  ;;  %v1069_v11 = vadd.f32 %v1043_v61, %v1031_v12  ;;  %v1117_v24 = vsel %vm1107_vm3, %v1114_v63, 0.0  ;;  %v1010_v59 = vadd.f32 %v1008_v23, %v1006_v33  ;;  %v8071_v63 = vld [vmem:[#allocation42_spill] sm:$0xff] }
 0x42f   : > { %v1072_v20 = vadd.f32 %v1070_v22, %v1068_v54  ;;  %v1131_v32 = vadd.f32 %v1105_v37, %v1093_v43  ;;  %v8070_v16 = vmov 20   ;;  %v1152_v14 = vsel %vm5098_vm2, %v5506_v7, 0.0 }
 0x430   : > { %1959 = vperm.xlu1 %4165, %v5201_v40   ;;  %v949_v40 = vadd.f32 %v947_v50, %v945_v44  ;;  %v1158_v13 = vmul.f32 %v5289_v58, %v5092_v27  ;;  %v948_v39 = vadd.f32 %v946_v51, %v944_v52  ;;  %v1073_v60 = vadd.f32 %v1071_v9, %v1069_v11 }
 0x431   : > { %v1126_v4 = vpop.permute.xlu0 %1125  ;;  %v1138_v49 = vadd.f32 %v1134_v0, %v1072_v20  ;;  %v1162_v7 = vmul.f32 %v5289_v58, %v8071_v63  ;;  %vm7916_vm12 = vcmask 523264   ;;  %v8073_v22 = vmov 21  }
 0x432   : > { %v1129_v38 = vsel %vm1119_vm13, %v1126_v4, 0.0  ;;  %v5572_v8 = vpop.permute.xlu1 %2245  ;;  %v1137_v33 = vadd.f32 %v5514_v26, %v949_v40  ;;  %v1136_v1 = vadd.f32 %v1010_v59, %v948_v39  ;;  %v1160_v44 = vsel %vm5127_vm8, %v1158_v13, 0.0 }
 0x433   : > { %v1133_v62 = vadd.f32 %v1129_v38, %v1117_v24  ;;  %v1164_v23 = vsel %vm5139_vm6, %v1162_v7, 0.0  ;;  %v8075_v54 = vmov 22   ;;  %v8079_v9 = vmov 23  }
 0x434   : > { %4166 = vset.pattern.permute.xlu1 %v8070_v16  ;;  %v1140_v28 = vadd.f32 %v1138_v49, %v1136_v1  ;;  %v1436_v52 = vmul.f32 %v5312_v5, %v5050_v31  ;;  %v8082_v11 = vmov 24   ;;  %v1444_v59 = vmul.f32 %v5312_v5, %v5092_v27 }
 0x435   : > { %v1135_v2 = vadd.f32 %v1133_v62, %v1131_v32  ;;  %1178 = vperm.xlu1 %4166, %v1152_v14   ;;  %v1448_v62 = vmul.f32 %v5312_v5, %v8071_v63  ;;  %v8086_v13 = vmov 25  }
 0x436   : > { %v5580_v3 = vpop.permute.xlu1 %2281  ;;  %v1438_v38 = vsel %vm5098_vm2, %v1436_v52, 0.0  ;;  %v1446_v32 = vsel %vm5127_vm8, %v1444_v59, 0.0  ;;  %v1730_v59 = vmul.f32 %v5322_v17, %v5092_v27 }
 0x437   : > { %v1139_v50 = vadd.f32 %v1135_v2, %v1073_v60  ;;  %v1450_v40 = vsel %vm5139_vm6, %v1448_v62, 0.0  ;;  %v8090_v2 = vmov 26   ;;  %v1734_v62 = vmul.f32 %v5322_v17, %v8071_v63 }
 0x438   : > { %v8104_v63 = vmov 30  }
 0x439   : > { %v1141_v12 = vadd.f32 %v1139_v50, %v1137_v33  ;;  %1206 = vperm.xlu1 %4166, %v1160_v44  }
 0x43a   : > { %v5587_v51 = vpop.permute.xlu1 %2299 }
 0x43b   : > { %v2000_v34 = vpack.c.bf16 %v1141_v12, %v1140_v28  ;;  %v1722_v12 = vmul.f32 %v5322_v17, %v5050_v31 }
 0x43d   : > { %1220 = vperm.xlu1 %4166, %v1164_v23   ;;  %4036 = vmatprep.mubr.msk.bf16.mxu0 %vm7916_vm12, %v2000_v34  ;;  %v1724_v52 = vsel %vm5098_vm2, %v1722_v12, 0.0  ;;  %v8102_v12 = vmov 29   ;;  %vm7917_vm2 = vcmask 130048  }
 0x43f   : > { %v5592_v26 = vpop.permute.xlu1 %2338 }
 0x441   : > { %4167 = vset.pattern.permute.xlu1 %v8073_v22 }
 0x442   : > { %1247 = vperm.xlu1 %4167, %v1152_v14  }
 0x444   : > { %v5595_v61 = vpop.permute.xlu1 %1183 }
 0x446   : > { %1271 = vperm.xlu1 %4167, %v1160_v44  }
 0x448   : > { %v5597_v58 = vpop.permute.xlu1 %1197 }
 0x44a   : > { %1283 = vperm.xlu1 %4167, %v1164_v23  }
 0x44d   : > { %v5599_v55 = vpop.permute.xlu1 %1251 }
 0x44e   : > { %8074 = vst [vmem:[#allocation42_spill] sm:$0xff] %v5599_v55  ;;  %4168 = vset.pattern.permute.xlu1 %v8075_v54  ;;  %v8156_v55 = vld [vmem:[#allocation69_spill] sm:$0xff] }
 0x44f   : > { %1309 = vperm.xlu1 %4168, %v1152_v14  }
 0x451   : > { %v5602_v25 = vpop.permute.xlu1 %1263 }
 0x452   : > { %8076 = vst [vmem:[#allocation43_spill] sm:$0xff] %v5602_v25 }
 0x453   : > { %1333 = vperm.xlu1 %4168, %v1160_v44  }
 0x456   : > { %v5604_v43 = vpop.permute.xlu1 %1313 }
 0x457   : > { %8077 = vst [vmem:[#allocation72_spill] sm:$0xff] %v5604_v43  ;;  %1345 = vperm.xlu1 %4168, %v1164_v23   ;;  %v8152_v43 = vld [vmem:[#allocation71_spill] sm:$0xff] }
 0x45a   : > { %v5606_v37 = vpop.permute.xlu1 %1325 }
 0x45b   : > { %8078 = vst [vmem:[#allocation73_spill] sm:$0xff] %v5606_v37  ;;  %4169 = vset.pattern.permute.xlu1 %v8079_v9 }
 0x45c   : > { %1371 = vperm.xlu1 %4169, %v1152_v14  }
 0x45f   : > { %v5609_v0 = vpop.permute.xlu1 %1375 }
 0x460   : > { %8080 = vst [vmem:[#allocation74_spill] sm:$0xff] %v5609_v0  ;;  %1395 = vperm.xlu1 %4169, %v1160_v44   ;;  %v8094_v44 = vmov 27  }
 0x463   : > { %v5611_v4 = vpop.permute.xlu1 %1387 }
 0x464   : > { %8081 = vst [vmem:[#allocation75_spill] sm:$0xff] %v5611_v4  ;;  %1407 = vperm.xlu1 %4169, %v1164_v23   ;;  %v8098_v23 = vmov 28  }
 0x468   : > { %4170 = vset.pattern.permute.xlu1 %v8082_v11  ;;  %v5616_v24 = vpop.permute.xlu1 %1469 }
 0x469   : > { %8083 = vst [vmem:[#allocation76_spill] sm:$0xff] %v5616_v24  ;;  %1464 = vperm.xlu1 %4170, %v1438_v38  }
 0x46c   : > { %v5622_v20 = vpop.permute.xlu1 %1483 }
 0x46d   : > { %8084 = vst [vmem:[#allocation77_spill] sm:$0xff] %v5622_v20  ;;  %1492 = vperm.xlu1 %4170, %v1446_v32  }
 0x471   : > { %1506 = vperm.xlu1 %4170, %v1450_v40   ;;  %v5630_v14 = vpop.permute.xlu1 %1537 }
 0x472   : > { %8085 = vst [vmem:[#allocation78_spill] sm:$0xff] %v5630_v14 }
 0x475   : > { %4171 = vset.pattern.permute.xlu1 %v8086_v13  ;;  %v5633_v39 = vpop.permute.xlu1 %1549  ;;  %v8150_v13 = vld [vmem:[#allocation63_spill] sm:$0xff] }
 0x476   : > { %8087 = vst [vmem:[#allocation79_spill] sm:$0xff] %v5633_v39  ;;  %1533 = vperm.xlu1 %4171, %v1438_v38   ;;  %v8121_v39 = vld [vmem:[#allocation29_spill] sm:$0xff] }
 0x477   : > { %4297 = vrcp.f32 %v8121_v39 }
 0x47a   : > { %1557 = vperm.xlu1 %4171, %v1446_v32   ;;  %v5635_v60 = vpop.permute.xlu1 %1599 }
 0x47b   : > { %8088 = vst [vmem:[#allocation80_spill] sm:$0xff] %v5635_v60 }
 0x47e   : > { %1569 = vperm.xlu1 %4171, %v1450_v40   ;;  %v5637_v49 = vpop.permute.xlu1 %1611 }
 0x47f   : > { %8089 = vst [vmem:[#allocation81_spill] sm:$0xff] %v5637_v49 }
 0x482   : > { %4172 = vset.pattern.permute.xlu1 %v8090_v2 }
 0x483   : > { %1595 = vperm.xlu1 %4172, %v1438_v38   ;;  %v5640_v33 = vpop.permute.xlu1 %1661 }
 0x484   : > { %8091 = vst [vmem:[#allocation82_spill] sm:$0xff] %v5640_v33  ;;  %v4298_v24 = vpop.eup %4297  ;;  %v8146_v33 = vld [vmem:[#allocation64_spill] sm:$0xff] }
 0x487   : > { %1619 = vperm.xlu1 %4172, %v1446_v32   ;;  %v5642_v1 = vpop.permute.xlu1 %1673 }
 0x488   : > { %8092 = vst [vmem:[#allocation83_spill] sm:$0xff] %v5642_v1 }
 0x48b   : > { %1631 = vperm.xlu1 %4172, %v1450_v40  }
 0x48c   : > { %v5644_v50 = vpop.permute.xlu1 %1755 }
 0x48d   : > { %8093 = vst [vmem:[#allocation84_spill] sm:$0xff] %v5644_v50 }
 0x48f   : > { %4173 = vset.pattern.permute.xlu1 %v8094_v44 }
 0x490   : > { %1657 = vperm.xlu1 %4173, %v1438_v38   ;;  %v5647_v7 = vpop.permute.xlu1 %1769 }
 0x491   : > { %8095 = vst [vmem:[#allocation85_spill] sm:$0xff] %v5647_v7  ;;  %v8111_v7 = vmov 34  }
 0x494   : > { %1681 = vperm.xlu1 %4173, %v1446_v32   ;;  %v1732_v32 = vsel %vm5127_vm8, %v1730_v59, 0.0 }
 0x495   : > { %v5649_v28 = vpop.permute.xlu1 %1823 }
 0x496   : > { %8096 = vst [vmem:[#allocation86_spill] sm:$0xff] %v5649_v28 }
 0x498   : > { %1693 = vperm.xlu1 %4173, %v1450_v40   ;;  %v1736_v40 = vsel %vm5139_vm6, %v1734_v62, 0.0 }
 0x499   : > { %v5653_v34 = vpop.permute.xlu1 %1835 }
 0x49a   : > { %8097 = vst [vmem:[#allocation87_spill] sm:$0xff] %v5653_v34 }
 0x49c   : > { %4174 = vset.pattern.permute.xlu1 %v8098_v23  ;;  %v8148_v23 = vld [vmem:[#allocation61_spill] sm:$0xff] }
 0x49d   : > { %1750 = vperm.xlu1 %4174, %v1724_v52  }
 0x49e   : > { %v5660_v38 = vpop.permute.xlu1 %1885 }
 0x49f   : > { %8099 = vst [vmem:[#allocation88_spill] sm:$0xff] %v5660_v38 }
 0x4a1   : > { %1778 = vperm.xlu1 %4174, %v1732_v32  }
 0x4a2   : > { %v5666_v31 = vpop.permute.xlu1 %1897 }
 0x4a3   : > { %8100 = vst [vmem:[#allocation89_spill] sm:$0xff] %v5666_v31 }
 0x4a5   : > { %1792 = vperm.xlu1 %4174, %v1736_v40  }
 0x4a7   : > { %v5670_v19 = vpop.permute.xlu1 %1947 }
 0x4a8   : > { %8101 = vst [vmem:[#allocation90_spill] sm:$0xff] %v5670_v19  ;;  %v8107_v19 = vmov 31  }
 0x4a9   : > { %4175 = vset.pattern.permute.xlu1 %v8102_v12 }
 0x4aa   : > { %1819 = vperm.xlu1 %4175, %v1724_v52  }
 0x4ab   : > { %v5673_v27 = vpop.permute.xlu1 %1959 }
 0x4ac   : > { %8103 = vst [vmem:[#allocation91_spill] sm:$0xff] %v5673_v27 }
 0x4ae   : > { %1843 = vperm.xlu1 %4175, %v1732_v32  }
 0x4b0   : > { %v5675_v45 = vpop.permute.xlu1 %1178 }
 0x4b2   : > { %1855 = vperm.xlu1 %4175, %v1736_v40  }
 0x4b4   : > { %v5677_v59 = vpop.permute.xlu1 %1206 }
 0x4b6   : > { %4176 = vset.pattern.permute.xlu1 %v8104_v63  ;;  %v8147_v63 = vld [vmem:[#allocation65_spill] sm:$0xff] }
 0x4b7   : > { %1881 = vperm.xlu1 %4176, %v1724_v52   ;;  %v5844_v1 = vsub.s32 %v5438_v57, %v8147_v63 }
 0x4b8   : > { %v5680_v30 = vpop.permute.xlu1 %1220 }
 0x4bb   : > { %1905 = vperm.xlu1 %4176, %v1732_v32  }
 0x4bd   : > { %v5682_v36 = vpop.permute.xlu1 %1247 }
 0x4be   : > { %8105 = vst [vmem:[#allocation92_spill] sm:$0xff] %v5682_v36 }
 0x4bf   : > { %1917 = vperm.xlu1 %4176, %v1736_v40  }
 0x4c1   : > { %v5684_v62 = vpop.permute.xlu1 %1271 }
 0x4c2   : > { %8106 = vst [vmem:[#allocation93_spill] sm:$0xff] %v5684_v62 }
 0x4c3   : > { %4177 = vset.pattern.permute.xlu1 %v8107_v19 }
 0x4c4   : > { %1943 = vperm.xlu1 %4177, %v1724_v52   ;;  %v8112_v52 = vld [vmem:[#allocation5_spill] sm:$0xff] }
 0x4c5   : > { %v5687_v27 = vpop.permute.xlu1 %1283 }
 0x4c8   : > { %1967 = vperm.xlu1 %4177, %v1732_v32  }
 0x4ca   : > { %v5689_v31 = vpop.permute.xlu1 %1309 }
 0x4cb   : > { %8108 = vst [vmem:[#allocation94_spill] sm:$0xff] %v5689_v31 }
 0x4cc   : > { %1979 = vperm.xlu1 %4177, %v1736_v40  }
 0x4ce   : > { %v5691_v38 = vpop.permute.xlu1 %1333 }
 0x4cf   : > { %8109 = vst [vmem:[#allocation95_spill] sm:$0xff] %v5691_v38 }
 0x4d0   : > { %4178 = vset.pattern.permute.xlu1 %v7978_v21 }
 0x4d1   : > { %2370 = vperm.xlu1 %4178, %v5301_v35  }
 0x4d2   : > { %v5695_v28 = vpop.permute.xlu1 %1345 }
 0x4d5   : > { %2386 = vperm.xlu1 %4178, %v5317_v6  }
 0x4d7   : > { %v5698_v34 = vpop.permute.xlu1 %1371 }
 0x4d8   : > { %8110 = vst [vmem:[#allocation96_spill] sm:$0xff] %v5698_v34 }
 0x4d9   : > { %4180 = vset.pattern.permute.xlu1 %v8111_v7 }
 0x4da   : > { %2410 = vperm.xlu1 %4180, %v8112_v52  }
 0x4db   : > { %v5702_v32 = vpop.permute.xlu1 %1395 }
 0x4dc   : > { %8113 = vst [vmem:[#allocation97_spill] sm:$0xff] %v5702_v32 }
 0x4de   : > { %4182 = vset.pattern.permute.xlu1 %v8016_v47 }
 0x4df   : > { %2424 = vperm.xlu1 %4182, %v5280_v48   ;;  %v5706_v40 = vpop.permute.xlu1 %1407 }
 0x4e0   : > { %8114 = vst [vmem:[#allocation98_spill] sm:$0xff] %v5706_v40 }
 0x4e3   : > { %2428 = vperm.xlu1 %4182, %v5242_v18  }
 0x4e4   : > { %v5709_v21 = vpop.permute.xlu1 %1464 }
 0x4e5   : > { %8115 = vst [vmem:[#allocation99_spill] sm:$0xff] %v5709_v21 }
 0x4e7   : > { %2444 = vperm.xlu1 %4182, %v5256_v42  }
 0x4e8   : > { %v5712_v50 = vpop.permute.xlu1 %1492 }
 0x4e9   : > { %8116 = vst [vmem:[#allocation100_spill] sm:$0xff] %v5712_v50 }
 0x4eb   : > { %2456 = vperm.xlu1 %4182, %v5301_v35  }
 0x4ec   : > { %v5715_v7 = vpop.permute.xlu1 %1506 }
 0x4ed   : > { %8117 = vst [vmem:[#allocation101_spill] sm:$0xff] %v5715_v7 }
 0x4ef   : > { %2472 = vperm.xlu1 %4182, %v5317_v6  }
 0x4f1   : > { %v5718_v47 = vpop.permute.xlu1 %1533 }
 0x4f2   : > { %8118 = vst [vmem:[#allocation102_spill] sm:$0xff] %v5718_v47 }
 0x4f3   : > { %4184 = vset.pattern.permute.xlu1 %v8025_v15 }
 0x4f4   : > { %2496 = vperm.xlu1 %4184, %v8112_v52  }
 0x4f5   : > { %v5722_v49 = vpop.permute.xlu1 %1557 }
 0x4f6   : > { %8119 = vst [vmem:[#allocation103_spill] sm:$0xff] %v5722_v49  ;;  %v8144_v49 = vld [vmem:[#allocation28_spill] sm:$0xff] }
 0x4f7   : > { %v5816_v47 = vsub.s32 %v5438_v57, %v8144_v49 }
 0x4f8   : > { %4186 = vset.pattern.permute.xlu1 %v8018_v10  ;;  %v3765_v10 = vld [vmem:[%s330_s11] sm:$0xff] }
 0x4f9   : > { %2510 = vperm.xlu1 %4186, %v5280_v48   ;;  %v5726_v60 = vpop.permute.xlu1 %1569  ;;  %v8126_v48 = vld [vmem:[#allocation10_spill] sm:$0xff]  ;;  %v3989_v39 = vcombine.high %v3765_v10, %v3765_v10  ;;  %vm2349_vm12 = vcmp.eq.s32.totalorder %v5816_v47, 1 }
 0x4fa   : > { %8120 = vst [vmem:[#allocation104_spill] sm:$0xff] %v5726_v60 }
 0x4fb   : > { %3990 = vmatprep.subr.msk.bf16.mxu1 %vm7917_vm2, %v3989_v39 }
 0x4fd   : > { %2514 = vperm.xlu1 %4186, %v5242_v18  }
 0x4fe   : > { %v5730_v14 = vpop.permute.xlu1 %1595 }
 0x4ff   : > { %8122 = vst [vmem:[#allocation29_spill] sm:$0xff] %v5730_v14  ;;  %v3988_v14 = vcombine.low %v3765_v10, %v3765_v10 }
 0x501   : > { %2530 = vperm.xlu1 %4186, %v5256_v42   ;;  %v625_v42 = vmul.f32 %v4298_v24, %v8126_v48  ;;  %3808 = vmatpush1.bf16.xpose.msra.mxu1 %v3988_v14 }
 0x502   : > { %v5733_v20 = vpop.permute.xlu1 %1619 }
 0x503   : > { %8123 = vst [vmem:[#allocation105_spill] sm:$0xff] %v5733_v20 }
 0x505   : > { %2542 = vperm.xlu1 %4186, %v5301_v35  }
 0x506   : > { %v5736_v15 = vpop.permute.xlu1 %1631 }
 0x507   : > { %8124 = vst [vmem:[#allocation106_spill] sm:$0xff] %v5736_v15  ;;  %v8143_v15 = vld [vmem:[#allocation27_spill] sm:$0xff] }
 0x508   : > { %v5808_v20 = vsub.s32 %v5438_v57, %v8143_v15 }
 0x509   : > { %2558 = vperm.xlu1 %4186, %v5317_v6  }
 0x50b   : > { %v5743_v18 = vpop.permute.xlu1 %1657 }
 0x50c   : > { %8125 = vst [vmem:[#allocation107_spill] sm:$0xff] %v5743_v18 }
 0x50d   : > { %2595 = vrot.lane.b32.xlu1 %v625_v42, %s4321_s27 }
 0x50e   : > { %4188 = vset.pattern.permute.xlu1 %v8041_v29 }
 0x50f   : > { %v5749_v35 = vpop.permute.xlu1 %1681 }
 0x510   : > { %8127 = vst [vmem:[#allocation10_spill] sm:$0xff] %v5749_v35 }
 0x511   : > { %2618 = vperm.xlu1 %4188, %v8112_v52  }
 0x513   : > { %v5752_v6 = vpop.permute.xlu1 %1693 }
 0x514   : > { %8128 = vst [vmem:[#allocation108_spill] sm:$0xff] %v5752_v6 }
 0x515   : > { %4190 = vset.pattern.permute.xlu1 %v8070_v16 }
 0x518   : > { %v5755_v18 = vpop.permute.xlu1 %1750 }
 0x519   : > { %8129 = vst [vmem:[#allocation109_spill] sm:$0xff] %v5755_v18 }
 0x51c   : > { %v5757_v24 = vpop.permute.xlu1 %1778 }
 0x51d   : > { %8130 = vst [vmem:[#allocation110_spill] sm:$0xff] %v5757_v24 }
 0x520   : > { %v5759_v10 = vpop.permute.xlu1 %1792 }
 0x521   : > { %8131 = vst [vmem:[#allocation111_spill] sm:$0xff] %v5759_v10 }
 0x525   : > { %v5761_v48 = vpop.permute.xlu1 %1819 }
 0x526   : > { %8132 = vst [vmem:[#allocation112_spill] sm:$0xff] %v5761_v48 }
 0x529   : > { %v5763_v42 = vpop.permute.xlu1 %1843 }
 0x52a   : > { %8133 = vst [vmem:[#allocation113_spill] sm:$0xff] %v5763_v42  ;;  %v5786_v42 = vadd.s32 128, %v5438_v57 }
 0x52c   : > { %v5851_v44 = vsub.s32 %v5786_v42, %v8147_v63 }
 0x52d   : > { %v5765_v29 = vpop.permute.xlu1 %1855 }
 0x52e   : > { %8134 = vst [vmem:[#allocation114_spill] sm:$0xff] %v5765_v29 }
 0x532   : > { %v5767_v14 = vpop.permute.xlu1 %1881 }
 0x533   : > { %8135 = vst [vmem:[#allocation115_spill] sm:$0xff] %v5767_v14 }
 0x536   : > { %v5769_v39 = vpop.permute.xlu1 %1905 }
 0x537   : > { %8136 = vst [vmem:[#allocation116_spill] sm:$0xff] %v5769_v39  ;;  %v8141_v39 = vld [vmem:[#allocation20_spill] sm:$0xff] }
 0x53a   : > { %v5771_v35 = vpop.permute.xlu1 %1917 }
 0x53b   : > { %8137 = vst [vmem:[#allocation117_spill] sm:$0xff] %v5771_v35  ;;  %v5792_v35 = vsub.s32 %v5438_v57, %v8141_v39 }
 0x53d   : > { %vm2277_vm8 = vcmp.eq.s32.totalorder %v5792_v35, 12  ;;  %vm2295_vm4 = vcmp.eq.s32.totalorder %v5792_v35, 13 }
 0x53e   : > { %v2309_v60 = vsel %vm2295_vm4, %v5381_v41, 0.0  ;;  %vm2257_vm4 = vcmp.eq.s32.totalorder %v5808_v20, 1 }
 0x53f   : > { %v5773_v6 = vpop.permute.xlu1 %1943  ;;  %v5847_v17 = vsel %vm2257_vm4, %v8148_v23, 0.0  ;;  %vm2453_vm4 = vcmp.eq.s32.totalorder %v5844_v1, 12 }
 0x540   : > { %8138 = vst [vmem:[#allocation118_spill] sm:$0xff] %v5773_v6  ;;  %v8142_v6 = vld [vmem:[#allocation22_spill] sm:$0xff] }
 0x541   : > { %v2332_v29 = vsub.s32 %v5786_v42, %v8142_v6 }
 0x543   : > { %v5775_v16 = vpop.permute.xlu1 %1967  ;;  %vm2368_vm5 = vcmp.eq.s32.totalorder %v2332_v29, 12  ;;  %vm2384_vm13 = vcmp.eq.s32.totalorder %v2332_v29, 13  ;;  %vm2336_vm6 = vcmp.eq.s32.totalorder %v2332_v29, 0  ;;  %vm2352_vm10 = vcmp.eq.s32.totalorder %v2332_v29, 1 }
 0x544   : > { %8139 = vst [vmem:[#allocation119_spill] sm:$0xff] %v5775_v16  ;;  %v2238_v16 = vsub.s32 %v5786_v42, %v8141_v39  ;;  %v5812_v39 = vsub.s32 %v5786_v42, %v8143_v15  ;;  %v2396_v7 = vsel %vm2384_vm13, %v8146_v33, 0.0  ;;  %v2364_v2 = vsel %vm2352_vm10, %v5553_v53, 0.0 }
 0x545   : > { %v2380_v4 = vsel %vm2368_vm5, %v8150_v13, 0.0  ;;  %vm8154_vm5 = vcmp.eq.s32.totalorder %v5792_v35, 1 }
 0x546   : > { %vm2296_vm9 = vcmp.eq.s32.totalorder %v2238_v16, 13  ;;  %vm2258_vm7 = vcmp.eq.s32.totalorder %v5812_v39, 1  ;;  %vm8145_vm15 = vcmp.eq.s32.totalorder %v2238_v16, 12  ;;  %v2404_v37 = vadd.f32 %v2396_v7, %v2380_v4  ;;  %v8155_v4 = vld [vmem:[#allocation68_spill] sm:$0xff] }
 0x547   : > { %v5777_v18 = vpop.permute.xlu1 %1979  ;;  %v2310_v21 = vsel %vm2296_vm9, %v5381_v41, 0.0  ;;  %v2292_v50 = vsel %vm8145_vm15, %v5376_v56, 0.0  ;;  %vm2240_vm15 = vcmp.eq.s32.totalorder %v5812_v39, 0  ;;  %vm8153_vm10 = vcmp.eq.s32.totalorder %v2238_v16, 1 }
 0x548   : > { %8140 = vst [vmem:[#allocation120_spill] sm:$0xff] %v5777_v18  ;;  %v5798_v18 = vsub.s32 %v5438_v57, %v8142_v6  ;;  %v5820_v6 = vsub.s32 %v5786_v42, %v8144_v49  ;;  %v2291_v49 = vsel %vm2277_vm8, %v5376_v56, 0.0  ;;  %v2318_v12 = vadd.f32 %v2310_v21, %v2292_v50  ;;  %v5856_v56 = vpop.permute.xlu0 %2526  ;;  %v8149_v50 = vld [vmem:[#allocation62_spill] sm:$0xff] }
 0x549   : > { %v2317_v41 = vadd.f32 %v2309_v60, %v2291_v49  ;;  %vm2239_vm8 = vcmp.eq.s32.totalorder %v5808_v20, 0  ;;  %v2272_v49 = vsel %vm2258_vm7, %v8148_v23, 0.0  ;;  %v5862_v21 = vsel %vm2349_vm12, %v8149_v50, 0.0 }
 0x54a   : > { %vm2383_vm3 = vcmp.eq.s32.totalorder %v5798_v18, 13  ;;  %vm2335_vm2 = vcmp.eq.s32.totalorder %v5798_v18, 0  ;;  %vm2351_vm1 = vcmp.eq.s32.totalorder %v5798_v18, 1  ;;  %vm2350_vm9 = vcmp.eq.s32.totalorder %v5820_v6, 1 }
 0x54b   : > { %vm8151_vm13 = vcmp.eq.s32.totalorder %v5798_v18, 12  ;;  %v2395_v0 = vsel %vm2383_vm3, %v8146_v33, 0.0  ;;  %v2274_v25 = vsel %vm8153_vm10, %v8152_v43, 0.0  ;;  %v2348_v23 = vsel %vm2336_vm6, %v5526_v46, 0.0 }
 0x54c   : > { %v5779_v24 = vpop.permute.xlu1 %2370  ;;  %v2379_v63 = vsel %vm8151_vm13, %v8150_v13, 0.0  ;;  %vm2469_vm13 = vcmp.eq.s32.totalorder %v5844_v1, 13  ;;  %v2273_v13 = vsel %vm8154_vm5, %v8152_v43, 0.0  ;;  %v2400_v33 = vadd.f32 %v2364_v2, %v2348_v23  ;;  %v8159_v23 = vld [vmem:[#allocation70_spill] sm:$0xff] }
 0x54d   : > { %vm2470_vm3 = vcmp.eq.s32.totalorder %v5851_v44, 13  ;;  %v2481_v7 = vsel %vm2469_vm13, %v8155_v4, 0.0  ;;  %vm8157_vm10 = vcmp.eq.s32.totalorder %v2238_v16, 0  ;;  %v2363_v34 = vsel %vm2351_vm1, %v5553_v53, 0.0 }
 0x54e   : > { %v2256_v29 = vsel %vm8157_vm10, %v8156_v55, 0.0  ;;  %vm2333_vm6 = vcmp.eq.s32.totalorder %v5816_v47, 0  ;;  %vm2334_vm7 = vcmp.eq.s32.totalorder %v5820_v6, 0  ;;  %vm2366_vm5 = vcmp.eq.s32.totalorder %v5820_v6, 12 }
 0x54f   : > { %v2482_v2 = vsel %vm2470_vm3, %v8155_v4, 0.0  ;;  %vm8158_vm13 = vcmp.eq.s32.totalorder %v5792_v35, 0  ;;  %v5902_v31 = vsub.s32 %v5438_v57, %v8159_v23  ;;  %v2314_v53 = vadd.f32 %v2274_v25, %v2256_v29  ;;  %v2547_v25 = vpop.permute.xlu0 %2546  ;;  %v8160_v35 = vld [vmem:[#allocation67_spill] sm:$0xff] }
 0x550   : > { %v5781_v10 = vpop.permute.xlu1 %2386  ;;  %v2255_v16 = vsel %vm8158_vm13, %v8156_v55, 0.0  ;;  %vm2293_vm1 = vcmp.eq.s32.totalorder %v5808_v20, 13  ;;  %vm2294_vm10 = vcmp.eq.s32.totalorder %v5812_v39, 13  ;;  %vm2454_vm12 = vcmp.eq.s32.totalorder %v5851_v44, 12 }
 0x551   : > { %v5909_v32 = vsub.s32 %v5786_v42, %v8159_v23  ;;  %v2313_v4 = vadd.f32 %v2273_v13, %v2255_v16  ;;  %v2347_v55 = vsel %vm2335_vm2, %v5526_v46, 0.0  ;;  %vm2275_vm3 = vcmp.eq.s32.totalorder %v5808_v20, 12 }
 0x552   : > { %v2465_v29 = vsel %vm2453_vm4, %v8160_v35, 0.0  ;;  %v2466_v38 = vsel %vm2454_vm12, %v8160_v35, 0.0  ;;  %v2399_v36 = vadd.f32 %v2363_v34, %v2347_v55  ;;  %v2408_v62 = vadd.f32 %v2404_v37, %v2400_v33 }
 0x553   : > { %v2362_v13 = vsel %vm2350_vm9, %v8149_v50, 0.0  ;;  %v2403_v16 = vadd.f32 %v2395_v0, %v2379_v63  ;;  %v5923_v18 = vadd.f32 %v2481_v7, %v2465_v29  ;;  %v5925_v46 = vadd.f32 %v2482_v2, %v2466_v38 }
 0x554   : > { %v2322_v23 = vadd.f32 %v2318_v12, %v2314_v53  ;;  %v2253_v40 = vsel %vm2239_vm8, %v5572_v8, 0.0  ;;  %v2254_v35 = vsel %vm2240_vm15, %v5572_v8, 0.0  ;;  %v5934_v34 = vadd.f32 %v2317_v41, %v2313_v4 }
 0x555   : > { %v5783_v48 = vpop.permute.xlu1 %2410  ;;  %vm2540_vm9 = vcmp.eq.s32.totalorder %v5909_v32, 12  ;;  %vm2555_vm12 = vcmp.eq.s32.totalorder %v5902_v31, 13  ;;  %vm2556_vm4 = vcmp.eq.s32.totalorder %v5909_v32, 13  ;;  %v5939_v0 = vadd.f32 %v2403_v16, %v2399_v36  ;;  %v2563_v36 = vpop.permute.xlu0 %2562 }
 0x556   : > { %vm8161_vm8 = vcmp.eq.s32.totalorder %v5816_v47, 13  ;;  %vm8162_vm15 = vcmp.eq.s32.totalorder %v5820_v6, 13  ;;  %vm2437_vm2 = vcmp.eq.s32.totalorder %v5844_v1, 1  ;;  %v5949_v12 = vadd.f32 %v2408_v62, %v2322_v23 }
 0x557   : > { %v2393_v38 = vsel %vm8161_vm8, %v5781_v10, 0.0  ;;  %v2394_v8 = vsel %vm8162_vm15, %v5781_v10, 0.0  ;;  %v5952_v41 = vadd.f32 %v5847_v17, %v2253_v40  ;;  %v5954_v50 = vadd.f32 %v2272_v49, %v2254_v35  ;;  %v8166_v35 = vld [vmem:[#allocation66_spill] sm:$0xff] }
 0x558   : > { %v5958_v63 = vsub.s32 %v5438_v57, %v5783_v48  ;;  %v5962_v33 = vsub.s32 %v5786_v42, %v5783_v48  ;;  %v2345_v10 = vsel %vm2333_vm6, %v5592_v26, 0.0  ;;  %v2346_v17 = vsel %vm2334_vm7, %v5592_v26, 0.0 }
 0x559   : > { %vm8163_vm8 = vcmp.eq.s32.totalorder %v5816_v47, 12  ;;  %v2378_v40 = vsel %vm2366_vm5, %v5779_v24, 0.0  ;;  %vm2421_vm15 = vcmp.eq.s32.totalorder %v5844_v1, 0  ;;  %vm2422_vm13 = vcmp.eq.s32.totalorder %v5851_v44, 0 }
 0x55a   : > { %v5788_v14 = vpop.permute.xlu1 %2424  ;;  %v2377_v62 = vsel %vm8163_vm8, %v5779_v24, 0.0  ;;  %v2307_v48 = vsel %vm2293_vm1, %v5587_v51, 0.0  ;;  %v2308_v26 = vsel %vm2294_vm10, %v5587_v51, 0.0  ;;  %v2402_v7 = vadd.f32 %v2394_v8, %v2378_v40 }
 0x55b   : > { %v2401_v49 = vadd.f32 %v2393_v38, %v2377_v62  ;;  %vm2523_vm7 = vcmp.eq.s32.totalorder %v5902_v31, 1  ;;  %v2289_v24 = vsel %vm2275_vm3, %v5580_v3, 0.0  ;;  %vm8164_vm5 = vcmp.eq.s32.totalorder %v5812_v39, 12 }
 0x55c   : > { %v2290_v6 = vsel %vm8164_vm5, %v5580_v3, 0.0  ;;  %v2567_v2 = vsel %vm2555_vm12, %v2563_v36, 0.0  ;;  %v2568_v51 = vsel %vm2556_vm4, %v2563_v36, 0.0  ;;  %vm2508_vm1 = vcmp.eq.s32.totalorder %v5909_v32, 0 }
 0x55d   : > { %v2397_v53 = vadd.f32 %v5862_v21, %v2345_v10  ;;  %v2398_v4 = vadd.f32 %v2362_v13, %v2346_v17  ;;  %vm2435_vm10 = vcmp.eq.s32.totalorder %v5958_v63, 1  ;;  %vm2436_vm8 = vcmp.eq.s32.totalorder %v5962_v33, 1 }
 0x55e   : > { %v5802_v19 = vpop.permute.xlu1 %2428  ;;  %vm8165_vm6 = vcmp.eq.s32.totalorder %v5902_v31, 12  ;;  %v2552_v20 = vsel %vm2540_vm9, %v2547_v25, 0.0  ;;  %v6007_v39 = vadd.f32 %v2307_v48, %v2289_v24  ;;  %v6009_v55 = vadd.f32 %v2308_v26, %v2290_v6 }
 0x55f   : > { %v2551_v3 = vsel %vm8165_vm6, %v2547_v25, 0.0  ;;  %v2576_v16 = vadd.f32 %v2568_v51, %v2552_v20  ;;  %v6011_v21 = vadd.f32 %v2401_v49, %v2397_v53  ;;  %v6013_v13 = vadd.f32 %v2402_v7, %v2398_v4  ;;  %v6049_v51 = vpop.permute.xlu0 %1170 }
 0x560   : > { %v2575_v29 = vadd.f32 %v2567_v2, %v2551_v3  ;;  %vm2419_vm12 = vcmp.eq.s32.totalorder %v5958_v63, 0  ;;  %vm2420_vm4 = vcmp.eq.s32.totalorder %v5962_v33, 0  ;;  %v2447_v38 = vsel %vm2435_vm10, %v8166_v35, 0.0 }
 0x561   : > { %v2448_v8 = vsel %vm2436_vm8, %v8166_v35, 0.0  ;;  %vm8167_vm9 = vcmp.eq.s32.totalorder %v5851_v44, 1  ;;  %vm2451_vm6 = vcmp.eq.s32.totalorder %v5958_v63, 12  ;;  %vm2452_vm5 = vcmp.eq.s32.totalorder %v5962_v33, 12 }
 0x562   : > { %v5827_v15 = vpop.permute.xlu1 %2444  ;;  %v2431_v10 = vsel %vm2419_vm12, %v5788_v14, 0.0  ;;  %vm2467_vm3 = vcmp.eq.s32.totalorder %v5958_v63, 13  ;;  %v2432_v40 = vsel %vm2420_vm4, %v5788_v14, 0.0  ;;  %v2433_v48 = vsel %vm2421_vm15, %v5802_v19, 0.0 }
 0x563   : > { %v2449_v25 = vsel %vm2437_vm2, %v5827_v15, 0.0  ;;  %v2450_v36 = vsel %vm8167_vm9, %v5827_v15, 0.0  ;;  %v2434_v15 = vsel %vm2422_vm13, %v5802_v19, 0.0  ;;  %vm2468_vm2 = vcmp.eq.s32.totalorder %v5962_v33, 13 }
 0x564   : > { %v2485_v49 = vadd.f32 %v2449_v25, %v2433_v48  ;;  %v2486_v7 = vadd.f32 %v2450_v36, %v2434_v15  ;;  %vm8168_vm10 = vcmp.eq.s32.totalorder %v5909_v32, 1  ;;  %v2483_v14 = vadd.f32 %v2447_v38, %v2431_v10  ;;  %v2598_v48 = vpop.permute.xlu0 %2597 }
 0x565   : > { %vm8169_vm8 = vcmp.eq.s32.totalorder %v5902_v31, 0  ;;  %v2484_v53 = vadd.f32 %v2448_v8, %v2432_v40 }
 0x566   : > { %v5858_v60 = vpop.permute.xlu1 %2456  ;;  %v2493_v20 = vadd.f32 %v5923_v18, %v2485_v49  ;;  %v2494_v35 = vadd.f32 %v5925_v46, %v2486_v7  ;;  %v2319_v7 = vadd.f32 %v6007_v39, %v5952_v41 }
 0x567   : > { %v2463_v4 = vsel %vm2451_vm6, %v5858_v60, 0.0 }
 0x56a   : > { %v5894_v43 = vpop.permute.xlu1 %2472 }
 0x56b   : > { %v2479_v6 = vsel %vm2467_vm3, %v5894_v43, 0.0  ;;  %v2480_v1 = vsel %vm2468_vm2, %v5894_v43, 0.0  ;;  %v2464_v43 = vsel %vm2452_vm5, %v5858_v60, 0.0  ;;  %vm8179_vm5 = vcmask 130048  }
 0x56c   : > { %v2487_v31 = vadd.f32 %v2479_v6, %v2463_v4  ;;  %v8172_v4 = vld [vmem:[#allocation36_spill] sm:$0xff] }
 0x56f   : > { %v2497_v37 = vpop.permute.xlu1 %2496 }
 0x570   : > { %v2501_v17 = vsub.s32 %v5438_v57, %v2497_v37  ;;  %v2502_v62 = vsub.s32 %v5786_v42, %v2497_v37 }
 0x572   : > { %vm2521_vm13 = vcmp.eq.s32.totalorder %v2501_v17, 1  ;;  %vm2522_vm15 = vcmp.eq.s32.totalorder %v2502_v62, 1  ;;  %vm2537_vm3 = vcmp.eq.s32.totalorder %v2501_v17, 12  ;;  %vm2538_vm12 = vcmp.eq.s32.totalorder %v2502_v62, 12 }
 0x573   : > { %v2533_v38 = vsel %vm2521_vm13, %v5856_v56, 0.0  ;;  %v2534_v63 = vsel %vm2522_vm15, %v5856_v56, 0.0  ;;  %vm2553_vm4 = vcmp.eq.s32.totalorder %v2501_v17, 13  ;;  %vm2554_vm9 = vcmp.eq.s32.totalorder %v2502_v62, 13 }
 0x574   : > { %v5984_v47 = vpop.permute.xlu1 %2510 }
 0x578   : > { %v2515_v23 = vpop.permute.xlu1 %2514 }
 0x579   : > { %v2520_v44 = vsel %vm2508_vm1, %v2515_v23, 0.0  ;;  %v2519_v19 = vsel %vm8169_vm8, %v2515_v23, 0.0  ;;  %v2488_v23 = vadd.f32 %v2480_v1, %v2464_v43  ;;  %vm2506_vm1 = vcmp.eq.s32.totalorder %v2502_v62, 0  ;;  %v8170_v1 = vld [vmem:[#allocation39_spill] sm:$0xff] }
 0x57a   : > { %v2518_v60 = vsel %vm2506_vm1, %v5984_v47, 0.0  ;;  %v2610_v43 = vmul.f32 %v2598_v48, %v8172_v4  ;;  %vm8207_vm8 = vcmask 523264  }
 0x57c   : > { %v2531_v26 = vpop.permute.xlu1 %2530 }
 0x57d   : > { %v2535_v24 = vsel %vm2523_vm7, %v2531_v26, 0.0  ;;  %v2536_v37 = vsel %vm8168_vm10, %v2531_v26, 0.0  ;;  %vm2505_vm7 = vcmp.eq.s32.totalorder %v2501_v17, 0  ;;  %v2570_v26 = vadd.f32 %v2534_v63, %v2518_v60  ;;  %v8176_v63 = vld [vmem:[#allocation38_spill] sm:$0xff]  ;;  %v8178_v60 = vld [vmem:[#allocation37_spill] sm:$0xff] }
 0x57e   : > { %v2572_v2 = vadd.f32 %v2536_v37, %v2520_v44  ;;  %v2571_v3 = vadd.f32 %v2535_v24, %v2519_v19  ;;  %v2517_v8 = vsel %vm2505_vm7, %v5984_v47, 0.0  ;;  %v2320_v47 = vadd.f32 %v6009_v55, %v5954_v50  ;;  %v8171_v19 = vld [vmem:[#allocation54_spill] sm:$0xff]  ;;  %vm8209_vm7 = vmmov %vm8207_vm8 }
 0x57f   : > { %v2569_v15 = vadd.f32 %v2533_v38, %v2517_v8  ;;  %v2492_v17 = vadd.f32 %v2488_v23, %v2484_v53  ;;  %v2581_v50 = vadd.f32 %v6011_v21, %v2319_v7  ;;  %vm8177_vm6 = vnez %v8176_v63  ;;  %v8188_v7 = vld [vmem:[#allocation57_spill] sm:$0xff] }
 0x580   : > { %v2543_v32 = vpop.permute.xlu1 %2542  ;;  %v2580_v33 = vadd.f32 %v2576_v16, %v2572_v2  ;;  %v2579_v25 = vadd.f32 %v2575_v29, %v2571_v3  ;;  %v2491_v29 = vadd.f32 %v2487_v31, %v2483_v14  ;;  %v2583_v3 = vadd.f32 %v5939_v0, %v5934_v34  ;;  %v8175_v31 = vld [vmem:[#allocation50_spill] sm:$0xff] }
 0x581   : > { %v2549_v46 = vsel %vm2537_vm3, %v2543_v32, 0.0  ;;  %v2550_v36 = vsel %vm2538_vm12, %v2543_v32, 0.0  ;;  %v2582_v41 = vadd.f32 %v6013_v13, %v2320_v47  ;;  %v2602_v23 = vmul.f32 %v2598_v48, %v8175_v31 }
 0x582   : > { %v2588_v16 = vadd.f32 %v2580_v33, %v2494_v35  ;;  %v2587_v6 = vadd.f32 %v2579_v25, %v2493_v20  ;;  %v6090_v8 = vsel %vm8177_vm6, %v2610_v43, 0.0  ;;  %v2614_v33 = vmul.f32 %v2598_v48, %v8178_v60  ;;  %v8201_v43 = vld [vmem:[#allocation31_spill] sm:$0xff] }
 0x583   : > { %v2604_v25 = vsel %vm5234_vm11, %v2602_v23, 0.0  ;;  %vm8189_vm13 = vnez %v8188_v7 }
 0x584   : > { %v2559_v18 = vpop.permute.xlu1 %2558  ;;  %v2592_v35 = vadd.f32 %v2588_v16, %v5949_v12  ;;  %v2591_v21 = vadd.f32 %v2587_v6, %v2583_v3  ;;  %v8191_v16 = vld [vmem:[#allocation2_spill] sm:$0xff]  ;;  %v8195_v6 = vld [vmem:[#allocation60_spill] sm:$0xff] }
 0x585   : > { %v2565_v10 = vsel %vm2553_vm4, %v2559_v18, 0.0  ;;  %v2566_v40 = vsel %vm2554_vm9, %v2559_v18, 0.0  ;;  %v8181_v18 = vld [vmem:[#allocation51_spill] sm:$0xff]  ;;  %v8202_v3 = vld [vmem:[#allocation30_spill] sm:$0xff] }
 0x586   : > { %v2573_v49 = vadd.f32 %v2565_v10, %v2549_v46  ;;  %v2574_v56 = vadd.f32 %v2566_v40, %v2550_v36  ;;  %v2606_v46 = vmul.f32 %v2598_v48, %v8181_v18  ;;  %v8182_v36 = vld [vmem:[#allocation40_spill] sm:$0xff]  ;;  %v8184_v40 = vld [vmem:[#allocation53_spill] sm:$0xff] }
 0x587   : > { %vm8183_vm2 = vnez %v8182_v36  ;;  %vm8185_vm10 = vnez %v8184_v40  ;;  %v8190_v48 = vld [vmem:[#allocation56_spill] sm:$0xff] }
 0x588   : > { %v2577_v62 = vadd.f32 %v2573_v49, %v2569_v15  ;;  %v2578_v24 = vadd.f32 %v2574_v56, %v2570_v26  ;;  %v2596_v37 = vpop.permute.xlu1 %2595  ;;  %v6100_v10 = vsel %vm8183_vm2, %v2614_v33, 0.0  ;;  %v2608_v15 = vsel %vm8185_vm10, %v2606_v46, 0.0  ;;  %v8186_v26 = vld [vmem:[#allocation55_spill] sm:$0xff]  ;;  %v8233_v36 = vld [vmem:[#allocation96_spill] sm:$0xff] }
 0x589   : > { %v2605_v44 = vmul.f32 %v2596_v37, %v8170_v1  ;;  %v2601_v2 = vmul.f32 %v2596_v37, %v8171_v19  ;;  %v2609_v49 = vmul.f32 %v2596_v37, %v8186_v26  ;;  %v8187_v56 = vmov 37   ;;  %v8210_v46 = vld [vmem:[#allocation7_spill] sm:$0xff] }
 0x58a   : > { %v2586_v39 = vadd.f32 %v2578_v24, %v2492_v17  ;;  %v2585_v55 = vadd.f32 %v2577_v62, %v2491_v29  ;;  %v2613_v29 = vmul.f32 %v2596_v37, %v8190_v48  ;;  %v8192_v17 = vld [vmem:[#allocation58_spill] sm:$0xff]  ;;  %v8194_v24 = vld [vmem:[#allocation3_spill] sm:$0xff]  ;;  %v8196_v37 = vld [vmem:[#allocation44_spill] sm:$0xff]  ;;  %v8208_v33 = vmov 40  }
 0x58b   : > { %v6078_v53 = vsel %vm5106_vm0, %v2605_v44, 0.0  ;;  %v6082_v20 = vsel %vm8031_vm14, %v2601_v2, 0.0  ;;  %v2611_v47 = vsel %vm8189_vm13, %v2609_v49, 0.0  ;;  %vm8193_vm15 = vnez %v8192_v17  ;;  %v8197_v44 = vld [vmem:[#allocation45_spill] sm:$0xff] }
 0x58c   : > { %2651 = vperm.xlu0 %4189, %v6078_v53   ;;  %2633 = vperm.xlu1 %4190, %v6082_v20   ;;  %v2590_v34 = vadd.f32 %v2586_v39, %v2582_v41  ;;  %v2589_v0 = vadd.f32 %v2585_v55, %v2581_v50  ;;  %v2615_v62 = vsel %vm8193_vm15, %v2613_v29, 0.0  ;;  %v8198_v2 = vmov 38   ;;  %v8203_v39 = vld [vmem:[#allocation6_spill] sm:$0xff] }
 0x58e   : > { %v3758_v13 = vpack.c.bf16 %v2592_v35, %v2590_v34  ;;  %v3757_v38 = vpack.c.bf16 %v2591_v21, %v2589_v0  ;;  %v8205_v35 = vld [vmem:[#allocation14_spill] sm:$0xff]  ;;  %v6158_v34 = vpop.permute.xlu0 %2621  ;;  %v8206_v0 = vld [vmem:[#allocation12_spill] sm:$0xff] }
 0x590   : > { %3991 = vmatprep.mubr.msk.bf16.mxu1 %vm8179_vm5, %v3758_v13  ;;  %2674 = vperm.xlu0 %4189, %v6090_v8   ;;  %v2004_v13 = vld [vmem:[%s325_s15] sm:$0xf] }
 0x591   : > { %2638 = vperm.xlu1 %4190, %v2604_v25   ;;  %3826 = vmatmul.mubr.bf16.vlgmr.msra.gmra.mxu1 %v3757_v38 }
 0x592   : > { %4044 = vmatprep.subr.msk.bf16.mxu0 %vm8207_vm8, %v2004_v13  ;;  %v6168_v38 = vpop.permute.xlu0 %1192 }
 0x594   : > { %2692 = vperm.xlu0 %4189, %v6100_v10  }
 0x595   : > { %2656 = vperm.xlu1 %4190, %v2608_v15  }
 0x596   : > { %v6176_v49 = vpop.permute.xlu0 %1211 }
 0x598   : > { %4191 = vset.pattern.permute.xlu0 %v8187_v56 }
 0x599   : > { %2669 = vperm.xlu1 %4190, %v2611_v47   ;;  %1240 = vperm.xlu0 %4191, %v8191_v16  }
 0x59d   : > { %2687 = vperm.xlu1 %4190, %v2615_v62   ;;  %2715 = vperm.xlu0 %4191, %v8194_v24  }
 0x5a1   : > { %4192 = vset.pattern.permute.xlu1 %v8187_v56  ;;  %4193 = vset.pattern.permute.xlu0 %v8073_v22  ;;  %v1226_v56 = vpop.permute.xlu0 %1225 }
 0x5a2   : > { %2712 = vperm.xlu1 %4192, %v8112_v52   ;;  %1259 = vperm.xlu0 %4193, %v8195_v6  }
 0x5a6   : > { %4194 = vset.pattern.permute.xlu1 %v8073_v22  ;;  %1275 = vperm.xlu0 %4193, %v8196_v37   ;;  %v8199_v22 = vmov 39  }
 0x5a7   : > { %2726 = vperm.xlu1 %4194, %v6082_v20  }
 0x5aa   : > { %1287 = vperm.xlu0 %4193, %v8197_v44  }
 0x5ab   : > { %2730 = vperm.xlu1 %4194, %v2604_v25  }
 0x5ae   : > { %2742 = vperm.xlu0 %4193, %v6078_v53  }
 0x5af   : > { %2746 = vperm.xlu1 %4194, %v2608_v15  }
 0x5b2   : > { %2762 = vperm.xlu0 %4193, %v6090_v8  }
 0x5b3   : > { %2758 = vperm.xlu1 %4194, %v2611_v47  }
 0x5b6   : > { %2778 = vperm.xlu0 %4193, %v6100_v10  }
 0x5b7   : > { %2774 = vperm.xlu1 %4194, %v2615_v62  }
 0x5ba   : > { %4195 = vset.pattern.permute.xlu0 %v8198_v2 }
 0x5bb   : > { %4196 = vset.pattern.permute.xlu1 %v8198_v2  ;;  %1302 = vperm.xlu0 %4195, %v8191_v16  }
 0x5bc   : > { %2798 = vperm.xlu1 %4196, %v8112_v52  }
 0x5bf   : > { %2801 = vperm.xlu0 %4195, %v8194_v24  }
 0x5c0   : > { %4198 = vset.pattern.permute.xlu1 %v8075_v54 }
 0x5c1   : > { %2812 = vperm.xlu1 %4198, %v6082_v20  }
 0x5c3   : > { %4197 = vset.pattern.permute.xlu0 %v8075_v54  ;;  %v8200_v54 = vld [vmem:[#allocation32_spill] sm:$0xff] }
 0x5c4   : > { %1321 = vperm.xlu0 %4197, %v8195_v6   ;;  %4299 = vrcp.f32 %v8200_v54 }
 0x5c5   : > { %2816 = vperm.xlu1 %4198, %v2604_v25   ;;  %4301 = vrcp.f32 %v8201_v43  ;;  %v8212_v43 = vmov 42  }
 0x5c6   : > { %4303 = vrcp.f32 %v8202_v3 }
 0x5c8   : > { %1337 = vperm.xlu0 %4197, %v8196_v37  }
 0x5c9   : > { %2832 = vperm.xlu1 %4198, %v2608_v15  }
 0x5cc   : > { %1349 = vperm.xlu0 %4197, %v8197_v44  }
 0x5cd   : > { %2844 = vperm.xlu1 %4198, %v2611_v47  }
 0x5d0   : > { %2828 = vperm.xlu0 %4197, %v6078_v53  }
 0x5d1   : > { %2860 = vperm.xlu1 %4198, %v2615_v62   ;;  %v4300_v41 = vpop.eup %4299 }
 0x5d2   : > { %v688_v50 = vmul.f32 %v4300_v41, %v8203_v39  ;;  %v4302_v55 = vpop.eup %4301 }
 0x5d3   : > { %v747_v23 = vmul.f32 %v4302_v55, %v8205_v35  ;;  %v8214_v35 = vld [vmem:[#allocation35_spill] sm:$0xff] }
 0x5d4   : > { %2848 = vperm.xlu0 %4197, %v6090_v8   ;;  %vm8215_vm1 = vnez %v8214_v35 }
 0x5d5   : > { %4200 = vset.pattern.permute.xlu1 %v8199_v22 }
 0x5d6   : > { %2884 = vperm.xlu1 %4200, %v8112_v52  }
 0x5d8   : > { %2864 = vperm.xlu0 %4197, %v6100_v10  }
 0x5da   : > { %4202 = vset.pattern.permute.xlu1 %v8079_v9 }
 0x5db   : > { %2898 = vperm.xlu1 %4202, %v6082_v20   ;;  %v8204_v20 = vld [vmem:[#allocation33_spill] sm:$0xff] }
 0x5dc   : > { %4199 = vset.pattern.permute.xlu0 %v8199_v22  ;;  %4305 = vrcp.f32 %v8204_v20 }
 0x5dd   : > { %1364 = vperm.xlu0 %4199, %v8191_v16  }
 0x5df   : > { %2902 = vperm.xlu1 %4202, %v2604_v25   ;;  %v2024_v25 = vsel %vm8209_vm7, %v2004_v13, 0  ;;  %v8217_v13 = vld [vmem:[#allocation46_spill] sm:$0xff] }
 0x5e0   : > { %4035 = vmatpush3.bf16.xpose.msra.mxu0 %v2024_v25 }
 0x5e1   : > { %2887 = vperm.xlu0 %4199, %v8194_v24  }
 0x5e3   : > { %2918 = vperm.xlu1 %4202, %v2608_v15  }
 0x5e5   : > { %4201 = vset.pattern.permute.xlu0 %v8079_v9  ;;  %v4304_v9 = vpop.eup %4303 }
 0x5e6   : > { %1383 = vperm.xlu0 %4201, %v8195_v6   ;;  %v686_v21 = vmul.f32 %v4304_v9, %v8206_v0 }
 0x5e7   : > { %2930 = vperm.xlu1 %4202, %v2611_v47   ;;  %v6180_v47 = vpop.permute.xlu1 %2618 }
 0x5ea   : > { %1399 = vperm.xlu0 %4201, %v8196_v37   ;;  %v8211_v37 = vmov 41  }
 0x5eb   : > { %2985 = vrot.lane.b32.xlu1 %v688_v50, %s4321_s27  ;;  %v8213_v50 = vld [vmem:[#allocation34_spill] sm:$0xff] }
 0x5ec   : > { %v1440_v55 = vmul.f32 %v5312_v5, %v8213_v50  ;;  %v8220_v50 = vld [vmem:[#allocation9_spill] sm:$0xff] }
 0x5ee   : > { %1411 = vperm.xlu0 %4201, %v8197_v44  }
 0x5ef   : > { %3371 = vrot.lane.b32.xlu1 %v747_v23, %s4321_s27  ;;  %v6222_v23 = vsel %vm8215_vm1, %v1440_v55, 0.0  ;;  %v8219_v55 = vld [vmem:[#allocation8_spill] sm:$0xff] }
 0x5f0   : > { %8216 = vst [vmem:[#allocation20_spill] sm:$0xff] %v6222_v23  ;;  %v1172_v35 = vsub.s32 %v5438_v57, %v8219_v55 }
 0x5f2   : > { %2914 = vperm.xlu0 %4201, %v6078_v53   ;;  %v4306_v53 = vpop.eup %4305  ;;  %vm1188_vm3 = vcmp.eq.s32.totalorder %v1172_v35, 1  ;;  %vm1174_vm12 = vcmp.eq.s32.totalorder %v1172_v35, 0  ;;  %vm1202_vm4 = vcmp.eq.s32.totalorder %v1172_v35, 8  ;;  %vm1216_vm9 = vcmp.eq.s32.totalorder %v1172_v35, 9 }
 0x5f3   : > { %2946 = vperm.xlu1 %4202, %v2615_v62   ;;  %v749_v15 = vmul.f32 %v4306_v53, %v8210_v46 }
 0x5f6   : > { %2983 = vrot.lane.b32.xlu0 %v686_v21, %s4321_s27 }
 0x5f7   : > { %4204 = vset.pattern.permute.xlu1 %v8208_v33 }
 0x5f8   : > { %3006 = vperm.xlu1 %4204, %v8112_v52  }
 0x5fa   : > { %2934 = vperm.xlu0 %4201, %v6090_v8  }
 0x5fc   : > { %4206 = vset.pattern.permute.xlu1 %v8082_v11 }
 0x5fe   : > { %3373 = vrot.lane.b32.xlu0 %v749_v15, %s4321_s27 }
 0x602   : > { %2950 = vperm.xlu0 %4201, %v6100_v10  }
 0x606   : > { %4203 = vset.pattern.permute.xlu0 %v8208_v33 }
 0x607   : > { %1456 = vperm.xlu0 %4203, %v8191_v16   ;;  %v6184_v29 = vpop.permute.xlu0 %2651  ;;  %v6186_v8 = vpop.permute.xlu1 %2633 }
 0x60b   : > { %3009 = vperm.xlu0 %4203, %v8194_v24   ;;  %v6189_v62 = vpop.permute.xlu0 %2674 }
 0x60c   : > { %v6191_v6 = vpop.permute.xlu1 %2638 }
 0x60f   : > { %4205 = vset.pattern.permute.xlu0 %v8211_v37  ;;  %v6194_v10 = vpop.permute.xlu0 %2692  ;;  %v8222_v37 = vld [vmem:[#allocation13_spill] sm:$0xff] }
 0x610   : > { %v6196_v44 = vpop.permute.xlu1 %2656  ;;  %1526 = vperm.xlu0 %4205, %v8191_v16  }
 0x614   : > { %v6199_v2 = vpop.permute.xlu1 %2669  ;;  %3100 = vperm.xlu0 %4205, %v8112_v52   ;;  %v6202_v22 = vpop.permute.xlu0 %1240  ;;  %v8221_v52 = vld [vmem:[#allocation11_spill] sm:$0xff] }
 0x618   : > { %v6204_v54 = vpop.permute.xlu1 %2687  ;;  %4207 = vset.pattern.permute.xlu0 %v8212_v43  ;;  %v6207_v3 = vpop.permute.xlu0 %2715  ;;  %v6253_v43 = vsub.s32 %v5438_v57, %v8221_v52  ;;  %v6272_v52 = vsub.s32 %v5438_v57, %v6158_v34 }
 0x619   : > { %1588 = vperm.xlu0 %4207, %v8191_v16   ;;  %v6249_v16 = vsub.s32 %v5438_v57, %v8220_v50 }
 0x61a   : > { %vm1342_vm10 = vcmp.eq.s32.totalorder %v6253_v43, 9  ;;  %vm2647_vm5 = vcmp.eq.s32.totalorder %v6272_v52, 1 }
 0x61b   : > { %vm1280_vm8 = vcmp.eq.s32.totalorder %v6249_v16, 9 }
 0x61d   : > { %v6210_v41 = vpop.permute.xlu1 %2712  ;;  %3189 = vperm.xlu0 %4207, %v8194_v24   ;;  %v6213_v39 = vpop.permute.xlu0 %1259  ;;  %v1173_v24 = vsub.s32 %v5438_v57, %v6049_v51 }
 0x61f   : > { %vm1175_vm7 = vcmp.eq.s32.totalorder %v1173_v24, 0  ;;  %vm1217_vm1 = vcmp.eq.s32.totalorder %v1173_v24, 9  ;;  %vm1189_vm2 = vcmp.eq.s32.totalorder %v1173_v24, 1  ;;  %vm1203_vm13 = vcmp.eq.s32.totalorder %v1173_v24, 8 }
 0x620   : > { %v1229_v51 = vsel %vm1217_vm1, %v1226_v56, 0.0  ;;  %v1201_v17 = vsel %vm1189_vm2, %v5597_v58, 0.0  ;;  %v1215_v7 = vsel %vm1203_vm13, %v6176_v49, 0.0  ;;  %v1186_v56 = vsel %vm1174_vm12, %v5675_v45, 0.0 }
 0x621   : > { %4210 = vset.pattern.permute.xlu0 %v8082_v11  ;;  %v6218_v20 = vpop.permute.xlu0 %1275  ;;  %v8218_v11 = vld [vmem:[#allocation47_spill] sm:$0xff]  ;;  %v1187_v58 = vsel %vm1175_vm7, %v5595_v61, 0.0  ;;  %v1200_v49 = vsel %vm1188_vm3, %v6168_v38, 0.0  ;;  %vm2665_vm13 = vcmp.eq.s32.totalorder %v6272_v52, 12  ;;  %vm2683_vm12 = vcmp.eq.s32.totalorder %v6272_v52, 13 }
 0x622   : > { %v6224_v9 = vpop.permute.xlu1 %2726  ;;  %1478 = vperm.xlu0 %4210, %v6222_v23   ;;  %v6281_v23 = vsub.s32 %v5786_v42, %v6158_v34  ;;  %v1233_v34 = vadd.f32 %v1229_v51, %v1215_v7  ;;  %v1231_v40 = vadd.f32 %v1201_v17, %v1187_v58  ;;  %v1230_v45 = vadd.f32 %v1200_v49, %v1186_v56  ;;  %v8223_v17 = vld [vmem:[#allocation98_spill] sm:$0xff]  ;;  %v8224_v56 = vld [vmem:[#allocation93_spill] sm:$0xff] }
 0x623   : > { %v1352_v7 = vsel %vm1342_vm10, %v5695_v28, 0.0  ;;  %v2624_v38 = vsub.s32 %v5786_v42, %v6180_v47  ;;  %vm8225_vm3 = vcmp.eq.s32.totalorder %v6249_v16, 8  ;;  %v8226_v28 = vld [vmem:[#allocation92_spill] sm:$0xff]  ;;  %vm8229_vm7 = vcmp.eq.s32.totalorder %v6253_v43, 8 }
 0x624   : > { %vm2684_vm15 = vcmp.eq.s32.totalorder %v6281_v23, 13  ;;  %v6319_v51 = vadd.f32 %v1233_v34, %v1231_v40  ;;  %vm2648_vm10 = vcmp.eq.s32.totalorder %v6281_v23, 1 }
 0x625   : > { %v6227_v0 = vpop.permute.xlu0 %1287 }
 0x626   : > { %v6229_v21 = vpop.permute.xlu1 %2730  ;;  %1497 = vperm.xlu0 %4210, %v8217_v13   ;;  %v6261_v13 = vsub.s32 %v5438_v57, %v8222_v37  ;;  %v1228_v37 = vsel %vm1216_vm9, %v5680_v30, 0.0  ;;  %v1214_v30 = vsel %vm1202_vm4, %v5677_v59, 0.0  ;;  %v1290_v59 = vsel %vm1280_vm8, %v5687_v27, 0.0 }
 0x627   : > { %v1232_v26 = vadd.f32 %v1228_v37, %v1214_v30  ;;  %v2623_v27 = vsub.s32 %v5438_v57, %v6180_v47  ;;  %v1278_v30 = vsel %vm8225_vm3, %v8224_v56, 0.0  ;;  %v8228_v47 = vld [vmem:[#allocation95_spill] sm:$0xff]  ;;  %vm8232_vm3 = vcmp.eq.s32.totalorder %v6253_v43, 0 }
 0x628   : > { %vm1392_vm1 = vcmp.eq.s32.totalorder %v6261_v13, 8  ;;  %vm1404_vm2 = vcmp.eq.s32.totalorder %v6261_v13, 9  ;;  %v6331_v49 = vadd.f32 %v1290_v59, %v1278_v30  ;;  %v1340_v40 = vsel %vm8229_vm7, %v8228_v47, 0.0 }
 0x629   : > { %v6232_v33 = vpop.permute.xlu0 %2742  ;;  %v1414_v24 = vsel %vm1404_vm2, %v8223_v17, 0.0  ;;  %v6321_v37 = vadd.f32 %v1232_v26, %v1230_v45  ;;  %vm8227_vm2 = vcmp.eq.s32.totalorder %v6249_v16, 0  ;;  %v8230_v26 = vld [vmem:[#allocation97_spill] sm:$0xff]  ;;  %v8231_v45 = vld [vmem:[#allocation94_spill] sm:$0xff]  ;;  %v6344_v56 = vadd.f32 %v1352_v7, %v1340_v40 }
 0x62a   : > { %v6234_v5 = vpop.permute.xlu1 %2746  ;;  %1511 = vperm.xlu0 %4210, %v8218_v11   ;;  %v1254_v58 = vsel %vm8227_vm2, %v8226_v28, 0.0  ;;  %v1402_v34 = vsel %vm1392_vm1, %v8230_v26, 0.0  ;;  %v6342_v17 = vsel %vm8232_vm3, %v8231_v45, 0.0  ;;  %vm8234_vm2 = vcmp.eq.s32.totalorder %v6261_v13, 0 }
 0x62b   : > { %v6349_v59 = vsel %vm8234_vm2, %v8233_v36, 0.0  ;;  %v6351_v30 = vadd.f32 %v1414_v24, %v1402_v34  ;;  %vm2645_vm7 = vcmp.eq.s32.totalorder %v2623_v27, 1  ;;  %vm2646_vm8 = vcmp.eq.s32.totalorder %v2624_v38, 1 }
 0x62c   : > { %vm2627_vm9 = vcmp.eq.s32.totalorder %v2623_v27, 0  ;;  %v2697_v7 = vsel %vm2683_vm12, %v6194_v10, 0.0  ;;  %vm2663_vm3 = vcmp.eq.s32.totalorder %v2623_v27, 12  ;;  %vm2664_vm4 = vcmp.eq.s32.totalorder %v2624_v38, 12 }
 0x62d   : > { %v6237_v25 = vpop.permute.xlu0 %2762  ;;  %v1243_v36 = vsub.s32 %v5438_v57, %v6202_v22  ;;  %v2698_v24 = vsel %vm2684_vm15, %v6194_v10, 0.0  ;;  %v2661_v40 = vsel %vm2647_vm5, %v6196_v44, 0.0  ;;  %vm2681_vm2 = vcmp.eq.s32.totalorder %v2623_v27, 13 }
 0x62e   : > { %v6239_v53 = vpop.permute.xlu1 %2758  ;;  %vm2682_vm1 = vcmp.eq.s32.totalorder %v2624_v38, 13  ;;  %v2659_v26 = vsel %vm2645_vm7, %v6184_v29, 0.0  ;;  %v2641_v34 = vsel %vm2627_vm9, %v6186_v8, 0.0  ;;  %v2679_v45 = vsel %vm2665_vm13, %v6189_v62, 0.0 }
 0x62f   : > { %v2662_v22 = vsel %vm2648_vm10, %v6196_v44, 0.0  ;;  %vm8235_vm15 = vcmp.eq.s32.totalorder %v6281_v23, 12  ;;  %vm8236_vm5 = vcmp.eq.s32.totalorder %v6272_v52, 0  ;;  %vm8237_vm12 = vcmp.eq.s32.totalorder %v6281_v23, 0 }
 0x630   : > { %v2680_v10 = vsel %vm8235_vm15, %v6189_v62, 0.0  ;;  %v2643_v12 = vsel %vm8236_vm5, %v6191_v6, 0.0  ;;  %v2644_v60 = vsel %vm8237_vm12, %v6191_v6, 0.0  ;;  %v2705_v63 = vadd.f32 %v2697_v7, %v2679_v45 }
 0x631   : > { %v6241_v46 = vpop.permute.xlu0 %2778  ;;  %v2706_v32 = vadd.f32 %v2698_v24, %v2680_v10  ;;  %v2701_v4 = vadd.f32 %v2661_v40, %v2643_v12  ;;  %vm1245_vm13 = vcmp.eq.s32.totalorder %v1243_v36, 0  ;;  %vm1257_vm9 = vcmp.eq.s32.totalorder %v1243_v36, 1  ;;  %v8241_v40 = vld [vmem:[#allocation43_spill] sm:$0xff] }
 0x632   : > { %v6243_v15 = vpop.permute.xlu1 %2774  ;;  %vm7924_vm10 = vcmask 64512   ;;  %v2702_v44 = vadd.f32 %v2662_v22, %v2644_v60  ;;  %v2695_v62 = vsel %vm2681_vm2, %v6204_v54, 0.0  ;;  %v2696_v52 = vsel %vm2682_vm1, %v6204_v54, 0.0 }
 0x633   : > { %vm8238_vm7 = vcmp.eq.s32.totalorder %v6249_v16, 1  ;;  %v2660_v23 = vsel %vm2646_vm8, %v6184_v29, 0.0  ;;  %vm8239_vm15 = vcmp.eq.s32.totalorder %v2624_v38, 0  ;;  %v2677_v60 = vsel %vm2663_vm3, %v6199_v2, 0.0  ;;  %v8240_v29 = vld [vmem:[#allocation42_spill] sm:$0xff] }
 0x634   : > { %v1266_v6 = vsel %vm8238_vm7, %v6213_v39, 0.0  ;;  %v2642_v12 = vsel %vm8239_vm15, %v6186_v8, 0.0  ;;  %v6404_v7 = vsub.s32 %v5438_v57, %v6207_v3  ;;  %v2678_v16 = vsel %vm2664_vm4, %v6199_v2, 0.0 }
 0x635   : > { %v6412_v54 = vsub.s32 %v5786_v42, %v6207_v3  ;;  %v1255_v39 = vsel %vm1245_vm13, %v8240_v29, 0.0  ;;  %v1267_v8 = vsel %vm1257_vm9, %v8241_v40, 0.0  ;;  %v2699_v27 = vadd.f32 %v2659_v26, %v2641_v34 }
 0x636   : > { %v6257_v11 = vpop.permute.xlu0 %1302  ;;  %v2703_v22 = vadd.f32 %v2695_v62, %v2677_v60  ;;  %v2704_v10 = vadd.f32 %v2696_v52, %v2678_v16  ;;  %v1292_v14 = vadd.f32 %v1266_v6, %v1254_v58  ;;  %v2700_v19 = vadd.f32 %v2660_v23, %v2642_v12  ;;  %v3987_v58 = vld [vmem:[%s7762_s6 + $0x1] ss:$0 sm:$0xff] }
 0x637   : > { %v6263_v55 = vpop.permute.xlu1 %2798  ;;  %v6419_v1 = vadd.f32 %v2705_v63, %v2701_v4  ;;  %v6421_v38 = vadd.f32 %v2706_v32, %v2702_v44  ;;  %vm1269_vm4 = vcmp.eq.s32.totalorder %v1243_v36, 8  ;;  %v2717_v2 = vsub.s32 %v5438_v57, %v6210_v41 }
 0x638   : > { %vm1281_vm8 = vcmp.eq.s32.totalorder %v1243_v36, 9  ;;  %v1293_v3 = vadd.f32 %v1267_v8, %v1255_v39  ;;  %vm2723_vm1 = vcmp.eq.s32.totalorder %v6404_v7, 0  ;;  %v6433_v4 = vsub.s32 %v5786_v42, %v6210_v41 }
 0x639   : > { %v1291_v32 = vsel %vm1281_vm8, %v6227_v0, 0.0  ;;  %vm2724_vm3 = vcmp.eq.s32.totalorder %v6412_v54, 0  ;;  %v6443_v63 = vadd.f32 %v2703_v22, %v2699_v27  ;;  %v6445_v26 = vadd.f32 %v2704_v10, %v2700_v19 }
 0x63a   : > { %v6276_v50 = vpop.permute.xlu0 %2801  ;;  %v1296_v34 = vadd.f32 %v6331_v49, %v1292_v14  ;;  %v1279_v44 = vsel %vm1269_vm4, %v6218_v20, 0.0  ;;  %vm2721_vm9 = vcmp.eq.s32.totalorder %v2717_v2, 0  ;;  %vm2772_vm15 = vcmp.eq.s32.totalorder %v6412_v54, 13 }
 0x63b   : > { %v1295_v52 = vadd.f32 %v1291_v32, %v1279_v44  ;;  %vm2737_vm5 = vcmp.eq.s32.totalorder %v2717_v2, 1  ;;  %vm2738_vm2 = vcmp.eq.s32.totalorder %v6433_v4, 1  ;;  %vm2753_vm4 = vcmp.eq.s32.totalorder %v2717_v2, 12 }
 0x63c   : > { %v6290_v48 = vpop.permute.xlu1 %2812  ;;  %v6464_v20 = vadd.f32 %v1296_v34, %v6321_v37  ;;  %vm2769_vm12 = vcmp.eq.s32.totalorder %v2717_v2, 13  ;;  %vm2770_vm7 = vcmp.eq.s32.totalorder %v6433_v4, 13  ;;  %v2733_v36 = vsel %vm2721_vm9, %v6224_v9, 0.0 }
 0x63d   : > { %v2735_v6 = vsel %vm2723_vm1, %v6229_v21, 0.0  ;;  %v2736_v23 = vsel %vm2724_vm3, %v6229_v21, 0.0  ;;  %vm1318_vm8 = vcmp.eq.s32.totalorder %v6253_v43, 1  ;;  %v1297_v60 = vadd.f32 %v1295_v52, %v1293_v3 }
 0x63e   : > { %vm8242_vm13 = vcmp.eq.s32.totalorder %v6404_v7, 13  ;;  %v2784_v39 = vsel %vm2772_vm15, %v6241_v46, 0.0  ;;  %v6487_v40 = vsub.s32 %v5438_v57, %v6257_v11  ;;  %v2749_v21 = vsel %vm2737_vm5, %v6232_v33, 0.0 }
 0x63f   : > { %v6307_v61 = vpop.permute.xlu0 %1321  ;;  %v2783_v16 = vsel %vm8242_vm13, %v6241_v46, 0.0  ;;  %v2750_v27 = vsel %vm2738_vm2, %v6232_v33, 0.0  ;;  %v2781_v22 = vsel %vm2769_vm12, %v6243_v15, 0.0  ;;  %v2782_v10 = vsel %vm2770_vm7, %v6243_v15, 0.0 }
 0x640   : > { %v6317_v35 = vpop.permute.xlu1 %2816  ;;  %vm8243_vm1 = vcmp.eq.s32.totalorder %v6404_v7, 1  ;;  %vm8244_vm3 = vcmp.eq.s32.totalorder %v6412_v54, 1  ;;  %vm8245_vm2 = vcmp.eq.s32.totalorder %v6404_v7, 12  ;;  %vm8246_vm5 = vcmp.eq.s32.totalorder %v6412_v54, 12 }
 0x641   : > { %v2751_v11 = vsel %vm8243_vm1, %v6234_v5, 0.0  ;;  %v2752_v3 = vsel %vm8244_vm3, %v6234_v5, 0.0  ;;  %v2767_v33 = vsel %vm8245_vm2, %v6237_v25, 0.0  ;;  %vm1380_vm12 = vcmp.eq.s32.totalorder %v6261_v13, 1 }
 0x642   : > { %v2765_v15 = vsel %vm2753_vm4, %v6239_v53, 0.0  ;;  %vm8247_vm13 = vcmp.eq.s32.totalorder %v6433_v4, 12  ;;  %v2791_v34 = vadd.f32 %v2783_v16, %v2767_v33  ;;  %vm1307_vm9 = vcmp.eq.s32.totalorder %v6487_v40, 0 }
 0x643   : > { %v6353_v28 = vpop.permute.xlu0 %1337  ;;  %v2766_v32 = vsel %vm8247_vm13, %v6239_v53, 0.0  ;;  %v2789_v44 = vadd.f32 %v2781_v22, %v2765_v15  ;;  %vm1319_vm7 = vcmp.eq.s32.totalorder %v6487_v40, 1  ;;  %vm8248_vm15 = vcmp.eq.s32.totalorder %v6433_v4, 0 }
 0x644   : > { %v6355_v47 = vpop.permute.xlu1 %2832  ;;  %v2790_v7 = vadd.f32 %v2782_v10, %v2766_v32  ;;  %v2787_v54 = vadd.f32 %v2751_v11, %v2735_v6  ;;  %v2788_v2 = vadd.f32 %v2752_v3, %v2736_v23  ;;  %v6531_v52 = vadd.f32 %v1297_v60, %v6319_v51  ;;  %v8250_v23 = vld [vmem:[#allocation73_spill] sm:$0xff] }
 0x645   : > { %v6558_v60 = vsub.s32 %v5786_v42, %v6276_v50  ;;  %vm1331_vm1 = vcmp.eq.s32.totalorder %v6487_v40, 8  ;;  %vm1343_vm3 = vcmp.eq.s32.totalorder %v6487_v40, 9 }
 0x646   : > { %v6537_v16 = vadd.f32 %v2791_v34, %v2787_v54 }
 0x647   : > { %v6376_v18 = vpop.permute.xlu0 %1349 }
 0x648   : > { %v6387_v31 = vpop.permute.xlu1 %2844  ;;  %v1353_v13 = vsel %vm1343_vm3, %v6376_v18, 0.0  ;;  %v1341_v18 = vsel %vm1331_vm1, %v6353_v28, 0.0  ;;  %v8253_v28 = vld [vmem:[#allocation75_spill] sm:$0xff] }
 0x649   : > { %v1357_v34 = vadd.f32 %v1353_v13, %v1341_v18 }
 0x64b   : > { %v6406_v24 = vpop.permute.xlu0 %2828 }
 0x64c   : > { %v6416_v45 = vpop.permute.xlu1 %2860 }
 0x64f   : > { %v6426_v29 = vpop.permute.xlu0 %2848 }
 0x651   : > { %v6449_v41 = vpop.permute.xlu1 %2884  ;;  %v3827_v0 = vpop.f32.mrf.mxu1 }
 0x652   : > { %v3828_v62 = vadd.f32 %v3987_v58, %v3827_v0 }
 0x653   : > { %v3829_v19 = vpop.f32.mrf.mxu1  ;;  %v6457_v14 = vpop.permute.xlu0 %2864 }
 0x654   : > { %3858 = vst.msk [vmem:[%s6441_s20 + $0x40] sm:$0xff] %vm7924_vm10, %v3828_v62  ;;  %v2803_v62 = vsub.s32 %v5438_v57, %v6263_v55  ;;  %v2785_v19 = vadd.f32 %v2749_v21, %v2733_v36  ;;  %v6551_v36 = vsub.s32 %v5438_v57, %v6276_v50 }
 0x655   : > { %v3830_v49 = vpop.f32.mrf.mxu1 }
 0x656   : > { %v3831_v37 = vadd.f32 %v3987_v58, %v3830_v49  ;;  %v6477_v12 = vpop.permute.xlu1 %2898  ;;  %v2768_v58 = vsel %vm8246_vm5, %v6237_v25, 0.0  ;;  %v2734_v25 = vsel %vm8248_vm15, %v6224_v9, 0.0  ;;  %v8249_v9 = vld [vmem:[#allocation72_spill] sm:$0xff]  ;;  %v6545_v22 = vadd.f32 %v2789_v44, %v2785_v19 }
 0x657   : > { %v3832_v8 = vpop.f32.mrf.mxu1  ;;  %v2792_v0 = vadd.f32 %v2784_v39, %v2768_v58  ;;  %v2786_v49 = vadd.f32 %v2750_v27, %v2734_v25  ;;  %v1317_v6 = vsel %vm1307_vm9, %v8249_v9, 0.0  ;;  %v1329_v39 = vsel %vm1319_vm7, %v8250_v23, 0.0 }
 0x658   : > { %3859 = vst.msk [vmem:[%s6441_s20 + $0x48] sm:$0xff] %vm7924_vm10, %v3831_v37  ;;  %v1365_v46 = vpop.permute.xlu0 %1364  ;;  %v6535_v37 = vsub.s32 %v5786_v42, %v6263_v55  ;;  %v1328_v55 = vsel %vm1318_vm8, %v6307_v61, 0.0  ;;  %vm2807_vm4 = vcmp.eq.s32.totalorder %v2803_v62, 0  ;;  %v1355_v21 = vadd.f32 %v1329_v39, %v1317_v6 }
 0x659   : > { %v6539_v4 = vadd.f32 %v2792_v0, %v2788_v2  ;;  %v6547_v51 = vadd.f32 %v2790_v7, %v2786_v49  ;;  %v1367_v27 = vsub.s32 %v5438_v57, %v1365_v46  ;;  %v1354_v11 = vadd.f32 %v1328_v55, %v6342_v17  ;;  %v8252_v0 = vld [vmem:[#allocation74_spill] sm:$0xff] }
 0x65a   : > { %v6519_v5 = vpop.permute.xlu1 %2902  ;;  %vm2808_vm2 = vcmp.eq.s32.totalorder %v6535_v37, 0  ;;  %v2819_v61 = vsel %vm2807_vm4, %v6290_v48, 0.0  ;;  %vm2809_vm9 = vcmp.eq.s32.totalorder %v6551_v36, 0  ;;  %vm2855_vm7 = vcmp.eq.s32.totalorder %v2803_v62, 13 }
 0x65b   : > { %v2820_v3 = vsel %vm2808_vm2, %v6290_v48, 0.0  ;;  %vm2825_vm10 = vcmp.eq.s32.totalorder %v6551_v36, 1  ;;  %vm2826_vm5 = vcmp.eq.s32.totalorder %v6558_v60, 1  ;;  %vm2856_vm13 = vcmp.eq.s32.totalorder %v6535_v37, 13 }
 0x65c   : > { %v6528_v53 = vpop.permute.xlu0 %2887  ;;  %vm1381_vm4 = vcmp.eq.s32.totalorder %v1367_v27, 1  ;;  %v1358_v46 = vadd.f32 %v6344_v56, %v1354_v11  ;;  %v2821_v33 = vsel %vm2809_vm9, %v6317_v35, 0.0  ;;  %vm2841_vm2 = vcmp.eq.s32.totalorder %v6551_v36, 12 }
 0x65d   : > { %vm2842_vm15 = vcmp.eq.s32.totalorder %v6558_v60, 12  ;;  %vm2857_vm8 = vcmp.eq.s32.totalorder %v6551_v36, 13  ;;  %vm8251_vm3 = vcmp.eq.s32.totalorder %v2803_v62, 1  ;;  %v2867_v15 = vsel %vm2855_vm7, %v6416_v45, 0.0 }
 0x65e   : > { %v6543_v8 = vpop.permute.xlu1 %2918  ;;  %v2835_v56 = vsel %vm8251_vm3, %v6406_v24, 0.0  ;;  %vm2858_vm9 = vcmp.eq.s32.totalorder %v6558_v60, 13  ;;  %v2838_v32 = vsel %vm2826_vm5, %v6355_v47, 0.0  ;;  %v1391_v44 = vsel %vm1381_vm4, %v8253_v28, 0.0 }
 0x65f   : > { %vm8254_vm1 = vcmp.eq.s32.totalorder %v2803_v62, 12  ;;  %vm1405_vm3 = vcmp.eq.s32.totalorder %v1367_v27, 9  ;;  %v2871_v2 = vadd.f32 %v2835_v56, %v2819_v61  ;;  %vm8255_vm5 = vcmp.eq.s32.totalorder %v6535_v37, 1  ;;  %v8259_v56 = vld [vmem:[#allocation54_spill] sm:$0xff] }
 0x660   : > { %v2851_v7 = vsel %vm8254_vm1, %v6387_v31, 0.0  ;;  %v2868_v6 = vsel %vm2856_vm13, %v6416_v45, 0.0  ;;  %vm8256_vm7 = vcmp.eq.s32.totalorder %v6558_v60, 0  ;;  %v2889_v55 = vsub.s32 %v5438_v57, %v6449_v41  ;;  %v8258_v60 = vld [vmem:[#allocation39_spill] sm:$0xff] }
 0x661   : > { %v1384_v10 = vpop.permute.xlu0 %1383  ;;  %v2875_v19 = vadd.f32 %v2867_v15, %v2851_v7  ;;  %vm8257_vm13 = vcmp.eq.s32.totalorder %v6535_v37, 12  ;;  %v2892_v36 = vsub.s32 %v5786_v42, %v6528_v53 }
 0x662   : > { %v1390_v43 = vsel %vm1380_vm12, %v1384_v10, 0.0  ;;  %v6568_v50 = vpop.permute.xlu1 %2930  ;;  %vm1369_vm12 = vcmp.eq.s32.totalorder %v1367_v27, 0  ;;  %v2852_v45 = vsel %vm8257_vm13, %v6387_v31, 0.0  ;;  %v2869_v31 = vsel %vm2857_vm8, %v6457_v14, 0.0 }
 0x663   : > { %v1416_v17 = vadd.f32 %v1390_v43, %v6349_v59  ;;  %v2837_v59 = vsel %vm2825_vm10, %v6355_v47, 0.0  ;;  %v1379_v40 = vsel %vm1369_vm12, %v8252_v0, 0.0  ;;  %vm1393_vm10 = vcmp.eq.s32.totalorder %v1367_v27, 8 }
 0x664   : > { %v2836_v47 = vsel %vm8255_vm5, %v6406_v24, 0.0  ;;  %v1417_v23 = vadd.f32 %v1391_v44, %v1379_v40  ;;  %v6617_v39 = vadd.f32 %v2837_v59, %v2821_v33  ;;  %v2890_v27 = vsub.s32 %v5786_v42, %v6449_v41 }
 0x665   : > { %v1400_v48 = vpop.permute.xlu0 %1399  ;;  %v1420_v25 = vadd.f32 %v6351_v30, %v1416_v17  ;;  %v2822_v30 = vsel %vm8256_vm7, %v6317_v35, 0.0  ;;  %v1359_v24 = vadd.f32 %v1357_v34, %v1355_v21  ;;  %v2872_v35 = vadd.f32 %v2836_v47, %v2820_v3 }
 0x666   : > { %v6587_v58 = vpop.permute.xlu1 %2985  ;;  %v1403_v49 = vsel %vm1393_vm10, %v1400_v48, 0.0  ;;  %v6628_v13 = vadd.f32 %v2838_v32, %v2822_v30  ;;  %v2876_v17 = vadd.f32 %v2868_v6, %v2852_v45  ;;  %v6630_v48 = vadd.f32 %v2875_v19, %v2871_v2 }
 0x667   : > { %v1424_v11 = vadd.f32 %v1420_v25, %v1358_v46  ;;  %v2853_v41 = vsel %vm2841_vm2, %v6426_v29, 0.0  ;;  %v2854_v21 = vsel %vm2842_vm15, %v6426_v29, 0.0  ;;  %v2870_v3 = vsel %vm2858_vm9, %v6457_v14, 0.0 }
 0x668   : > { %vm2893_vm12 = vcmp.eq.s32.totalorder %v2889_v55, 0  ;;  %vm2894_vm4 = vcmp.eq.s32.totalorder %v2890_v27, 0  ;;  %vm2925_vm1 = vcmp.eq.s32.totalorder %v2889_v55, 12  ;;  %vm2926_vm10 = vcmp.eq.s32.totalorder %v2890_v27, 12 }
 0x669   : > { %v1412_v54 = vpop.permute.xlu0 %1411  ;;  %v1426_v46 = vadd.f32 %v1424_v11, %v6464_v20  ;;  %vm2909_vm2 = vcmp.eq.s32.totalorder %v2889_v55, 1  ;;  %v2891_v29 = vsub.s32 %v5438_v57, %v6528_v53  ;;  %v2905_v20 = vsel %vm2893_vm12, %v6477_v12, 0.0  ;;  %v8261_v53 = vld [vmem:[#allocation36_spill] sm:$0xff] }
 0x66a   : > { %v1415_v9 = vsel %vm1405_vm3, %v1412_v54, 0.0  ;;  %v6623_v10 = vpop.permute.xlu1 %3371  ;;  %vm2910_vm8 = vcmp.eq.s32.totalorder %v2890_v27, 1  ;;  %vm2941_vm15 = vcmp.eq.s32.totalorder %v2889_v55, 13  ;;  %vm2942_vm9 = vcmp.eq.s32.totalorder %v2890_v27, 13 }
 0x66b   : > { %v1419_v62 = vadd.f32 %v1415_v9, %v1403_v49  ;;  %v2998_v40 = vmul.f32 %v6587_v58, %v8261_v53  ;;  %vm8262_vm3 = vcmask 523264   ;;  %vm2895_vm5 = vcmp.eq.s32.totalorder %v2891_v29, 0 }
 0x66c   : > { %vm2896_vm7 = vcmp.eq.s32.totalorder %v2892_v36, 0  ;;  %vm2911_vm13 = vcmp.eq.s32.totalorder %v2891_v29, 1  ;;  %vm2912_vm12 = vcmp.eq.s32.totalorder %v2892_v36, 1  ;;  %v2937_v9 = vsel %vm2925_vm1, %v6568_v50, 0.0 }
 0x66d   : > { %v1421_v43 = vadd.f32 %v1419_v62, %v1417_v23  ;;  %v2915_v61 = vpop.permute.xlu0 %2914  ;;  %v2938_v47 = vsel %vm2926_vm10, %v6568_v50, 0.0  ;;  %v6680_v30 = vsel %vm8177_vm6, %v2998_v40, 0.0  ;;  %v8268_v50 = vld [vmem:[#allocation51_spill] sm:$0xff]  ;;  %vm2928_vm1 = vcmp.eq.s32.totalorder %v2892_v36, 12 }
 0x66e   : > { %v2947_v59 = vpop.permute.xlu1 %2946  ;;  %v2921_v28 = vsel %vm2909_vm2, %v2915_v61, 0.0  ;;  %v2922_v19 = vsel %vm2910_vm8, %v2915_v61, 0.0  ;;  %v2994_v27 = vmul.f32 %v6587_v58, %v8268_v50  ;;  %vm2943_vm10 = vcmp.eq.s32.totalorder %v2891_v29, 13 }
 0x66f   : > { %v1425_v37 = vadd.f32 %v1421_v43, %v1359_v24  ;;  %v2953_v44 = vsel %vm2941_vm15, %v2947_v59, 0.0  ;;  %v2954_v49 = vsel %vm2942_vm9, %v2947_v59, 0.0  ;;  %v2957_v6 = vadd.f32 %v2921_v28, %v2905_v20  ;;  %v8266_v24 = vld [vmem:[#allocation37_spill] sm:$0xff] }
 0x670   : > { %v2961_v23 = vadd.f32 %v2953_v44, %v2937_v9  ;;  %v3002_v45 = vmul.f32 %v6587_v58, %v8266_v24  ;;  %v2962_v43 = vadd.f32 %v2954_v49, %v2938_v47  ;;  %v2878_v59 = vadd.f32 %v2870_v3, %v2854_v21 }
 0x671   : > { %v1427_v33 = vadd.f32 %v1425_v37, %v6531_v52  ;;  %v6646_v18 = vpop.permute.xlu0 %2983  ;;  %v2906_v52 = vsel %vm2894_vm4, %v6477_v12, 0.0  ;;  %v8264_v12 = vld [vmem:[#allocation50_spill] sm:$0xff]  ;;  %v2923_v20 = vsel %vm2911_vm13, %v6543_v8, 0.0  ;;  %vm2927_vm4 = vcmp.eq.s32.totalorder %v2891_v29, 12 }
 0x672   : > { %v2993_v14 = vmul.f32 %v6646_v18, %v8258_v60  ;;  %v2989_v15 = vmul.f32 %v6646_v18, %v8259_v56  ;;  %v2990_v2 = vmul.f32 %v6587_v58, %v8264_v12  ;;  %v2958_v11 = vadd.f32 %v2922_v19, %v2906_v52  ;;  %v8269_v58 = vld [vmem:[#allocation40_spill] sm:$0xff] }
 0x673   : > { %v2001_v32 = vpack.c.bf16 %v1427_v33, %v1426_v46  ;;  %v2880_v46 = vadd.f32 %v2876_v17, %v2872_v35  ;;  %v2877_v33 = vadd.f32 %v2869_v31, %v2853_v41  ;;  %v2965_v52 = vadd.f32 %v2961_v23, %v2957_v6  ;;  %v8273_v31 = vld [vmem:[#allocation55_spill] sm:$0xff]  ;;  %v8274_v6 = vld [vmem:[#allocation56_spill] sm:$0xff] }
 0x674   : > { %v6661_v0 = vsel %vm5106_vm0, %v2993_v14, 0.0  ;;  %v6669_v54 = vsel %vm8031_vm14, %v2989_v15, 0.0  ;;  %v6689_v37 = vsel %vm5234_vm11, %v2990_v2, 0.0  ;;  %v2907_v14 = vsel %vm2895_vm5, %v6519_v5, 0.0 }
 0x675   : > { %4037 = vmatmul.mubr.msk.bf16.vlgmr.msra.gmra.mxu0 %vm8262_vm3, %v2001_v32  ;;  %3039 = vperm.xlu0 %4210, %v6661_v0   ;;  %v2935_v7 = vpop.permute.xlu0 %2934  ;;  %v2908_v15 = vsel %vm2896_vm7, %v6519_v5, 0.0  ;;  %v2924_v32 = vsel %vm2912_vm12, %v6543_v8, 0.0  ;;  %vm8270_vm2 = vnez %v8269_v58  ;;  %v2966_v17 = vadd.f32 %v2962_v43, %v2958_v11  ;;  %v8271_v5 = vld [vmem:[#allocation53_spill] sm:$0xff] }
 0x676   : > { %3021 = vperm.xlu1 %4206, %v6669_v54   ;;  %v6704_v35 = vsel %vm8270_vm2, %v3002_v45, 0.0  ;;  %vm2944_vm8 = vcmp.eq.s32.totalorder %v2892_v36, 13  ;;  %vm8272_vm15 = vnez %v8271_v5  ;;  %v2997_v8 = vmul.f32 %v6646_v18, %v8273_v31 }
 0x677   : > { %v6709_v21 = vsel %vm8272_vm15, %v2994_v27, 0.0  ;;  %v2939_v3 = vsel %vm2927_vm4, %v2935_v7, 0.0  ;;  %v2940_v40 = vsel %vm2928_vm1, %v2935_v7, 0.0  ;;  %v2959_v44 = vadd.f32 %v2923_v20, %v2907_v14  ;;  %v8276_v27 = vld [vmem:[#allocation57_spill] sm:$0xff] }
 0x678   : > { %v2960_v2 = vadd.f32 %v2924_v32, %v2908_v15  ;;  %v2881_v49 = vadd.f32 %v2877_v33, %v6617_v39  ;;  %v2882_v9 = vadd.f32 %v2878_v59, %v6628_v13  ;;  %v2973_v47 = vadd.f32 %v2965_v52, %v6630_v48  ;;  %v8278_v39 = vld [vmem:[#allocation20_spill] sm:$0xff]  ;;  %v8279_v59 = vld [vmem:[#allocation58_spill] sm:$0xff] }
 0x679   : > { %v6684_v61 = vpop.permute.xlu0 %3373  ;;  %3062 = vperm.xlu0 %4210, %v6680_v30   ;;  %v3001_v23 = vmul.f32 %v6646_v18, %v8274_v6  ;;  %v2974_v45 = vadd.f32 %v2966_v17, %v2880_v46  ;;  %v8275_v43 = vmov 25   ;;  %vm8277_vm9 = vnez %v8276_v27  ;;  %v8281_v17 = vld [vmem:[#allocation46_spill] sm:$0xff] }
 0x67a   : > { %3026 = vperm.xlu1 %4206, %v6689_v37   ;;  %v6722_v14 = vsel %vm8277_vm9, %v2997_v8, 0.0  ;;  %v2972_v15 = vadd.f32 %v6539_v4, %v6421_v38  ;;  %v2971_v13 = vadd.f32 %v6537_v16, %v6419_v1  ;;  %v2970_v48 = vadd.f32 %v6547_v51, %v6445_v26  ;;  %v8284_v16 = vld [vmem:[#allocation47_spill] sm:$0xff]  ;;  %v8287_v51 = vld [vmem:[#allocation5_spill] sm:$0xff] }
 0x67b   : > { %v2969_v46 = vadd.f32 %v6545_v22, %v6443_v63  ;;  %vm8280_vm3 = vnez %v8279_v59  ;;  %vm8282_vm5 = vcmask 130048   ;;  %v8283_v26 = vmov 41   ;;  %v8285_v63 = vld [vmem:[#allocation3_spill] sm:$0xff] }
 0x67c   : > { %v3003_v20 = vsel %vm8280_vm3, %v3001_v23, 0.0  ;;  %v2978_v32 = vadd.f32 %v2974_v45, %v2970_v48  ;;  %v8286_v22 = vmov 42   ;;  %v8288_v8 = vmov 43  }
 0x67d   : > { %v2951_v41 = vpop.permute.xlu0 %2950  ;;  %3080 = vperm.xlu0 %4210, %v6704_v35   ;;  %v2977_v4 = vadd.f32 %v2973_v47, %v2969_v46  ;;  %v8297_v47 = vld [vmem:[#allocation59_spill] sm:$0xff]  ;;  %v8298_v45 = vmov 28   ;;  %v3382_v25 = vmul.f32 %v6684_v61, %v8268_v50  ;;  %v3386_v55 = vmul.f32 %v6684_v61, %v8261_v53 }
 0x67e   : > { %v2955_v28 = vsel %vm2943_vm10, %v2951_v41, 0.0  ;;  %v2956_v29 = vsel %vm2944_vm8, %v2951_v41, 0.0  ;;  %3044 = vperm.xlu1 %4206, %v6709_v21   ;;  %v3389_v34 = vmul.f32 %v6623_v10, %v8274_v6  ;;  %v3390_v6 = vmul.f32 %v6684_v61, %v8266_v24 }
 0x67f   : > { %v2963_v19 = vadd.f32 %v2955_v28, %v2939_v3  ;;  %v2964_v36 = vadd.f32 %v2956_v29, %v2940_v40  ;;  %v8289_v3 = vmov 26   ;;  %v8290_v40 = vmov 27  }
 0x680   : > { %v6893_v62 = vsel %vm8280_vm3, %v3389_v34, 0.0  ;;  %v6897_v24 = vsel %vm8270_vm2, %v3390_v6, 0.0 }
 0x681   : > { %v2967_v11 = vadd.f32 %v2963_v19, %v2959_v44  ;;  %v2968_v7 = vadd.f32 %v2964_v36, %v2960_v2  ;;  %4212 = vset.pattern.permute.xlu0 %v8275_v43  ;;  %v8292_v19 = vld [vmem:[#allocation2_spill] sm:$0xff]  ;;  %v8295_v36 = vmov 47   ;;  %8304 = vst [vmem:[#allocation27_spill] sm:$0xff] %v6893_v62 }
 0x682   : > { %3057 = vperm.xlu1 %4206, %v6722_v14   ;;  %1545 = vperm.xlu0 %4212, %v8278_v39   ;;  %v6767_v28 = vpop.permute.xlu0 %1456 }
 0x683   : > { %v2976_v18 = vadd.f32 %v2968_v7, %v2882_v9  ;;  %v2975_v33 = vadd.f32 %v2967_v11, %v2881_v49  ;;  %v8296_v9 = vld [vmem:[#allocation34_spill] sm:$0xff]  ;;  %v8299_v11 = vld [vmem:[#allocation35_spill] sm:$0xff] }
 0x684   : > { %v1726_v23 = vmul.f32 %v8297_v47, %v8296_v9  ;;  %vm8300_vm7 = vnez %v8299_v11 }
 0x685   : > { %v2980_v38 = vadd.f32 %v2976_v18, %v2972_v15  ;;  %v2979_v52 = vadd.f32 %v2975_v33, %v2971_v13  ;;  %v3007_v15 = vpop.permute.xlu1 %3006  ;;  %v8301_v13 = vld [vmem:[#allocation48_spill] sm:$0xff]  ;;  %v3378_v18 = vmul.f32 %v6684_v61, %v8264_v12  ;;  %v3381_v33 = vmul.f32 %v6623_v10, %v8258_v60 }
 0x686   : > { %3075 = vperm.xlu1 %4206, %v3003_v20   ;;  %1561 = vperm.xlu0 %4212, %v8281_v17   ;;  %v3010_v29 = vpop.permute.xlu0 %3009  ;;  %v6814_v7 = vsel %vm8300_vm7, %v1726_v23, 0.0  ;;  %v3011_v50 = vsub.s32 %v5438_v57, %v3007_v15 }
 0x687   : > { %v3760_v41 = vpack.c.bf16 %v2980_v38, %v2978_v32  ;;  %v3759_v1 = vpack.c.bf16 %v2979_v52, %v2977_v4  ;;  %v6838_v32 = vsel %vm5234_vm11, %v3378_v18, 0.0  ;;  %v6843_v38 = vsub.s32 %v5438_v57, %v3010_v29 }
 0x688   : > { %8303 = vst [vmem:[#allocation22_spill] sm:$0xff] %v6838_v32  ;;  %v6846_v12 = vsub.s32 %v5786_v42, %v3010_v29  ;;  %v6851_v4 = vsel %vm5106_vm0, %v3381_v33, 0.0  ;;  %v3385_v52 = vmul.f32 %v6623_v10, %v8273_v31  ;;  %vm3033_vm12 = vcmp.eq.s32.totalorder %v3011_v50, 1 }
 0x689   : > { %3992 = vmatprep.mubr.msk.bf16.mxu1 %vm8282_vm5, %v3760_v41  ;;  %vm3017_vm0 = vcmp.eq.s32.totalorder %v6843_v38, 0  ;;  %vm3015_vm4 = vcmp.eq.s32.totalorder %v3011_v50, 0  ;;  %vm3051_vm10 = vcmp.eq.s32.totalorder %v3011_v50, 12 }
 0x68a   : > { %4208 = vset.pattern.permute.xlu1 %v8283_v26  ;;  %1573 = vperm.xlu0 %4212, %v8284_v16   ;;  %vm3018_vm11 = vcmp.eq.s32.totalorder %v6846_v12, 0  ;;  %vm3036_vm13 = vcmp.eq.s32.totalorder %v6846_v12, 1 }
 0x68b   : > { %3103 = vperm.xlu1 %4208, %v8285_v63   ;;  %3834 = vmatmul.mubr.bf16.gmra.mxu1 %v3759_v1  ;;  %v6775_v44 = vpop.permute.xlu0 %1526  ;;  %v6864_v1 = vsel %vm8272_vm15, %v3382_v25, 0.0  ;;  %vm3069_vm15 = vcmp.eq.s32.totalorder %v3011_v50, 13 }
 0x68e   : > { %3130 = vperm.xlu0 %4212, %v6661_v0  }
 0x68f   : > { %4209 = vset.pattern.permute.xlu1 %v8286_v22  ;;  %v6781_v2 = vpop.permute.xlu0 %3100 }
 0x690   : > { %3186 = vperm.xlu1 %4209, %v8287_v51  }
 0x692   : > { %3150 = vperm.xlu0 %4212, %v6680_v30  }
 0x694   : > { %4211 = vset.pattern.permute.xlu1 %v8288_v8 }
 0x695   : > { %3272 = vperm.xlu1 %4211, %v8287_v51  }
 0x696   : > { %3166 = vperm.xlu0 %4212, %v6704_v35  }
 0x699   : > { %3275 = vperm.xlu1 %4211, %v8285_v63  }
 0x69a   : > { %4214 = vset.pattern.permute.xlu0 %v8289_v3 }
 0x69b   : > { %1607 = vperm.xlu0 %4214, %v8278_v39  }
 0x69d   : > { %4213 = vset.pattern.permute.xlu1 %v8275_v43 }
 0x69e   : > { %3114 = vperm.xlu1 %4213, %v6669_v54  }
 0x69f   : > { %1623 = vperm.xlu0 %4214, %v8281_v17  }
 0x6a2   : > { %3118 = vperm.xlu1 %4213, %v6689_v37  }
 0x6a3   : > { %1635 = vperm.xlu0 %4214, %v8284_v16  }
 0x6a6   : > { %3134 = vperm.xlu1 %4213, %v6709_v21  }
 0x6a7   : > { %3204 = vperm.xlu0 %4214, %v6689_v37  }
 0x6aa   : > { %3146 = vperm.xlu1 %4213, %v6722_v14  }
 0x6ab   : > { %3232 = vperm.xlu0 %4214, %v6722_v14  }
 0x6ae   : > { %3162 = vperm.xlu1 %4213, %v3003_v20  }
 0x6af   : > { %3248 = vperm.xlu0 %4214, %v3003_v20  }
 0x6b2   : > { %4215 = vset.pattern.permute.xlu1 %v8289_v3 }
 0x6b3   : > { %3200 = vperm.xlu1 %4215, %v6669_v54   ;;  %4216 = vset.pattern.permute.xlu0 %v8290_v40 }
 0x6b4   : > { %1669 = vperm.xlu0 %4216, %v8278_v39  }
 0x6b7   : > { %3216 = vperm.xlu1 %4215, %v6661_v0  }
 0x6b8   : > { %1685 = vperm.xlu0 %4216, %v8281_v17   ;;  %v3012_v17 = vsub.s32 %v5786_v42, %v3007_v15 }
 0x6ba   : > { %vm3016_vm1 = vcmp.eq.s32.totalorder %v3012_v17, 0  ;;  %vm3052_vm8 = vcmp.eq.s32.totalorder %v3012_v17, 12 }
 0x6bb   : > { %3220 = vperm.xlu1 %4215, %v6709_v21  }
 0x6bc   : > { %1697 = vperm.xlu0 %4216, %v8284_v16  }
 0x6bf   : > { %3236 = vperm.xlu1 %4215, %v6680_v30  }
 0x6c0   : > { %3286 = vperm.xlu0 %4216, %v6669_v54   ;;  %v8291_v54 = vmov 44  }
 0x6c3   : > { %3252 = vperm.xlu1 %4215, %v6704_v35  }
 0x6c4   : > { %3306 = vperm.xlu0 %4216, %v6709_v21   ;;  %v6786_v21 = vpop.permute.xlu0 %1588 }
 0x6c7   : > { %4217 = vset.pattern.permute.xlu1 %v8290_v40 }
 0x6c8   : > { %3290 = vperm.xlu1 %4217, %v6689_v37   ;;  %3322 = vperm.xlu0 %4216, %v6680_v30   ;;  %v6792_v30 = vpop.permute.xlu0 %3189  ;;  %v8294_v37 = vmov 45  }
 0x6cc   : > { %3302 = vperm.xlu1 %4217, %v6661_v0   ;;  %3338 = vperm.xlu0 %4216, %v6704_v35   ;;  %v8293_v0 = vmov 46   ;;  %v6798_v35 = vpop.permute.xlu0 %1478 }
 0x6d0   : > { %3318 = vperm.xlu1 %4217, %v6722_v14   ;;  %4218 = vset.pattern.permute.xlu0 %v8291_v54  ;;  %v6803_v49 = vpop.permute.xlu0 %1497  ;;  %v3377_v14 = vmul.f32 %v6623_v10, %v8259_v56  ;;  %v6879_v10 = vsel %vm8177_vm6, %v3386_v55, 0.0  ;;  %vm3034_vm6 = vcmp.eq.s32.totalorder %v3012_v17, 1 }
 0x6d1   : > { %1742 = vperm.xlu0 %4218, %v8292_v19  }
 0x6d2   : > { %v6826_v48 = vsel %vm8031_vm14, %v3377_v14, 0.0  ;;  %vm3035_vm14 = vcmp.eq.s32.totalorder %v6843_v38, 1 }
 0x6d4   : > { %3334 = vperm.xlu1 %4217, %v3003_v20   ;;  %v6816_v43 = vpop.permute.xlu0 %1511  ;;  %v8302_v20 = vld [vmem:[#allocation49_spill] sm:$0xff] }
 0x6d5   : > { %3397 = vperm.xlu0 %4218, %v8285_v63  }
 0x6d8   : > { %4219 = vset.pattern.permute.xlu1 %v8291_v54 }
 0x6d9   : > { %3394 = vperm.xlu1 %4219, %v8287_v51   ;;  %4220 = vset.pattern.permute.xlu0 %v8293_v0 }
 0x6da   : > { %1874 = vperm.xlu0 %4220, %v8292_v19  }
 0x6dd   : > { %4221 = vset.pattern.permute.xlu1 %v8294_v37 }
 0x6de   : > { %3488 = vperm.xlu1 %4221, %v8287_v51   ;;  %3574 = vperm.xlu0 %4220, %v8287_v51  }
 0x6e2   : > { %3491 = vperm.xlu1 %4221, %v8285_v63   ;;  %4222 = vset.pattern.permute.xlu0 %v8295_v36 }
 0x6e3   : > { %1936 = vperm.xlu0 %4222, %v8292_v19  }
 0x6e6   : > { %4223 = vset.pattern.permute.xlu1 %v8293_v0 }
 0x6e7   : > { %3577 = vperm.xlu1 %4223, %v8285_v63   ;;  %3663 = vperm.xlu0 %4222, %v8285_v63  }
 0x6eb   : > { %4224 = vset.pattern.permute.xlu1 %v8295_v36  ;;  %4225 = vset.pattern.permute.xlu0 %v8298_v45 }
 0x6ec   : > { %3660 = vperm.xlu1 %4224, %v8287_v51   ;;  %1764 = vperm.xlu0 %4225, %v6814_v7   ;;  %v6886_v51 = vsel %vm8277_vm9, %v3385_v52, 0.0  ;;  %vm3070_vm9 = vcmp.eq.s32.totalorder %v3012_v17, 13 }
 0x6f0   : > { %4226 = vset.pattern.permute.xlu1 %v8298_v45  ;;  %v3040_v39 = vpop.permute.xlu0 %3039  ;;  %1783 = vperm.xlu0 %4225, %v8301_v13   ;;  %v8305_v45 = vmov 29  }
 0x6f1   : > { %3409 = vperm.xlu1 %4226, %v6826_v48   ;;  %v3022_v46 = vpop.permute.xlu1 %3021  ;;  %v3047_v61 = vsel %vm3033_vm12, %v3040_v39, 0.0  ;;  %v3048_v27 = vsel %vm3034_vm6, %v3040_v39, 0.0 }
 0x6f2   : > { %v3029_v40 = vsel %vm3015_vm4, %v3022_v46, 0.0  ;;  %v3030_v29 = vsel %vm3016_vm1, %v3022_v46, 0.0 }
 0x6f3   : > { %v3087_v36 = vadd.f32 %v3047_v61, %v3029_v40  ;;  %v3088_v9 = vadd.f32 %v3048_v27, %v3030_v29  ;;  %v8308_v27 = vld [vmem:[#allocation17_spill] sm:$0xff] }
 0x6f4   : > { %v6833_v56 = vpop.permute.xlu0 %3062  ;;  %1797 = vperm.xlu0 %4225, %v8302_v20   ;;  %v6952_v40 = vsub.s32 %v5438_v57, %v8308_v27  ;;  %v8316_v27 = vld [vmem:[#allocation99_spill] sm:$0xff] }
 0x6f5   : > { %3414 = vperm.xlu1 %4226, %v6838_v32   ;;  %v3027_v60 = vpop.permute.xlu1 %3026 }
 0x6f6   : > { %v3031_v31 = vsel %vm3017_vm0, %v3027_v60, 0.0  ;;  %v3032_v26 = vsel %vm3018_vm11, %v3027_v60, 0.0  ;;  %vm1530_vm6 = vcmp.eq.s32.totalorder %v6952_v40, 0  ;;  %vm1554_vm4 = vcmp.eq.s32.totalorder %v6952_v40, 8 }
 0x6f7   : > { %vm1566_vm1 = vcmp.eq.s32.totalorder %v6952_v40, 9 }
 0x6f8   : > { %v6859_v41 = vpop.permute.xlu0 %3080  ;;  %3427 = vperm.xlu0 %4225, %v6851_v4  }
 0x6f9   : > { %3432 = vperm.xlu1 %4226, %v6864_v1   ;;  %v3045_v53 = vpop.permute.xlu1 %3044 }
 0x6fa   : > { %v3049_v16 = vsel %vm3035_vm14, %v3045_v53, 0.0  ;;  %v3050_v5 = vsel %vm3036_vm13, %v3045_v53, 0.0 }
 0x6fb   : > { %v6873_v63 = vadd.f32 %v3049_v16, %v3031_v31  ;;  %v6875_v22 = vadd.f32 %v3050_v5, %v3032_v26  ;;  %v8306_v5 = vld [vmem:[#allocation16_spill] sm:$0xff] }
 0x6fc   : > { %3450 = vperm.xlu0 %4225, %v6879_v10   ;;  %v6943_v6 = vsub.s32 %v5438_v57, %v8306_v5 }
 0x6fd   : > { %3445 = vperm.xlu1 %4226, %v6886_v51   ;;  %v3058_v8 = vpop.permute.xlu1 %3057  ;;  %v6889_v3 = vpop.permute.xlu0 %1545 }
 0x6fe   : > { %v3065_v19 = vsel %vm3051_vm10, %v3058_v8, 0.0  ;;  %v3066_v0 = vsel %vm3052_vm8, %v3058_v8, 0.0  ;;  %v8307_v8 = vld [vmem:[#allocation15_spill] sm:$0xff]  ;;  %vm1655_vm0 = vcmp.eq.s32.totalorder %v6943_v6, 0  ;;  %vm1667_vm11 = vcmp.eq.s32.totalorder %v6943_v6, 1 }
 0x6ff   : > { %v6947_v61 = vsub.s32 %v5438_v57, %v8307_v8 }
 0x700   : > { %3468 = vperm.xlu0 %4225, %v6897_v24  }
 0x701   : > { %3463 = vperm.xlu1 %4226, %v6893_v62   ;;  %v3076_v59 = vpop.permute.xlu1 %3075  ;;  %v6901_v54 = vpop.permute.xlu0 %1561  ;;  %vm1460_vm14 = vcmp.eq.s32.totalorder %v6947_v61, 0  ;;  %vm1488_vm13 = vcmp.eq.s32.totalorder %v6947_v61, 8  ;;  %vm1502_vm12 = vcmp.eq.s32.totalorder %v6947_v61, 9 }
 0x702   : > { %v3083_v58 = vsel %vm3069_vm15, %v3076_v59, 0.0  ;;  %v3084_v37 = vsel %vm3070_vm9, %v3076_v59, 0.0  ;;  %v8309_v59 = vld [vmem:[#allocation19_spill] sm:$0xff]  ;;  %vm3071_vm15 = vcmp.eq.s32.totalorder %v6843_v38, 13  ;;  %vm3072_vm9 = vcmp.eq.s32.totalorder %v6846_v12, 13 }
 0x703   : > { %v3091_v47 = vadd.f32 %v3083_v58, %v3065_v19  ;;  %v3092_v23 = vadd.f32 %v3084_v37, %v3066_v0  ;;  %v6959_v19 = vsub.s32 %v5438_v57, %v8309_v59  ;;  %v8310_v58 = vld [vmem:[#allocation83_spill] sm:$0xff]  ;;  %v3086_v5 = vsel %vm3072_vm9, %v6859_v41, 0.0 }
 0x704   : > { %4227 = vset.pattern.permute.xlu0 %v8305_v45  ;;  %v1677_v37 = vsel %vm1667_vm11, %v8310_v58, 0.0  ;;  %v7000_v59 = vsel %vm1460_vm14, %v8316_v27, 0.0 }
 0x705   : > { %v6904_v11 = vadd.f32 %v3091_v47, %v3087_v36  ;;  %v6906_v14 = vadd.f32 %v3092_v23, %v3088_v9  ;;  %4228 = vset.pattern.permute.xlu1 %v8305_v45  ;;  %v6909_v15 = vpop.permute.xlu0 %1573  ;;  %1831 = vperm.xlu0 %4227, %v6814_v7   ;;  %v8311_v36 = vmov 30   ;;  %v8312_v47 = vld [vmem:[#allocation101_spill] sm:$0xff]  ;;  %vm1616_vm10 = vcmp.eq.s32.totalorder %v6959_v19, 8 }
 0x706   : > { %3502 = vperm.xlu1 %4228, %v6826_v48   ;;  %v3104_v39 = vpop.permute.xlu1 %3103  ;;  %v1514_v23 = vsel %vm1502_vm12, %v8312_v47, 0.0  ;;  %vm1628_vm8 = vcmp.eq.s32.totalorder %v6959_v19, 9  ;;  %v8313_v45 = vld [vmem:[#allocation21_spill] sm:$0xff]  ;;  %v8317_v47 = vld [vmem:[#allocation104_spill] sm:$0xff]  ;;  %vm1592_vm14 = vcmp.eq.s32.totalorder %v6959_v19, 0 }
 0x707   : > { %v6914_v18 = vsub.s32 %v5438_v57, %v3104_v39  ;;  %v6917_v46 = vsub.s32 %v5786_v42, %v3104_v39  ;;  %v6982_v39 = vsub.s32 %v5438_v57, %v8313_v45 }
 0x709   : > { %v6919_v33 = vpop.permute.xlu0 %3130  ;;  %1847 = vperm.xlu0 %4227, %v8301_v13   ;;  %vm3143_vm2 = vcmp.eq.s32.totalorder %v6914_v18, 12  ;;  %vm3144_vm3 = vcmp.eq.s32.totalorder %v6917_v46, 12  ;;  %vm3159_vm5 = vcmp.eq.s32.totalorder %v6914_v18, 13  ;;  %vm3160_vm7 = vcmp.eq.s32.totalorder %v6917_v46, 13 }
 0x70a   : > { %3518 = vperm.xlu1 %4228, %v6851_v4   ;;  %vm3128_vm11 = vcmp.eq.s32.totalorder %v6917_v46, 1 }
 0x70b   : > { %v6923_v25 = vpop.permute.xlu1 %3186 }
 0x70d   : > { %v3151_v60 = vpop.permute.xlu0 %3150  ;;  %1859 = vperm.xlu0 %4227, %v8302_v20  }
 0x70e   : > { %v3155_v55 = vsel %vm3143_vm2, %v3151_v60, 0.0  ;;  %v3156_v52 = vsel %vm3144_vm3, %v3151_v60, 0.0  ;;  %3522 = vperm.xlu1 %4228, %v6864_v1   ;;  %v8314_v60 = vld [vmem:[#allocation82_spill] sm:$0xff]  ;;  %vm3053_vm2 = vcmp.eq.s32.totalorder %v6843_v38, 12  ;;  %vm3054_vm3 = vcmp.eq.s32.totalorder %v6846_v12, 12 }
 0x70f   : > { %v3067_v45 = vsel %vm3053_vm2, %v6833_v56, 0.0  ;;  %v3105_v38 = vsub.s32 %v5438_v57, %v6781_v2  ;;  %v3106_v12 = vsub.s32 %v5786_v42, %v6781_v2  ;;  %v8318_v2 = vld [vmem:[#allocation102_spill] sm:$0xff]  ;;  %vm1666_vm2 = vcmp.eq.s32.totalorder %v6982_v39, 1 }
 0x710   : > { %v6929_v50 = vpop.permute.xlu1 %3272 }
 0x711   : > { %v3167_v17 = vpop.permute.xlu0 %3166  ;;  %3506 = vperm.xlu0 %4227, %v6838_v32   ;;  %vm3110_vm9 = vcmp.eq.s32.totalorder %v3106_v12, 0 }
 0x712   : > { %v3171_v34 = vsel %vm3159_vm5, %v3167_v17, 0.0  ;;  %v3172_v53 = vsel %vm3160_vm7, %v3167_v17, 0.0  ;;  %3538 = vperm.xlu1 %4228, %v6879_v10   ;;  %v8315_v17 = vld [vmem:[#allocation100_spill] sm:$0xff]  ;;  %vm3111_vm5 = vcmp.eq.s32.totalorder %v6914_v18, 0  ;;  %vm3112_vm7 = vcmp.eq.s32.totalorder %v6917_v46, 0 }
 0x713   : > { %v6935_v31 = vadd.f32 %v3171_v34, %v3155_v55  ;;  %v6937_v26 = vadd.f32 %v3172_v53, %v3156_v52  ;;  %v1665_v55 = vsel %vm1655_vm0, %v8314_v60, 0.0  ;;  %v1500_v34 = vsel %vm1488_vm13, %v8315_v17, 0.0 }
 0x714   : > { %v6939_v16 = vpop.permute.xlu1 %3275  ;;  %v6989_v52 = vadd.f32 %v1677_v37, %v1665_v55  ;;  %v3085_v53 = vsel %vm3071_vm15, %v6859_v41, 0.0  ;;  %v7002_v58 = vadd.f32 %v1514_v23, %v1500_v34  ;;  %v1576_v41 = vsel %vm1566_vm1, %v8317_v47, 0.0 }
 0x715   : > { %3534 = vperm.xlu0 %4227, %v6886_v51   ;;  %v3068_v23 = vsel %vm3054_vm3, %v6833_v56, 0.0  ;;  %v3093_v60 = vadd.f32 %v3085_v53, %v3067_v45  ;;  %vm3127_vm0 = vcmp.eq.s32.totalorder %v6914_v18, 1  ;;  %v7033_v53 = vsel %vm1530_vm6, %v8318_v2, 0.0  ;;  %v8321_v2 = vld [vmem:[#allocation106_spill] sm:$0xff] }
 0x716   : > { %3554 = vperm.xlu1 %4228, %v6897_v24   ;;  %v6955_v29 = vpop.permute.xlu0 %1607  ;;  %v3094_v55 = vadd.f32 %v3086_v5, %v3068_v23  ;;  %v8319_v5 = vld [vmem:[#allocation103_spill] sm:$0xff]  ;;  %vm1690_vm13 = vcmp.eq.s32.totalorder %v6982_v39, 9  ;;  %v8320_v23 = vld [vmem:[#allocation105_spill] sm:$0xff]  ;;  %vm3109_vm15 = vcmp.eq.s32.totalorder %v3105_v38, 0  ;;  %vm3141_vm3 = vcmp.eq.s32.totalorder %v3105_v38, 12 }
 0x717   : > { %v1564_v18 = vsel %vm1554_vm4, %v8319_v5, 0.0  ;;  %v7058_v5 = vsub.s32 %v5438_v57, %v6775_v44  ;;  %vm3158_vm4 = vcmp.eq.s32.totalorder %v3106_v12, 13  ;;  %vm1474_vm6 = vcmp.eq.s32.totalorder %v6947_v61, 1 }
 0x718   : > { %v7041_v45 = vadd.f32 %v1576_v41, %v1564_v18 }
 0x719   : > { %v6965_v0 = vpop.permute.xlu1 %3114  ;;  %3550 = vperm.xlu0 %4227, %v6893_v62  }
 0x71a   : > { %4230 = vset.pattern.permute.xlu1 %v8311_v36  ;;  %v6973_v9 = vpop.permute.xlu0 %1623  ;;  %v3121_v44 = vsel %vm3109_vm15, %v6965_v0, 0.0 }
 0x71b   : > { %3592 = vperm.xlu1 %4230, %v6838_v32   ;;  %v1638_v32 = vsel %vm1628_vm8, %v8321_v2, 0.0  ;;  %vm3126_vm8 = vcmp.eq.s32.totalorder %v3106_v12, 1 }
 0x71d   : > { %v3119_v8 = vpop.permute.xlu1 %3118  ;;  %4229 = vset.pattern.permute.xlu0 %v8311_v36  ;;  %v7014_v36 = vsub.s32 %v5438_v57, %v6767_v28 }
 0x71e   : > { %v7006_v37 = vpop.permute.xlu0 %1635  ;;  %1893 = vperm.xlu0 %4229, %v6814_v7   ;;  %v3123_v56 = vsel %vm3111_vm5, %v3119_v8, 0.0  ;;  %v3124_v17 = vsel %vm3112_vm7, %v3119_v8, 0.0  ;;  %vm3142_vm5 = vcmp.eq.s32.totalorder %v3106_v12, 12  ;;  %vm1542_vm7 = vcmp.eq.s32.totalorder %v6952_v40, 1 }
 0x71f   : > { %3604 = vperm.xlu1 %4230, %v6851_v4   ;;  %vm1461_vm12 = vcmp.eq.s32.totalorder %v7014_v36, 0  ;;  %vm1475_vm1 = vcmp.eq.s32.totalorder %v7014_v36, 1  ;;  %vm1503_vm15 = vcmp.eq.s32.totalorder %v7014_v36, 9 }
 0x721   : > { %v3135_v28 = vpop.permute.xlu1 %3134 }
 0x722   : > { %v3139_v34 = vsel %vm3127_vm0, %v3135_v28, 0.0  ;;  %v3140_v27 = vsel %vm3128_vm11, %v3135_v28, 0.0  ;;  %v7027_v47 = vpop.permute.xlu0 %3204  ;;  %1909 = vperm.xlu0 %4229, %v8301_v13   ;;  %v1626_v28 = vsel %vm1616_vm10, %v8320_v23, 0.0  ;;  %vm3125_vm10 = vcmp.eq.s32.totalorder %v3105_v38, 1 }
 0x723   : > { %v3175_v46 = vadd.f32 %v3139_v34, %v3123_v56  ;;  %v3176_v8 = vadd.f32 %v3140_v27, %v3124_v17  ;;  %3620 = vperm.xlu1 %4230, %v6886_v51   ;;  %v3097_v56 = vadd.f32 %v3093_v60, %v6873_v63  ;;  %v3098_v17 = vadd.f32 %v3094_v55, %v6875_v22 }
 0x724   : > { %v3138_v60 = vsel %vm3126_vm8, %v6919_v33, 0.0  ;;  %vm1604_vm0 = vcmp.eq.s32.totalorder %v6959_v19, 1  ;;  %vm3157_vm11 = vcmp.eq.s32.totalorder %v3105_v38, 13  ;;  %v7084_v12 = vadd.f32 %v1638_v32, %v1626_v28  ;;  %v8329_v28 = vld [vmem:[#allocation107_spill] sm:$0xff]  ;;  %v8335_v19 = vld [vmem:[#allocation80_spill] sm:$0xff] }
 0x725   : > { %v3183_v41 = vadd.f32 %v6935_v31, %v3175_v46  ;;  %v3184_v34 = vadd.f32 %v6937_v26, %v3176_v8  ;;  %v3147_v27 = vpop.permute.xlu1 %3146  ;;  %v3122_v31 = vsel %vm3110_vm9, %v6965_v0, 0.0  ;;  %v3137_v26 = vsel %vm3125_vm10, %v6919_v33, 0.0 }
 0x726   : > { %v7061_v18 = vpop.permute.xlu0 %3232  ;;  %1921 = vperm.xlu0 %4229, %v8302_v20   ;;  %v3153_v46 = vsel %vm3141_vm3, %v3147_v27, 0.0  ;;  %v3154_v8 = vsel %vm3142_vm5, %v3147_v27, 0.0  ;;  %v8324_v33 = vmov 31   ;;  %vm1679_vm10 = vcmp.eq.s32.totalorder %v6943_v6, 8 }
 0x727   : > { %v7064_v63 = vadd.f32 %v3183_v41, %v3097_v56  ;;  %v7066_v22 = vadd.f32 %v3184_v34, %v3098_v17  ;;  %3636 = vperm.xlu1 %4230, %v6893_v62   ;;  %v3173_v56 = vadd.f32 %v3137_v26, %v3121_v44  ;;  %v3174_v17 = vadd.f32 %v3138_v60, %v3122_v31  ;;  %v8328_v31 = vld [vmem:[#allocation77_spill] sm:$0xff] }
 0x728   : > { %v1591_v44 = vsub.s32 %v5438_v57, %v6786_v21  ;;  %v1487_v26 = vsel %vm1475_vm1, %v8328_v31, 0.0  ;;  %vm1489_vm1 = vcmp.eq.s32.totalorder %v7014_v36, 8  ;;  %vm1691_vm8 = vcmp.eq.s32.totalorder %v6943_v6, 9 }
 0x729   : > { %8322 = vst [vmem:[#allocation28_spill] sm:$0xff] %v7064_v63  ;;  %8323 = vst [vmem:[#allocation64_spill] sm:$0xff] %v7066_v22  ;;  %v3163_v55 = vpop.permute.xlu1 %3162  ;;  %v8325_v63 = vld [vmem:[#allocation29_spill] sm:$0xff]  ;;  %v8326_v22 = vld [vmem:[#allocation108_spill] sm:$0xff]  ;;  %vm1555_vm9 = vcmp.eq.s32.totalorder %v7058_v5, 8  ;;  %vm1567_vm3 = vcmp.eq.s32.totalorder %v7058_v5, 9 }
 0x72a   : > { %v3169_v23 = vsel %vm3157_vm11, %v3163_v55, 0.0  ;;  %v3170_v2 = vsel %vm3158_vm4, %v3163_v55, 0.0  ;;  %v7077_v0 = vpop.permute.xlu0 %3248  ;;  %3588 = vperm.xlu0 %4229, %v6826_v48   ;;  %v1602_v38 = vsel %vm1592_vm14, %v8325_v63, 0.0  ;;  %v1700_v27 = vsel %vm1690_vm13, %v8326_v22, 0.0  ;;  %v8327_v55 = vld [vmem:[#allocation76_spill] sm:$0xff]  ;;  %v8331_v22 = vld [vmem:[#allocation10_spill] sm:$0xff] }
 0x72b   : > { %v3177_v41 = vadd.f32 %v3169_v23, %v3153_v46  ;;  %v3178_v34 = vadd.f32 %v3170_v2, %v3154_v8  ;;  %4232 = vset.pattern.permute.xlu1 %v8324_v33  ;;  %v1473_v62 = vsel %vm1461_vm12, %v8327_v55, 0.0  ;;  %vm8330_vm14 = vcmp.eq.s32.totalorder %v6982_v39, 0 }
 0x72c   : > { %3674 = vperm.xlu1 %4232, %v6826_v48   ;;  %v1664_v60 = vsel %vm8330_vm14, %v8329_v28, 0.0  ;;  %vm8332_vm13 = vcmp.eq.s32.totalorder %v6982_v39, 8  ;;  %vm1531_vm12 = vcmp.eq.s32.totalorder %v7058_v5, 0  ;;  %vm1543_vm4 = vcmp.eq.s32.totalorder %v7058_v5, 1  ;;  %v8336_v28 = vld [vmem:[#allocation81_spill] sm:$0xff] }
 0x72d   : > { %v3181_v63 = vadd.f32 %v3177_v41, %v3173_v56  ;;  %v3182_v32 = vadd.f32 %v3178_v34, %v3174_v17  ;;  %v1688_v46 = vsel %vm8332_vm13, %v8331_v22, 0.0  ;;  %v1517_v56 = vadd.f32 %v1487_v26, %v1473_v62  ;;  %v8334_v41 = vld [vmem:[#allocation79_spill] sm:$0xff] }
 0x72e   : > { %v7106_v48 = vpop.permute.xlu1 %3200  ;;  %3608 = vperm.xlu0 %4229, %v6864_v1   ;;  %v1704_v21 = vadd.f32 %v1700_v27, %v1688_v46  ;;  %v1553_v34 = vsel %vm1543_vm4, %v8334_v41, 0.0  ;;  %vm1593_vm5 = vcmp.eq.s32.totalorder %v1591_v44, 0  ;;  %v1552_v62 = vsel %vm1542_vm7, %v6889_v3, 0.0  ;;  %v3982_v3 = vld [vmem:[%s7762_s6] ss:$0 sm:$0xff] }
 0x72f   : > { %v7111_v8 = vadd.f32 %v3181_v63, %v6904_v11  ;;  %v7114_v23 = vadd.f32 %v3182_v32, %v6906_v14  ;;  %v1670_v2 = vpop.permute.xlu0 %1669  ;;  %v8333_v11 = vld [vmem:[#allocation78_spill] sm:$0xff]  ;;  %v1577_v39 = vsel %vm1567_vm3, %v6909_v15, 0.0  ;;  %v1486_v55 = vsel %vm1474_vm6, %v6798_v35, 0.0 }
 0x730   : > { %v1676_v17 = vsel %vm1666_vm2, %v1670_v2, 0.0  ;;  %3690 = vperm.xlu1 %4232, %v6851_v4   ;;  %v1541_v14 = vsel %vm1531_vm12, %v8333_v11, 0.0  ;;  %v1614_v4 = vsel %vm1604_vm0, %v6955_v29, 0.0  ;;  %vm1605_vm2 = vcmp.eq.s32.totalorder %v1591_v44, 1 }
 0x731   : > { %vm1617_vm11 = vcmp.eq.s32.totalorder %v1591_v44, 8  ;;  %vm1629_vm14 = vcmp.eq.s32.totalorder %v1591_v44, 9  ;;  %v1702_v31 = vadd.f32 %v1676_v17, %v1664_v60  ;;  %v1515_v15 = vsel %vm1503_vm15, %v6816_v43, 0.0 }
 0x732   : > { %v7137_v27 = vpop.permute.xlu1 %3216  ;;  %3624 = vperm.xlu0 %4229, %v6879_v10   ;;  %v1565_v29 = vsel %vm1555_vm9, %v6901_v54, 0.0  ;;  %v1603_v26 = vsel %vm1593_vm5, %v8335_v19, 0.0  ;;  %v1639_v35 = vsel %vm1629_vm14, %v7006_v37, 0.0  ;;  %v1578_v61 = vadd.f32 %v1552_v62, %v7033_v53 }
 0x733   : > { %v1686_v40 = vpop.permute.xlu0 %1685  ;;  %v1581_v63 = vadd.f32 %v1577_v39, %v1565_v29  ;;  %v1640_v32 = vadd.f32 %v1614_v4, %v1602_v38  ;;  %v1615_v60 = vsel %vm1605_vm2, %v8336_v28, 0.0  ;;  %v1516_v43 = vadd.f32 %v1486_v55, %v7000_v59 }
 0x734   : > { %3694 = vperm.xlu1 %4232, %v6864_v1   ;;  %v1501_v54 = vsel %vm1489_vm1, %v6803_v49, 0.0  ;;  %v1627_v37 = vsel %vm1617_vm11, %v6973_v9, 0.0  ;;  %v1579_v38 = vadd.f32 %v1553_v34, %v1541_v14  ;;  %v1706_v2 = vadd.f32 %v1704_v21, %v1702_v31 }
 0x735   : > { %v4038_v22 = vpop.f32.mrf.mxu0  ;;  %v1519_v53 = vadd.f32 %v1515_v15, %v1501_v54  ;;  %v1643_v46 = vadd.f32 %v1639_v35, %v1627_v37  ;;  %v1641_v59 = vadd.f32 %v1615_v60, %v1603_v26  ;;  %v1689_v36 = vsel %vm1679_vm10, %v1686_v40, 0.0 }
 0x736   : > { %v2069_v5 = vadd.f32 %v4038_v22, %v3982_v3  ;;  %v7164_v1 = vpop.permute.xlu1 %3220  ;;  %3640 = vperm.xlu0 %4229, %v6897_v24   ;;  %vm8337_vm6 = vcmask 64512   ;;  %v1582_v44 = vadd.f32 %v7041_v45, %v1578_v61  ;;  %v1583_v14 = vadd.f32 %v1581_v63, %v1579_v38 }
 0x737   : > { %v2060_v17 = vpop.f32.mrf.mxu0  ;;  %v1698_v11 = vpop.permute.xlu0 %1697  ;;  %v1644_v21 = vadd.f32 %v7084_v12, %v1640_v32  ;;  %v7178_v62 = vsub.s32 %v5438_v57, %v6792_v30  ;;  %v7182_v39 = vsub.s32 %v5786_v42, %v6792_v30  ;;  %v1520_v6 = vadd.f32 %v7002_v58, %v1516_v43  ;;  %vm8338_vm7 = vmmov %vm8337_vm6 }
 0x738   : > { %2094 = vst.msk [vmem:[%s6441_s20 + $0x10] sm:$0xff] %vm8337_vm6, %v2069_v5  ;;  %v2061_v49 = vadd.f32 %v3982_v3, %v2060_v17  ;;  %v1701_v9 = vsel %vm1691_vm8, %v1698_v11, 0.0  ;;  %3710 = vperm.xlu1 %4232, %v6879_v10   ;;  %v1521_v12 = vadd.f32 %v1519_v53, %v1517_v56  ;;  %v1645_v4 = vadd.f32 %v1643_v46, %v1641_v59  ;;  %vm8339_vm0 = vmmov %vm8337_vm6 }
 0x739   : > { %v1705_v41 = vadd.f32 %v1701_v9, %v1689_v36  ;;  %v4039_v34 = vpop.f32.mrf.mxu0  ;;  %v1710_v55 = vadd.f32 %v1706_v2, %v1644_v21  ;;  %v3191_v30 = vsub.s32 %v5438_v57, %v6923_v25  ;;  %v7198_v58 = vsub.s32 %v5786_v42, %v6923_v25  ;;  %vm8340_vm4 = vmmov %vm8339_vm0  ;;  %v8343_v2 = vld [vmem:[#allocation22_spill] sm:$0xff] }
 0x73a   : > { %2092 = vst.msk [vmem:[%s6441_s20] sm:$0xff] %vm8338_vm7, %v2061_v49  ;;  %v2072_v10 = vadd.f32 %v4039_v34, %v3982_v3  ;;  %v7187_v45 = vpop.permute.xlu1 %3236  ;;  %4231 = vset.pattern.permute.xlu0 %v8324_v33  ;;  %v1708_v56 = vadd.f32 %v1582_v44, %v1520_v6  ;;  %v1709_v29 = vadd.f32 %v1583_v14, %v1521_v12  ;;  %vm3197_vm13 = vcmp.eq.s32.totalorder %v7178_v62, 0 }
 0x73b   : > { %v1707_v31 = vadd.f32 %v1705_v41, %v6989_v52  ;;  %v2063_v40 = vpop.f32.mrf.mxu0  ;;  %v7191_v15 = vpop.permute.xlu0 %3286  ;;  %1955 = vperm.xlu0 %4231, %v6814_v7   ;;  %vm3198_vm12 = vcmp.eq.s32.totalorder %v7182_v39, 0  ;;  %v7210_v25 = vsub.s32 %v5438_v57, %v6939_v16  ;;  %v7222_v35 = vsub.s32 %v5438_v57, %v6929_v50 }
 0x73c   : > { %2095 = vst.msk [vmem:[%s6441_s20 + $0x18] sm:$0xff] %vm8339_vm0, %v2072_v10  ;;  %v2064_v33 = vadd.f32 %v3982_v3, %v2063_v40  ;;  %3726 = vperm.xlu1 %4232, %v6897_v24   ;;  %v7214_v3 = vsub.s32 %v5786_v42, %v6939_v16  ;;  %v1712_v24 = vadd.f32 %v1710_v55, %v1708_v56  ;;  %vm3227_vm8 = vcmp.eq.s32.totalorder %v3191_v30, 12  ;;  %v7321_v55 = vld [vmem:[%s7762_s6 + $0x1] ss:$0 sm:$0xff] }
 0x73d   : > { %v1711_v52 = vadd.f32 %v1707_v31, %v1645_v4  ;;  %vm3228_vm15 = vcmp.eq.s32.totalorder %v7198_v58, 12  ;;  %v7231_v16 = vsub.s32 %v5786_v42, %v6929_v50  ;;  %vm3243_vm11 = vcmp.eq.s32.totalorder %v3191_v30, 13 }
 0x73e   : > { %2093 = vst.msk [vmem:[%s6441_s20 + $0x8] sm:$0xff] %vm8340_vm4, %v2064_v33  ;;  %v3253_v7 = vpop.permute.xlu1 %3252  ;;  %vm3244_vm14 = vcmp.eq.s32.totalorder %v7198_v58, 13  ;;  %vm3195_vm6 = vcmp.eq.s32.totalorder %v3191_v30, 0  ;;  %vm3196_vm7 = vcmp.eq.s32.totalorder %v7198_v58, 0  ;;  %vm3211_vm0 = vcmp.eq.s32.totalorder %v3191_v30, 1 }
 0x73f   : > { %v1713_v19 = vadd.f32 %v1711_v52, %v1709_v29  ;;  %v7217_v26 = vpop.permute.xlu0 %3306  ;;  %1971 = vperm.xlu0 %4231, %v8301_v13   ;;  %vm3212_vm4 = vcmp.eq.s32.totalorder %v7198_v58, 1  ;;  %v3255_v61 = vsel %vm3243_vm11, %v7077_v0, 0.0  ;;  %vm3283_vm9 = vcmp.eq.s32.totalorder %v7210_v25, 0 }
 0x740   : > { %vm3284_vm2 = vcmp.eq.s32.totalorder %v7214_v3, 0  ;;  %vm8341_vm10 = vcmask 523264   ;;  %vm3315_vm1 = vcmp.eq.s32.totalorder %v7210_v25, 12  ;;  %v3256_v32 = vsel %vm3244_vm14, %v7077_v0, 0.0 }
 0x741   : > { %v2002_v13 = vpack.c.bf16 %v1713_v19, %v1712_v24  ;;  %v3223_v28 = vsel %vm3211_vm0, %v7137_v27, 0.0  ;;  %vm3316_vm3 = vcmp.eq.s32.totalorder %v7214_v3, 12  ;;  %vm3331_vm5 = vcmp.eq.s32.totalorder %v7210_v25, 13 }
 0x742   : > { %v3209_v60 = vsel %vm3197_vm13, %v7027_v47, 0.0  ;;  %v3239_v22 = vsel %vm3227_vm8, %v7061_v18, 0.0  ;;  %vm3297_vm14 = vcmp.eq.s32.totalorder %v7222_v35, 1  ;;  %vm3298_vm0 = vcmp.eq.s32.totalorder %v7231_v16, 1 }
 0x743   : > { %v3291_v50 = vpop.permute.xlu1 %3290  ;;  %4040 = vmatprep.mubr.msk.bf16.mxu0 %vm8341_vm10, %v2002_v13  ;;  %v3323_v63 = vpop.permute.xlu0 %3322  ;;  %1983 = vperm.xlu0 %4231, %v8302_v20   ;;  %v3210_v20 = vsel %vm3198_vm12, %v7027_v47, 0.0  ;;  %vm3282_vm10 = vcmp.eq.s32.totalorder %v7231_v16, 0  ;;  %vm3332_vm11 = vcmp.eq.s32.totalorder %v7214_v3, 13  ;;  %v3240_v0 = vsel %vm3228_vm15, %v7061_v18, 0.0 }
 0x744   : > { %v7266_v43 = vadd.f32 %v3255_v61, %v3239_v22  ;;  %v3207_v47 = vsel %vm3195_vm6, %v7106_v48, 0.0  ;;  %vm8342_vm13 = vcmp.eq.s32.totalorder %v7178_v62, 13  ;;  %vm3313_vm12 = vcmp.eq.s32.totalorder %v7222_v35, 12 }
 0x745   : > { %v3257_v54 = vsel %vm8342_vm13, %v3253_v7, 0.0  ;;  %v7273_v37 = vadd.f32 %v3256_v32, %v3240_v0  ;;  %v3208_v5 = vsel %vm3196_vm7, %v7106_v48, 0.0  ;;  %v3224_v18 = vsel %vm3212_vm4, %v7137_v27, 0.0 }
 0x746   : > { %v3259_v53 = vadd.f32 %v3223_v28, %v3207_v47  ;;  %vm3314_vm8 = vcmp.eq.s32.totalorder %v7231_v16, 12  ;;  %vm3329_vm15 = vcmp.eq.s32.totalorder %v7222_v35, 13  ;;  %vm8344_vm13 = vcmp.eq.s32.totalorder %v7178_v62, 12 }
 0x747   : > { %v3303_v38 = vpop.permute.xlu1 %3302  ;;  %v3339_v46 = vpop.permute.xlu0 %3338  ;;  %3678 = vperm.xlu0 %4231, %v8343_v2   ;;  %v3241_v17 = vsel %vm8344_vm13, %v7187_v45, 0.0  ;;  %vm8345_vm7 = vcmp.eq.s32.totalorder %v7182_v39, 13  ;;  %vm8346_vm4 = vcmp.eq.s32.totalorder %v7178_v62, 1  ;;  %vm8347_vm6 = vcmp.eq.s32.totalorder %v7182_v39, 1 }
 0x748   : > { %v3258_v48 = vsel %vm8345_vm7, %v3253_v7, 0.0  ;;  %v3343_v27 = vsel %vm3331_vm5, %v3339_v46, 0.0  ;;  %v3344_v11 = vsel %vm3332_vm11, %v3339_v46, 0.0  ;;  %v3225_v59 = vsel %vm8346_vm4, %v7164_v1, 0.0 }
 0x749   : > { %v3226_v36 = vsel %vm8347_vm6, %v7164_v1, 0.0  ;;  %vm8348_vm13 = vcmp.eq.s32.totalorder %v7182_v39, 12  ;;  %v3265_v9 = vadd.f32 %v3257_v54, %v3241_v17  ;;  %v3295_v44 = vsel %vm3283_vm9, %v3291_v50, 0.0 }
 0x74a   : > { %v3242_v49 = vsel %vm8348_vm13, %v7187_v45, 0.0  ;;  %v3296_v14 = vsel %vm3284_vm2, %v3291_v50, 0.0  ;;  %v3327_v21 = vsel %vm3315_vm1, %v3323_v63, 0.0  ;;  %v3328_v41 = vsel %vm3316_vm3, %v3323_v63, 0.0  ;;  %v8353_v50 = vld [vmem:[#allocation27_spill] sm:$0xff] }
 0x74b   : > { %v3260_v34 = vadd.f32 %v3224_v18, %v3208_v5  ;;  %v3266_v62 = vadd.f32 %v3258_v48, %v3242_v49  ;;  %v3351_v1 = vadd.f32 %v3343_v27, %v3327_v21  ;;  %v3352_v6 = vadd.f32 %v3344_v11, %v3328_v41  ;;  %v3835_v10 = vpop.f32.mrf.mxu1  ;;  %v3319_v39 = vpop.permute.xlu1 %3318  ;;  %3706 = vperm.xlu0 %4231, %v6886_v51   ;;  %v8356_v11 = vld [vmem:[#allocation64_spill] sm:$0xff] }
 0x74c   : > { %v3261_v45 = vadd.f32 %v3225_v59, %v3209_v60  ;;  %vm8349_vm9 = vcmp.eq.s32.totalorder %v7210_v25, 1  ;;  %vm8350_vm1 = vcmp.eq.s32.totalorder %v7214_v3, 1  ;;  %v3836_v31 = vadd.f32 %v7321_v55, %v3835_v10  ;;  %v1743_v40 = vpop.permute.xlu0 %1742 }
 0x74d   : > { %v3311_v12 = vsel %vm8349_vm9, %v7217_v26, 0.0  ;;  %v3312_v4 = vsel %vm8350_vm1, %v7217_v26, 0.0  ;;  %v3262_v30 = vadd.f32 %v3226_v36, %v3210_v20  ;;  %vm8351_vm3 = vcmp.eq.s32.totalorder %v7222_v35, 0  ;;  %v3837_v56 = vpop.f32.mrf.mxu1 }
 0x74e   : > { %v3293_v51 = vsel %vm8351_vm3, %v7191_v15, 0.0  ;;  %v3347_v58 = vadd.f32 %v3311_v12, %v3295_v44  ;;  %v3348_v33 = vadd.f32 %v3312_v4, %v3296_v14  ;;  %v3294_v29 = vsel %vm3282_vm10, %v7191_v15, 0.0 }
 0x74f   : > { %v3269_v52 = vadd.f32 %v3265_v9, %v3261_v45  ;;  %v3309_v7 = vsel %vm3297_vm14, %v3303_v38, 0.0  ;;  %v3310_v25 = vsel %vm3298_vm0, %v3303_v38, 0.0  ;;  %vm8352_vm5 = vcmask 64512   ;;  %v3838_v13 = vpop.f32.mrf.mxu1  ;;  %v3335_v61 = vpop.permute.xlu1 %3334  ;;  %3722 = vperm.xlu0 %4231, %v8353_v50  }
 0x750   : > { %3860 = vst.msk [vmem:[%s6441_s20 + $0x50] sm:$0xff] %vm8352_vm5, %v3836_v31  ;;  %v3270_v3 = vadd.f32 %v3266_v62, %v3262_v30  ;;  %v3355_v24 = vadd.f32 %v3351_v1, %v3347_v58  ;;  %v3356_v19 = vadd.f32 %v3352_v6, %v3348_v33  ;;  %v3325_v26 = vsel %vm3313_vm12, %v3319_v39, 0.0  ;;  %v3398_v60 = vpop.permute.xlu0 %3397  ;;  %vm8355_vm11 = vmmov %vm8352_vm5  ;;  %v8360_v33 = vld [vmem:[#allocation85_spill] sm:$0xff] }
 0x751   : > { %v3326_v15 = vsel %vm3314_vm8, %v3319_v39, 0.0  ;;  %v3839_v63 = vadd.f32 %v7321_v55, %v3838_v13  ;;  %v3341_v32 = vsel %vm3329_vm15, %v3335_v61, 0.0  ;;  %vm8354_vm2 = vcmp.eq.s32.totalorder %v7231_v16, 13  ;;  %v3840_v54 = vpop.f32.mrf.mxu1 }
 0x752   : > { %v3342_v28 = vsel %vm8354_vm2, %v3335_v61, 0.0  ;;  %v3345_v20 = vadd.f32 %v3309_v7, %v3293_v51  ;;  %v3346_v22 = vadd.f32 %v3310_v25, %v3294_v29  ;;  %v3349_v0 = vadd.f32 %v3341_v32, %v3325_v26  ;;  %v8359_v51 = vld [vmem:[#allocation84_spill] sm:$0xff] }
 0x753   : > { %v3350_v47 = vadd.f32 %v3342_v28, %v3326_v15  ;;  %v3267_v5 = vadd.f32 %v7266_v43, %v3259_v53  ;;  %v3268_v18 = vadd.f32 %v7273_v37, %v3260_v34  ;;  %3861 = vst.msk [vmem:[%s6441_s20 + $0x58] sm:$0xff] %vm8355_vm11, %v3839_v63  ;;  %v3363_v38 = vadd.f32 %v3355_v24, %v3269_v52  ;;  %v8357_v43 = vld [vmem:[#allocation28_spill] sm:$0xff] }
 0x754   : > { %v3364_v46 = vadd.f32 %v3356_v19, %v3270_v3  ;;  %v3353_v2 = vadd.f32 %v3349_v0, %v3345_v20  ;;  %v3395_v17 = vpop.permute.xlu1 %3394  ;;  %vm8358_vm10 = vcmask 130048   ;;  %v3401_v39 = vsub.s32 %v5438_v57, %v3398_v60 }
 0x755   : > { %v3354_v35 = vadd.f32 %v3350_v47, %v3346_v22  ;;  %v7350_v27 = vpop.permute.xlu0 %1874  ;;  %v3367_v53 = vadd.f32 %v3363_v38, %v8357_v43  ;;  %v3399_v6 = vsub.s32 %v5438_v57, %v3395_v17  ;;  %v3400_v10 = vsub.s32 %v5786_v42, %v3395_v17 }
 0x756   : > { %v3361_v48 = vadd.f32 %v3353_v2, %v3267_v5  ;;  %v3368_v59 = vadd.f32 %v3364_v46, %v8356_v11  ;;  %v3402_v12 = vsub.s32 %v5786_v42, %v3398_v60  ;;  %vm3405_vm7 = vcmp.eq.s32.totalorder %v3401_v39, 0 }
 0x757   : > { %v3362_v16 = vadd.f32 %v3354_v35, %v3268_v18  ;;  %vm3403_vm8 = vcmp.eq.s32.totalorder %v3399_v6, 0  ;;  %vm3404_vm15 = vcmp.eq.s32.totalorder %v3400_v10, 0  ;;  %vm3421_vm13 = vcmp.eq.s32.totalorder %v3399_v6, 1 }
 0x758   : > { %v3365_v49 = vadd.f32 %v3361_v48, %v7111_v8  ;;  %v1745_v8 = vsub.s32 %v5438_v57, %v1743_v40  ;;  %vm3406_vm4 = vcmp.eq.s32.totalorder %v3402_v12, 0  ;;  %vm3422_vm9 = vcmp.eq.s32.totalorder %v3400_v10, 1 }
 0x759   : > { %v3366_v36 = vadd.f32 %v3362_v16, %v7114_v23  ;;  %v7356_v37 = vpop.permute.xlu1 %3488  ;;  %v7358_v9 = vpop.permute.xlu0 %3574  ;;  %vm3423_vm1 = vcmp.eq.s32.totalorder %v3401_v39, 1  ;;  %vm3424_vm3 = vcmp.eq.s32.totalorder %v3402_v12, 1  ;;  %vm3441_vm5 = vcmp.eq.s32.totalorder %v3401_v39, 12 }
 0x75a   : > { %v3761_v14 = vpack.c.bf16 %v3367_v53, %v3365_v49  ;;  %vm1775_vm14 = vcmp.eq.s32.totalorder %v1745_v8, 8  ;;  %vm1747_vm0 = vcmp.eq.s32.totalorder %v1745_v8, 0  ;;  %vm1761_vm12 = vcmp.eq.s32.totalorder %v1745_v8, 1 }
 0x75b   : > { %v3762_v44 = vpack.c.bf16 %v3368_v59, %v3366_v36  ;;  %v1759_v58 = vsel %vm1747_vm0, %v8359_v51, 0.0  ;;  %v1773_v56 = vsel %vm1761_vm12, %v8360_v33, 0.0  ;;  %vm1789_vm6 = vcmp.eq.s32.totalorder %v1745_v8, 9 }
 0x75c   : > { %v1803_v25 = vadd.f32 %v1773_v56, %v1759_v58  ;;  %vm3442_vm2 = vcmp.eq.s32.totalorder %v3402_v12, 12  ;;  %vm3439_vm11 = vcmp.eq.s32.totalorder %v3399_v6, 12  ;;  %vm3460_vm0 = vcmp.eq.s32.totalorder %v3402_v12, 13 }
 0x75d   : > { %3993 = vmatprep.mubr.msk.bf16.mxu1 %vm8358_vm10, %v3762_v44  ;;  %v7361_v21 = vpop.permute.xlu1 %3491  ;;  %vm3459_vm10 = vcmp.eq.s32.totalorder %v3401_v39, 13  ;;  %vm3457_vm12 = vcmp.eq.s32.totalorder %v3399_v6, 13  ;;  %v3494_v12 = vsub.s32 %v5786_v42, %v7356_v37 }
 0x75e   : > { %3842 = vmatmul.mubr.bf16.gmra.mxu1 %v3761_v14  ;;  %v7363_v41 = vpop.permute.xlu0 %1936 }
 0x762   : > { %v7365_v34 = vpop.permute.xlu1 %3577  ;;  %v7367_v23 = vpop.permute.xlu0 %3663 }
 0x767   : > { %v7370_v62 = vpop.permute.xlu1 %3660  ;;  %v7372_v1 = vpop.permute.xlu0 %1764 }
 0x76b   : > { %v1784_v45 = vpop.permute.xlu0 %1783 }
 0x76c   : > { %v1787_v4 = vsel %vm1775_vm14, %v1784_v45, 0.0  ;;  %v3410_v31 = vpop.permute.xlu1 %3409  ;;  %vm3440_vm14 = vcmp.eq.s32.totalorder %v3400_v10, 12  ;;  %v3493_v45 = vsub.s32 %v5438_v57, %v7356_v37 }
 0x76d   : > { %v3417_v40 = vsel %vm3403_vm8, %v3410_v31, 0.0  ;;  %v3418_v30 = vsel %vm3404_vm15, %v3410_v31, 0.0  ;;  %vm3458_vm8 = vcmp.eq.s32.totalorder %v3400_v10, 13 }
 0x76e   : > { %vm3497_vm15 = vcmp.eq.s32.totalorder %v3493_v45, 0 }
 0x76f   : > { %v1798_v29 = vpop.permute.xlu0 %1797 }
 0x770   : > { %v1801_v52 = vsel %vm1789_vm6, %v1798_v29, 0.0  ;;  %v3415_v7 = vpop.permute.xlu1 %3414  ;;  %vm3498_vm6 = vcmp.eq.s32.totalorder %v3494_v12, 0 }
 0x771   : > { %v1805_v3 = vadd.f32 %v1801_v52, %v1787_v4  ;;  %v3419_v24 = vsel %vm3405_vm7, %v3415_v7, 0.0  ;;  %v3420_v19 = vsel %vm3406_vm4, %v3415_v7, 0.0  ;;  %vm3513_vm7 = vcmp.eq.s32.totalorder %v3493_v45, 1 }
 0x772   : > { %vm3514_vm4 = vcmp.eq.s32.totalorder %v3494_v12, 1 }
 0x773   : > { %v7380_v26 = vadd.f32 %v1805_v3, %v1803_v25  ;;  %v3428_v13 = vpop.permute.xlu0 %3427 }
 0x774   : > { %v3435_v61 = vsel %vm3421_vm13, %v3428_v13, 0.0  ;;  %v3436_v50 = vsel %vm3422_vm9, %v3428_v13, 0.0  ;;  %v3433_v15 = vpop.permute.xlu1 %3432  ;;  %vm3529_vm13 = vcmp.eq.s32.totalorder %v3493_v45, 12  ;;  %vm3530_vm9 = vcmp.eq.s32.totalorder %v3494_v12, 12 }
 0x775   : > { %v3475_v63 = vadd.f32 %v3435_v61, %v3417_v40  ;;  %v3476_v32 = vadd.f32 %v3436_v50, %v3418_v30  ;;  %v3437_v28 = vsel %vm3423_vm1, %v3433_v15, 0.0  ;;  %v3438_v60 = vsel %vm3424_vm3, %v3433_v15, 0.0 }
 0x776   : > { %v3477_v20 = vadd.f32 %v3437_v28, %v3419_v24  ;;  %v3478_v22 = vadd.f32 %v3438_v60, %v3420_v19  ;;  %v3495_v40 = vsub.s32 %v5438_v57, %v7361_v21  ;;  %v3496_v30 = vsub.s32 %v5786_v42, %v7361_v21 }
 0x777   : > { %v3451_v0 = vpop.permute.xlu0 %3450 }
 0x778   : > { %v3455_v47 = vsel %vm3441_vm5, %v3451_v0, 0.0  ;;  %v3456_v54 = vsel %vm3442_vm2, %v3451_v0, 0.0  ;;  %v3446_v5 = vpop.permute.xlu1 %3445  ;;  %vm3515_vm1 = vcmp.eq.s32.totalorder %v3495_v40, 1  ;;  %vm3516_vm3 = vcmp.eq.s32.totalorder %v3496_v30, 1 }
 0x779   : > { %v3453_v38 = vsel %vm3439_vm11, %v3446_v5, 0.0  ;;  %v3454_v46 = vsel %vm3440_vm14, %v3446_v5, 0.0  ;;  %vm3545_vm5 = vcmp.eq.s32.totalorder %v3493_v45, 13  ;;  %vm3546_vm2 = vcmp.eq.s32.totalorder %v3494_v12, 13 }
 0x77a   : > { %vm3499_vm11 = vcmp.eq.s32.totalorder %v3495_v40, 0  ;;  %vm3531_vm14 = vcmp.eq.s32.totalorder %v3495_v40, 12 }
 0x77b   : > { %v3469_v18 = vpop.permute.xlu0 %3468 }
 0x77c   : > { %v3473_v2 = vsel %vm3459_vm10, %v3469_v18, 0.0  ;;  %v3474_v35 = vsel %vm3460_vm0, %v3469_v18, 0.0  ;;  %v3464_v17 = vpop.permute.xlu1 %3463  ;;  %vm3500_vm10 = vcmp.eq.s32.totalorder %v3496_v30, 0  ;;  %vm3532_vm0 = vcmp.eq.s32.totalorder %v3496_v30, 12 }
 0x77d   : > { %v3481_v48 = vadd.f32 %v3473_v2, %v3455_v47  ;;  %v3482_v16 = vadd.f32 %v3474_v35, %v3456_v54  ;;  %v3471_v11 = vsel %vm3457_vm12, %v3464_v17, 0.0  ;;  %v3472_v59 = vsel %vm3458_vm8, %v3464_v17, 0.0 }
 0x77e   : > { %v3479_v36 = vadd.f32 %v3471_v11, %v3453_v38  ;;  %v3480_v49 = vadd.f32 %v3472_v59, %v3454_v46  ;;  %vm3547_vm12 = vcmp.eq.s32.totalorder %v3495_v40, 13  ;;  %vm3548_vm8 = vcmp.eq.s32.totalorder %v3496_v30, 13  ;;  %v8362_v40 = vld [vmem:[#allocation23_spill] sm:$0xff] }
 0x77f   : > { %v3485_v43 = vadd.f32 %v3481_v48, %v3477_v20  ;;  %v3486_v53 = vadd.f32 %v3482_v16, %v3478_v22 }
 0x780   : > { %v7382_v44 = vadd.f32 %v3479_v36, %v3475_v63  ;;  %v7384_v14 = vadd.f32 %v3480_v49, %v3476_v32  ;;  %v7386_v8 = vpop.permute.xlu0 %1831 }
 0x781   : > { %v3503_v6 = vpop.permute.xlu1 %3502 }
 0x782   : > { %v3509_v32 = vsel %vm3497_vm15, %v3503_v6, 0.0  ;;  %v3510_v28 = vsel %vm3498_vm6, %v3503_v6, 0.0 }
 0x784   : > { %v7388_v10 = vpop.permute.xlu0 %1847 }
 0x785   : > { %v3519_v39 = vpop.permute.xlu1 %3518 }
 0x786   : > { %v3525_v21 = vsel %vm3513_vm7, %v3519_v39, 0.0  ;;  %v3526_v29 = vsel %vm3514_vm4, %v3519_v39, 0.0 }
 0x787   : > { %v3561_v18 = vadd.f32 %v3525_v21, %v3509_v32  ;;  %v3562_v38 = vadd.f32 %v3526_v29, %v3510_v28  ;;  %v8366_v29 = vld [vmem:[#allocation87_spill] sm:$0xff]  ;;  %v8371_v32 = vld [vmem:[#allocation117_spill] sm:$0xff] }
 0x788   : > { %v7394_v4 = vpop.permute.xlu0 %1859 }
 0x789   : > { %v3523_v31 = vpop.permute.xlu1 %3522 }
 0x78a   : > { %v3527_v52 = vsel %vm3515_vm1, %v3523_v31, 0.0  ;;  %v3528_v7 = vsel %vm3516_vm3, %v3523_v31, 0.0 }
 0x78c   : > { %v3507_v51 = vpop.permute.xlu0 %3506 }
 0x78d   : > { %v3539_v58 = vpop.permute.xlu1 %3538  ;;  %v3511_v37 = vsel %vm3499_vm11, %v3507_v51, 0.0  ;;  %v3512_v33 = vsel %vm3500_vm10, %v3507_v51, 0.0  ;;  %v8364_v51 = vld [vmem:[#allocation25_spill] sm:$0xff] }
 0x78e   : > { %v3543_v3 = vsel %vm3531_vm14, %v3539_v58, 0.0  ;;  %v3544_v24 = vsel %vm3532_vm0, %v3539_v58, 0.0  ;;  %v3563_v61 = vadd.f32 %v3527_v52, %v3511_v37  ;;  %v3564_v50 = vadd.f32 %v3528_v7, %v3512_v33  ;;  %v8365_v33 = vld [vmem:[#allocation26_spill] sm:$0xff]  ;;  %v8367_v7 = vld [vmem:[#allocation111_spill] sm:$0xff] }
 0x78f   : > { %v7444_v58 = vsub.s32 %v5438_v57, %v8364_v51 }
 0x790   : > { %v3535_v56 = vpop.permute.xlu0 %3534 }
 0x791   : > { %v3555_v25 = vpop.permute.xlu1 %3554  ;;  %v3541_v60 = vsel %vm3529_vm13, %v3535_v56, 0.0  ;;  %v3542_v20 = vsel %vm3530_vm9, %v3535_v56, 0.0  ;;  %v7450_v56 = vsub.s32 %v5438_v57, %v8365_v33  ;;  %vm1902_vm10 = vcmp.eq.s32.totalorder %v7444_v58, 8  ;;  %v8378_v33 = vld [vmem:[#allocation118_spill] sm:$0xff] }
 0x792   : > { %v3559_v19 = vsel %vm3547_vm12, %v3555_v25, 0.0  ;;  %v3560_v13 = vsel %vm3548_vm8, %v3555_v25, 0.0  ;;  %vm1914_vm14 = vcmp.eq.s32.totalorder %v7444_v58, 9 }
 0x793   : > { %v3567_v15 = vadd.f32 %v3559_v19, %v3543_v3  ;;  %v3568_v63 = vadd.f32 %v3560_v13, %v3544_v24  ;;  %v8368_v24 = vld [vmem:[#allocation114_spill] sm:$0xff]  ;;  %vm1940_vm8 = vcmp.eq.s32.totalorder %v7450_v56, 0  ;;  %vm1964_vm1 = vcmp.eq.s32.totalorder %v7450_v56, 8 }
 0x794   : > { %v3551_v22 = vpop.permute.xlu0 %3550  ;;  %v7474_v13 = vsub.s32 %v5438_v57, %v7350_v27  ;;  %v1924_v28 = vsel %vm1914_vm14, %v8371_v32, 0.0  ;;  %v8381_v32 = vld [vmem:[#allocation88_spill] sm:$0xff] }
 0x795   : > { %v3571_v0 = vadd.f32 %v3567_v15, %v3563_v61  ;;  %v3572_v47 = vadd.f32 %v3568_v63, %v3564_v50  ;;  %v3557_v54 = vsel %vm3545_vm5, %v3551_v22, 0.0  ;;  %v3558_v5 = vsel %vm3546_vm2, %v3551_v22, 0.0  ;;  %v8369_v61 = vld [vmem:[#allocation86_spill] sm:$0xff]  ;;  %v8372_v22 = vld [vmem:[#allocation109_spill] sm:$0xff] }
 0x796   : > { %v3565_v46 = vadd.f32 %v3557_v54, %v3541_v60  ;;  %v3566_v2 = vadd.f32 %v3558_v5, %v3542_v20  ;;  %v7408_v35 = vpop.permute.xlu1 %3592  ;;  %vm1878_vm2 = vcmp.eq.s32.totalorder %v7444_v58, 0  ;;  %v8370_v15 = vld [vmem:[#allocation110_spill] sm:$0xff]  ;;  %v8374_v5 = vld [vmem:[#allocation112_spill] sm:$0xff] }
 0x797   : > { %v7410_v17 = vadd.f32 %v3571_v0, %v3485_v43  ;;  %v7412_v48 = vadd.f32 %v3572_v47, %v3486_v53  ;;  %v8361_v53 = vld [vmem:[#allocation18_spill] sm:$0xff]  ;;  %v8373_v47 = vld [vmem:[#allocation113_spill] sm:$0xff] }
 0x798   : > { %v3569_v16 = vadd.f32 %v3565_v46, %v3561_v18  ;;  %v3570_v11 = vadd.f32 %v3566_v2, %v3562_v38  ;;  %v7432_v12 = vsub.s32 %v5438_v57, %v8361_v53  ;;  %v8375_v46 = vld [vmem:[#allocation115_spill] sm:$0xff] }
 0x799   : > { %v7414_v59 = vpop.permute.xlu0 %1893  ;;  %v1888_v2 = vsel %vm1878_vm2, %v8375_v46, 0.0 }
 0x79a   : > { %v7417_v36 = vadd.f32 %v3569_v16, %v7382_v44  ;;  %v7420_v49 = vadd.f32 %v3570_v11, %v7384_v14  ;;  %v7422_v6 = vpop.permute.xlu1 %3604  ;;  %v7438_v44 = vsub.s32 %v5438_v57, %v8362_v40  ;;  %v8363_v14 = vld [vmem:[#allocation24_spill] sm:$0xff]  ;;  %vm1817_vm15 = vcmp.eq.s32.totalorder %v7432_v12, 0 }
 0x79b   : > { %v1814_v30 = vsub.s32 %v5438_v57, %v8363_v14  ;;  %vm1829_vm6 = vcmp.eq.s32.totalorder %v7432_v12, 1  ;;  %vm1841_vm12 = vcmp.eq.s32.totalorder %v7432_v12, 8  ;;  %v1827_v50 = vsel %vm1817_vm15, %v8369_v61, 0.0  ;;  %v8376_v16 = vld [vmem:[#allocation116_spill] sm:$0xff] }
 0x79c   : > { %vm1746_vm7 = vcmp.eq.s32.totalorder %v7438_v44, 0  ;;  %vm1774_vm4 = vcmp.eq.s32.totalorder %v7438_v44, 8  ;;  %vm1788_vm13 = vcmp.eq.s32.totalorder %v7438_v44, 9  ;;  %v1839_v52 = vsel %vm1829_vm6, %v8366_v29, 0.0  ;;  %v8377_v14 = vld [vmem:[#allocation120_spill] sm:$0xff] }
 0x79d   : > { %v7424_v39 = vpop.permute.xlu0 %1909  ;;  %vm1816_vm9 = vcmp.eq.s32.totalorder %v1814_v30, 0  ;;  %vm1840_vm3 = vcmp.eq.s32.totalorder %v1814_v30, 8  ;;  %vm1852_vm5 = vcmp.eq.s32.totalorder %v1814_v30, 9  ;;  %vm1828_vm11 = vcmp.eq.s32.totalorder %v1814_v30, 1 }
 0x79e   : > { %v7426_v45 = vpop.permute.xlu1 %3620  ;;  %v1800_v25 = vsel %vm1788_vm13, %v8367_v7, 0.0  ;;  %vm1760_vm0 = vcmp.eq.s32.totalorder %v7438_v44, 1  ;;  %v1862_v19 = vsel %vm1852_vm5, %v8368_v24, 0.0  ;;  %v1786_v63 = vsel %vm1774_vm4, %v8370_v15, 0.0 }
 0x79f   : > { %vm1976_vm6 = vcmp.eq.s32.totalorder %v7450_v56, 9  ;;  %v1865_v20 = vadd.f32 %v1839_v52, %v1827_v50  ;;  %v1758_v27 = vsel %vm1746_vm7, %v8372_v22, 0.0  ;;  %v7489_v0 = vadd.f32 %v1800_v25, %v1786_v63  ;;  %v8379_v52 = vld [vmem:[#allocation119_spill] sm:$0xff] }
 0x7a0   : > { %v1850_v54 = vsel %vm1840_vm3, %v8373_v47, 0.0  ;;  %v1826_v18 = vsel %vm1816_vm9, %v8374_v5, 0.0  ;;  %v1912_v11 = vsel %vm1902_vm10, %v8376_v16, 0.0  ;;  %vm1890_vm15 = vcmp.eq.s32.totalorder %v7444_v58, 1 }
 0x7a1   : > { %v7428_v43 = vpop.permute.xlu0 %1921  ;;  %v1866_v38 = vadd.f32 %v1862_v19, %v1850_v54  ;;  %v7504_v40 = vadd.f32 %v1924_v28, %v1912_v11  ;;  %v1986_v51 = vsel %vm1976_vm6, %v8377_v14, 0.0  ;;  %vm1879_vm7 = vcmp.eq.s32.totalorder %v7474_v13, 0  ;;  %v8382_v28 = vld [vmem:[#allocation89_spill] sm:$0xff] }
 0x7a2   : > { %v7434_v31 = vpop.permute.xlu1 %3636  ;;  %vm1891_vm4 = vcmp.eq.s32.totalorder %v7474_v13, 1  ;;  %vm1952_vm13 = vcmp.eq.s32.totalorder %v7450_v56, 1  ;;  %v1950_v29 = vsel %vm1940_vm8, %v8378_v33, 0.0  ;;  %v1974_v7 = vsel %vm1964_vm1, %v8379_v52, 0.0 }
 0x7a3   : > { %v7518_v25 = vsub.s32 %v5438_v57, %v7358_v9  ;;  %v7522_v24 = vsub.s32 %v5438_v57, %v7363_v41  ;;  %v7526_v19 = vsub.s32 %v5786_v42, %v7358_v9  ;;  %v7530_v61 = vsub.s32 %v5438_v57, %v7365_v34 }
 0x7a4   : > { %v1838_v50 = vsel %vm1828_vm11, %v7386_v8, 0.0  ;;  %vm8380_vm9 = vcmp.eq.s32.totalorder %v7432_v12, 9  ;;  %v7537_v63 = vadd.f32 %v1986_v51, %v1974_v7  ;;  %v7541_v41 = vsub.s32 %v5786_v42, %v7365_v34 }
 0x7a5   : > { %v7446_v37 = vpop.permute.xlu0 %3588  ;;  %v1863_v15 = vsel %vm8380_vm9, %v7394_v4, 0.0  ;;  %v1889_v9 = vsel %vm1879_vm7, %v8381_v32, 0.0  ;;  %v1901_v22 = vsel %vm1891_vm4, %v8382_v28, 0.0  ;;  %v1772_v8 = vsel %vm1760_vm0, %v7372_v1, 0.0 }
 0x7a6   : > { %v1851_v4 = vsel %vm1841_vm12, %v7388_v10, 0.0  ;;  %vm1903_vm1 = vcmp.eq.s32.totalorder %v7474_v13, 8  ;;  %vm1915_vm3 = vcmp.eq.s32.totalorder %v7474_v13, 9  ;;  %v1864_v34 = vadd.f32 %v1838_v50, %v1826_v18  ;;  %v8383_v18 = vld [vmem:[#allocation90_spill] sm:$0xff] }
 0x7a7   : > { %v7458_v21 = vpop.permute.xlu1 %3674  ;;  %v1867_v30 = vadd.f32 %v1863_v15, %v1851_v4  ;;  %vm1941_vm5 = vcmp.eq.s32.totalorder %v7522_v24, 0  ;;  %vm1953_vm2 = vcmp.eq.s32.totalorder %v7522_v24, 1  ;;  %v7561_v5 = vsub.s32 %v5438_v57, %v7367_v23 }
 0x7a8   : > { %v7565_v1 = vsub.s32 %v5786_v42, %v7367_v23  ;;  %vm3585_vm11 = vcmp.eq.s32.totalorder %v7530_v61, 0  ;;  %vm3615_vm10 = vcmp.eq.s32.totalorder %v7518_v25, 12  ;;  %v1927_v10 = vadd.f32 %v1901_v22, %v1889_v9 }
 0x7a9   : > { %v7467_v3 = vpop.permute.xlu0 %3608  ;;  %vm3631_vm14 = vcmp.eq.s32.totalorder %v7518_v25, 13  ;;  %vm3632_vm0 = vcmp.eq.s32.totalorder %v7526_v19, 13  ;;  %v1802_v12 = vadd.f32 %v1772_v8, %v1758_v27  ;;  %vm3586_vm12 = vcmp.eq.s32.totalorder %v7541_v41, 0  ;;  %v8384_v27 = vld [vmem:[#allocation91_spill] sm:$0xff] }
 0x7aa   : > { %vm3601_vm8 = vcmp.eq.s32.totalorder %v7530_v61, 1  ;;  %vm3602_vm6 = vcmp.eq.s32.totalorder %v7541_v41, 1  ;;  %v1900_v23 = vsel %vm1890_vm15, %v7414_v59, 0.0  ;;  %vm3633_vm7 = vcmp.eq.s32.totalorder %v7530_v61, 13 }
 0x7ab   : > { %v7484_v60 = vpop.permute.xlu1 %3690  ;;  %v1951_v46 = vsel %vm1941_vm5, %v8383_v18, 0.0  ;;  %v1963_v16 = vsel %vm1953_vm2, %v8384_v27, 0.0  ;;  %v1868_v11 = vadd.f32 %v1866_v38, %v1864_v34  ;;  %v1869_v14 = vadd.f32 %v1867_v30, %v1865_v20 }
 0x7ac   : > { %v1925_v58 = vsel %vm1915_vm3, %v7428_v43, 0.0  ;;  %v7596_v33 = vsub.s32 %v5438_v57, %v7370_v62  ;;  %v7600_v20 = vsub.s32 %v5786_v42, %v7370_v62  ;;  %vm3634_vm3 = vcmp.eq.s32.totalorder %v7541_v41, 13 }
 0x7ad   : > { %v7502_v53 = vpop.permute.xlu0 %3624  ;;  %v1806_v43 = vadd.f32 %v7489_v0, %v1802_v12  ;;  %v1926_v38 = vadd.f32 %v1900_v23, %v1888_v2  ;;  %v1913_v56 = vsel %vm1903_vm1, %v7424_v39, 0.0  ;;  %vm3720_vm15 = vcmp.eq.s32.totalorder %v7565_v1, 13 }
 0x7ae   : > { %v1929_v57 = vadd.f32 %v1925_v58, %v1913_v56  ;;  %vm1977_vm2 = vcmp.eq.s32.totalorder %v7522_v24, 9  ;;  %v1989_v52 = vadd.f32 %v1963_v16, %v1951_v46  ;;  %v1995_v2 = vadd.f32 %v1869_v14, %v7380_v26 }
 0x7af   : > { %v7545_v47 = vpop.permute.xlu1 %3694  ;;  %v1994_v0 = vadd.f32 %v1868_v11, %v1806_v43  ;;  %vm3671_vm4 = vcmp.eq.s32.totalorder %v7561_v5, 0  ;;  %vm3672_vm1 = vcmp.eq.s32.totalorder %v7565_v1, 0  ;;  %v3597_v39 = vsel %vm3585_vm11, %v7408_v35, 0.0 }
 0x7b0   : > { %v3598_v13 = vsel %vm3586_vm12, %v7408_v35, 0.0  ;;  %vm3583_vm5 = vcmp.eq.s32.totalorder %v7518_v25, 0  ;;  %vm3584_vm9 = vcmp.eq.s32.totalorder %v7526_v19, 0  ;;  %v3613_v26 = vsel %vm3601_vm8, %v7467_v3, 0.0 }
 0x7b1   : > { %v7547_v54 = vpop.permute.xlu0 %3640  ;;  %v1930_v7 = vadd.f32 %v7504_v40, %v1926_v38  ;;  %v3627_v50 = vsel %vm3615_vm10, %v7426_v45, 0.0  ;;  %v3643_v35 = vsel %vm3631_vm14, %v7434_v31, 0.0  ;;  %v3644_v15 = vsel %vm3632_vm0, %v7434_v31, 0.0 }
 0x7b2   : > { %vm3599_vm11 = vcmp.eq.s32.totalorder %v7518_v25, 1  ;;  %vm3600_vm12 = vcmp.eq.s32.totalorder %v7526_v19, 1  ;;  %vm3616_vm8 = vcmp.eq.s32.totalorder %v7526_v19, 12  ;;  %v3645_v40 = vsel %vm3633_vm7, %v7547_v54, 0.0 }
 0x7b3   : > { %v7590_v59 = vpop.permute.xlu1 %3710  ;;  %v3646_v9 = vsel %vm3634_vm3, %v7547_v54, 0.0  ;;  %v3649_v31 = vadd.f32 %v3613_v26, %v3597_v39  ;;  %vm8385_vm10 = vcmp.eq.s32.totalorder %v7522_v24, 8  ;;  %vm3686_vm0 = vcmp.eq.s32.totalorder %v7600_v20, 1 }
 0x7b4   : > { %vm8387_vm7 = vcmp.eq.s32.totalorder %v7541_v41, 12  ;;  %vm8388_vm3 = vcmp.eq.s32.totalorder %v7561_v5, 13  ;;  %vm8389_vm14 = vcmp.eq.s32.totalorder %v7561_v5, 1  ;;  %v3595_v38 = vsel %vm3583_vm5, %v7446_v37, 0.0 }
 0x7b5   : > { %v3699_v24 = vsel %vm8389_vm14, %v7545_v47, 0.0  ;;  %vm3702_vm14 = vcmp.eq.s32.totalorder %v7600_v20, 12  ;;  %v3596_v56 = vsel %vm3584_vm9, %v7446_v37, 0.0  ;;  %v3611_v39 = vsel %vm3599_vm11, %v7422_v6, 0.0 }
 0x7b6   : > { %v1956_v44 = vpop.permute.xlu0 %1955  ;;  %v3628_v26 = vsel %vm3616_vm8, %v7426_v45, 0.0  ;;  %v3651_v37 = vadd.f32 %v3643_v35, %v3627_v50  ;;  %vm8393_vm9 = vcmp.eq.s32.totalorder %v7600_v20, 0  ;;  %vm8394_vm5 = vcmask 523264  }
 0x7b7   : > { %v1962_v51 = vsel %vm1952_vm13, %v1956_v44, 0.0  ;;  %vm3688_vm13 = vcmp.eq.s32.totalorder %v7565_v1, 1  ;;  %v3727_v32 = vpop.permute.xlu1 %3726  ;;  %v3682_v45 = vsel %vm8393_vm9, %v7458_v21, 0.0 }
 0x7b8   : > { %v1988_v42 = vadd.f32 %v1962_v51, %v1950_v29  ;;  %v3614_v29 = vsel %vm3602_vm6, %v7467_v3, 0.0  ;;  %v1931_v3 = vadd.f32 %v1929_v57, %v1927_v10  ;;  %vm8386_vm6 = vcmp.eq.s32.totalorder %v7530_v61, 12 }
 0x7b9   : > { %v3650_v8 = vadd.f32 %v3614_v29, %v3598_v13  ;;  %v3629_v30 = vsel %vm8386_vm6, %v7502_v53, 0.0  ;;  %v3731_v54 = vsel %vm8388_vm3, %v3727_v32, 0.0  ;;  %v3732_v61 = vsel %vm3720_vm15, %v3727_v32, 0.0 }
 0x7ba   : > { %v1972_v62 = vpop.permute.xlu0 %1971  ;;  %v1992_v28 = vadd.f32 %v7537_v63, %v1988_v42  ;;  %v3630_v63 = vsel %vm8387_vm7, %v7502_v53, 0.0  ;;  %v3653_v12 = vadd.f32 %v3645_v40, %v3629_v30  ;;  %v3700_v53 = vsel %vm3688_vm13, %v7545_v47, 0.0 }
 0x7bb   : > { %v1975_v4 = vsel %vm8385_vm10, %v1972_v62, 0.0  ;;  %vm3669_vm10 = vcmp.eq.s32.totalorder %v7596_v33, 0  ;;  %v3654_v23 = vadd.f32 %v3646_v9, %v3630_v63  ;;  %vm8390_vm6 = vcmp.eq.s32.totalorder %v7561_v5, 12 }
 0x7bc   : > { %v3715_v41 = vsel %vm8390_vm6, %v7590_v59, 0.0  ;;  %v1996_v44 = vadd.f32 %v1992_v28, %v1930_v7  ;;  %vm3701_vm7 = vcmp.eq.s32.totalorder %v7596_v33, 12  ;;  %vm3717_vm3 = vcmp.eq.s32.totalorder %v7596_v33, 13 }
 0x7bd   : > { %vm8391_vm15 = vcmp.eq.s32.totalorder %v7565_v1, 12  ;;  %v3739_v47 = vadd.f32 %v3731_v54, %v3715_v41  ;;  %v3658_v57 = vadd.f32 %v3654_v23, %v3650_v8  ;;  %v3612_v13 = vsel %vm3600_vm12, %v7422_v6, 0.0  ;;  %v4308_v41 = vld [vmem:[%s7762_s6] ss:$0 sm:$0xff] }
 0x7be   : > { %v1984_v22 = vpop.permute.xlu0 %1983  ;;  %v3716_v27 = vsel %vm8391_vm15, %v7590_v59, 0.0  ;;  %v3657_v59 = vadd.f32 %v3653_v12, %v3649_v31  ;;  %v1998_v42 = vadd.f32 %v1996_v44, %v1994_v0  ;;  %v3652_v29 = vadd.f32 %v3644_v15, %v3628_v26 }
 0x7bf   : > { %v1987_v34 = vsel %vm1977_vm2, %v1984_v22, 0.0  ;;  %vm3718_vm2 = vcmp.eq.s32.totalorder %v7600_v20, 13  ;;  %v3740_v14 = vadd.f32 %v3732_v61, %v3716_v27  ;;  %v3647_v32 = vadd.f32 %v3611_v39, %v3595_v38 }
 0x7c0   : > { %v1991_v10 = vadd.f32 %v1987_v34, %v1975_v4  ;;  %v3698_v40 = vsel %vm3686_vm0, %v7484_v60, 0.0  ;;  %v3681_v6 = vsel %vm3669_vm10, %v7458_v21, 0.0  ;;  %vm8395_vm13 = vcmask 130048  }
 0x7c1   : > { %v3734_v22 = vadd.f32 %v3698_v40, %v3682_v45  ;;  %v3655_v8 = vadd.f32 %v3651_v37, %v3647_v32 }
 0x7c2   : > { %v1993_v18 = vadd.f32 %v1991_v10, %v1989_v52  ;;  %v3679_v46 = vpop.permute.xlu0 %3678 }
 0x7c3   : > { %v3683_v16 = vsel %vm3671_vm4, %v3679_v46, 0.0  ;;  %v3684_v11 = vsel %vm3672_vm1, %v3679_v46, 0.0  ;;  %vm8392_vm4 = vcmp.eq.s32.totalorder %v7596_v33, 1  ;;  %vm8396_vm1 = vcmask 64512  }
 0x7c4   : > { %v1997_v58 = vadd.f32 %v1993_v18, %v1931_v3  ;;  %v3735_v51 = vadd.f32 %v3699_v24, %v3683_v16  ;;  %v3736_v43 = vadd.f32 %v3700_v53, %v3684_v11  ;;  %v3648_v3 = vadd.f32 %v3612_v13, %v3596_v56  ;;  %vm8397_vm11 = vmmov %vm8396_vm1 }
 0x7c5   : > { %v3697_v25 = vsel %vm8392_vm4, %v7484_v60, 0.0  ;;  %vm8398_vm12 = vmmov %vm8396_vm1 }
 0x7c6   : > { %v1999_v5 = vadd.f32 %v1997_v58, %v1995_v2  ;;  %v3743_v62 = vadd.f32 %v3739_v47, %v3735_v51  ;;  %v3744_v52 = vadd.f32 %v3740_v14, %v3736_v43  ;;  %v3707_v1 = vpop.permute.xlu0 %3706  ;;  %v3733_v21 = vadd.f32 %v3697_v25, %v3681_v6  ;;  %vm8399_vm8 = vmmov %vm8396_vm1 }
 0x7c7   : > { %v3713_v15 = vsel %vm3701_vm7, %v3707_v1, 0.0  ;;  %v3714_v60 = vsel %vm3702_vm14, %v3707_v1, 0.0  ;;  %v3656_v4 = vadd.f32 %v3652_v29, %v3648_v3  ;;  %vm8400_vm0 = vmmov %vm8396_vm1 }
 0x7c8   : > { %v3751_v7 = vadd.f32 %v3743_v62, %v3657_v59  ;;  %v3752_v0 = vadd.f32 %v3744_v52, %v3658_v57  ;;  %v2003_v2 = vpack.c.bf16 %v1999_v5, %v1998_v42  ;;  %vm8401_vm10 = vmmov %vm8400_vm0 }
 0x7c9   : > { %vm8403_vm6 = vmmov %vm8400_vm0 }
 0x7ca   : > { %v3756_v19 = vadd.f32 %v3752_v0, %v7412_v48  ;;  %4041 = vmatmul.mubr.msk.bf16.gmra.mxu0 %vm8394_vm5, %v2003_v2  ;;  %v3723_v50 = vpop.permute.xlu0 %3722  ;;  %v3755_v35 = vadd.f32 %v3751_v7, %v7410_v17 }
 0x7cb   : > { %v3729_v9 = vsel %vm3717_vm3, %v3723_v50, 0.0  ;;  %v3730_v28 = vsel %vm3718_vm2, %v3723_v50, 0.0  ;;  %vm8402_vm2 = vmmov %vm8400_vm0 }
 0x7cc   : > { %v3737_v48 = vadd.f32 %v3729_v9, %v3713_v15  ;;  %v3738_v31 = vadd.f32 %v3730_v28, %v3714_v60 }
 0x7ce   : > { %v3741_v17 = vadd.f32 %v3737_v48, %v3733_v21  ;;  %v3742_v34 = vadd.f32 %v3738_v31, %v3734_v22 }
 0x7d0   : > { %v3749_v30 = vadd.f32 %v3741_v17, %v3655_v8  ;;  %v3750_v63 = vadd.f32 %v3742_v34, %v3656_v4 }
 0x7d2   : > { %v3754_v54 = vadd.f32 %v3750_v63, %v7420_v49  ;;  %v3753_v33 = vadd.f32 %v3749_v30, %v7417_v36 }
 0x7d4   : > { %v3764_v10 = vpack.c.bf16 %v3756_v19, %v3754_v54  ;;  %v3763_v20 = vpack.c.bf16 %v3755_v35, %v3753_v33 }
 0x7d6   : > { %3994 = vmatprep.mubr.msk.bf16.mxu1 %vm8395_vm13, %v3764_v10 }
 0x7d7   : > { %3850 = vmatmul.mubr.bf16.gmra.mxu1 %v3763_v20 }
 0x81e   : > { %v3843_v24 = vpop.f32.mrf.mxu1 }
 0x81f   : > { %v3844_v12 = vadd.f32 %v7321_v55, %v3843_v24 }
 0x820   : > { %v3845_v23 = vpop.f32.mrf.mxu1 }
 0x821   : > { %3862 = vst.msk [vmem:[%s6441_s20 + $0x60] sm:$0xff] %vm8396_vm1, %v3844_v12 }
 0x822   : > { %v3846_v61 = vpop.f32.mrf.mxu1 }
 0x823   : > { %v3847_v49 = vadd.f32 %v7321_v55, %v3846_v61 }
 0x824   : > { %v3848_v53 = vpop.f32.mrf.mxu1 }
 0x825   : > { %3863 = vst.msk [vmem:[%s6441_s20 + $0x68] sm:$0xff] %vm8397_vm11, %v3847_v49 }
 0x88a   : > { %v4042_v36 = vpop.f32.mrf.mxu0 }
 0x88b   : > { %v2085_v44 = vadd.f32 %v4308_v41, %v4042_v36 }
 0x88c   : > { %v2076_v18 = vpop.f32.mrf.mxu0 }
 0x88d   : > { %2098 = vst.msk [vmem:[%s6441_s20 + $0x30] sm:$0xff] %vm8398_vm12, %v2085_v44  ;;  %v2077_v46 = vadd.f32 %v4308_v41, %v2076_v18 }
 0x88e   : > { %v4043_v27 = vpop.f32.mrf.mxu0 }
 0x88f   : > { %2096 = vst.msk [vmem:[%s6441_s20 + $0x20] sm:$0xff] %vm8399_vm8, %v2077_v46  ;;  %v2088_v47 = vadd.f32 %v4308_v41, %v4043_v27 }
 0x890   : > { %v2079_v16 = vpop.f32.mrf.mxu0 }
 0x891   : > { %2099 = vst.msk [vmem:[%s6441_s20 + $0x38] sm:$0xff] %vm8400_vm0, %v2088_v47  ;;  %v2080_v11 = vadd.f32 %v4308_v41, %v2079_v16 }
 0x893   : > { %2097 = vst.msk [vmem:[%s6441_s20 + $0x28] sm:$0xff] %vm8401_vm10, %v2080_v11 }
 0x897   : > { %v3851_v14 = vpop.f32.mrf.mxu1 }
 0x898   : > { %v3852_v58 = vadd.f32 %v7321_v55, %v3851_v14 }
 0x899   : > { %v3853_v51 = vpop.f32.mrf.mxu1 }
 0x89a   : > { %3864 = vst.msk [vmem:[%s6441_s20 + $0x70] sm:$0xff] %vm8402_vm2, %v3852_v58 }
 0x89b   : > { %v3854_v43 = vpop.f32.mrf.mxu1 }
 0x89c   : > { %v3855_v38 = vadd.f32 %v7321_v55, %v3854_v43 }
 0x89d   : > { %v3856_v56 = vpop.f32.mrf.mxu1 }
 0x89e   : > { %3865 = vst.msk [vmem:[%s6441_s20 + $0x78] sm:$0xff] %vm8403_vm6, %v3855_v38 }
 0x89f PF: > { %s17_s24 = sadd.s32 1, %s4315_s24  }
 0x8a0   : > { %p14_p4 = scmp.ge.s32.totalorder %s17_s24, 4  }
 0x8a2   :  { %16 = sbr.rel (!%p14_p4) target bundleno = 1 (0x1), region = 87 }

</bundles_post_ra>
